<compile_context>
chip_gen: v6e
topology: v6e:2x2x1
jax: 0.10.0
libtpu: 0.0.40
codegen_flags: <defaults>
</compile_context>

<pallas_src>
import jax
import jax.numpy as jnp
from jax import lax
from jax.experimental import pallas as pl
from jax.experimental.pallas import tpu as pltpu


# ---------------------------------------------------------------------------
# Fused Pallas kernel: whole ColorPredictor forward for a tile of TB samples.
#
# Data layout inside the kernel (per sample):
#   input   x_ref[t]            : (32, 128)   lanes = w*3 + ci   (lanes 96.. zero)
#   conv1   C1 = c1_ref[t]      : (28, 256)   [oh,      co*28 + ow]       (168 real)
#   pool1   P1 = p1_ref[t]      : (28, 256)   pooled (oh2,ow2,co) at [2*oh2, co*28+2*ow2]
#   conv2   C2 = c2_ref[t]      : (20, 256)   [p=2*oh', co2*10 + ow']     (160 real)
#   pool2   P2 = p2_ref[t]      : (20, 256)   pooled (oh2',ow2',co2) at [4*oh2', co2*10+2*ow2']
#   output  out_ref[t]          : (128,)      col 0 = sigmoid(reg2), rest padding
# All GEMM weights are pre-packed so that a plain (M,K)x(K,N) 2-D matmul with
# K % 128 == 0 and N in {128,256} implements the convolution / gather exactly.
# ---------------------------------------------------------------------------
def _fused_forward_kernel(x_ref, w1_ref, b1_ref, w2_ref, b2_ref,
                          wf1_ref, bf1_ref, wr1_ref, br1_ref, wr2_ref, br2_ref,
                          out_ref,
                          c1_ref, p1_ref, c2_ref, p2_ref):
    tb = x_ref.shape[0]

    for t in range(tb):
        # ---------------- conv1 + ReLU  (row-unfold GEMM, K = 5*128 = 640) ---
        rows5 = jnp.concatenate(
            [x_ref[t, dy:dy + 28, :] for dy in range(5)], axis=1)        # (28, 640)
        y1 = jnp.dot(rows5, w1_ref[...],
                     preferred_element_type=jnp.float32) + b1_ref[...]   # (28, 256)
        y1 = jnp.maximum(y1, 0.0)
        c1_ref[t] = y1

        # ---------------- 2x2 max-pool #1 (shifted-window max in VMEM) -------
        p1_ref[t] = jnp.zeros((28, 256), jnp.float32)   # keep unread margins finite/zero
        p1 = jnp.maximum(
            jnp.maximum(c1_ref[t, 0:27, 0:255], c1_ref[t, 0:27, 1:256]),
            jnp.maximum(c1_ref[t, 1:28, 0:255], c1_ref[t, 1:28, 1:256]))
        p1_ref[t, 0:27, 0:255] = p1

        # ---------------- conv2 + ReLU  (row-unfold GEMM, K = 5*256 = 1280) --
        rows5_2 = jnp.concatenate(
            [p1_ref[t, 2 * dy:2 * dy + 20, :] for dy in range(5)], axis=1)  # (20, 1280)
        y2 = jnp.dot(rows5_2, w2_ref[...],
                     preferred_element_type=jnp.float32) + b2_ref[...]      # (20, 256)
        y2 = jnp.maximum(y2, 0.0)
        c2_ref[t] = y2

        # ---------------- 2x2 max-pool #2 ------------------------------------
        p2_ref[t] = jnp.zeros((20, 256), jnp.float32)
        p2 = jnp.maximum(
            jnp.maximum(c2_ref[t, 0:18, 0:255], c2_ref[t, 0:18, 1:256]),
            jnp.maximum(c2_ref[t, 2:20, 0:255], c2_ref[t, 2:20, 1:256]))
        p2_ref[t, 0:18, 0:255] = p2

        # ------------- fused FC stack: fc1 -> relu -> reg1 -> relu -> reg2 ---
        feat = jnp.concatenate(
            [p2_ref[t, 4 * r:4 * r + 1, :] for r in range(5)], axis=1)      # (1, 1280)
        z = jnp.maximum(jnp.dot(feat, wf1_ref[...],
                                preferred_element_type=jnp.float32) + bf1_ref[...], 0.0)
        h = jnp.maximum(jnp.dot(z, wr1_ref[...],
                                preferred_element_type=jnp.float32) + br1_ref[...], 0.0)
        o = jax.nn.sigmoid(jnp.dot(h, wr2_ref[...],
                                   preferred_element_type=jnp.float32) + br2_ref[...])
        out_ref[t:t + 1, :] = o.astype(out_ref.dtype)                       # (1, 128)


# ---------------------------------------------------------------------------
# One-time weight re-packing (host / plain-XLA side).
#
#   conv1:  W1[dy*128 + (ow+dx)*3 + ci, co*28 + ow]          = w1[dy,dx,ci,co]
#   conv2:  W2[dy*256 + co*28 + 2*(ow'+dx), co2*10 + ow']    = w2[dy,dx,co,co2]
#   fc1:    Wf[r*256  + co2*10 + 2*ow2',  j] = fc1_w[co2*25 + r*5 + ow2', j]
# (all other rows/cols zero -> padded lanes stay exactly zero through ReLU)
# ---------------------------------------------------------------------------
def prepare_params(params):
    f32 = jnp.float32
    w1, b1 = params["conv1_w"], params["conv1_b"]
    w2, b2 = params["conv2_w"], params["conv2_b"]

    dy, dx, ci, co, ow = jnp.meshgrid(jnp.arange(5), jnp.arange(5), jnp.arange(3),
                                      jnp.arange(6), jnp.arange(28), indexing="ij")
    k = dy * 128 + (ow + dx) * 3 + ci
    n = co * 28 + ow
    w1big = jnp.zeros((640, 256), f32).at[k.ravel(), n.ravel()].set(w1[dy, dx, ci, co].ravel())
    cob, owb = jnp.meshgrid(jnp.arange(6), jnp.arange(28), indexing="ij")
    b1big = jnp.zeros((256,), f32).at[(cob * 28 + owb).ravel()].set(b1[cob].ravel()).reshape(1, 256)

    dy, dx, co, co2, owp = jnp.meshgrid(jnp.arange(5), jnp.arange(5), jnp.arange(6),
                                        jnp.arange(16), jnp.arange(10), indexing="ij")
    k = dy * 256 + co * 28 + 2 * (owp + dx)
    n = co2 * 10 + owp
    w2big = jnp.zeros((1280, 256), f32).at[k.ravel(), n.ravel()].set(w2[dy, dx, co, co2].ravel())
    c2b, owb2 = jnp.meshgrid(jnp.arange(16), jnp.arange(10), indexing="ij")
    b2big = jnp.zeros((256,), f32).at[(c2b * 10 + owb2).ravel()].set(b2[c2b].ravel()).reshape(1, 256)

    co2, r, ow2 = jnp.meshgrid(jnp.arange(16), jnp.arange(5), jnp.arange(5), indexing="ij")
    k = (r * 256 + co2 * 10 + 2 * ow2).ravel()
    f = (co2 * 25 + r * 5 + ow2).ravel()
    fc1p = jnp.pad(params["fc1_w"], ((0, 0), (0, 8)))                       # (400, 128)
    wf1 = jnp.zeros((1280, 128), f32).at[k].set(fc1p[f])
    bf1 = jnp.pad(params["fc1_b"], (0, 8)).reshape(1, 128)

    wr1 = jnp.zeros((128, 128), f32).at[:120, :84].set(params["reg1_w"])
    br1 = jnp.pad(params["reg1_b"], (0, 44)).reshape(1, 128)
    wr2 = jnp.zeros((128, 128), f32).at[:84, :1].set(params["reg2_w"])
    br2 = jnp.pad(params["reg2_b"], (0, 127)).reshape(1, 128)

    return {"w1": w1big, "b1": b1big, "w2": w2big, "b2": b2big,
            "wf1": wf1, "bf1": bf1, "wr1": wr1, "br1": br1, "wr2": wr2, "br2": br2}


# ---------------------------------------------------------------------------
# pallas_call wrapper
# ---------------------------------------------------------------------------
def _fused_forward(x_pad, prep):
    b = x_pad.shape[0]
    tb = 8 if b % 8 == 0 else b           # batch tile per grid step
    grid = (b // tb,)

    names = ["w1", "b1", "w2", "b2", "wf1", "bf1", "wr1", "br1", "wr2", "br2"]
    weights = [prep[k] for k in names]

    def const_spec(a):                    # weights: whole array, resident across the grid
        zeros = (0,) * a.ndim
        return pl.BlockSpec(a.shape, lambda i: zeros)

    in_specs = ([pl.BlockSpec((tb, 32, 128), lambda i: (i, 0, 0))]
                + [const_spec(a) for a in weights])
    out_specs = pl.BlockSpec((tb, 128), lambda i: (i, 0))

    flops = 2 * (28 * 640 * 256 + 20 * 1280 * 256 + 1280 * 128 + 2 * 128 * 128) * b
    bytes_accessed = int(x_pad.size * 4 + sum(a.size * 4 for a in weights) + b * 128 * 4)

    return pl.pallas_call(
        _fused_forward_kernel,
        out_shape=jax.ShapeDtypeStruct((b, 128), jnp.float32),
        grid_spec=pltpu.PrefetchScalarGridSpec(
            num_scalar_prefetch=0,
            grid=grid,
            in_specs=in_specs,
            out_specs=out_specs,
            scratch_shapes=[
                pltpu.VMEM((tb, 28, 256), jnp.float32),   # conv1 activations
                pltpu.VMEM((tb, 28, 256), jnp.float32),   # pooled-1 staging
                pltpu.VMEM((tb, 20, 256), jnp.float32),   # conv2 activations
                pltpu.VMEM((tb, 20, 256), jnp.float32),   # pooled-2 staging
            ]),
        compiler_params=pltpu.CompilerParams(
            dimension_semantics=("parallel",),            # v7x: shard batch over 2 TCs
            vmem_limit_bytes=32 * 1024 * 1024),           # ~4 MiB used; fits v7x 64 MiB
        cost_estimate=pl.CostEstimate(flops=flops,
                                      transcendentals=128 * b,
                                      bytes_accessed=bytes_accessed),
    )(x_pad, *weights)


@jax.jit
def color_predictor_forward(x_nchw, prep):
    """x_nchw: (B, 3, 32, 32) float32 -> (B, 1) sigmoid output."""
    b = x_nchw.shape[0]
    x = jnp.transpose(x_nchw, (0, 2, 3, 1)).reshape(b, 32, 96)   # NHWC, rows flattened (w*3+ci)
    x = jnp.pad(x, ((0, 0), (0, 0), (0, 32)))                    # lane-pad 96 -> 128 with zeros
    out = _fused_forward(x, prep)                                # (B, 128), col 0 is the result
    return out[:, :1]


# ---------------------------------------------------------------------------
# Params + pure-JAX reference (for a correctness check in main)
# ---------------------------------------------------------------------------
def init_params():
    key = jax.random.PRNGKey(42)
    ks = jax.random.split(key, 8)

    def lin(k, shape, fan_in):
        return jax.random.normal(k, shape, jnp.float32) * (1.0 / jnp.sqrt(fan_in))

    return {
        "conv1_w": lin(ks[0], (5, 5, 3, 6), 75.0),   "conv1_b": jnp.zeros((6,), jnp.float32),
        "conv2_w": lin(ks[1], (5, 5, 6, 16), 150.0), "conv2_b": jnp.zeros((16,), jnp.float32),
        "fc1_w":   lin(ks[2], (400, 120), 400.0),    "fc1_b":   jnp.zeros((120,), jnp.float32),
        "reg1_w":  lin(ks[3], (120, 84), 120.0),     "reg1_b":  jnp.zeros((84,), jnp.float32),
        "reg2_w":  lin(ks[4], (84, 1), 84.0),        "reg2_b":  jnp.zeros((1,), jnp.float32),
    }


def reference_forward(x_nchw, params):
    hp = lax.Precision.HIGHEST
    dn = ("NHWC", "HWIO", "NHWC")
    x = jnp.transpose(x_nchw, (0, 2, 3, 1))
    y = lax.conv_general_dilated(x, params["conv1_w"], (1, 1), "VALID",
                                 dimension_numbers=dn, precision=hp)
    y = jnp.maximum(y + params["conv1_b"], 0.0)
    y = lax.reduce_window(y, -jnp.inf, lax.max, (1, 2, 2, 1), (1, 2, 2, 1), "VALID")
    y = lax.conv_general_dilated(y, params["conv2_w"], (1, 1), "VALID",
                                 dimension_numbers=dn, precision=hp)
    y = jnp.maximum(y + params["conv2_b"], 0.0)
    y = lax.reduce_window(y, -jnp.inf, lax.max, (1, 2, 2, 1), (1, 2, 2, 1), "VALID")
    feat = jnp.transpose(y, (0, 3, 1, 2)).reshape(x.shape[0], -1)       # NCHW flatten order
    z = jnp.maximum(jnp.dot(feat, params["fc1_w"], precision=hp) + params["fc1_b"], 0.0)
    h = jnp.maximum(jnp.dot(z, params["reg1_w"], precision=hp) + params["reg1_b"], 0.0)
    return jax.nn.sigmoid(jnp.dot(h, params["reg2_w"], precision=hp) + params["reg2_b"])


if __name__ == "__main__":
    params = init_params()
    prep = prepare_params(params)

    x = jax.random.normal(jax.random.PRNGKey(0), (2, 3, 32, 32), jnp.float32)
    y = color_predictor_forward(x, prep)
    jax.block_until_ready(y)

    assert y.shape == (2, 1)
    assert bool(jnp.all((y >= 0.0) & (y <= 1.0)))
    y_ref = reference_forward(x, params)
    err = float(jnp.max(jnp.abs(y - y_ref)))
    assert err < 2e-2, f"mismatch vs reference: {err}"
    print("KERNEL_OK")
</pallas_src>

<mosaic_0001>
module attributes {stable_mosaic.version = 11 : i64} {
  func.func @_fused_forward_kernel(%arg0: i32, %arg1: memref<2x32x128xf32, #tpu.memory_space<vmem>>, %arg2: memref<640x256xf32, #tpu.memory_space<vmem>>, %arg3: memref<1x256xf32, #tpu.memory_space<vmem>>, %arg4: memref<1280x256xf32, #tpu.memory_space<vmem>>, %arg5: memref<1x256xf32, #tpu.memory_space<vmem>>, %arg6: memref<1280x128xf32, #tpu.memory_space<vmem>>, %arg7: memref<1x128xf32, #tpu.memory_space<vmem>>, %arg8: memref<128x128xf32, #tpu.memory_space<vmem>>, %arg9: memref<1x128xf32, #tpu.memory_space<vmem>>, %arg10: memref<128x128xf32, #tpu.memory_space<vmem>>, %arg11: memref<1x128xf32, #tpu.memory_space<vmem>>, %arg12: memref<2x128xf32, #tpu.memory_space<vmem>>, %arg13: memref<2x28x256xf32, #tpu.memory_space<vmem>>, %arg14: memref<2x28x256xf32, #tpu.memory_space<vmem>>, %arg15: memref<2x20x256xf32, #tpu.memory_space<vmem>>, %arg16: memref<2x20x256xf32, #tpu.memory_space<vmem>>) attributes {dimension_semantics = [#tpu.dimension_semantics<parallel>], iteration_bounds = array<i64: 1>, scalar_prefetch = 0 : i64, scratch_operands = 4 : i64, tpu.core_type = #tpu.core_type<tc>, window_params = [{transform_indices = @transform_0, window_bounds = array<i64: 2, 32, 128>}, {pipeline_mode = #tpu.pipeline_mode<synchronous>, transform_indices = @transform_1, window_bounds = array<i64: 640, 256>}, {pipeline_mode = #tpu.pipeline_mode<synchronous>, transform_indices = @transform_2, window_bounds = array<i64: 1, 256>}, {pipeline_mode = #tpu.pipeline_mode<synchronous>, transform_indices = @transform_3, window_bounds = array<i64: 1280, 256>}, {pipeline_mode = #tpu.pipeline_mode<synchronous>, transform_indices = @transform_4, window_bounds = array<i64: 1, 256>}, {pipeline_mode = #tpu.pipeline_mode<synchronous>, transform_indices = @transform_5, window_bounds = array<i64: 1280, 128>}, {pipeline_mode = #tpu.pipeline_mode<synchronous>, transform_indices = @transform_6, window_bounds = array<i64: 1, 128>}, {pipeline_mode = #tpu.pipeline_mode<synchronous>, transform_indices = @transform_7, window_bounds = array<i64: 128, 128>}, {pipeline_mode = #tpu.pipeline_mode<synchronous>, transform_indices = @transform_8, window_bounds = array<i64: 1, 128>}, {pipeline_mode = #tpu.pipeline_mode<synchronous>, transform_indices = @transform_9, window_bounds = array<i64: 128, 128>}, {pipeline_mode = #tpu.pipeline_mode<synchronous>, transform_indices = @transform_10, window_bounds = array<i64: 1, 128>}, {transform_indices = @transform_11, window_bounds = array<i64: 2, 128>}]} {
    %c0 = arith.constant 0 : index
    %c0_0 = arith.constant 0 : index
    %c0_1 = arith.constant 0 : index
    %0 = vector.load %arg1[%c0, %c0_0, %c0_1] : memref<2x32x128xf32, #tpu.memory_space<vmem>>, vector<1x28x128xf32>
    %1 = vector.shape_cast %0 : vector<1x28x128xf32> to vector<28x128xf32>
    %c0_2 = arith.constant 0 : index
    %c1 = arith.constant 1 : index
    %c0_3 = arith.constant 0 : index
    %2 = vector.load %arg1[%c0_2, %c1, %c0_3] : memref<2x32x128xf32, #tpu.memory_space<vmem>>, vector<1x28x128xf32>
    %3 = vector.shape_cast %2 : vector<1x28x128xf32> to vector<28x128xf32>
    %c0_4 = arith.constant 0 : index
    %c2 = arith.constant 2 : index
    %c0_5 = arith.constant 0 : index
    %4 = vector.load %arg1[%c0_4, %c2, %c0_5] : memref<2x32x128xf32, #tpu.memory_space<vmem>>, vector<1x28x128xf32>
    %5 = vector.shape_cast %4 : vector<1x28x128xf32> to vector<28x128xf32>
    %c0_6 = arith.constant 0 : index
    %c3 = arith.constant 3 : index
    %c0_7 = arith.constant 0 : index
    %6 = vector.load %arg1[%c0_6, %c3, %c0_7] : memref<2x32x128xf32, #tpu.memory_space<vmem>>, vector<1x28x128xf32>
    %7 = vector.shape_cast %6 : vector<1x28x128xf32> to vector<28x128xf32>
    %c0_8 = arith.constant 0 : index
    %c4 = arith.constant 4 : index
    %c0_9 = arith.constant 0 : index
    %8 = vector.load %arg1[%c0_8, %c4, %c0_9] : memref<2x32x128xf32, #tpu.memory_space<vmem>>, vector<1x28x128xf32>
    %9 = vector.shape_cast %8 : vector<1x28x128xf32> to vector<28x128xf32>
    %10 = tpu.concatenate %1, %3, %5, %7, %9 in 1 : vector<28x128xf32>, vector<28x128xf32>, vector<28x128xf32>, vector<28x128xf32>, vector<28x128xf32> -> vector<28x640xf32>
    %c0_10 = arith.constant 0 : index
    %c0_11 = arith.constant 0 : index
    %11 = vector.load %arg2[%c0_10, %c0_11] : memref<640x256xf32, #tpu.memory_space<vmem>>, vector<640x256xf32>
    %cst = arith.constant dense<0.000000e+00> : vector<28x256xf32>
    %12 = tpu.matmul %10, %11, %cst {dimension_numbers = #tpu.dot_dimension_numbers<[1], [0], [0], [1], [0, 0, 1, 1], [], []>} : vector<28x640xf32>, vector<640x256xf32>, vector<28x256xf32> -> vector<28x256xf32>
    %c0_12 = arith.constant 0 : index
    %c0_13 = arith.constant 0 : index
    %13 = vector.load %arg3[%c0_12, %c0_13] : memref<1x256xf32, #tpu.memory_space<vmem>>, vector<1x256xf32>
    %14 = vector.broadcast %13 : vector<1x256xf32> to vector<28x256xf32>
    %15 = arith.addf %12, %14 : vector<28x256xf32>
    %cst_14 = arith.constant 0.000000e+00 : f32
    %16 = vector.broadcast %cst_14 : f32 to vector<28x256xf32>
    %17 = arith.maximumf %15, %16 : vector<28x256xf32>
    %c0_15 = arith.constant 0 : index
    %c0_16 = arith.constant 0 : index
    %c0_17 = arith.constant 0 : index
    %18 = vector.load %arg13[%c0_15, %c0_16, %c0_17] : memref<2x28x256xf32, #tpu.memory_space<vmem>>, vector<1x28x256xf32>
    %19 = vector.shape_cast %18 : vector<1x28x256xf32> to vector<28x256xf32>
    %20 = vector.shape_cast %17 : vector<28x256xf32> to vector<1x28x256xf32>
    tpu.vector_store %arg13[%c0_15, %c0_16, %c0_17], %20 {strides = array<i32>} : memref<2x28x256xf32, #tpu.memory_space<vmem>>, vector<1x28x256xf32>,
    %cst_18 = arith.constant 0.000000e+00 : f32
    %21 = vector.broadcast %cst_18 : f32 to vector<28x256xf32>
    %c0_19 = arith.constant 0 : index
    %c0_20 = arith.constant 0 : index
    %c0_21 = arith.constant 0 : index
    %22 = vector.load %arg14[%c0_19, %c0_20, %c0_21] : memref<2x28x256xf32, #tpu.memory_space<vmem>>, vector<1x28x256xf32>
    %23 = vector.shape_cast %22 : vector<1x28x256xf32> to vector<28x256xf32>
    %24 = vector.shape_cast %21 : vector<28x256xf32> to vector<1x28x256xf32>
    tpu.vector_store %arg14[%c0_19, %c0_20, %c0_21], %24 {strides = array<i32>} : memref<2x28x256xf32, #tpu.memory_space<vmem>>, vector<1x28x256xf32>,
    %c0_22 = arith.constant 0 : index
    %c0_23 = arith.constant 0 : index
    %c0_24 = arith.constant 0 : index
    %25 = vector.load %arg13[%c0_22, %c0_23, %c0_24] : memref<2x28x256xf32, #tpu.memory_space<vmem>>, vector<1x27x255xf32>
    %26 = vector.shape_cast %25 : vector<1x27x255xf32> to vector<27x255xf32>
    %c0_25 = arith.constant 0 : index
    %c0_26 = arith.constant 0 : index
    %c1_27 = arith.constant 1 : index
    %27 = vector.load %arg13[%c0_25, %c0_26, %c1_27] : memref<2x28x256xf32, #tpu.memory_space<vmem>>, vector<1x27x255xf32>
    %28 = vector.shape_cast %27 : vector<1x27x255xf32> to vector<27x255xf32>
    %29 = arith.maximumf %26, %28 : vector<27x255xf32>
    %c0_28 = arith.constant 0 : index
    %c1_29 = arith.constant 1 : index
    %c0_30 = arith.constant 0 : index
    %30 = vector.load %arg13[%c0_28, %c1_29, %c0_30] : memref<2x28x256xf32, #tpu.memory_space<vmem>>, vector<1x27x255xf32>
    %31 = vector.shape_cast %30 : vector<1x27x255xf32> to vector<27x255xf32>
    %c0_31 = arith.constant 0 : index
    %c1_32 = arith.constant 1 : index
    %c1_33 = arith.constant 1 : index
    %32 = vector.load %arg13[%c0_31, %c1_32, %c1_33] : memref<2x28x256xf32, #tpu.memory_space<vmem>>, vector<1x27x255xf32>
    %33 = vector.shape_cast %32 : vector<1x27x255xf32> to vector<27x255xf32>
    %34 = arith.maximumf %31, %33 : vector<27x255xf32>
    %35 = arith.maximumf %29, %34 : vector<27x255xf32>
    %c0_34 = arith.constant 0 : index
    %c0_35 = arith.constant 0 : index
    %c0_36 = arith.constant 0 : index
    %36 = vector.load %arg14[%c0_34, %c0_35, %c0_36] : memref<2x28x256xf32, #tpu.memory_space<vmem>>, vector<1x27x255xf32>
    %37 = vector.shape_cast %36 : vector<1x27x255xf32> to vector<27x255xf32>
    %38 = vector.shape_cast %35 : vector<27x255xf32> to vector<1x27x255xf32>
    tpu.vector_store %arg14[%c0_34, %c0_35, %c0_36], %38 {strides = array<i32>} : memref<2x28x256xf32, #tpu.memory_space<vmem>>, vector<1x27x255xf32>,
    %c0_37 = arith.constant 0 : index
    %c0_38 = arith.constant 0 : index
    %c0_39 = arith.constant 0 : index
    %39 = vector.load %arg14[%c0_37, %c0_38, %c0_39] : memref<2x28x256xf32, #tpu.memory_space<vmem>>, vector<1x20x256xf32>
    %40 = vector.shape_cast %39 : vector<1x20x256xf32> to vector<20x256xf32>
    %c0_40 = arith.constant 0 : index
    %c2_41 = arith.constant 2 : index
    %c0_42 = arith.constant 0 : index
    %41 = vector.load %arg14[%c0_40, %c2_41, %c0_42] : memref<2x28x256xf32, #tpu.memory_space<vmem>>, vector<1x20x256xf32>
    %42 = vector.shape_cast %41 : vector<1x20x256xf32> to vector<20x256xf32>
    %c0_43 = arith.constant 0 : index
    %c4_44 = arith.constant 4 : index
    %c0_45 = arith.constant 0 : index
    %43 = vector.load %arg14[%c0_43, %c4_44, %c0_45] : memref<2x28x256xf32, #tpu.memory_space<vmem>>, vector<1x20x256xf32>
    %44 = vector.shape_cast %43 : vector<1x20x256xf32> to vector<20x256xf32>
    %c0_46 = arith.constant 0 : index
    %c6 = arith.constant 6 : index
    %c0_47 = arith.constant 0 : index
    %45 = vector.load %arg14[%c0_46, %c6, %c0_47] : memref<2x28x256xf32, #tpu.memory_space<vmem>>, vector<1x20x256xf32>
    %46 = vector.shape_cast %45 : vector<1x20x256xf32> to vector<20x256xf32>
    %c0_48 = arith.constant 0 : index
    %c8 = arith.constant 8 : index
    %c0_49 = arith.constant 0 : index
    %47 = vector.load %arg14[%c0_48, %c8, %c0_49] : memref<2x28x256xf32, #tpu.memory_space<vmem>>, vector<1x20x256xf32>
    %48 = vector.shape_cast %47 : vector<1x20x256xf32> to vector<20x256xf32>
    %49 = tpu.concatenate %40, %42, %44, %46, %48 in 1 : vector<20x256xf32>, vector<20x256xf32>, vector<20x256xf32>, vector<20x256xf32>, vector<20x256xf32> -> vector<20x1280xf32>
    %c0_50 = arith.constant 0 : index
    %c0_51 = arith.constant 0 : index
    %50 = vector.load %arg4[%c0_50, %c0_51] : memref<1280x256xf32, #tpu.memory_space<vmem>>, vector<1280x256xf32>
    %cst_52 = arith.constant dense<0.000000e+00> : vector<20x256xf32>
    %51 = tpu.matmul %49, %50, %cst_52 {dimension_numbers = #tpu.dot_dimension_numbers<[1], [0], [0], [1], [0, 0, 1, 1], [], []>} : vector<20x1280xf32>, vector<1280x256xf32>, vector<20x256xf32> -> vector<20x256xf32>
    %c0_53 = arith.constant 0 : index
    %c0_54 = arith.constant 0 : index
    %52 = vector.load %arg5[%c0_53, %c0_54] : memref<1x256xf32, #tpu.memory_space<vmem>>, vector<1x256xf32>
    %53 = vector.broadcast %52 : vector<1x256xf32> to vector<20x256xf32>
    %54 = arith.addf %51, %53 : vector<20x256xf32>
    %cst_55 = arith.constant 0.000000e+00 : f32
    %55 = vector.broadcast %cst_55 : f32 to vector<20x256xf32>
    %56 = arith.maximumf %54, %55 : vector<20x256xf32>
    %c0_56 = arith.constant 0 : index
    %c0_57 = arith.constant 0 : index
    %c0_58 = arith.constant 0 : index
    %57 = vector.load %arg15[%c0_56, %c0_57, %c0_58] : memref<2x20x256xf32, #tpu.memory_space<vmem>>, vector<1x20x256xf32>
    %58 = vector.shape_cast %57 : vector<1x20x256xf32> to vector<20x256xf32>
    %59 = vector.shape_cast %56 : vector<20x256xf32> to vector<1x20x256xf32>
    tpu.vector_store %arg15[%c0_56, %c0_57, %c0_58], %59 {strides = array<i32>} : memref<2x20x256xf32, #tpu.memory_space<vmem>>, vector<1x20x256xf32>,
    %cst_59 = arith.constant 0.000000e+00 : f32
    %60 = vector.broadcast %cst_59 : f32 to vector<20x256xf32>
    %c0_60 = arith.constant 0 : index
    %c0_61 = arith.constant 0 : index
    %c0_62 = arith.constant 0 : index
    %61 = vector.load %arg16[%c0_60, %c0_61, %c0_62] : memref<2x20x256xf32, #tpu.memory_space<vmem>>, vector<1x20x256xf32>
    %62 = vector.shape_cast %61 : vector<1x20x256xf32> to vector<20x256xf32>
    %63 = vector.shape_cast %60 : vector<20x256xf32> to vector<1x20x256xf32>
    tpu.vector_store %arg16[%c0_60, %c0_61, %c0_62], %63 {strides = array<i32>} : memref<2x20x256xf32, #tpu.memory_space<vmem>>, vector<1x20x256xf32>,
    %c0_63 = arith.constant 0 : index
    %c0_64 = arith.constant 0 : index
    %c0_65 = arith.constant 0 : index
    %64 = vector.load %arg15[%c0_63, %c0_64, %c0_65] : memref<2x20x256xf32, #tpu.memory_space<vmem>>, vector<1x18x255xf32>
    %65 = vector.shape_cast %64 : vector<1x18x255xf32> to vector<18x255xf32>
    %c0_66 = arith.constant 0 : index
    %c0_67 = arith.constant 0 : index
    %c1_68 = arith.constant 1 : index
    %66 = vector.load %arg15[%c0_66, %c0_67, %c1_68] : memref<2x20x256xf32, #tpu.memory_space<vmem>>, vector<1x18x255xf32>
    %67 = vector.shape_cast %66 : vector<1x18x255xf32> to vector<18x255xf32>
    %68 = arith.maximumf %65, %67 : vector<18x255xf32>
    %c0_69 = arith.constant 0 : index
    %c2_70 = arith.constant 2 : index
    %c0_71 = arith.constant 0 : index
    %69 = vector.load %arg15[%c0_69, %c2_70, %c0_71] : memref<2x20x256xf32, #tpu.memory_space<vmem>>, vector<1x18x255xf32>
    %70 = vector.shape_cast %69 : vector<1x18x255xf32> to vector<18x255xf32>
    %c0_72 = arith.constant 0 : index
    %c2_73 = arith.constant 2 : index
    %c1_74 = arith.constant 1 : index
    %71 = vector.load %arg15[%c0_72, %c2_73, %c1_74] : memref<2x20x256xf32, #tpu.memory_space<vmem>>, vector<1x18x255xf32>
    %72 = vector.shape_cast %71 : vector<1x18x255xf32> to vector<18x255xf32>
    %73 = arith.maximumf %70, %72 : vector<18x255xf32>
    %74 = arith.maximumf %68, %73 : vector<18x255xf32>
    %c0_75 = arith.constant 0 : index
    %c0_76 = arith.constant 0 : index
    %c0_77 = arith.constant 0 : index
    %75 = vector.load %arg16[%c0_75, %c0_76, %c0_77] : memref<2x20x256xf32, #tpu.memory_space<vmem>>, vector<1x18x255xf32>
    %76 = vector.shape_cast %75 : vector<1x18x255xf32> to vector<18x255xf32>
    %77 = vector.shape_cast %74 : vector<18x255xf32> to vector<1x18x255xf32>
    tpu.vector_store %arg16[%c0_75, %c0_76, %c0_77], %77 {strides = array<i32>} : memref<2x20x256xf32, #tpu.memory_space<vmem>>, vector<1x18x255xf32>,
    %c0_78 = arith.constant 0 : index
    %c0_79 = arith.constant 0 : index
    %c0_80 = arith.constant 0 : index
    %78 = vector.load %arg16[%c0_78, %c0_79, %c0_80] : memref<2x20x256xf32, #tpu.memory_space<vmem>>, vector<1x1x256xf32>
    %79 = vector.shape_cast %78 : vector<1x1x256xf32> to vector<1x256xf32>
    %c0_81 = arith.constant 0 : index
    %c4_82 = arith.constant 4 : index
    %c0_83 = arith.constant 0 : index
    %80 = vector.load %arg16[%c0_81, %c4_82, %c0_83] : memref<2x20x256xf32, #tpu.memory_space<vmem>>, vector<1x1x256xf32>
    %81 = vector.shape_cast %80 : vector<1x1x256xf32> to vector<1x256xf32>
    %c0_84 = arith.constant 0 : index
    %c8_85 = arith.constant 8 : index
    %c0_86 = arith.constant 0 : index
    %82 = vector.load %arg16[%c0_84, %c8_85, %c0_86] : memref<2x20x256xf32, #tpu.memory_space<vmem>>, vector<1x1x256xf32>
    %83 = vector.shape_cast %82 : vector<1x1x256xf32> to vector<1x256xf32>
    %c0_87 = arith.constant 0 : index
    %c12 = arith.constant 12 : index
    %c0_88 = arith.constant 0 : index
    %84 = vector.load %arg16[%c0_87, %c12, %c0_88] : memref<2x20x256xf32, #tpu.memory_space<vmem>>, vector<1x1x256xf32>
    %85 = vector.shape_cast %84 : vector<1x1x256xf32> to vector<1x256xf32>
    %c0_89 = arith.constant 0 : index
    %c16 = arith.constant 16 : index
    %c0_90 = arith.constant 0 : index
    %86 = vector.load %arg16[%c0_89, %c16, %c0_90] : memref<2x20x256xf32, #tpu.memory_space<vmem>>, vector<1x1x256xf32>
    %87 = vector.shape_cast %86 : vector<1x1x256xf32> to vector<1x256xf32>
    %88 = tpu.concatenate %79, %81, %83, %85, %87 in 1 : vector<1x256xf32>, vector<1x256xf32>, vector<1x256xf32>, vector<1x256xf32>, vector<1x256xf32> -> vector<1x1280xf32>
    %c0_91 = arith.constant 0 : index
    %c0_92 = arith.constant 0 : index
    %89 = vector.load %arg6[%c0_91, %c0_92] : memref<1280x128xf32, #tpu.memory_space<vmem>>, vector<1280x128xf32>
    %cst_93 = arith.constant dense<0.000000e+00> : vector<1x128xf32>
    %90 = tpu.matmul %88, %89, %cst_93 {dimension_numbers = #tpu.dot_dimension_numbers<[1], [0], [0], [1], [0, 0, 1, 1], [], []>} : vector<1x1280xf32>, vector<1280x128xf32>, vector<1x128xf32> -> vector<1x128xf32>
    %c0_94 = arith.constant 0 : index
    %c0_95 = arith.constant 0 : index
    %91 = vector.load %arg7[%c0_94, %c0_95] : memref<1x128xf32, #tpu.memory_space<vmem>>, vector<1x128xf32>
    %92 = arith.addf %90, %91 : vector<1x128xf32>
    %cst_96 = arith.constant 0.000000e+00 : f32
    %93 = vector.broadcast %cst_96 : f32 to vector<1x128xf32>
    %94 = arith.maximumf %92, %93 : vector<1x128xf32>
    %c0_97 = arith.constant 0 : index
    %c0_98 = arith.constant 0 : index
    %95 = vector.load %arg8[%c0_97, %c0_98] : memref<128x128xf32, #tpu.memory_space<vmem>>, vector<128x128xf32>
    %cst_99 = arith.constant dense<0.000000e+00> : vector<1x128xf32>
    %96 = tpu.matmul %94, %95, %cst_99 {dimension_numbers = #tpu.dot_dimension_numbers<[1], [0], [0], [1], [0, 0, 1, 1], [], []>} : vector<1x128xf32>, vector<128x128xf32>, vector<1x128xf32> -> vector<1x128xf32>
    %c0_100 = arith.constant 0 : index
    %c0_101 = arith.constant 0 : index
    %97 = vector.load %arg9[%c0_100, %c0_101] : memref<1x128xf32, #tpu.memory_space<vmem>>, vector<1x128xf32>
    %98 = arith.addf %96, %97 : vector<1x128xf32>
    %cst_102 = arith.constant 0.000000e+00 : f32
    %99 = vector.broadcast %cst_102 : f32 to vector<1x128xf32>
    %100 = arith.maximumf %98, %99 : vector<1x128xf32>
    %c0_103 = arith.constant 0 : index
    %c0_104 = arith.constant 0 : index
    %101 = vector.load %arg10[%c0_103, %c0_104] : memref<128x128xf32, #tpu.memory_space<vmem>>, vector<128x128xf32>
    %cst_105 = arith.constant dense<0.000000e+00> : vector<1x128xf32>
    %102 = tpu.matmul %100, %101, %cst_105 {dimension_numbers = #tpu.dot_dimension_numbers<[1], [0], [0], [1], [0, 0, 1, 1], [], []>} : vector<1x128xf32>, vector<128x128xf32>, vector<1x128xf32> -> vector<1x128xf32>
    %c0_106 = arith.constant 0 : index
    %c0_107 = arith.constant 0 : index
    %103 = vector.load %arg11[%c0_106, %c0_107] : memref<1x128xf32, #tpu.memory_space<vmem>>, vector<1x128xf32>
    %104 = arith.addf %102, %103 : vector<1x128xf32>
    %105 = arith.negf %104 : vector<1x128xf32>
    %106 = math.exp %105 : vector<1x128xf32>
    %cst_108 = arith.constant 1.000000e+00 : f32
    %107 = vector.broadcast %cst_108 : f32 to vector<1x128xf32>
    %108 = arith.addf %107, %106 : vector<1x128xf32>
    %109 = arith.divf %107, %108 : vector<1x128xf32>
    %c0_109 = arith.constant 0 : index
    %c0_110 = arith.constant 0 : index
    %110 = vector.load %arg12[%c0_109, %c0_110] : memref<2x128xf32, #tpu.memory_space<vmem>>, vector<1x128xf32>
    tpu.vector_store %arg12[%c0_109, %c0_110], %109 {strides = array<i32>} : memref<2x128xf32, #tpu.memory_space<vmem>>, vector<1x128xf32>,
    %c1_111 = arith.constant 1 : index
    %c0_112 = arith.constant 0 : index
    %c0_113 = arith.constant 0 : index
    %111 = vector.load %arg1[%c1_111, %c0_112, %c0_113] : memref<2x32x128xf32, #tpu.memory_space<vmem>>, vector<1x28x128xf32>
    %112 = vector.shape_cast %111 : vector<1x28x128xf32> to vector<28x128xf32>
    %c1_114 = arith.constant 1 : index
    %c1_115 = arith.constant 1 : index
    %c0_116 = arith.constant 0 : index
    %113 = vector.load %arg1[%c1_114, %c1_115, %c0_116] : memref<2x32x128xf32, #tpu.memory_space<vmem>>, vector<1x28x128xf32>
    %114 = vector.shape_cast %113 : vector<1x28x128xf32> to vector<28x128xf32>
    %c1_117 = arith.constant 1 : index
    %c2_118 = arith.constant 2 : index
    %c0_119 = arith.constant 0 : index
    %115 = vector.load %arg1[%c1_117, %c2_118, %c0_119] : memref<2x32x128xf32, #tpu.memory_space<vmem>>, vector<1x28x128xf32>
    %116 = vector.shape_cast %115 : vector<1x28x128xf32> to vector<28x128xf32>
    %c1_120 = arith.constant 1 : index
    %c3_121 = arith.constant 3 : index
    %c0_122 = arith.constant 0 : index
    %117 = vector.load %arg1[%c1_120, %c3_121, %c0_122] : memref<2x32x128xf32, #tpu.memory_space<vmem>>, vector<1x28x128xf32>
    %118 = vector.shape_cast %117 : vector<1x28x128xf32> to vector<28x128xf32>
    %c1_123 = arith.constant 1 : index
    %c4_124 = arith.constant 4 : index
    %c0_125 = arith.constant 0 : index
    %119 = vector.load %arg1[%c1_123, %c4_124, %c0_125] : memref<2x32x128xf32, #tpu.memory_space<vmem>>, vector<1x28x128xf32>
    %120 = vector.shape_cast %119 : vector<1x28x128xf32> to vector<28x128xf32>
    %121 = tpu.concatenate %112, %114, %116, %118, %120 in 1 : vector<28x128xf32>, vector<28x128xf32>, vector<28x128xf32>, vector<28x128xf32>, vector<28x128xf32> -> vector<28x640xf32>
    %c0_126 = arith.constant 0 : index
    %c0_127 = arith.constant 0 : index
    %122 = vector.load %arg2[%c0_126, %c0_127] : memref<640x256xf32, #tpu.memory_space<vmem>>, vector<640x256xf32>
    %cst_128 = arith.constant dense<0.000000e+00> : vector<28x256xf32>
    %123 = tpu.matmul %121, %122, %cst_128 {dimension_numbers = #tpu.dot_dimension_numbers<[1], [0], [0], [1], [0, 0, 1, 1], [], []>} : vector<28x640xf32>, vector<640x256xf32>, vector<28x256xf32> -> vector<28x256xf32>
    %c0_129 = arith.constant 0 : index
    %c0_130 = arith.constant 0 : index
    %124 = vector.load %arg3[%c0_129, %c0_130] : memref<1x256xf32, #tpu.memory_space<vmem>>, vector<1x256xf32>
    %125 = vector.broadcast %124 : vector<1x256xf32> to vector<28x256xf32>
    %126 = arith.addf %123, %125 : vector<28x256xf32>
    %cst_131 = arith.constant 0.000000e+00 : f32
    %127 = vector.broadcast %cst_131 : f32 to vector<28x256xf32>
    %128 = arith.maximumf %126, %127 : vector<28x256xf32>
    %c1_132 = arith.constant 1 : index
    %c0_133 = arith.constant 0 : index
    %c0_134 = arith.constant 0 : index
    %129 = vector.load %arg13[%c1_132, %c0_133, %c0_134] : memref<2x28x256xf32, #tpu.memory_space<vmem>>, vector<1x28x256xf32>
    %130 = vector.shape_cast %129 : vector<1x28x256xf32> to vector<28x256xf32>
    %131 = vector.shape_cast %128 : vector<28x256xf32> to vector<1x28x256xf32>
    tpu.vector_store %arg13[%c1_132, %c0_133, %c0_134], %131 {strides = array<i32>} : memref<2x28x256xf32, #tpu.memory_space<vmem>>, vector<1x28x256xf32>,
    %cst_135 = arith.constant 0.000000e+00 : f32
    %132 = vector.broadcast %cst_135 : f32 to vector<28x256xf32>
    %c1_136 = arith.constant 1 : index
    %c0_137 = arith.constant 0 : index
    %c0_138 = arith.constant 0 : index
    %133 = vector.load %arg14[%c1_136, %c0_137, %c0_138] : memref<2x28x256xf32, #tpu.memory_space<vmem>>, vector<1x28x256xf32>
    %134 = vector.shape_cast %133 : vector<1x28x256xf32> to vector<28x256xf32>
    %135 = vector.shape_cast %132 : vector<28x256xf32> to vector<1x28x256xf32>
    tpu.vector_store %arg14[%c1_136, %c0_137, %c0_138], %135 {strides = array<i32>} : memref<2x28x256xf32, #tpu.memory_space<vmem>>, vector<1x28x256xf32>,
    %c1_139 = arith.constant 1 : index
    %c0_140 = arith.constant 0 : index
    %c0_141 = arith.constant 0 : index
    %136 = vector.load %arg13[%c1_139, %c0_140, %c0_141] : memref<2x28x256xf32, #tpu.memory_space<vmem>>, vector<1x27x255xf32>
    %137 = vector.shape_cast %136 : vector<1x27x255xf32> to vector<27x255xf32>
    %c1_142 = arith.constant 1 : index
    %c0_143 = arith.constant 0 : index
    %c1_144 = arith.constant 1 : index
    %138 = vector.load %arg13[%c1_142, %c0_143, %c1_144] : memref<2x28x256xf32, #tpu.memory_space<vmem>>, vector<1x27x255xf32>
    %139 = vector.shape_cast %138 : vector<1x27x255xf32> to vector<27x255xf32>
    %140 = arith.maximumf %137, %139 : vector<27x255xf32>
    %c1_145 = arith.constant 1 : index
    %c1_146 = arith.constant 1 : index
    %c0_147 = arith.constant 0 : index
    %141 = vector.load %arg13[%c1_145, %c1_146, %c0_147] : memref<2x28x256xf32, #tpu.memory_space<vmem>>, vector<1x27x255xf32>
    %142 = vector.shape_cast %141 : vector<1x27x255xf32> to vector<27x255xf32>
    %c1_148 = arith.constant 1 : index
    %c1_149 = arith.constant 1 : index
    %c1_150 = arith.constant 1 : index
    %143 = vector.load %arg13[%c1_148, %c1_149, %c1_150] : memref<2x28x256xf32, #tpu.memory_space<vmem>>, vector<1x27x255xf32>
    %144 = vector.shape_cast %143 : vector<1x27x255xf32> to vector<27x255xf32>
    %145 = arith.maximumf %142, %144 : vector<27x255xf32>
    %146 = arith.maximumf %140, %145 : vector<27x255xf32>
    %c1_151 = arith.constant 1 : index
    %c0_152 = arith.constant 0 : index
    %c0_153 = arith.constant 0 : index
    %147 = vector.load %arg14[%c1_151, %c0_152, %c0_153] : memref<2x28x256xf32, #tpu.memory_space<vmem>>, vector<1x27x255xf32>
    %148 = vector.shape_cast %147 : vector<1x27x255xf32> to vector<27x255xf32>
    %149 = vector.shape_cast %146 : vector<27x255xf32> to vector<1x27x255xf32>
    tpu.vector_store %arg14[%c1_151, %c0_152, %c0_153], %149 {strides = array<i32>} : memref<2x28x256xf32, #tpu.memory_space<vmem>>, vector<1x27x255xf32>,
    %c1_154 = arith.constant 1 : index
    %c0_155 = arith.constant 0 : index
    %c0_156 = arith.constant 0 : index
    %150 = vector.load %arg14[%c1_154, %c0_155, %c0_156] : memref<2x28x256xf32, #tpu.memory_space<vmem>>, vector<1x20x256xf32>
    %151 = vector.shape_cast %150 : vector<1x20x256xf32> to vector<20x256xf32>
    %c1_157 = arith.constant 1 : index
    %c2_158 = arith.constant 2 : index
    %c0_159 = arith.constant 0 : index
    %152 = vector.load %arg14[%c1_157, %c2_158, %c0_159] : memref<2x28x256xf32, #tpu.memory_space<vmem>>, vector<1x20x256xf32>
    %153 = vector.shape_cast %152 : vector<1x20x256xf32> to vector<20x256xf32>
    %c1_160 = arith.constant 1 : index
    %c4_161 = arith.constant 4 : index
    %c0_162 = arith.constant 0 : index
    %154 = vector.load %arg14[%c1_160, %c4_161, %c0_162] : memref<2x28x256xf32, #tpu.memory_space<vmem>>, vector<1x20x256xf32>
    %155 = vector.shape_cast %154 : vector<1x20x256xf32> to vector<20x256xf32>
    %c1_163 = arith.constant 1 : index
    %c6_164 = arith.constant 6 : index
    %c0_165 = arith.constant 0 : index
    %156 = vector.load %arg14[%c1_163, %c6_164, %c0_165] : memref<2x28x256xf32, #tpu.memory_space<vmem>>, vector<1x20x256xf32>
    %157 = vector.shape_cast %156 : vector<1x20x256xf32> to vector<20x256xf32>
    %c1_166 = arith.constant 1 : index
    %c8_167 = arith.constant 8 : index
    %c0_168 = arith.constant 0 : index
    %158 = vector.load %arg14[%c1_166, %c8_167, %c0_168] : memref<2x28x256xf32, #tpu.memory_space<vmem>>, vector<1x20x256xf32>
    %159 = vector.shape_cast %158 : vector<1x20x256xf32> to vector<20x256xf32>
    %160 = tpu.concatenate %151, %153, %155, %157, %159 in 1 : vector<20x256xf32>, vector<20x256xf32>, vector<20x256xf32>, vector<20x256xf32>, vector<20x256xf32> -> vector<20x1280xf32>
    %c0_169 = arith.constant 0 : index
    %c0_170 = arith.constant 0 : index
    %161 = vector.load %arg4[%c0_169, %c0_170] : memref<1280x256xf32, #tpu.memory_space<vmem>>, vector<1280x256xf32>
    %cst_171 = arith.constant dense<0.000000e+00> : vector<20x256xf32>
    %162 = tpu.matmul %160, %161, %cst_171 {dimension_numbers = #tpu.dot_dimension_numbers<[1], [0], [0], [1], [0, 0, 1, 1], [], []>} : vector<20x1280xf32>, vector<1280x256xf32>, vector<20x256xf32> -> vector<20x256xf32>
    %c0_172 = arith.constant 0 : index
    %c0_173 = arith.constant 0 : index
    %163 = vector.load %arg5[%c0_172, %c0_173] : memref<1x256xf32, #tpu.memory_space<vmem>>, vector<1x256xf32>
    %164 = vector.broadcast %163 : vector<1x256xf32> to vector<20x256xf32>
    %165 = arith.addf %162, %164 : vector<20x256xf32>
    %cst_174 = arith.constant 0.000000e+00 : f32
    %166 = vector.broadcast %cst_174 : f32 to vector<20x256xf32>
    %167 = arith.maximumf %165, %166 : vector<20x256xf32>
    %c1_175 = arith.constant 1 : index
    %c0_176 = arith.constant 0 : index
    %c0_177 = arith.constant 0 : index
    %168 = vector.load %arg15[%c1_175, %c0_176, %c0_177] : memref<2x20x256xf32, #tpu.memory_space<vmem>>, vector<1x20x256xf32>
    %169 = vector.shape_cast %168 : vector<1x20x256xf32> to vector<20x256xf32>
    %170 = vector.shape_cast %167 : vector<20x256xf32> to vector<1x20x256xf32>
    tpu.vector_store %arg15[%c1_175, %c0_176, %c0_177], %170 {strides = array<i32>} : memref<2x20x256xf32, #tpu.memory_space<vmem>>, vector<1x20x256xf32>,
    %cst_178 = arith.constant 0.000000e+00 : f32
    %171 = vector.broadcast %cst_178 : f32 to vector<20x256xf32>
    %c1_179 = arith.constant 1 : index
    %c0_180 = arith.constant 0 : index
    %c0_181 = arith.constant 0 : index
    %172 = vector.load %arg16[%c1_179, %c0_180, %c0_181] : memref<2x20x256xf32, #tpu.memory_space<vmem>>, vector<1x20x256xf32>
    %173 = vector.shape_cast %172 : vector<1x20x256xf32> to vector<20x256xf32>
    %174 = vector.shape_cast %171 : vector<20x256xf32> to vector<1x20x256xf32>
    tpu.vector_store %arg16[%c1_179, %c0_180, %c0_181], %174 {strides = array<i32>} : memref<2x20x256xf32, #tpu.memory_space<vmem>>, vector<1x20x256xf32>,
    %c1_182 = arith.constant 1 : index
    %c0_183 = arith.constant 0 : index
    %c0_184 = arith.constant 0 : index
    %175 = vector.load %arg15[%c1_182, %c0_183, %c0_184] : memref<2x20x256xf32, #tpu.memory_space<vmem>>, vector<1x18x255xf32>
    %176 = vector.shape_cast %175 : vector<1x18x255xf32> to vector<18x255xf32>
    %c1_185 = arith.constant 1 : index
    %c0_186 = arith.constant 0 : index
    %c1_187 = arith.constant 1 : index
    %177 = vector.load %arg15[%c1_185, %c0_186, %c1_187] : memref<2x20x256xf32, #tpu.memory_space<vmem>>, vector<1x18x255xf32>
    %178 = vector.shape_cast %177 : vector<1x18x255xf32> to vector<18x255xf32>
    %179 = arith.maximumf %176, %178 : vector<18x255xf32>
    %c1_188 = arith.constant 1 : index
    %c2_189 = arith.constant 2 : index
    %c0_190 = arith.constant 0 : index
    %180 = vector.load %arg15[%c1_188, %c2_189, %c0_190] : memref<2x20x256xf32, #tpu.memory_space<vmem>>, vector<1x18x255xf32>
    %181 = vector.shape_cast %180 : vector<1x18x255xf32> to vector<18x255xf32>
    %c1_191 = arith.constant 1 : index
    %c2_192 = arith.constant 2 : index
    %c1_193 = arith.constant 1 : index
    %182 = vector.load %arg15[%c1_191, %c2_192, %c1_193] : memref<2x20x256xf32, #tpu.memory_space<vmem>>, vector<1x18x255xf32>
    %183 = vector.shape_cast %182 : vector<1x18x255xf32> to vector<18x255xf32>
    %184 = arith.maximumf %181, %183 : vector<18x255xf32>
    %185 = arith.maximumf %179, %184 : vector<18x255xf32>
    %c1_194 = arith.constant 1 : index
    %c0_195 = arith.constant 0 : index
    %c0_196 = arith.constant 0 : index
    %186 = vector.load %arg16[%c1_194, %c0_195, %c0_196] : memref<2x20x256xf32, #tpu.memory_space<vmem>>, vector<1x18x255xf32>
    %187 = vector.shape_cast %186 : vector<1x18x255xf32> to vector<18x255xf32>
    %188 = vector.shape_cast %185 : vector<18x255xf32> to vector<1x18x255xf32>
    tpu.vector_store %arg16[%c1_194, %c0_195, %c0_196], %188 {strides = array<i32>} : memref<2x20x256xf32, #tpu.memory_space<vmem>>, vector<1x18x255xf32>,
    %c1_197 = arith.constant 1 : index
    %c0_198 = arith.constant 0 : index
    %c0_199 = arith.constant 0 : index
    %189 = vector.load %arg16[%c1_197, %c0_198, %c0_199] : memref<2x20x256xf32, #tpu.memory_space<vmem>>, vector<1x1x256xf32>
    %190 = vector.shape_cast %189 : vector<1x1x256xf32> to vector<1x256xf32>
    %c1_200 = arith.constant 1 : index
    %c4_201 = arith.constant 4 : index
    %c0_202 = arith.constant 0 : index
    %191 = vector.load %arg16[%c1_200, %c4_201, %c0_202] : memref<2x20x256xf32, #tpu.memory_space<vmem>>, vector<1x1x256xf32>
    %192 = vector.shape_cast %191 : vector<1x1x256xf32> to vector<1x256xf32>
    %c1_203 = arith.constant 1 : index
    %c8_204 = arith.constant 8 : index
    %c0_205 = arith.constant 0 : index
    %193 = vector.load %arg16[%c1_203, %c8_204, %c0_205] : memref<2x20x256xf32, #tpu.memory_space<vmem>>, vector<1x1x256xf32>
    %194 = vector.shape_cast %193 : vector<1x1x256xf32> to vector<1x256xf32>
    %c1_206 = arith.constant 1 : index
    %c12_207 = arith.constant 12 : index
    %c0_208 = arith.constant 0 : index
    %195 = vector.load %arg16[%c1_206, %c12_207, %c0_208] : memref<2x20x256xf32, #tpu.memory_space<vmem>>, vector<1x1x256xf32>
    %196 = vector.shape_cast %195 : vector<1x1x256xf32> to vector<1x256xf32>
    %c1_209 = arith.constant 1 : index
    %c16_210 = arith.constant 16 : index
    %c0_211 = arith.constant 0 : index
    %197 = vector.load %arg16[%c1_209, %c16_210, %c0_211] : memref<2x20x256xf32, #tpu.memory_space<vmem>>, vector<1x1x256xf32>
    %198 = vector.shape_cast %197 : vector<1x1x256xf32> to vector<1x256xf32>
    %199 = tpu.concatenate %190, %192, %194, %196, %198 in 1 : vector<1x256xf32>, vector<1x256xf32>, vector<1x256xf32>, vector<1x256xf32>, vector<1x256xf32> -> vector<1x1280xf32>
    %c0_212 = arith.constant 0 : index
    %c0_213 = arith.constant 0 : index
    %200 = vector.load %arg6[%c0_212, %c0_213] : memref<1280x128xf32, #tpu.memory_space<vmem>>, vector<1280x128xf32>
    %cst_214 = arith.constant dense<0.000000e+00> : vector<1x128xf32>
    %201 = tpu.matmul %199, %200, %cst_214 {dimension_numbers = #tpu.dot_dimension_numbers<[1], [0], [0], [1], [0, 0, 1, 1], [], []>} : vector<1x1280xf32>, vector<1280x128xf32>, vector<1x128xf32> -> vector<1x128xf32>
    %c0_215 = arith.constant 0 : index
    %c0_216 = arith.constant 0 : index
    %202 = vector.load %arg7[%c0_215, %c0_216] : memref<1x128xf32, #tpu.memory_space<vmem>>, vector<1x128xf32>
    %203 = arith.addf %201, %202 : vector<1x128xf32>
    %cst_217 = arith.constant 0.000000e+00 : f32
    %204 = vector.broadcast %cst_217 : f32 to vector<1x128xf32>
    %205 = arith.maximumf %203, %204 : vector<1x128xf32>
    %c0_218 = arith.constant 0 : index
    %c0_219 = arith.constant 0 : index
    %206 = vector.load %arg8[%c0_218, %c0_219] : memref<128x128xf32, #tpu.memory_space<vmem>>, vector<128x128xf32>
    %cst_220 = arith.constant dense<0.000000e+00> : vector<1x128xf32>
    %207 = tpu.matmul %205, %206, %cst_220 {dimension_numbers = #tpu.dot_dimension_numbers<[1], [0], [0], [1], [0, 0, 1, 1], [], []>} : vector<1x128xf32>, vector<128x128xf32>, vector<1x128xf32> -> vector<1x128xf32>
    %c0_221 = arith.constant 0 : index
    %c0_222 = arith.constant 0 : index
    %208 = vector.load %arg9[%c0_221, %c0_222] : memref<1x128xf32, #tpu.memory_space<vmem>>, vector<1x128xf32>
    %209 = arith.addf %207, %208 : vector<1x128xf32>
    %cst_223 = arith.constant 0.000000e+00 : f32
    %210 = vector.broadcast %cst_223 : f32 to vector<1x128xf32>
    %211 = arith.maximumf %209, %210 : vector<1x128xf32>
    %c0_224 = arith.constant 0 : index
    %c0_225 = arith.constant 0 : index
    %212 = vector.load %arg10[%c0_224, %c0_225] : memref<128x128xf32, #tpu.memory_space<vmem>>, vector<128x128xf32>
    %cst_226 = arith.constant dense<0.000000e+00> : vector<1x128xf32>
    %213 = tpu.matmul %211, %212, %cst_226 {dimension_numbers = #tpu.dot_dimension_numbers<[1], [0], [0], [1], [0, 0, 1, 1], [], []>} : vector<1x128xf32>, vector<128x128xf32>, vector<1x128xf32> -> vector<1x128xf32>
    %c0_227 = arith.constant 0 : index
    %c0_228 = arith.constant 0 : index
    %214 = vector.load %arg11[%c0_227, %c0_228] : memref<1x128xf32, #tpu.memory_space<vmem>>, vector<1x128xf32>
    %215 = arith.addf %213, %214 : vector<1x128xf32>
    %216 = arith.negf %215 : vector<1x128xf32>
    %217 = math.exp %216 : vector<1x128xf32>
    %cst_229 = arith.constant 1.000000e+00 : f32
    %218 = vector.broadcast %cst_229 : f32 to vector<1x128xf32>
    %219 = arith.addf %218, %217 : vector<1x128xf32>
    %220 = arith.divf %218, %219 : vector<1x128xf32>
    %c1_230 = arith.constant 1 : index
    %c0_231 = arith.constant 0 : index
    %221 = vector.load %arg12[%c1_230, %c0_231] : memref<2x128xf32, #tpu.memory_space<vmem>>, vector<1x128xf32>
    tpu.vector_store %arg12[%c1_230, %c0_231], %220 {strides = array<i32>} : memref<2x128xf32, #tpu.memory_space<vmem>>, vector<1x128xf32>,
    return
  }
  func.func @transform_0(%arg0: i32) -> (i32, i32, i32) {
    %c0_i32 = arith.constant 0 : i32
    %c0_i32_0 = arith.constant 0 : i32
    %c0_i32_1 = arith.constant 0 : i32
    return %arg0, %c0_i32, %c0_i32_0 : i32, i32, i32
  }
  func.func @transform_1(%arg0: i32) -> (i32, i32) {
    %c0_i32 = arith.constant 0 : i32
    %c0_i32_0 = arith.constant 0 : i32
    %c0_i32_1 = arith.constant 0 : i32
    return %c0_i32, %c0_i32_0 : i32, i32
  }
  func.func @transform_2(%arg0: i32) -> (i32, i32) {
    %c0_i32 = arith.constant 0 : i32
    %c0_i32_0 = arith.constant 0 : i32
    %c0_i32_1 = arith.constant 0 : i32
    return %c0_i32, %c0_i32_0 : i32, i32
  }
  func.func @transform_3(%arg0: i32) -> (i32, i32) {
    %c0_i32 = arith.constant 0 : i32
    %c0_i32_0 = arith.constant 0 : i32
    %c0_i32_1 = arith.constant 0 : i32
    return %c0_i32, %c0_i32_0 : i32, i32
  }
  func.func @transform_4(%arg0: i32) -> (i32, i32) {
    %c0_i32 = arith.constant 0 : i32
    %c0_i32_0 = arith.constant 0 : i32
    %c0_i32_1 = arith.constant 0 : i32
    return %c0_i32, %c0_i32_0 : i32, i32
  }
  func.func @transform_5(%arg0: i32) -> (i32, i32) {
    %c0_i32 = arith.constant 0 : i32
    %c0_i32_0 = arith.constant 0 : i32
    %c0_i32_1 = arith.constant 0 : i32
    return %c0_i32, %c0_i32_0 : i32, i32
  }
  func.func @transform_6(%arg0: i32) -> (i32, i32) {
    %c0_i32 = arith.constant 0 : i32
    %c0_i32_0 = arith.constant 0 : i32
    %c0_i32_1 = arith.constant 0 : i32
    return %c0_i32, %c0_i32_0 : i32, i32
  }
  func.func @transform_7(%arg0: i32) -> (i32, i32) {
    %c0_i32 = arith.constant 0 : i32
    %c0_i32_0 = arith.constant 0 : i32
    %c0_i32_1 = arith.constant 0 : i32
    return %c0_i32, %c0_i32_0 : i32, i32
  }
  func.func @transform_8(%arg0: i32) -> (i32, i32) {
    %c0_i32 = arith.constant 0 : i32
    %c0_i32_0 = arith.constant 0 : i32
    %c0_i32_1 = arith.constant 0 : i32
    return %c0_i32, %c0_i32_0 : i32, i32
  }
  func.func @transform_9(%arg0: i32) -> (i32, i32) {
    %c0_i32 = arith.constant 0 : i32
    %c0_i32_0 = arith.constant 0 : i32
    %c0_i32_1 = arith.constant 0 : i32
    return %c0_i32, %c0_i32_0 : i32, i32
  }
  func.func @transform_10(%arg0: i32) -> (i32, i32) {
    %c0_i32 = arith.constant 0 : i32
    %c0_i32_0 = arith.constant 0 : i32
    %c0_i32_1 = arith.constant 0 : i32
    return %c0_i32, %c0_i32_0 : i32, i32
  }
  func.func @transform_11(%arg0: i32) -> (i32, i32) {
    %c0_i32 = arith.constant 0 : i32
    %c0_i32_0 = arith.constant 0 : i32
    return %arg0, %c0_i32 : i32, i32
  }
}

</mosaic_0001>

<bundles_post_ra>
// kernel: color_predictor_forward.1
= control target key start
LH: loop header
LB: loop body
LE: loop exit
PB: predicated region body
PF: predicated region fallthrough
CT: control target
= control target key end

     0   :  { %16 = vsyncpa [#allocation7], 0  ;;  %s6453_s0 = inlined_call_operand.vmem [shape: f32[2,32,128], index: 0, kind: input, shape index: {}]   ;;  %s6454_s1 = inlined_call_operand.hbm [shape: f32[640,256], index: 1, kind: input, shape index: {}]   ;;  %s6455_s2 = inlined_call_operand.hbm [shape: f32[1,256], index: 2, kind: input, shape index: {}]   ;;  %s6456_s3 = inlined_call_operand.hbm [shape: f32[1280,256], index: 3, kind: input, shape index: {}]   ;;  %s6457_s4 = inlined_call_operand.hbm [shape: f32[1,256], index: 4, kind: input, shape index: {}]   ;;  %s6458_s5 = inlined_call_operand.hbm [shape: f32[1280,128], index: 5, kind: input, shape index: {}]   ;;  %s6459_s6 = inlined_call_operand.hbm [shape: f32[1,128], index: 6, kind: input, shape index: {}]   ;;  %s6460_s7 = inlined_call_operand.hbm [shape: f32[128,128], index: 7, kind: input, shape index: {}]   ;;  %s6461_s8 = inlined_call_operand.hbm [shape: f32[1,128], index: 8, kind: input, shape index: {}]   ;;  %s6462_s9 = inlined_call_operand.hbm [shape: f32[128,128], index: 9, kind: input, shape index: {}]   ;;  %s6463_s10 = inlined_call_operand.hbm [shape: f32[1,128], index: 10, kind: input, shape index: {}]   ;;  %s6464_s11 = inlined_call_operand.vmem [shape: f32[2,128], index: 11, kind: output, shape index: {}]  }
   0x1   :  { %17 = vsyncpa [#allocation9], 0 }
   0x2   :  { %18 = vsyncpa [#allocation12], 0 }
   0x3   :  { %19 = vsyncpa [#allocation15], 0 }
   0x4   :  { %20 = vsyncpa [#allocation18], 0 }
   0x5   :  { %21 = vsyncpa [#allocation21], 0  ;;  %s5638_s17 = smov [#allocation8]   ;;  %s5639_s19 = smov [#allocation11]  }
   0x6   :  { %s42_s18 = sshll.u32 %s5638_s17, 4  ;;  %s64_s20 = sshll.u32 %s5639_s19, 4  ;;  %s43_s18 = int_to_ptr.vmem [resolvable:$true] %s42_s18  ;;  %s65_s20 = int_to_ptr.vmem [resolvable:$true] %s64_s20 }
   0x7   :  { %s5434_s21 = scalar_lea.vmem %s43_s18, 32  ;;  %p5439_p1 = scmp.lt.s32.totalorder %s43_s18, %s43_s18 }
   0x8   :  { %p5435_p0 = scmp.ne.s32.totalorder %s43_s18, %s5434_s21  ;;  %p5440_p2 = scmp.lt.s32.totalorder %s5434_s21, %s5434_s21 }
   0xa   :  { %p5441_p3 = por %p5440_p2, %p5439_p1 }
   0xc   :  { %p5442_p4 = pnand %p5441_p3, %p5435_p0 }
   0xe   :  { %5445 = shalt.err (!%p5442_p4)
}
   0xf   :  { %45 = dma.hbm_to_vmem [thread:$0]  %s6455_s2, 32, %s43_s18, [#allocation9]  }
  0x10   :  { %s5454_s24 = scalar_lea.vmem %s65_s20, 32  ;;  %p5459_p6 = scmp.lt.s32.totalorder %s65_s20, %s65_s20 }
  0x11   :  { %p5455_p5 = scmp.ne.s32.totalorder %s65_s20, %s5454_s24  ;;  %p5460_p7 = scmp.lt.s32.totalorder %s5454_s24, %s5454_s24 }
  0x13   :  { %p5461_p8 = por %p5460_p7, %p5459_p6 }
  0x15   :  { %p5462_p9 = pnand %p5461_p8, %p5455_p5 }
  0x17   :  { %5465 = shalt.err (!%p5462_p9)
}
  0x18   :  { %67 = dma.hbm_to_vmem [thread:$0]  %s6457_s4, 32, %s65_s20, [#allocation12]  }
  0x19   :  { %s5640_s27 = smov [#allocation14]   ;;  %s5641_s29 = smov [#allocation17]  }
  0x1a   :  { %s86_s28 = sshll.u32 %s5640_s27, 4  ;;  %s108_s30 = sshll.u32 %s5641_s29, 4  ;;  %s87_s28 = int_to_ptr.vmem [resolvable:$true] %s86_s28  ;;  %s109_s30 = int_to_ptr.vmem [resolvable:$true] %s108_s30 }
  0x1b   :  { %s5474_s12 = scalar_lea.vmem %s87_s28, 16  ;;  %s5478_s2 = scalar_lea.vmem %s87_s28, 32 }
  0x1c   :  { %p5475_p10 = scmp.ne.s32.totalorder %s87_s28, %s5474_s12  ;;  %p5479_p11 = scmp.lt.s32.totalorder %s87_s28, %s87_s28 }
  0x1d   :  { %p5480_p12 = scmp.lt.s32.totalorder %s5478_s2, %s5474_s12 }
  0x1f   :  { %p5481_p13 = por %p5480_p12, %p5479_p11 }
  0x21   :  { %p5482_p0 = pnand %p5481_p13, %p5475_p10 }
  0x23   :  { %5485 = shalt.err (!%p5482_p0)
}
  0x24   :  { %89 = dma.hbm_to_vmem [thread:$0]  %s6459_s6, 16, %s87_s28, [#allocation15]  }
  0x25   :  { %s5494_s15 = scalar_lea.vmem %s109_s30, 16  ;;  %s5498_s4 = scalar_lea.vmem %s109_s30, 32 }
  0x26   :  { %p5495_p1 = scmp.ne.s32.totalorder %s109_s30, %s5494_s15  ;;  %p5499_p2 = scmp.lt.s32.totalorder %s109_s30, %s109_s30 }
  0x27   :  { %p5500_p3 = scmp.lt.s32.totalorder %s5498_s4, %s5494_s15 }
  0x29   :  { %p5501_p4 = por %p5500_p3, %p5499_p2 }
  0x2b   :  { %p5502_p5 = pnand %p5501_p4, %p5495_p1 }
  0x2d   :  { %5505 = shalt.err (!%p5502_p5)
}
  0x2e   :  { %111 = dma.hbm_to_vmem [thread:$0]  %s6461_s8, 16, %s109_s30, [#allocation18]  }
  0x2f   :  { %s5642_s18 = smov [#allocation6]  }
  0x30   :  { %s29_s19 = sshll.u32 %s5642_s18, 4  ;;  %s30_s19 = int_to_ptr.vmem [resolvable:$true] %s29_s19 }
  0x31   :  { %s5514_s20 = scalar_lea.vmem %s30_s19, 20480  ;;  %p5519_p7 = scmp.lt.s32.totalorder %s30_s19, %s30_s19 }
  0x32   :  { %p5515_p6 = scmp.ne.s32.totalorder %s30_s19, %s5514_s20  ;;  %p5520_p8 = scmp.lt.s32.totalorder %s5514_s20, %s5514_s20 }
  0x34   :  { %p5521_p9 = por %p5520_p8, %p5519_p7 }
  0x36   :  { %p5522_p10 = pnand %p5521_p9, %p5515_p6 }
  0x38   :  { %5525 = shalt.err (!%p5522_p10)
}
  0x39   :  { %s5643_s6 = smov 256   ;;  %s5644_s21 = smov 16  }
  0x3a   :  { %35 = dma.hbm_to_vmem [thread:$0]  %s6454_s1, 20480, %s30_s19, [#allocation7], %s5643_s6, %s5643_s6, %s5644_s21  }
  0x3b   :  { %s5645_s24 = smov [#allocation10]   ;;  %s5646_s8 = smov [#allocation13]  }
  0x3c   :  { %s51_s25 = sshll.u32 %s5645_s24, 4  ;;  %s73_s26 = sshll.u32 %s5646_s8, 4  ;;  %s52_s25 = int_to_ptr.vmem [resolvable:$true] %s51_s25  ;;  %s74_s26 = int_to_ptr.vmem [resolvable:$true] %s73_s26 }
  0x3d   :  { %s5534_s27 = scalar_lea.vmem %s52_s25, 40960  ;;  %p5539_p12 = scmp.lt.s32.totalorder %s52_s25, %s52_s25 }
  0x3e   :  { %p5535_p11 = scmp.ne.s32.totalorder %s52_s25, %s5534_s27  ;;  %p5540_p13 = scmp.lt.s32.totalorder %s5534_s27, %s5534_s27 }
  0x40   :  { %p5541_p0 = por %p5540_p13, %p5539_p12 }
  0x42   :  { %p5542_p1 = pnand %p5541_p0, %p5535_p11 }
  0x44   :  { %5545 = shalt.err (!%p5542_p1)
}
  0x45   :  { %57 = dma.hbm_to_vmem [thread:$0]  %s6456_s3, 40960, %s52_s25, [#allocation9], %s5643_s6, %s5643_s6, %s5644_s21  }
  0x46   :  { %s5554_s30 = scalar_lea.vmem %s74_s26, 20480  ;;  %p5559_p3 = scmp.lt.s32.totalorder %s74_s26, %s74_s26 }
  0x47   :  { %p5555_p2 = scmp.ne.s32.totalorder %s74_s26, %s5554_s30  ;;  %p5560_p4 = scmp.lt.s32.totalorder %s5554_s30, %s5554_s30 }
  0x49   :  { %p5561_p5 = por %p5560_p4, %p5559_p3 }
  0x4b   :  { %p5562_p6 = pnand %p5561_p5, %p5555_p2 }
  0x4d   :  { %5565 = shalt.err (!%p5562_p6)
}
  0x4e   :  { %s5647_s1 = smov 128   ;;  %s5648_s12 = smov 8  }
  0x4f   :  { %79 = dma.hbm_to_vmem [thread:$0]  %s6458_s5, 20480, %s74_s26, [#allocation12], %s5647_s1, %s5647_s1, %s5648_s12  }
  0x50   :  { %s5649_s14 = smov [#allocation16]   ;;  %s5650_s4 = smov [#allocation19]  }
  0x51   :  { %s95_s15 = sshll.u32 %s5649_s14, 4  ;;  %s117_s16 = sshll.u32 %s5650_s4, 4  ;;  %s96_s15 = int_to_ptr.vmem [resolvable:$true] %s95_s15  ;;  %s118_s16 = int_to_ptr.vmem [resolvable:$true] %s117_s16 }
  0x52   :  { %s5574_s3 = scalar_lea.vmem %s96_s15, 2048  ;;  %p5579_p8 = scmp.lt.s32.totalorder %s96_s15, %s96_s15 }
  0x53   :  { %p5575_p7 = scmp.ne.s32.totalorder %s96_s15, %s5574_s3  ;;  %p5580_p9 = scmp.lt.s32.totalorder %s5574_s3, %s5574_s3 }
  0x55   :  { %p5581_p10 = por %p5580_p9, %p5579_p8 }
  0x57   :  { %p5582_p11 = pnand %p5581_p10, %p5575_p7 }
  0x59   :  { %5585 = shalt.err (!%p5582_p11)
}
  0x5a   :  { %101 = dma.hbm_to_vmem [thread:$0]  %s6460_s7, 2048, %s96_s15, [#allocation15], %s5647_s1, %s5647_s1, %s5648_s12  }
  0x5b   :  { %s5594_s19 = scalar_lea.vmem %s118_s16, 2048  ;;  %p5599_p13 = scmp.lt.s32.totalorder %s118_s16, %s118_s16 }
  0x5c   :  { %p5595_p12 = scmp.ne.s32.totalorder %s118_s16, %s5594_s19  ;;  %p5600_p0 = scmp.lt.s32.totalorder %s5594_s19, %s5594_s19 }
  0x5e   :  { %p5601_p1 = por %p5600_p0, %p5599_p13 }
  0x60   :  { %p5602_p2 = pnand %p5601_p1, %p5595_p12 }
  0x62   :  { %5605 = shalt.err (!%p5602_p2)
}
  0x63   :  { %123 = dma.hbm_to_vmem [thread:$0]  %s6462_s9, 2048, %s118_s16, [#allocation18], %s5647_s1, %s5647_s1, %s5648_s12  }
  0x64   :  { %s5651_s6 = smov [#allocation20]  }
  0x65   :  { %s130_s21 = sshll.u32 %s5651_s6, 4  ;;  %s131_s21 = int_to_ptr.vmem [resolvable:$true] %s130_s21 }
  0x66   :  { %s5614_s22 = scalar_lea.vmem %s131_s21, 16  ;;  %s5618_s23 = scalar_lea.vmem %s131_s21, 32 }
  0x67   :  { %p5615_p3 = scmp.ne.s32.totalorder %s131_s21, %s5614_s22  ;;  %p5619_p4 = scmp.lt.s32.totalorder %s131_s21, %s131_s21 }
  0x68   :  { %p5620_p5 = scmp.lt.s32.totalorder %s5618_s23, %s5614_s22 }
  0x6a   :  { %p5621_p6 = por %p5620_p5, %p5619_p4 }
  0x6c   :  { %p5622_p7 = pnand %p5621_p6, %p5615_p3 }
  0x6e   :  { %5625 = shalt.err (!%p5622_p7)
}
  0x6f   :  { %133 = dma.hbm_to_vmem [thread:$0]  %s6463_s10, 16, %s131_s21, [#allocation21]  }
  0x70   :  { %5626 = dma.done.wait [#allocation7], 20480  }
  0x71   :  { %5627 = vsyncadd [#allocation7], 4294946816 }
  0x72   :  { %5628 = dma.done.wait [#allocation9], 40992  }
  0x73   :  { %5629 = vsyncadd [#allocation9], 4294926304 }
  0x74   :  { %5630 = dma.done.wait [#allocation12], 20512  }
  0x75   :  { %5631 = vsyncadd [#allocation12], 4294946784 }
  0x76   :  { %5632 = dma.done.wait [#allocation15], 2064  }
  0x77   :  { %5633 = vsyncadd [#allocation15], 4294965232 }
  0x78   :  { %5634 = dma.done.wait [#allocation18], 2064  }
  0x79   :  { %5635 = vsyncadd [#allocation18], 4294965232 }
  0x7a   :  { %5636 = dma.done.wait [#allocation21], 16  }
  0x7b   :  { %5637 = vsyncadd [#allocation21], 4294967280  ;;  %v5652_v0 = vmov 0.0   ;;  %v215_v1 = vld [vmem:[#allocation6 + $0xf8] sm:$0xff]  ;;  %v214_v2 = vld [vmem:[#allocation6 + $0xf0] sm:$0xff]  ;;  %s5653_s2 = smov 127  }
  0x7c   :  { %640 = vst [vmem:[#allocation3 + $0x8] sm:$0xff] %v5652_v0  ;;  %642 = vst [vmem:[#allocation3 + $0x18] sm:$0xff] %v5652_v0  ;;  %v213_v3 = vld [vmem:[#allocation6 + $0xe8] sm:$0xff]  ;;  %356 = vmatprep.subr.mxu0 %v215_v1  ;;  %v279_v4 = vld [vmem:[#allocation6 + $0x2f8] sm:$0xff]  ;;  %vm679_vm0 = vcmask 1039360   ;;  %vm734_vm1 = vcmask 1046528  }
  0x7d   :  { %644 = vst [vmem:[#allocation3 + $0x28] sm:$0xff] %v5652_v0  ;;  %645 = vst [vmem:[#allocation3 + $0x30] sm:$0xf] %v5652_v0  ;;  %v212_v5 = vld [vmem:[#allocation6 + $0xe0] sm:$0xff]  ;;  %v278_v6 = vld [vmem:[#allocation6 + $0x2f0] sm:$0xff]  ;;  %357 = vmatpush1.msra.mxu0 %v214_v2  ;;  %445 = vmatprep.subr.mxu1 %v279_v4  ;;  %vm772_vm2 = vcmask 1034240  }
  0x7e   :  { %646 = vst [vmem:[#allocation3 + $0x38] sm:$0xf] %v5652_v0  ;;  %1623 = vst [vmem:[#allocation5 + $0x8] sm:$0xff] %v5652_v0  ;;  %v211_v7 = vld [vmem:[#allocation6 + $0xd8] sm:$0xff]  ;;  %v277_v8 = vld [vmem:[#allocation6 + $0x2e8] sm:$0xff]  ;;  %358 = vmatprep.subr.mxu0 %v213_v3  ;;  %446 = vmatpush1.msra.mxu1 %v278_v6  ;;  %vm800_vm3 = vcmask 1045504  }
  0x7f   :  { %1625 = vst [vmem:[#allocation5 + $0x18] sm:$0xff] %v5652_v0  ;;  %1626 = vst [vmem:[#allocation5 + $0x20] sm:$0xf] %v5652_v0  ;;  %v210_v9 = vld [vmem:[#allocation6 + $0xd0] sm:$0xff]  ;;  %v276_v10 = vld [vmem:[#allocation6 + $0x2e0] sm:$0xff]  ;;  %359 = vmatpush1.msra.mxu0 %v212_v5  ;;  %447 = vmatprep.subr.mxu1 %v277_v8  ;;  %vm821_vm4 = vcmask 1043456  }
  0x80   :  { %1627 = vst [vmem:[#allocation5 + $0x28] sm:$0xf] %v5652_v0  ;;  %2965 = vst [vmem:[#allocation3 + $0x48] sm:$0xff] %v5652_v0  ;;  %v275_v11 = vld [vmem:[#allocation6 + $0x2d8] sm:$0xff]  ;;  %v209_v12 = vld [vmem:[#allocation6 + $0xc8] sm:$0xff]  ;;  %360 = vmatprep.subr.mxu0 %v211_v7  ;;  %448 = vmatpush1.msra.mxu1 %v276_v10  ;;  %vm842_vm5 = vcmask 1041408  }
  0x81   :  { %2967 = vst [vmem:[#allocation3 + $0x58] sm:$0xff] %v5652_v0  ;;  %2969 = vst [vmem:[#allocation3 + $0x68] sm:$0xff] %v5652_v0  ;;  %v274_v13 = vld [vmem:[#allocation6 + $0x2d0] sm:$0xff]  ;;  %v208_v14 = vld [vmem:[#allocation6 + $0xc0] sm:$0xff]  ;;  %361 = vmatpush1.msra.mxu0 %v210_v9  ;;  %449 = vmatprep.subr.mxu1 %v275_v11  ;;  %vm1726_vm6 = vcmask 1033216   ;;  %vm5654_vm7 = vmmov 0  }
  0x82   :  { %2970 = vst [vmem:[#allocation3 + $0x70] sm:$0xf] %v5652_v0  ;;  %2971 = vst [vmem:[#allocation3 + $0x78] sm:$0xf] %v5652_v0  ;;  %v273_v15 = vld [vmem:[#allocation6 + $0x2c8] sm:$0xff]  ;;  %v207_v16 = vld [vmem:[#allocation6 + $0xb8] sm:$0xff]  ;;  %362 = vmatprep.subr.mxu0 %v209_v12  ;;  %450 = vmatpush1.msra.mxu1 %v274_v13 }
  0x83   :  { %3944 = vst [vmem:[#allocation5 + $0x38] sm:$0xff] %v5652_v0  ;;  %3946 = vst [vmem:[#allocation5 + $0x48] sm:$0xff] %v5652_v0  ;;  %v272_v17 = vld [vmem:[#allocation6 + $0x2c0] sm:$0xff]  ;;  %v206_v18 = vld [vmem:[#allocation6 + $0xb0] sm:$0xff]  ;;  %363 = vmatpush1.msra.mxu0 %v208_v14  ;;  %451 = vmatprep.subr.mxu1 %v273_v15 }
  0x84   :  { %3947 = vst [vmem:[#allocation5 + $0x50] sm:$0xf] %v5652_v0  ;;  %3948 = vst [vmem:[#allocation5 + $0x58] sm:$0xf] %v5652_v0  ;;  %v271_v19 = vld [vmem:[#allocation6 + $0x2b8] sm:$0xff]  ;;  %v205_v20 = vld [vmem:[#allocation6 + $0xa8] sm:$0xff]  ;;  %364 = vmatprep.subr.mxu0 %v207_v16  ;;  %452 = vmatpush1.msra.mxu1 %v272_v17 }
  0x85   :  { %v270_v21 = vld [vmem:[#allocation6 + $0x2b0] sm:$0xff]  ;;  %v204_v22 = vld [vmem:[#allocation6 + $0xa0] sm:$0xff]  ;;  %v269_v23 = vld [vmem:[#allocation6 + $0x2a8] sm:$0xff]  ;;  %365 = vmatpush1.msra.mxu0 %v206_v18  ;;  %453 = vmatprep.subr.mxu1 %v271_v19 }
  0x86   :  { %v203_v24 = vld [vmem:[#allocation6 + $0x98] sm:$0xff]  ;;  %v268_v25 = vld [vmem:[#allocation6 + $0x2a0] sm:$0xff]  ;;  %366 = vmatprep.subr.mxu0 %v205_v20  ;;  %454 = vmatpush1.msra.mxu1 %v270_v21  ;;  %v202_v26 = vld [vmem:[#allocation6 + $0x90] sm:$0xff] }
  0x87   :  { %v267_v27 = vld [vmem:[#allocation6 + $0x298] sm:$0xff]  ;;  %367 = vmatpush1.msra.mxu0 %v204_v22  ;;  %455 = vmatprep.subr.mxu1 %v269_v23  ;;  %v201_v28 = vld [vmem:[#allocation6 + $0x88] sm:$0xff]  ;;  %v266_v29 = vld [vmem:[#allocation6 + $0x290] sm:$0xff] }
  0x88   :  { %368 = vmatprep.subr.mxu0 %v203_v24  ;;  %456 = vmatpush1.msra.mxu1 %v268_v25  ;;  %v200_v30 = vld [vmem:[#allocation6 + $0x80] sm:$0xff]  ;;  %v265_v31 = vld [vmem:[#allocation6 + $0x288] sm:$0xff]  ;;  %v199_v32 = vld [vmem:[#allocation6 + $0x78] sm:$0xff] }
  0x89   :  { %369 = vmatpush1.msra.mxu0 %v202_v26  ;;  %457 = vmatprep.subr.mxu1 %v267_v27  ;;  %v264_v33 = vld [vmem:[#allocation6 + $0x280] sm:$0xff]  ;;  %v198_v34 = vld [vmem:[#allocation6 + $0x70] sm:$0xff]  ;;  %v263_v35 = vld [vmem:[#allocation6 + $0x278] sm:$0xff] }
  0x8a   :  { %370 = vmatprep.subr.mxu0 %v201_v28  ;;  %458 = vmatpush1.msra.mxu1 %v266_v29  ;;  %v197_v36 = vld [vmem:[#allocation6 + $0x68] sm:$0xff]  ;;  %v262_v37 = vld [vmem:[#allocation6 + $0x270] sm:$0xff]  ;;  %v196_v38 = vld [vmem:[#allocation6 + $0x60] sm:$0xff] }
  0x8b   :  { %371 = vmatpush1.msra.mxu0 %v200_v30  ;;  %459 = vmatprep.subr.mxu1 %v265_v31  ;;  %v261_v39 = vld [vmem:[#allocation6 + $0x268] sm:$0xff]  ;;  %v195_v40 = vld [vmem:[#allocation6 + $0x58] sm:$0xff]  ;;  %v260_v41 = vld [vmem:[#allocation6 + $0x260] sm:$0xff] }
  0x8c   :  { %372 = vmatprep.subr.mxu0 %v199_v32  ;;  %460 = vmatpush1.msra.mxu1 %v264_v33  ;;  %v194_v42 = vld [vmem:[#allocation6 + $0x50] sm:$0xff]  ;;  %v259_v43 = vld [vmem:[#allocation6 + $0x258] sm:$0xff]  ;;  %v193_v44 = vld [vmem:[#allocation6 + $0x48] sm:$0xff] }
  0x8d   :  { %373 = vmatpush1.msra.mxu0 %v198_v34  ;;  %461 = vmatprep.subr.mxu1 %v263_v35  ;;  %v258_v45 = vld [vmem:[#allocation6 + $0x250] sm:$0xff]  ;;  %v192_v46 = vld [vmem:[#allocation6 + $0x40] sm:$0xff]  ;;  %v257_v47 = vld [vmem:[#allocation6 + $0x248] sm:$0xff] }
  0x8e   :  { %374 = vmatprep.subr.mxu0 %v197_v36  ;;  %462 = vmatpush1.msra.mxu1 %v262_v37  ;;  %v191_v48 = vld [vmem:[#allocation6 + $0x38] sm:$0xff]  ;;  %v256_v49 = vld [vmem:[#allocation6 + $0x240] sm:$0xff]  ;;  %v190_v50 = vld [vmem:[#allocation6 + $0x30] sm:$0xff] }
  0x8f   :  { %375 = vmatpush1.msra.mxu0 %v196_v38  ;;  %463 = vmatprep.subr.mxu1 %v261_v39  ;;  %v255_v51 = vld [vmem:[#allocation6 + $0x238] sm:$0xff]  ;;  %v189_v52 = vld [vmem:[#allocation6 + $0x28] sm:$0xff]  ;;  %v254_v53 = vld [vmem:[#allocation6 + $0x230] sm:$0xff] }
  0x90   :  { %376 = vmatprep.subr.mxu0 %v195_v40  ;;  %464 = vmatpush1.msra.mxu1 %v260_v41  ;;  %v188_v54 = vld [vmem:[#allocation6 + $0x20] sm:$0xff]  ;;  %v253_v55 = vld [vmem:[#allocation6 + $0x228] sm:$0xff]  ;;  %v187_v56 = vld [vmem:[#allocation6 + $0x18] sm:$0xff] }
  0x91   :  { %377 = vmatpush1.msra.mxu0 %v194_v42  ;;  %465 = vmatprep.subr.mxu1 %v259_v43  ;;  %v252_v57 = vld [vmem:[#allocation6 + $0x220] sm:$0xff]  ;;  %v186_v58 = vld [vmem:[#allocation6 + $0x10] sm:$0xff]  ;;  %v251_v59 = vld [vmem:[#allocation6 + $0x218] sm:$0xff] }
  0x92   :  { %378 = vmatprep.subr.mxu0 %v193_v44  ;;  %466 = vmatpush1.msra.mxu1 %v258_v45  ;;  %v185_v60 = vld [vmem:[#allocation6 + $0x8] sm:$0xff]  ;;  %v250_v61 = vld [vmem:[#allocation6 + $0x210] sm:$0xff]  ;;  %v184_v62 = vld [vmem:[#allocation6] sm:$0xff] }
  0x93   :  { %379 = vmatpush1.msra.mxu0 %v192_v46  ;;  %467 = vmatprep.subr.mxu1 %v257_v47  ;;  %v249_v63 = vld [vmem:[#allocation6 + $0x208] sm:$0xff]  ;;  %v247_v1 = vld [vmem:[#allocation6 + $0x1f8] sm:$0xff]  ;;  %v248_v2 = vld [vmem:[#allocation6 + $0x200] sm:$0xff] }
  0x94   :  { %380 = vmatprep.subr.mxu0 %v191_v48  ;;  %468 = vmatpush1.msra.mxu1 %v256_v49  ;;  %v246_v3 = vld [vmem:[#allocation6 + $0x1f0] sm:$0xff]  ;;  %v311_v4 = vld [vmem:[#allocation6 + $0x3f8] sm:$0xff]  ;;  %v245_v5 = vld [vmem:[#allocation6 + $0x1e8] sm:$0xff] }
  0x95   :  { %381 = vmatpush1.msra.mxu0 %v190_v50  ;;  %469 = vmatprep.subr.mxu1 %v255_v51  ;;  %v310_v6 = vld [vmem:[#allocation6 + $0x3f0] sm:$0xff]  ;;  %v244_v7 = vld [vmem:[#allocation6 + $0x1e0] sm:$0xff]  ;;  %v309_v8 = vld [vmem:[#allocation6 + $0x3e8] sm:$0xff] }
  0x96   :  { %382 = vmatprep.subr.mxu0 %v189_v52  ;;  %470 = vmatpush1.msra.mxu1 %v254_v53  ;;  %v243_v9 = vld [vmem:[#allocation6 + $0x1d8] sm:$0xff]  ;;  %v308_v10 = vld [vmem:[#allocation6 + $0x3e0] sm:$0xff]  ;;  %v242_v11 = vld [vmem:[#allocation6 + $0x1d0] sm:$0xff] }
  0x97   :  { %383 = vmatpush1.msra.mxu0 %v188_v54  ;;  %471 = vmatprep.subr.mxu1 %v253_v55  ;;  %v307_v12 = vld [vmem:[#allocation6 + $0x3d8] sm:$0xff]  ;;  %v241_v13 = vld [vmem:[#allocation6 + $0x1c8] sm:$0xff]  ;;  %v306_v14 = vld [vmem:[#allocation6 + $0x3d0] sm:$0xff] }
  0x98   :  { %384 = vmatprep.subr.mxu0 %v187_v56  ;;  %472 = vmatpush1.msra.mxu1 %v252_v57  ;;  %v240_v15 = vld [vmem:[#allocation6 + $0x1c0] sm:$0xff]  ;;  %v305_v16 = vld [vmem:[#allocation6 + $0x3c8] sm:$0xff]  ;;  %v239_v17 = vld [vmem:[#allocation6 + $0x1b8] sm:$0xff] }
  0x99   :  { %385 = vmatpush1.msra.mxu0 %v186_v58  ;;  %473 = vmatprep.subr.mxu1 %v251_v59  ;;  %v304_v18 = vld [vmem:[#allocation6 + $0x3c0] sm:$0xff]  ;;  %v238_v19 = vld [vmem:[#allocation6 + $0x1b0] sm:$0xff]  ;;  %v303_v20 = vld [vmem:[#allocation6 + $0x3b8] sm:$0xff] }
  0x9a   :  { %386 = vmatprep.subr.mxu0 %v185_v60  ;;  %474 = vmatpush1.msra.mxu1 %v250_v61  ;;  %v237_v21 = vld [vmem:[#allocation6 + $0x1a8] sm:$0xff]  ;;  %v302_v22 = vld [vmem:[#allocation6 + $0x3b0] sm:$0xff]  ;;  %v236_v23 = vld [vmem:[#allocation6 + $0x1a0] sm:$0xff] }
  0x9b   :  { %387 = vmatpush1.msra.mxu0 %v184_v62  ;;  %475 = vmatprep.subr.mxu1 %v249_v63  ;;  %v301_v24 = vld [vmem:[#allocation6 + $0x3a8] sm:$0xff]  ;;  %v235_v25 = vld [vmem:[#allocation6 + $0x198] sm:$0xff]  ;;  %v300_v26 = vld [vmem:[#allocation6 + $0x3a0] sm:$0xff] }
  0x9c   :  { %388 = vmatprep.subr.mxu0 %v247_v1  ;;  %476 = vmatpush1.msra.mxu1 %v248_v2  ;;  %v234_v27 = vld [vmem:[#allocation6 + $0x190] sm:$0xff]  ;;  %v299_v28 = vld [vmem:[#allocation6 + $0x398] sm:$0xff]  ;;  %v233_v29 = vld [vmem:[#allocation6 + $0x188] sm:$0xff] }
  0x9d   :  { %389 = vmatpush2.msra.mxu0 %v246_v3  ;;  %477 = vmatprep.subr.mxu1 %v311_v4  ;;  %v298_v30 = vld [vmem:[#allocation6 + $0x390] sm:$0xff]  ;;  %v232_v31 = vld [vmem:[#allocation6 + $0x180] sm:$0xff]  ;;  %v297_v32 = vld [vmem:[#allocation6 + $0x388] sm:$0xff] }
  0x9e   :  { %390 = vmatprep.subr.mxu0 %v245_v5  ;;  %478 = vmatpush2.msra.mxu1 %v310_v6  ;;  %v231_v33 = vld [vmem:[#allocation6 + $0x178] sm:$0xff]  ;;  %v296_v34 = vld [vmem:[#allocation6 + $0x380] sm:$0xff]  ;;  %v230_v35 = vld [vmem:[#allocation6 + $0x170] sm:$0xff] }
  0x9f   :  { %391 = vmatpush2.msra.mxu0 %v244_v7  ;;  %479 = vmatprep.subr.mxu1 %v309_v8  ;;  %v295_v36 = vld [vmem:[#allocation6 + $0x378] sm:$0xff]  ;;  %v229_v37 = vld [vmem:[#allocation6 + $0x168] sm:$0xff]  ;;  %v294_v38 = vld [vmem:[#allocation6 + $0x370] sm:$0xff] }
  0xa0   :  { %392 = vmatprep.subr.mxu0 %v243_v9  ;;  %480 = vmatpush2.msra.mxu1 %v308_v10  ;;  %v228_v39 = vld [vmem:[#allocation6 + $0x160] sm:$0xff]  ;;  %v293_v40 = vld [vmem:[#allocation6 + $0x368] sm:$0xff]  ;;  %v227_v41 = vld [vmem:[#allocation6 + $0x158] sm:$0xff] }
  0xa1   :  { %393 = vmatpush2.msra.mxu0 %v242_v11  ;;  %481 = vmatprep.subr.mxu1 %v307_v12  ;;  %v292_v42 = vld [vmem:[#allocation6 + $0x360] sm:$0xff]  ;;  %v226_v43 = vld [vmem:[#allocation6 + $0x150] sm:$0xff]  ;;  %v291_v44 = vld [vmem:[#allocation6 + $0x358] sm:$0xff] }
  0xa2   :  { %394 = vmatprep.subr.mxu0 %v241_v13  ;;  %482 = vmatpush2.msra.mxu1 %v306_v14  ;;  %v225_v45 = vld [vmem:[#allocation6 + $0x148] sm:$0xff]  ;;  %v290_v46 = vld [vmem:[#allocation6 + $0x350] sm:$0xff]  ;;  %v224_v47 = vld [vmem:[#allocation6 + $0x140] sm:$0xff] }
  0xa3   :  { %395 = vmatpush2.msra.mxu0 %v240_v15  ;;  %483 = vmatprep.subr.mxu1 %v305_v16  ;;  %v289_v48 = vld [vmem:[#allocation6 + $0x348] sm:$0xff]  ;;  %v223_v49 = vld [vmem:[#allocation6 + $0x138] sm:$0xff]  ;;  %v288_v50 = vld [vmem:[#allocation6 + $0x340] sm:$0xff] }
  0xa4   :  { %396 = vmatprep.subr.mxu0 %v239_v17  ;;  %484 = vmatpush2.msra.mxu1 %v304_v18  ;;  %v222_v51 = vld [vmem:[#allocation6 + $0x130] sm:$0xff]  ;;  %v287_v52 = vld [vmem:[#allocation6 + $0x338] sm:$0xff]  ;;  %v221_v53 = vld [vmem:[#allocation6 + $0x128] sm:$0xff] }
  0xa5   :  { %397 = vmatpush2.msra.mxu0 %v238_v19  ;;  %485 = vmatprep.subr.mxu1 %v303_v20  ;;  %v286_v54 = vld [vmem:[#allocation6 + $0x330] sm:$0xff]  ;;  %v220_v55 = vld [vmem:[#allocation6 + $0x120] sm:$0xff]  ;;  %v285_v56 = vld [vmem:[#allocation6 + $0x328] sm:$0xff] }
  0xa6   :  { %398 = vmatprep.subr.mxu0 %v237_v21  ;;  %486 = vmatpush2.msra.mxu1 %v302_v22  ;;  %v219_v57 = vld [vmem:[#allocation6 + $0x118] sm:$0xff]  ;;  %v284_v58 = vld [vmem:[#allocation6 + $0x320] sm:$0xff]  ;;  %v218_v59 = vld [vmem:[#allocation6 + $0x110] sm:$0xff] }
  0xa7   :  { %399 = vmatpush2.msra.mxu0 %v236_v23  ;;  %487 = vmatprep.subr.mxu1 %v301_v24  ;;  %v283_v60 = vld [vmem:[#allocation6 + $0x318] sm:$0xff]  ;;  %v217_v61 = vld [vmem:[#allocation6 + $0x108] sm:$0xff]  ;;  %v216_v63 = vld [vmem:[#allocation6 + $0x100] sm:$0xff] }
  0xa8   :  { %400 = vmatprep.subr.mxu0 %v235_v25  ;;  %488 = vmatpush2.msra.mxu1 %v300_v26  ;;  %v168_v62 = vld [vmem:[%s6453_s0 + $0x1] sm:$0xff]  ;;  %v282_v1 = vld [vmem:[#allocation6 + $0x310] sm:$0xff]  ;;  %v343_v4 = vld [vmem:[#allocation6 + $0x4f8] sm:$0xff] }
  0xa9   :  { %401 = vmatpush2.msra.mxu0 %v234_v27  ;;  %489 = vmatprep.subr.mxu1 %v299_v28  ;;  %v164_v2 = vld [vmem:[%s6453_s0] sm:$0xff]  ;;  %v281_v3 = vld [vmem:[#allocation6 + $0x308] sm:$0xff]  ;;  %v342_v7 = vld [vmem:[#allocation6 + $0x4f0] sm:$0xff] }
  0xaa   :  { %402 = vmatprep.subr.mxu0 %v233_v29  ;;  %490 = vmatpush2.msra.mxu1 %v298_v30  ;;  %v280_v5 = vld [vmem:[#allocation6 + $0x300] sm:$0xff]  ;;  %v341_v9 = vld [vmem:[#allocation6 + $0x4e8] sm:$0xff]  ;;  %v339_v12 = vld [vmem:[#allocation6 + $0x4d8] sm:$0xff] }
  0xab   :  { %403 = vmatpush2.msra.mxu0 %v232_v31  ;;  %491 = vmatprep.subr.mxu1 %v297_v32  ;;  %v176_v6 = vld [vmem:[%s6453_s0 + $0x3] sm:$0xff]  ;;  %v338_v14 = vld [vmem:[#allocation6 + $0x4d0] sm:$0xff]  ;;  %v335_v20 = vld [vmem:[#allocation6 + $0x4b8] sm:$0xff] }
  0xac   :  { %404 = vmatprep.subr.mxu0 %v231_v33  ;;  %492 = vmatpush2.msra.mxu1 %v296_v34  ;;  %v172_v8 = vld [vmem:[%s6453_s0 + $0x2] sm:$0xff]  ;;  %v177_v15 = vld [vmem:[%s6453_s0 + $0xb] sm:$0xff]  ;;  %v178_v23 = vld [vmem:[%s6453_s0 + $0x13] sm:$0xff] }
  0xad   :  { %405 = vmatpush2.msra.mxu0 %v230_v35  ;;  %493 = vmatprep.subr.mxu1 %v295_v36  ;;  %v340_v10 = vld [vmem:[#allocation6 + $0x4e0] sm:$0xff]  ;;  %v169_v11 = vld [vmem:[%s6453_s0 + $0x9] sm:$0xff]  ;;  %v170_v19 = vld [vmem:[%s6453_s0 + $0x11] sm:$0xff] }
  0xae   :  { %406 = vmatprep.subr.mxu0 %v229_v37  ;;  %494 = vmatpush2.msra.mxu1 %v294_v38  ;;  %v165_v13 = vld [vmem:[%s6453_s0 + $0x8] sm:$0xff]  ;;  %v336_v18 = vld [vmem:[#allocation6 + $0x4c0] sm:$0xff]  ;;  %v166_v21 = vld [vmem:[%s6453_s0 + $0x10] sm:$0xff] }
  0xaf   :  { %407 = vmatpush2.msra.mxu0 %v228_v39  ;;  %495 = vmatprep.subr.mxu1 %v293_v40  ;;  %v337_v16 = vld [vmem:[#allocation6 + $0x4c8] sm:$0xff]  ;;  %v334_v22 = vld [vmem:[#allocation6 + $0x4b0] sm:$0xff]  ;;  %v332_v26 = vld [vmem:[#allocation6 + $0x4a0] sm:$0xff] }
  0xb0   :  { %408 = vmatprep.subr.mxu0 %v227_v41  ;;  %496 = vmatpush2.msra.mxu1 %v292_v42  ;;  %v173_v17 = vld [vmem:[%s6453_s0 + $0xa] sm:$0xff]  ;;  %v174_v25 = vld [vmem:[%s6453_s0 + $0x12] sm:$0xff]  ;;  %v179_v31 = vld [vmem:[%s6453_s0 + $0x1b] sm:$0xf] }
  0xb1   :  { %409 = vmatpush2.msra.mxu0 %v226_v43  ;;  %497 = vmatprep.subr.mxu1 %v291_v44  ;;  %v333_v24 = vld [vmem:[#allocation6 + $0x4a8] sm:$0xff]  ;;  %v171_v27 = vld [vmem:[%s6453_s0 + $0x19] sm:$0xf]  ;;  %v330_v30 = vld [vmem:[#allocation6 + $0x490] sm:$0xff] }
  0xb2   :  { %410 = vmatprep.subr.mxu0 %v225_v45  ;;  %498 = vmatpush2.msra.mxu1 %v290_v46  ;;  %v331_v28 = vld [vmem:[#allocation6 + $0x498] sm:$0xff]  ;;  %v329_v32 = vld [vmem:[#allocation6 + $0x488] sm:$0xff]  ;;  %v328_v34 = vld [vmem:[#allocation6 + $0x480] sm:$0xff] }
  0xb3   :  { %411 = vmatpush2.msra.mxu0 %v224_v47  ;;  %499 = vmatprep.subr.mxu1 %v289_v48  ;;  %v167_v29 = vld [vmem:[%s6453_s0 + $0x18] sm:$0xf]  ;;  %v326_v36 = vld [vmem:[#allocation6 + $0x470] sm:$0xff]  ;;  %v325_v37 = vld [vmem:[#allocation6 + $0x468] sm:$0xff] }
  0xb4   :  { %412 = vmatprep.subr.mxu0 %v223_v49  ;;  %500 = vmatpush2.msra.mxu1 %v288_v50  ;;  %v175_v33 = vld [vmem:[%s6453_s0 + $0x1a] sm:$0xf]  ;;  %v324_v38 = vld [vmem:[#allocation6 + $0x460] sm:$0xff]  ;;  %v322_v40 = vld [vmem:[#allocation6 + $0x450] sm:$0xff] }
  0xb5   :  { %413 = vmatpush2.msra.mxu0 %v222_v51  ;;  %501 = vmatprep.subr.mxu1 %v287_v52  ;;  %v327_v35 = vld [vmem:[#allocation6 + $0x478] sm:$0xff]  ;;  %v321_v41 = vld [vmem:[#allocation6 + $0x448] sm:$0xff]  ;;  %v320_v42 = vld [vmem:[#allocation6 + $0x440] sm:$0xff] }
  0xb6   :  { %414 = vmatprep.subr.mxu0 %v221_v53  ;;  %502 = vmatpush2.msra.mxu1 %v286_v54  ;;  %v323_v39 = vld [vmem:[#allocation6 + $0x458] sm:$0xff]  ;;  %v318_v44 = vld [vmem:[#allocation6 + $0x430] sm:$0xff]  ;;  %v317_v45 = vld [vmem:[#allocation6 + $0x428] sm:$0xff] }
  0xb7   :  { %415 = vmatpush2.msra.mxu0 %v220_v55  ;;  %503 = vmatprep.subr.mxu1 %v285_v56  ;;  %v319_v43 = vld [vmem:[#allocation6 + $0x438] sm:$0xff]  ;;  %v316_v46 = vld [vmem:[#allocation6 + $0x420] sm:$0xff]  ;;  %v314_v48 = vld [vmem:[#allocation6 + $0x410] sm:$0xff] }
  0xb8   :  { %416 = vmatprep.subr.mxu0 %v219_v57  ;;  %504 = vmatpush2.msra.mxu1 %v284_v58  ;;  %v315_v47 = vld [vmem:[#allocation6 + $0x418] sm:$0xff]  ;;  %v313_v49 = vld [vmem:[#allocation6 + $0x408] sm:$0xff]  ;;  %v312_v50 = vld [vmem:[#allocation6 + $0x400] sm:$0xff] }
  0xb9   :  { %417 = vmatpush2.msra.mxu0 %v218_v59  ;;  %505 = vmatprep.subr.mxu1 %v283_v60  ;;  %v180_v51 = vld [vmem:[%s6453_s0 + $0x4] sm:$0xff]  ;;  %v181_v52 = vld [vmem:[%s6453_s0 + $0xc] sm:$0xff]  ;;  %v182_v53 = vld [vmem:[%s6453_s0 + $0x14] sm:$0xff] }
  0xba   :  { %418 = vmatprep.subr.mxu0 %v217_v61  ;;  %420 = vmatprep.mubr.f32.mxu0 %v168_v62  ;;  %v183_v54 = vld [vmem:[%s6453_s0 + $0x1c] sm:$0xf]  ;;  %v893_v56 = vld [vmem:[#allocation10 + $0xf0] sm:$0xff]  ;;  %v892_v57 = vld [vmem:[#allocation10 + $0xe8] sm:$0xff] }
  0xbb   :  { %419 = vmatpush2.msra.mxu0 %v216_v63  ;;  %506 = vmatpush2.msra.mxu1 %v282_v1  ;;  %v894_v55 = vld [vmem:[#allocation10 + $0xf8] sm:$0xff]  ;;  %v891_v58 = vld [vmem:[#allocation10 + $0xe0] sm:$0xff]  ;;  %v889_v60 = vld [vmem:[#allocation10 + $0xd0] sm:$0xff] }
  0xbc   :  { %421 = vmatmul.mubr.f32.vlgmr.msra.gmra.mxu0 %v164_v2  ;;  %507 = vmatprep.subr.mxu1 %v281_v3  ;;  %v890_v59 = vld [vmem:[#allocation10 + $0xd8] sm:$0xff]  ;;  %v888_v62 = vld [vmem:[#allocation10 + $0xc8] sm:$0xff]  ;;  %v957_v63 = vld [vmem:[#allocation10 + $0x2f0] sm:$0xff] }
  0xbd   :  { %534 = vmatprep.subr.mxu0 %v343_v4  ;;  %508 = vmatpush2.msra.mxu1 %v280_v5  ;;  %v958_v61 = vld [vmem:[#allocation10 + $0x2f8] sm:$0xff]  ;;  %v956_v1 = vld [vmem:[#allocation10 + $0x2e8] sm:$0xff]  ;;  %v955_v2 = vld [vmem:[#allocation10 + $0x2e0] sm:$0xff] }
  0xbe   :  { %509 = vmatprep.mubr.f32.mxu1 %v176_v6  ;;  %535 = vmatpush1.msra.mxu0 %v342_v7  ;;  %v886_v3 = vld [vmem:[#allocation10 + $0xb8] sm:$0xff]  ;;  %v885_v5 = vld [vmem:[#allocation10 + $0xb0] sm:$0xff]  ;;  %v952_v7 = vld [vmem:[#allocation10 + $0x2c8] sm:$0xff] }
  0xbf   :  { %510 = vmatmul.mubr.f32.vlgmr.msra.gmra.mxu1 %v172_v8  ;;  %536 = vmatprep.subr.mxu0 %v341_v9  ;;  %v954_v4 = vld [vmem:[#allocation10 + $0x2d8] sm:$0xff]  ;;  %v953_v6 = vld [vmem:[#allocation10 + $0x2d0] sm:$0xff]  ;;  %v884_v8 = vld [vmem:[#allocation10 + $0xa8] sm:$0xff] }
  0xc0   :  { %537 = vmatpush1.msra.mxu0 %v340_v10  ;;  %426 = vmatprep.mubr.f32.mxu0 %v169_v11  ;;  %v951_v9 = vld [vmem:[#allocation10 + $0x2c0] sm:$0xff]  ;;  %v950_v11 = vld [vmem:[#allocation10 + $0x2b8] sm:$0xff] }
  0xc1   :  { %538 = vmatprep.subr.mxu0 %v339_v12  ;;  %427 = vmatmul.mubr.f32.gmra.mxu0 %v165_v13  ;;  %v883_v10 = vld [vmem:[#allocation10 + $0xa0] sm:$0xff]  ;;  %v882_v12 = vld [vmem:[#allocation10 + $0x98] sm:$0xff]  ;;  %v949_v13 = vld [vmem:[#allocation10 + $0x2b0] sm:$0xff] }
  0xc2   :  { %539 = vmatpush1.msra.mxu0 %v338_v14  ;;  %515 = vmatprep.mubr.f32.mxu1 %v177_v15  ;;  %v881_v14 = vld [vmem:[#allocation10 + $0x90] sm:$0xff]  ;;  %v948_v15 = vld [vmem:[#allocation10 + $0x2a8] sm:$0xff] }
  0xc3   :  { %540 = vmatprep.subr.mxu0 %v337_v16  ;;  %516 = vmatmul.mubr.f32.gmra.mxu1 %v173_v17  ;;  %v880_v16 = vld [vmem:[#allocation10 + $0x88] sm:$0xff]  ;;  %v947_v17 = vld [vmem:[#allocation10 + $0x2a0] sm:$0xff] }
  0xc4   :  { %541 = vmatpush1.msra.mxu0 %v336_v18  ;;  %432 = vmatprep.mubr.f32.mxu0 %v170_v19  ;;  %v879_v18 = vld [vmem:[#allocation10 + $0x80] sm:$0xff]  ;;  %v946_v19 = vld [vmem:[#allocation10 + $0x298] sm:$0xff] }
  0xc5   :  { %542 = vmatprep.subr.mxu0 %v335_v20  ;;  %433 = vmatmul.mubr.f32.gmra.mxu0 %v166_v21  ;;  %v878_v20 = vld [vmem:[#allocation10 + $0x78] sm:$0xff]  ;;  %v945_v21 = vld [vmem:[#allocation10 + $0x290] sm:$0xff] }
  0xc6   :  { %543 = vmatpush1.msra.mxu0 %v334_v22  ;;  %521 = vmatprep.mubr.f32.mxu1 %v178_v23  ;;  %v877_v22 = vld [vmem:[#allocation10 + $0x70] sm:$0xff]  ;;  %v944_v23 = vld [vmem:[#allocation10 + $0x288] sm:$0xff] }
  0xc7   :  { %544 = vmatprep.subr.mxu0 %v333_v24  ;;  %522 = vmatmul.mubr.f32.gmra.mxu1 %v174_v25  ;;  %v876_v24 = vld [vmem:[#allocation10 + $0x68] sm:$0xff]  ;;  %v943_v25 = vld [vmem:[#allocation10 + $0x280] sm:$0xff] }
  0xc8   :  { %545 = vmatpush1.msra.mxu0 %v332_v26  ;;  %438 = vmatprep.mubr.f32.mxu0 %v171_v27  ;;  %v875_v26 = vld [vmem:[#allocation10 + $0x60] sm:$0xff]  ;;  %v942_v27 = vld [vmem:[#allocation10 + $0x278] sm:$0xff] }
  0xc9   :  { %546 = vmatprep.subr.mxu0 %v331_v28  ;;  %439 = vmatmul.mubr.f32.gmra.mxu0 %v167_v29  ;;  %v874_v28 = vld [vmem:[#allocation10 + $0x58] sm:$0xff]  ;;  %v941_v29 = vld [vmem:[#allocation10 + $0x270] sm:$0xff] }
  0xca   :  { %547 = vmatpush1.msra.mxu0 %v330_v30  ;;  %527 = vmatprep.mubr.f32.mxu1 %v179_v31  ;;  %v873_v30 = vld [vmem:[#allocation10 + $0x50] sm:$0xff]  ;;  %v940_v31 = vld [vmem:[#allocation10 + $0x268] sm:$0xff] }
  0xcb   :  { %548 = vmatprep.subr.mxu0 %v329_v32  ;;  %528 = vmatmul.mubr.f32.gmra.mxu1 %v175_v33  ;;  %v872_v32 = vld [vmem:[#allocation10 + $0x48] sm:$0xff]  ;;  %v939_v33 = vld [vmem:[#allocation10 + $0x260] sm:$0xff] }
  0xcc   :  { %549 = vmatpush1.msra.mxu0 %v328_v34  ;;  %598 = vmatprep.mubr.f32.mxu0 %v5652_v0  ;;  %v871_v34 = vld [vmem:[#allocation10 + $0x40] sm:$0xff] }
  0xcd   :  { %550 = vmatprep.subr.mxu0 %v327_v35  ;;  %1195 = vmatprep.subr.mxu1 %v894_v55  ;;  %v938_v35 = vld [vmem:[#allocation10 + $0x258] sm:$0xff]  ;;  %v924_v55 = vld [vmem:[#allocation10 + $0x1e8] sm:$0xff] }
  0xce   :  { %551 = vmatpush1.msra.mxu0 %v326_v36  ;;  %1196 = vmatpush1.msra.mxu1 %v893_v56  ;;  %v870_v36 = vld [vmem:[#allocation10 + $0x38] sm:$0xff]  ;;  %v923_v56 = vld [vmem:[#allocation10 + $0x1e0] sm:$0xff] }
  0xcf   :  { %552 = vmatprep.subr.mxu0 %v325_v37  ;;  %1197 = vmatprep.subr.mxu1 %v892_v57  ;;  %v937_v37 = vld [vmem:[#allocation10 + $0x250] sm:$0xff]  ;;  %v922_v57 = vld [vmem:[#allocation10 + $0x1d8] sm:$0xff] }
  0xd0   :  { %553 = vmatpush1.msra.mxu0 %v324_v38  ;;  %1198 = vmatpush1.msra.mxu1 %v891_v58  ;;  %v869_v38 = vld [vmem:[#allocation10 + $0x30] sm:$0xff] }
  0xd1   :  { %554 = vmatprep.subr.mxu0 %v323_v39  ;;  %1199 = vmatprep.subr.mxu1 %v890_v59  ;;  %v936_v39 = vld [vmem:[#allocation10 + $0x248] sm:$0xff]  ;;  %v921_v58 = vld [vmem:[#allocation10 + $0x1d0] sm:$0xff] }
  0xd2   :  { %555 = vmatpush1.msra.mxu0 %v322_v40  ;;  %1200 = vmatpush1.msra.mxu1 %v889_v60  ;;  %v868_v40 = vld [vmem:[#allocation10 + $0x28] sm:$0xff]  ;;  %v919_v60 = vld [vmem:[#allocation10 + $0x1c0] sm:$0xff] }
  0xd3   :  { %556 = vmatprep.subr.mxu0 %v321_v41  ;;  %1201 = vmatprep.subr.mxu1 %v888_v62  ;;  %v935_v41 = vld [vmem:[#allocation10 + $0x240] sm:$0xff]  ;;  %v920_v59 = vld [vmem:[#allocation10 + $0x1c8] sm:$0xff] }
  0xd4   :  { %557 = vmatpush1.msra.mxu0 %v320_v42  ;;  %v867_v42 = vld [vmem:[#allocation10 + $0x20] sm:$0xff] }
  0xd5   :  { %558 = vmatprep.subr.mxu0 %v319_v43  ;;  %v934_v43 = vld [vmem:[#allocation10 + $0x238] sm:$0xff] }
  0xd6   :  { %559 = vmatpush1.msra.mxu0 %v318_v44  ;;  %v866_v44 = vld [vmem:[#allocation10 + $0x18] sm:$0xff] }
  0xd7   :  { %560 = vmatprep.subr.mxu0 %v317_v45  ;;  %v933_v45 = vld [vmem:[#allocation10 + $0x230] sm:$0xff] }
  0xd8   :  { %561 = vmatpush1.msra.mxu0 %v316_v46  ;;  %v865_v46 = vld [vmem:[#allocation10 + $0x10] sm:$0xff] }
  0xd9   :  { %562 = vmatprep.subr.mxu0 %v315_v47  ;;  %v932_v47 = vld [vmem:[#allocation10 + $0x228] sm:$0xff] }
  0xda   :  { %563 = vmatpush1.msra.mxu0 %v314_v48  ;;  %v864_v48 = vld [vmem:[#allocation10 + $0x8] sm:$0xff] }
  0xdb   :  { %564 = vmatprep.subr.mxu0 %v313_v49  ;;  %v931_v49 = vld [vmem:[#allocation10 + $0x220] sm:$0xff] }
  0xdc   :  { %565 = vmatpush1.msra.mxu0 %v312_v50  ;;  %v863_v50 = vld [vmem:[#allocation10] sm:$0xff] }
  0xdd   :  { %599 = vmatmul.mubr.f32.vlgmr.msra.gmra.mxu0 %v180_v51  ;;  %1278 = vmatprep.subr.mxu0 %v958_v61  ;;  %v930_v51 = vld [vmem:[#allocation10 + $0x218] sm:$0xff] }
  0xde   :  { %604 = vmatprep.mubr.f32.mxu0 %v5652_v0  ;;  %1279 = vmatpush1.msra.mxu0 %v957_v63 }
  0xdf   :  { %1280 = vmatprep.subr.mxu0 %v956_v1 }
  0xe0   :  { %1281 = vmatpush1.msra.mxu0 %v955_v2 }
  0xe1   :  { %605 = vmatmul.mubr.f32.gmra.mxu0 %v181_v52  ;;  %1282 = vmatprep.subr.mxu0 %v954_v4  ;;  %v926_v52 = vld [vmem:[#allocation10 + $0x1f8] sm:$0xff] }
  0xe2   :  { %610 = vmatprep.mubr.f32.mxu0 %v5652_v0  ;;  %1283 = vmatpush1.msra.mxu0 %v953_v6  ;;  %v344_v6 = vld [vmem:[#allocation8] sm:$0x3] }
  0xe3   :  { %1284 = vmatprep.subr.mxu0 %v952_v7 }
  0xe4   :  { %1285 = vmatpush1.msra.mxu0 %v951_v9 }
  0xe5   :  { %611 = vmatmul.mubr.f32.gmra.mxu0 %v182_v53  ;;  %1286 = vmatprep.subr.mxu0 %v950_v11  ;;  %v929_v53 = vld [vmem:[#allocation10 + $0x210] sm:$0xff] }
  0xe6   :  { %616 = vmatprep.mubr.f32.mxu0 %v5652_v0  ;;  %v887_v0 = vld [vmem:[#allocation10 + $0xc0] sm:$0xff]  ;;  %1287 = vmatpush1.msra.mxu0 %v949_v13 }
  0xe7   :  { %1202 = vmatpush1.msra.mxu1 %v887_v0  ;;  %1288 = vmatprep.subr.mxu0 %v948_v15  ;;  %v346_v0 = vlaneseq }
  0xe8   :  { %1203 = vmatprep.subr.mxu1 %v886_v3  ;;  %1289 = vmatpush1.msra.mxu0 %v947_v17  ;;  %v928_v17 = vld [vmem:[#allocation10 + $0x208] sm:$0xff] }
  0xe9   :  { %617 = vmatmul.mubr.f32.gmra.mxu0 %v183_v54  ;;  %1204 = vmatpush1.msra.mxu1 %v885_v5  ;;  %v925_v54 = vld [vmem:[#allocation10 + $0x1f0] sm:$0xff]  ;;  %v347_v2 = vshrl.u32 %v346_v0, 7 }
  0xea   :  { %1205 = vmatprep.subr.mxu1 %v884_v8  ;;  %1290 = vmatprep.subr.mxu0 %v946_v19  ;;  %v927_v19 = vld [vmem:[#allocation10 + $0x200] sm:$0xff] }
  0xeb   :  { %1206 = vmatpush1.msra.mxu1 %v883_v10  ;;  %1291 = vmatpush1.msra.mxu0 %v945_v21  ;;  %v5827_v5 = vsub.s32 0, %v347_v2  ;;  %v5829_v8 = vsub.s32 1, %v347_v2  ;;  %v916_v21 = vld [vmem:[#allocation10 + $0x1a8] sm:$0xff]  ;;  %v906_v2 = vld [vmem:[#allocation10 + $0x158] sm:$0xff] }
  0xec   :  { %1207 = vmatprep.subr.mxu1 %v882_v12  ;;  %1292 = vmatprep.subr.mxu0 %v944_v23 }
  0xed   :  { %1208 = vmatpush1.msra.mxu1 %v881_v14  ;;  %1293 = vmatpush1.msra.mxu0 %v943_v25  ;;  %v5832_v11 = vrot.slane %v344_v6, %v5827_v5  ;;  %v5835_v12 = vrot.slane %v344_v6, %v5829_v8  ;;  %v915_v25 = vld [vmem:[#allocation10 + $0x1a0] sm:$0xff]  ;;  %v905_v6 = vld [vmem:[#allocation10 + $0x150] sm:$0xff] }
  0xee   :  { %1209 = vmatprep.subr.mxu1 %v880_v16  ;;  %1294 = vmatprep.subr.mxu0 %v942_v27  ;;  %v918_v16 = vld [vmem:[#allocation10 + $0x1b8] sm:$0xff] }
  0xef   :  { %1210 = vmatpush1.msra.mxu1 %v879_v18  ;;  %1295 = vmatpush1.msra.mxu0 %v941_v29  ;;  %v917_v18 = vld [vmem:[#allocation10 + $0x1b0] sm:$0xff]  ;;  %v914_v29 = vld [vmem:[#allocation10 + $0x198] sm:$0xff] }
  0xf0   :  { %1211 = vmatprep.subr.mxu1 %v878_v20  ;;  %1296 = vmatprep.subr.mxu0 %v940_v31 }
  0xf1   :  { %1212 = vmatpush1.msra.mxu1 %v877_v22  ;;  %1297 = vmatpush1.msra.mxu0 %v939_v33  ;;  %v990_v22 = vld [vmem:[#allocation10 + $0x3f8] sm:$0xff]  ;;  %v987_v33 = vld [vmem:[#allocation10 + $0x3e0] sm:$0xff] }
  0xf2   :  { %1213 = vmatprep.subr.mxu1 %v876_v24  ;;  %1298 = vmatprep.subr.mxu0 %v938_v35 }
  0xf3   :  { %1214 = vmatpush1.msra.mxu1 %v875_v26  ;;  %1299 = vmatpush1.msra.mxu0 %v937_v37  ;;  %v989_v26 = vld [vmem:[#allocation10 + $0x3f0] sm:$0xff]  ;;  %v912_v37 = vld [vmem:[#allocation10 + $0x188] sm:$0xff] }
  0xf4   :  { %1215 = vmatprep.subr.mxu1 %v874_v28  ;;  %1300 = vmatprep.subr.mxu0 %v936_v39 }
  0xf5   :  { %1216 = vmatpush1.msra.mxu1 %v873_v30  ;;  %1301 = vmatpush1.msra.mxu0 %v935_v41  ;;  %v988_v30 = vld [vmem:[#allocation10 + $0x3e8] sm:$0xff]  ;;  %v911_v41 = vld [vmem:[#allocation10 + $0x180] sm:$0xff] }
  0xf6   :  { %1217 = vmatprep.subr.mxu1 %v872_v32  ;;  %1302 = vmatprep.subr.mxu0 %v934_v43  ;;  %v913_v32 = vld [vmem:[#allocation10 + $0x190] sm:$0xff] }
  0xf7   :  { %1218 = vmatpush1.msra.mxu1 %v871_v34  ;;  %1303 = vmatpush1.msra.mxu0 %v933_v45 }
  0xf8   :  { %1219 = vmatprep.subr.mxu1 %v870_v36  ;;  %1304 = vmatprep.subr.mxu0 %v932_v47  ;;  %v910_v47 = vld [vmem:[#allocation10 + $0x178] sm:$0xff] }
  0xf9   :  { %1220 = vmatpush1.msra.mxu1 %v869_v38  ;;  %1305 = vmatpush1.msra.mxu0 %v931_v49  ;;  %v986_v38 = vld [vmem:[#allocation10 + $0x3d8] sm:$0xff] }
  0xfa   :  { %1221 = vmatprep.subr.mxu1 %v868_v40  ;;  %1306 = vmatprep.subr.mxu0 %v930_v51  ;;  %v983_v51 = vld [vmem:[#allocation10 + $0x3c0] sm:$0xff] }
  0xfb   :  { %1222 = vmatpush1.msra.mxu1 %v867_v42  ;;  %1307 = vmatpush1.msra.mxu0 %v929_v53  ;;  %v985_v42 = vld [vmem:[#allocation10 + $0x3d0] sm:$0xff] }
  0xfc   :  { %1223 = vmatprep.subr.mxu1 %v866_v44  ;;  %1308 = vmatprep.subr.mxu0 %v928_v17 }
  0xfd   :  { %1224 = vmatpush1.msra.mxu1 %v865_v46  ;;  %1309 = vmatpush1.msra.mxu0 %v927_v19  ;;  %v977_v19 = vld [vmem:[#allocation10 + $0x390] sm:$0xff] }
  0xfe   :  { %1225 = vmatprep.subr.mxu1 %v864_v48  ;;  %1310 = vmatprep.subr.mxu0 %v990_v22  ;;  %v984_v48 = vld [vmem:[#allocation10 + $0x3c8] sm:$0xff]  ;;  %v902_v22 = vld [vmem:[#allocation10 + $0x138] sm:$0xff] }
  0xff   :  { %1226 = vmatpush1.msra.mxu1 %v863_v50  ;;  %1311 = vmatpush2.msra.mxu0 %v989_v26  ;;  %v909_v50 = vld [vmem:[#allocation10 + $0x170] sm:$0xff] }
 0x100   :  { %1227 = vmatprep.subr.mxu1 %v926_v52  ;;  %1312 = vmatprep.subr.mxu0 %v988_v30  ;;  %v901_v26 = vld [vmem:[#allocation10 + $0x130] sm:$0xff] }
 0x101   :  { %1228 = vmatpush2.msra.mxu1 %v925_v54  ;;  %1313 = vmatpush2.msra.mxu0 %v987_v33 }
 0x102   :  { %1229 = vmatprep.subr.mxu1 %v924_v55  ;;  %1314 = vmatprep.subr.mxu0 %v986_v38  ;;  %v898_v38 = vld [vmem:[#allocation10 + $0x118] sm:$0xff] }
 0x103   :  { %1230 = vmatpush2.msra.mxu1 %v923_v56  ;;  %1315 = vmatpush2.msra.mxu0 %v985_v42  ;;  %v908_v56 = vld [vmem:[#allocation10 + $0x168] sm:$0xff] }
 0x104   :  { %1231 = vmatprep.subr.mxu1 %v922_v57  ;;  %1316 = vmatprep.subr.mxu0 %v984_v48  ;;  %v982_v57 = vld [vmem:[#allocation10 + $0x3b8] sm:$0xff]  ;;  %v969_v48 = vld [vmem:[#allocation10 + $0x350] sm:$0xff] }
 0x105   :  { %1232 = vmatpush2.msra.mxu1 %v921_v58  ;;  %1317 = vmatpush2.msra.mxu0 %v983_v51  ;;  %v967_v51 = vld [vmem:[#allocation10 + $0x340] sm:$0xff] }
 0x106   :  { %1233 = vmatprep.subr.mxu1 %v920_v59  ;;  %1318 = vmatprep.subr.mxu0 %v982_v57  ;;  %v964_v57 = vld [vmem:[#allocation10 + $0x328] sm:$0xff] }
 0x107   :  { %1234 = vmatpush2.msra.mxu1 %v919_v60  ;;  %v907_v60 = vld [vmem:[#allocation10 + $0x160] sm:$0xff] }
 0x108   :  { %1235 = vmatprep.subr.mxu1 %v918_v16 }
 0x109   :  { %1236 = vmatpush2.msra.mxu1 %v917_v18  ;;  %v903_v18 = vld [vmem:[#allocation10 + $0x140] sm:$0xff] }
 0x10a   :  { %1237 = vmatprep.subr.mxu1 %v916_v21 }
 0x10b   :  { %1238 = vmatpush2.msra.mxu1 %v915_v25 }
 0x10c   :  { %1239 = vmatprep.subr.mxu1 %v914_v29 }
 0x10d   :  { %1240 = vmatpush2.msra.mxu1 %v913_v32  ;;  %v974_v32 = vld [vmem:[#allocation10 + $0x378] sm:$0xff] }
 0x10e   :  { %1241 = vmatprep.subr.mxu1 %v912_v37  ;;  %v973_v37 = vld [vmem:[#allocation10 + $0x370] sm:$0xff] }
 0x10f   :  { %1242 = vmatpush2.msra.mxu1 %v911_v41  ;;  %v897_v41 = vld [vmem:[#allocation10 + $0x110] sm:$0xff] }
 0x110   :  { %1243 = vmatprep.subr.mxu1 %v910_v47  ;;  %v895_v47 = vld [vmem:[#allocation10 + $0x100] sm:$0xff] }
 0x111   :  { %1244 = vmatpush2.msra.mxu1 %v909_v50  ;;  %v968_v50 = vld [vmem:[#allocation10 + $0x348] sm:$0xff] }
 0x112   :  { %1245 = vmatprep.subr.mxu1 %v908_v56  ;;  %v965_v56 = vld [vmem:[#allocation10 + $0x330] sm:$0xff] }
 0x113   :  { %1246 = vmatpush2.msra.mxu1 %v907_v60  ;;  %v963_v60 = vld [vmem:[#allocation10 + $0x320] sm:$0xff] }
 0x114   :  { %1247 = vmatprep.subr.mxu1 %v906_v2 }
 0x115   :  { %1248 = vmatpush2.msra.mxu1 %v905_v6 }
 0x17c   :  { %v422_v61 = vpop.f32.mrf.mxu0 }
 0x17d   :  { %v423_v15 = vadd.f32 %v422_v61, %v5832_v11  ;;  %v981_v61 = vld [vmem:[#allocation10 + $0x3b0] sm:$0xff] }
 0x17e   :  { %v424_v62 = vpop.f32.mrf.mxu0  ;;  %1319 = vmatpush2.msra.mxu0 %v981_v61  ;;  %v962_v61 = vld [vmem:[#allocation10 + $0x318] sm:$0xff] }
 0x17f   :  { %v511_v3 = vpop.f32.mrf.mxu1  ;;  %v425_v20 = vadd.f32 %v424_v62, %v5835_v12 }
 0x180   :  { %v512_v27 = vadd.f32 %v511_v3, %v423_v15  ;;  %v980_v3 = vld [vmem:[#allocation10 + $0x3a8] sm:$0xff]  ;;  %v978_v15 = vld [vmem:[#allocation10 + $0x398] sm:$0xff] }
 0x181   :  { %v428_v63 = vpop.f32.mrf.mxu0  ;;  %v513_v7 = vpop.f32.mrf.mxu1  ;;  %1320 = vmatprep.subr.mxu0 %v980_v3  ;;  %v959_v3 = vld [vmem:[#allocation10 + $0x300] sm:$0xff] }
 0x182   :  { %v429_v28 = vadd.f32 %v428_v63, %v5832_v11  ;;  %v514_v34 = vadd.f32 %v513_v7, %v425_v20  ;;  %v979_v7 = vld [vmem:[#allocation10 + $0x3a0] sm:$0xff] }
 0x183   :  { %v430_v1 = vpop.f32.mrf.mxu0  ;;  %v517_v9 = vpop.f32.mrf.mxu1  ;;  %1321 = vmatpush2.msra.mxu0 %v979_v7 }
 0x184   :  { %v431_v35 = vadd.f32 %v430_v1, %v5835_v12  ;;  %v518_v43 = vadd.f32 %v517_v9, %v429_v28  ;;  %1322 = vmatprep.subr.mxu0 %v978_v15 }
 0x185   :  { %v434_v4 = vpop.f32.mrf.mxu0  ;;  %v519_v13 = vpop.f32.mrf.mxu1  ;;  %1323 = vmatpush2.msra.mxu0 %v977_v19 }
 0x186   :  { %v435_v44 = vadd.f32 %v434_v4, %v5832_v11  ;;  %v520_v52 = vadd.f32 %v519_v13, %v431_v35 }
 0x187   :  { %v436_v10 = vpop.f32.mrf.mxu0  ;;  %v523_v23 = vpop.f32.mrf.mxu1 }
 0x188   :  { %v437_v53 = vadd.f32 %v436_v10, %v5835_v12  ;;  %v524_v62 = vadd.f32 %v523_v23, %v435_v44  ;;  %v976_v23 = vld [vmem:[#allocation10 + $0x388] sm:$0xff] }
 0x189   :  { %v5837_v14 = vpop.f32.mrf.mxu0  ;;  %v525_v39 = vpop.f32.mrf.mxu1  ;;  %1324 = vmatprep.subr.mxu0 %v976_v23  ;;  %v896_v44 = vld [vmem:[#allocation10 + $0x108] sm:$0xff] }
 0x18a   :  { %v441_v63 = vadd.f32 %v5837_v14, %v5832_v11  ;;  %v526_v9 = vadd.f32 %v525_v39, %v437_v53  ;;  %v904_v14 = vld [vmem:[#allocation10 + $0x148] sm:$0xff]  ;;  %v966_v53 = vld [vmem:[#allocation10 + $0x338] sm:$0xff] }
 0x18b   :  { %v5841_v24 = vpop.f32.mrf.mxu0  ;;  %v529_v58 = vpop.f32.mrf.mxu1  ;;  %1249 = vmatprep.subr.mxu1 %v904_v14 }
 0x18c   :  { %v443_v10 = vadd.f32 %v5841_v24, %v5835_v12  ;;  %v530_v20 = vadd.f32 %v529_v58, %v441_v63  ;;  %1250 = vmatpush2.msra.mxu1 %v903_v18  ;;  %v960_v63 = vld [vmem:[#allocation10 + $0x308] sm:$0xff] }
 0x18d   :  { %v531_v16 = vpop.f32.mrf.mxu1  ;;  %1251 = vmatprep.subr.mxu1 %v902_v22 }
 0x18e   :  { %v532_v28 = vadd.f32 %v531_v16, %v443_v10  ;;  %1252 = vmatpush2.msra.mxu1 %v901_v26 }
 0x19d   :  { %v600_v31 = vpop.f32.mrf.mxu0 }
 0x19e   :  { %v601_v36 = vadd.f32 %v600_v31, %v512_v27  ;;  %v975_v27 = vld [vmem:[#allocation10 + $0x380] sm:$0xff]  ;;  %v900_v31 = vld [vmem:[#allocation10 + $0x128] sm:$0xff] }
 0x19f   :  { %v602_v40 = vpop.f32.mrf.mxu0  ;;  %1325 = vmatpush2.msra.mxu0 %v975_v27  ;;  %1253 = vmatprep.subr.mxu1 %v900_v31 }
 0x1a0   :  { %v5846_v45 = vmax.f32 %v601_v36, 0.0  ;;  %v603_v46 = vadd.f32 %v602_v40, %v514_v34  ;;  %v899_v34 = vld [vmem:[#allocation10 + $0x120] sm:$0xff]  ;;  %1326 = vmatprep.subr.mxu0 %v974_v32  ;;  %v972_v40 = vld [vmem:[#allocation10 + $0x368] sm:$0xff] }
 0x1a1   :  { %v606_v49 = vpop.f32.mrf.mxu0  ;;  %1254 = vmatpush2.msra.mxu1 %v899_v34  ;;  %1327 = vmatpush2.msra.mxu0 %v973_v37 }
 0x1a2   :  { %631 = vst [vmem:[#allocation2 + $0x30] sm:$0xff] %v5846_v45  ;;  %v5850_v54 = vmax.f32 %v603_v46, 0.0  ;;  %v5852_v55 = vadd.f32 %v606_v49, %v518_v43  ;;  %v971_v43 = vld [vmem:[#allocation10 + $0x360] sm:$0xff]  ;;  %1255 = vmatprep.subr.mxu1 %v898_v38  ;;  %1328 = vmatprep.subr.mxu0 %v972_v40  ;;  %v970_v46 = vld [vmem:[#allocation10 + $0x358] sm:$0xff] }
 0x1a3   :  { %v608_v59 = vpop.f32.mrf.mxu0  ;;  %1256 = vmatpush2.msra.mxu1 %v897_v41  ;;  %1329 = vmatpush2.msra.mxu0 %v971_v43  ;;  %v1022_v49 = vld [vmem:[#allocation10 + $0x4f8] sm:$0xff] }
 0x1a4   :  { %632 = vst [vmem:[#allocation2] sm:$0xff] %v5850_v54  ;;  %v625_v0 = vmax.f32 %v5852_v55, 0.0  ;;  %v5858_v1 = vadd.f32 %v608_v59, %v520_v52  ;;  %1257 = vmatprep.subr.mxu1 %v896_v44  ;;  %1330 = vmatprep.subr.mxu0 %v970_v46 }
 0x1a5   :  { %v612_v4 = vpop.f32.mrf.mxu0  ;;  %1258 = vmatpush2.msra.mxu1 %v895_v47  ;;  %1331 = vmatpush2.msra.mxu0 %v969_v48  ;;  %v1021_v47 = vld [vmem:[#allocation10 + $0x4f0] sm:$0xff] }
 0x1a6   :  { %v626_v11 = vmax.f32 %v5858_v1, 0.0  ;;  %v5863_v13 = vadd.f32 %v612_v4, %v524_v62  ;;  %667 = vrot.lane.b32.xlu0 %v625_v0, %s5653_s2  ;;  %1361 = vmatprep.subr.mxu1 %v1022_v49  ;;  %v961_v62 = vld [vmem:[#allocation10 + $0x310] sm:$0xff]  ;;  %v1086_v4 = vld [vmem:[#allocation10 + $0x6f8] sm:$0xff] }
 0x1a7   :  { %v614_v17 = vpop.f32.mrf.mxu0  ;;  %1332 = vmatprep.subr.mxu0 %v968_v50 }
 0x1a8   :  { %v627_v12 = vmax.f32 %v5863_v13, 0.0  ;;  %v5869_v21 = vadd.f32 %v614_v17, %v526_v9  ;;  %1333 = vmatpush2.msra.mxu0 %v967_v51  ;;  %v1020_v51 = vld [vmem:[#allocation10 + $0x4e8] sm:$0xff] }
 0x1a9   :  { %v618_v24 = vpop.f32.mrf.mxu0  ;;  %v5871_v25 = vld [vmem:[#allocation2 + $0x30] sm:$0xfe]  ;;  %1334 = vmatprep.subr.mxu0 %v966_v53 }
 0x1aa   :  { %v628_v29 = vmax.f32 %v5869_v21, 0.0  ;;  %v619_v30 = vadd.f32 %v618_v24, %v530_v20  ;;  %708 = vrot.lane.b32.xlu1 %v5871_v25, %s5653_s2  ;;  %669 = vrot.lane.b32.xlu0 %v626_v11, %s5653_s2 }
 0x1ab   :  { %v620_v33 = vpop.f32.mrf.mxu0  ;;  %v5879_v39 = vld [vmem:[#allocation2] sm:$0xfe]  ;;  %1335 = vmatpush2.msra.mxu0 %v965_v56 }
 0x1ac   :  { %v629_v35 = vmax.f32 %v619_v30, 0.0  ;;  %v621_v36 = vadd.f32 %v620_v33, %v532_v28  ;;  %1336 = vmatprep.subr.mxu0 %v964_v57  ;;  %v1019_v57 = vld [vmem:[#allocation10 + $0x4e0] sm:$0xff] }
 0x1ad   :  { %1337 = vmatpush2.msra.mxu0 %v963_v60 }
 0x1ae   :  { %637 = vst [vmem:[#allocation2 + $0x8] sm:$0xf] %v629_v35  ;;  %v630_v42 = vmax.f32 %v621_v36, 0.0  ;;  %710 = vrot.lane.b32.xlu1 %v5879_v39, %s5653_s2  ;;  %663 = vrot.lane.b32.xlu0 %v5846_v45, %s5653_s2 }
 0x1af   :  { %1338 = vmatprep.subr.mxu0 %v962_v61  ;;  %v1018_v61 = vld [vmem:[#allocation10 + $0x4d8] sm:$0xff] }
 0x1b0   :  { %638 = vst [vmem:[#allocation2 + $0x48] sm:$0xf] %v630_v42  ;;  %1339 = vmatpush2.msra.mxu0 %v961_v62 }
 0x1b1   :  { %1340 = vmatprep.subr.mxu0 %v960_v63  ;;  %v1017_v63 = vld [vmem:[#allocation10 + $0x4d0] sm:$0xff] }
 0x1b2   :  { %665 = vrot.lane.b32.xlu1 %v5850_v54, %s5653_s2  ;;  %671 = vrot.lane.b32.xlu0 %v627_v12, %s5653_s2 }
 0x1b3   :  { %1341 = vmatpush2.msra.mxu0 %v959_v3  ;;  %v1016_v3 = vld [vmem:[#allocation10 + $0x4c8] sm:$0xff] }
 0x1b4   :  { %1444 = vmatprep.subr.mxu0 %v1086_v4  ;;  %v1015_v4 = vld [vmem:[#allocation10 + $0x4c0] sm:$0xff] }
 0x1b5   :  { %v5890_v52 = vld [vmem:[#allocation2 + $0x8] sm:$0xf] }
 0x1b6   :  { %673 = vrot.lane.b32.xlu1 %v628_v29, %s5653_s2  ;;  %712 = vrot.lane.b32.xlu0 %v5890_v52, %s5653_s2  ;;  %v5897_v59 = vld [vmem:[#allocation2 + $0x8] sm:$0x7] }
 0x1b7   :  { %v703_v58 = vld [vmem:[#allocation2 + $0x48] sm:$0xf] }
 0x1b8   :  { %v5902_v2 = vld [vmem:[#allocation2 + $0x48] sm:$0x7] }
 0x1ba   :  { %714 = vrot.lane.b32.xlu1 %v703_v58, %s5653_s2  ;;  %675 = vrot.lane.b32.xlu0 %v5897_v59, %s5653_s2 }
 0x1be   :  { %677 = vrot.lane.b32.xlu1 %v5902_v2, %s5653_s2 }
 0x218   :  { %v668_v6 = vpop.permute.xlu0 %667 }
 0x21c   :  { %v709_v7 = vpop.permute.xlu1 %708  ;;  %v670_v9 = vpop.permute.xlu0 %669 }
 0x21d   :  { %v681_v10 = vsel %vm679_vm0, %v668_v6, %v670_v9  ;;  %v695_v14 = vmax.f32 %v626_v11, %v670_v9 }
 0x21e   :  { %v694_v16 = vmax.f32 %v625_v0, %v681_v10 }
 0x21f   :  { %v739_v23 = vrot.slane %v695_v14, 1 }
 0x220   :  { %v711_v15 = vpop.permute.xlu1 %710  ;;  %v664_v17 = vpop.permute.xlu0 %663  ;;  %v736_v26 = vrot.slane %v694_v16, 1 }
 0x221   :  { %v716_v18 = vsel %vm679_vm0, %v709_v7, %v711_v15  ;;  %v723_v19 = vmax.f32 %v5879_v39, %v711_v15  ;;  %v1014_v7 = vld [vmem:[#allocation10 + $0x4b8] sm:$0xff] }
 0x222   :  { %v722_v20 = vmax.f32 %v5871_v25, %v716_v18 }
 0x223   :  { %v738_v22 = vrot.slane %v723_v19, 1  ;;  %v1011_v19 = vld [vmem:[#allocation10 + $0x4a0] sm:$0xff] }
 0x224   :  { %v735_v24 = vrot.slane %v722_v20, 1  ;;  %v666_v27 = vpop.permute.xlu1 %665  ;;  %v672_v28 = vpop.permute.xlu0 %671  ;;  %v1085_v20 = vld [vmem:[#allocation10 + $0x6f0] sm:$0xff] }
 0x225   :  { %v740_v1 = vsel %vm734_vm1, %v738_v22, %v739_v23  ;;  %v693_v11 = vmax.f32 %v5850_v54, %v666_v27  ;;  %v680_v55 = vsel %vm679_vm0, %v664_v17, %v666_v27  ;;  %v1012_v17 = vld [vmem:[#allocation10 + $0x4a8] sm:$0xff]  ;;  %v1010_v22 = vld [vmem:[#allocation10 + $0x498] sm:$0xff] }
 0x226   :  { %v737_v0 = vsel %vm734_vm1, %v735_v24, %v736_v26  ;;  %v692_v30 = vmax.f32 %v5846_v45, %v680_v55 }
 0x227   :  { %v758_v31 = vmax.f32 %v693_v11, %v740_v1 }
 0x228   :  { %v674_v32 = vpop.permute.xlu1 %673  ;;  %v757_v25 = vmax.f32 %v692_v30, %v737_v0  ;;  %v713_v35 = vpop.permute.xlu0 %712  ;;  %v1084_v0 = vld [vmem:[#allocation10 + $0x6e8] sm:$0xff]  ;;  %v1009_v30 = vld [vmem:[#allocation10 + $0x490] sm:$0xff] }
 0x229   :  { %766 = vst.msk [vmem:[#allocation3 + $0x8] sm:$0xff] %vm679_vm0, %v758_v31  ;;  %v697_v33 = vmax.f32 %v628_v29, %v674_v32  ;;  %v682_v34 = vsel %vm679_vm0, %v672_v28, %v674_v32 }
 0x22a   :  { %765 = vst [vmem:[#allocation3] sm:$0xff] %v757_v25  ;;  %v696_v54 = vmax.f32 %v627_v12, %v682_v34  ;;  %v1008_v34 = vld [vmem:[#allocation10 + $0x488] sm:$0xff] }
 0x22b   :  { %v743_v36 = vrot.slane %v697_v33, 1 }
 0x22c   :  { %v715_v37 = vpop.permute.xlu1 %714  ;;  %v741_v38 = vrot.slane %v696_v54, 1  ;;  %v676_v46 = vpop.permute.xlu0 %675 }
 0x22d   :  { %v744_v45 = vsel %vm734_vm1, %v739_v23, %v743_v36  ;;  %v725_v39 = vmax.f32 %v703_v58, %v715_v37  ;;  %v717_v40 = vsel %vm679_vm0, %v713_v35, %v715_v37  ;;  %v1007_v37 = vld [vmem:[#allocation10 + $0x480] sm:$0xff] }
 0x22e   :  { %v760_v41 = vmax.f32 %v695_v14, %v744_v45  ;;  %v742_v42 = vsel %vm734_vm1, %v736_v26, %v741_v38  ;;  %v724_v21 = vmax.f32 %v5890_v52, %v717_v40  ;;  %v1013_v14 = vld [vmem:[#allocation10 + $0x4b0] sm:$0xff]  ;;  %v1006_v45 = vld [vmem:[#allocation10 + $0x478] sm:$0xff] }
 0x22f   :  { %v747_v29 = vrot.slane %v725_v39, 1  ;;  %v5929_v43 = vmax.f32 %v694_v16, %v742_v42  ;;  %v1080_v39 = vld [vmem:[#allocation10 + $0x6c8] sm:$0xff]  ;;  %v1005_v40 = vld [vmem:[#allocation10 + $0x470] sm:$0xff] }
 0x230   :  { %768 = vst.msk [vmem:[#allocation3 + $0x18] sm:$0xff] %vm679_vm0, %v760_v41  ;;  %v678_v13 = vpop.permute.xlu1 %677  ;;  %v745_v12 = vrot.slane %v724_v21, 1  ;;  %v775_v44 = vld [vmem:[#allocation3 + $0x8] sm:$0xff]  ;;  %v1078_v21 = vld [vmem:[#allocation10 + $0x6b8] sm:$0xff] }
 0x231   :  { %v748_v48 = vsel %vm734_vm1, %v743_v36, %v747_v29  ;;  %v699_v49 = vmax.f32 %v5902_v2, %v678_v13  ;;  %1259 = vmatprep.mubr.f32.mxu1 %v775_v44  ;;  %v683_v50 = vsel %vm679_vm0, %v676_v46, %v678_v13  ;;  %v781_v2 = vld [vmem:[#allocation3 + $0x8] sm:$0xfc]  ;;  %v802_v16 = vrot.slane %v5929_v43, 2  ;;  %v1079_v41 = vld [vmem:[#allocation10 + $0x6c0] sm:$0xff]  ;;  %v1077_v44 = vld [vmem:[#allocation10 + $0x6b0] sm:$0xff] }
 0x232   :  { %v762_v53 = vmax.f32 %v697_v33, %v748_v48  ;;  %v746_v52 = vsel %vm734_vm1, %v741_v38, %v745_v12  ;;  %v698_v56 = vmax.f32 %v5897_v59, %v683_v50  ;;  %1260 = vmatmul.mubr.f32.vlgmr.msra.gmra.mxu1 %v757_v25  ;;  %v780_v59 = vld [vmem:[#allocation3] sm:$0xfc]  ;;  %v804_v9 = vrot.slane %v781_v2, 2  ;;  %v785_v26 = vld [vmem:[#allocation3 + $0x8] sm:$0xf0]  ;;  %v1081_v38 = vld [vmem:[#allocation10 + $0x6d0] sm:$0xff] }
 0x233   :  { %v764_v58 = vmax.f32 %v699_v49, %v747_v29  ;;  %v5937_v60 = vmax.f32 %v696_v54, %v746_v52  ;;  %1362 = vmatpush1.msra.mxu1 %v1021_v47  ;;  %v801_v15 = vrot.slane %v780_v59, 2  ;;  %v825_v25 = vrot.slane %v785_v26, 4  ;;  %v1083_v33 = vld [vmem:[#allocation10 + $0x6e0] sm:$0xff]  ;;  %v1082_v54 = vld [vmem:[#allocation10 + $0x6d8] sm:$0xff]  ;;  %v1004_v42 = vld [vmem:[#allocation10 + $0x468] sm:$0xff] }
 0x234   :  { %770 = vst.msk [vmem:[#allocation3 + $0x28] sm:$0xff] %vm679_vm0, %v762_v53  ;;  %v763_v62 = vmax.f32 %v698_v56, %v745_v12  ;;  %1363 = vmatprep.subr.mxu1 %v1020_v51  ;;  %v789_v29 = vld [vmem:[#allocation3 + $0x8] sm:$0xc0]  ;;  %v1003_v13 = vld [vmem:[#allocation10 + $0x460] sm:$0xff]  ;;  %v1002_v46 = vld [vmem:[#allocation10 + $0x458] sm:$0xff] }
 0x235   :  { %773 = vst.msk [vmem:[#allocation3 + $0x38] sm:$0x7] %vm772_vm2, %v764_v58  ;;  %769 = vst [vmem:[#allocation3 + $0x20] sm:$0xff] %v5937_v60  ;;  %1364 = vmatpush1.msra.mxu1 %v1019_v57  ;;  %v803_v27 = vsel %vm800_vm3, %v801_v15, %v802_v16  ;;  %v1076_v47 = vld [vmem:[#allocation10 + $0x6a8] sm:$0xff]  ;;  %v846_v48 = vrot.slane %v789_v29, 6  ;;  %v1001_v49 = vld [vmem:[#allocation10 + $0x450] sm:$0xff] }
 0x236   :  { %771 = vst [vmem:[#allocation3 + $0x30] sm:$0x7] %v763_v62  ;;  %1365 = vmatprep.subr.mxu1 %v1018_v61  ;;  %v1075_v50 = vld [vmem:[#allocation10 + $0x6a0] sm:$0xff]  ;;  %v1000_v53 = vld [vmem:[#allocation10 + $0x448] sm:$0xff]  ;;  %v1074_v52 = vld [vmem:[#allocation10 + $0x698] sm:$0xff] }
 0x237   :  { %v5942_v6 = vld [vmem:[#allocation3 + $0x18] sm:$0xff]  ;;  %1366 = vmatpush1.msra.mxu1 %v1017_v63  ;;  %v999_v56 = vld [vmem:[#allocation10 + $0x440] sm:$0xff]  ;;  %v1072_v61 = vld [vmem:[#allocation10 + $0x688] sm:$0xff] }
 0x238   :  { %1265 = vmatprep.mubr.f32.mxu1 %v5942_v6  ;;  %v805_v10 = vrot.slane %v5942_v6, 2  ;;  %1367 = vmatprep.subr.mxu1 %v1016_v3  ;;  %v826_v11 = vrot.slane %v5942_v6, 4  ;;  %v847_v12 = vrot.slane %v5942_v6, 6  ;;  %v1073_v57 = vld [vmem:[#allocation10 + $0x690] sm:$0xff]  ;;  %v998_v58 = vld [vmem:[#allocation10 + $0x438] sm:$0xff]  ;;  %v1071_v63 = vld [vmem:[#allocation10 + $0x680] sm:$0xff] }
 0x239   :  { %1368 = vmatpush1.msra.mxu1 %v1015_v4  ;;  %v997_v62 = vld [vmem:[#allocation10 + $0x430] sm:$0xff]  ;;  %v996_v2 = vld [vmem:[#allocation10 + $0x428] sm:$0xff]  ;;  %v1070_v3 = vld [vmem:[#allocation10 + $0x678] sm:$0xff] }
 0x23a   :  { %v806_v18 = vsel %vm800_vm3, %v804_v9, %v805_v10  ;;  %1266 = vmatmul.mubr.f32.gmra.mxu1 %v5929_v43  ;;  %1369 = vmatprep.subr.mxu1 %v1014_v7  ;;  %v827_v35 = vsel %vm821_vm4, %v825_v25, %v826_v11  ;;  %v848_v51 = vsel %vm842_vm5, %v846_v48, %v847_v12  ;;  %v995_v59 = vld [vmem:[#allocation10 + $0x420] sm:$0xff]  ;;  %v1069_v4 = vld [vmem:[#allocation10 + $0x670] sm:$0xff]  ;;  %v994_v7 = vld [vmem:[#allocation10 + $0x418] sm:$0xff] }
 0x23b   :  { %1342 = vmatprep.mubr.f32.mxu0 %v806_v18  ;;  %v779_v23 = vld [vmem:[#allocation3 + $0x28] sm:$0xf]  ;;  %1370 = vmatpush1.msra.mxu1 %v1013_v14  ;;  %v1065_v18 = vld [vmem:[#allocation10 + $0x650] sm:$0xff]  ;;  %v1062_v26 = vld [vmem:[#allocation10 + $0x638] sm:$0xff] }
 0x23c   :  { %v783_v24 = vld [vmem:[#allocation3 + $0x28] sm:$0x3f]  ;;  %1271 = vmatprep.mubr.f32.mxu1 %v779_v23  ;;  %1371 = vmatprep.subr.mxu1 %v1012_v17  ;;  %v778_v28 = vld [vmem:[#allocation3 + $0x20] sm:$0xf] }
 0x23d   :  { %v809_v1 = vrot.slane %v783_v24, 2  ;;  %v782_v55 = vld [vmem:[#allocation3 + $0x20] sm:$0x3f]  ;;  %1343 = vmatmul.mubr.f32.vlgmr.msra.gmra.mxu0 %v803_v27  ;;  %1372 = vmatpush1.msra.mxu1 %v1011_v19  ;;  %v1068_v9 = vld [vmem:[#allocation10 + $0x668] sm:$0xff] }
 0x23e   :  { %v807_v31 = vrot.slane %v782_v55, 2  ;;  %1445 = vmatpush1.msra.mxu0 %v1085_v20  ;;  %1272 = vmatmul.mubr.f32.gmra.mxu1 %v778_v28  ;;  %v1067_v14 = vld [vmem:[#allocation10 + $0x660] sm:$0xff]  ;;  %v992_v15 = vld [vmem:[#allocation10 + $0x408] sm:$0xff]  ;;  %v1054_v19 = vld [vmem:[#allocation10 + $0x5f8] sm:$0xff] }
 0x23f   :  { %v810_v32 = vsel %vm800_vm3, %v805_v10, %v809_v1  ;;  %1373 = vmatprep.subr.mxu1 %v1010_v22  ;;  %1446 = vmatprep.subr.mxu0 %v1084_v0  ;;  %v993_v10 = vld [vmem:[#allocation10 + $0x410] sm:$0xff]  ;;  %v991_v17 = vld [vmem:[#allocation10 + $0x400] sm:$0xff]  ;;  %v1064_v20 = vld [vmem:[#allocation10 + $0x648] sm:$0xff] }
 0x240   :  { %1348 = vmatprep.mubr.f32.mxu0 %v810_v32  ;;  %1374 = vmatpush1.msra.mxu1 %v1009_v30  ;;  %v808_v36 = vsel %vm800_vm3, %v802_v16, %v807_v31  ;;  %v1066_v16 = vld [vmem:[#allocation10 + $0x658] sm:$0xff]  ;;  %v1053_v22 = vld [vmem:[#allocation10 + $0x5f0] sm:$0xff]  ;;  %v1063_v23 = vld [vmem:[#allocation10 + $0x640] sm:$0xff] }
 0x241   :  { %1425 = vmatprep.mubr.f32.mxu1 %v827_v35  ;;  %1447 = vmatpush1.msra.mxu0 %v1083_v33  ;;  %v1052_v24 = vld [vmem:[#allocation10 + $0x5e8] sm:$0xff]  ;;  %v1051_v27 = vld [vmem:[#allocation10 + $0x5e0] sm:$0xff]  ;;  %v1061_v28 = vld [vmem:[#allocation10 + $0x630] sm:$0xff] }
 0x242   :  { %1375 = vmatprep.subr.mxu1 %v1008_v34  ;;  %1448 = vmatprep.subr.mxu0 %v1082_v54  ;;  %v1060_v55 = vld [vmem:[#allocation10 + $0x628] sm:$0xff]  ;;  %v1049_v0 = vld [vmem:[#allocation10 + $0x5d0] sm:$0xff]  ;;  %v1059_v30 = vld [vmem:[#allocation10 + $0x620] sm:$0xff] }
 0x243   :  { %1349 = vmatmul.mubr.f32.gmra.mxu0 %v808_v36  ;;  %1376 = vmatpush1.msra.mxu1 %v1007_v37  ;;  %v1058_v32 = vld [vmem:[#allocation10 + $0x618] sm:$0xff]  ;;  %v1047_v25 = vld [vmem:[#allocation10 + $0x5c0] sm:$0xff]  ;;  %v1057_v33 = vld [vmem:[#allocation10 + $0x610] sm:$0xff] }
 0x244   :  { %1449 = vmatpush1.msra.mxu0 %v1081_v38  ;;  %1354 = vmatprep.mubr.f32.mxu0 %v809_v1  ;;  %v1050_v1 = vld [vmem:[#allocation10 + $0x5d8] sm:$0xff]  ;;  %v1056_v54 = vld [vmem:[#allocation10 + $0x608] sm:$0xff]  ;;  %v1045_v35 = vld [vmem:[#allocation10 + $0x5b0] sm:$0xff] }
 0x245   :  { %1377 = vmatprep.subr.mxu1 %v1006_v45  ;;  %1450 = vmatprep.subr.mxu0 %v1080_v39  ;;  %v1046_v34 = vld [vmem:[#allocation10 + $0x5b8] sm:$0xff]  ;;  %v1055_v36 = vld [vmem:[#allocation10 + $0x600] sm:$0xff]  ;;  %v1044_v37 = vld [vmem:[#allocation10 + $0x5a8] sm:$0xff] }
 0x246   :  { %1378 = vmatpush1.msra.mxu1 %v1005_v40  ;;  %1451 = vmatpush1.msra.mxu0 %v1079_v41  ;;  %v1118_v38 = vld [vmem:[#allocation10 + $0x7f8] sm:$0xff]  ;;  %v1043_v45 = vld [vmem:[#allocation10 + $0x5a0] sm:$0xff]  ;;  %v1117_v39 = vld [vmem:[#allocation10 + $0x7f0] sm:$0xff] }
 0x247   :  { %1379 = vmatprep.subr.mxu1 %v1004_v42  ;;  %1452 = vmatprep.subr.mxu0 %v1078_v21  ;;  %v1042_v40 = vld [vmem:[#allocation10 + $0x598] sm:$0xff]  ;;  %v1116_v41 = vld [vmem:[#allocation10 + $0x7e8] sm:$0xff]  ;;  %v1041_v42 = vld [vmem:[#allocation10 + $0x590] sm:$0xff] }
 0x248   :  { %1355 = vmatmul.mubr.f32.gmra.mxu0 %v807_v31  ;;  %1380 = vmatpush1.msra.mxu1 %v1003_v13  ;;  %v1048_v31 = vld [vmem:[#allocation10 + $0x5c8] sm:$0xff]  ;;  %v1115_v21 = vld [vmem:[#allocation10 + $0x7e0] sm:$0xff]  ;;  %v1114_v13 = vld [vmem:[#allocation10 + $0x7d8] sm:$0xff] }
 0x249   :  { %1453 = vmatpush1.msra.mxu0 %v1077_v44  ;;  %1381 = vmatprep.subr.mxu1 %v1002_v46  ;;  %v1040_v29 = vld [vmem:[#allocation10 + $0x588] sm:$0xff]  ;;  %v1039_v44 = vld [vmem:[#allocation10 + $0x580] sm:$0xff]  ;;  %v1113_v46 = vld [vmem:[#allocation10 + $0x7d0] sm:$0xff] }
 0x24a   :  { %1454 = vmatprep.subr.mxu0 %v1076_v47  ;;  %1508 = vmatprep.mubr.f32.mxu0 %v848_v51  ;;  %v1038_v47 = vld [vmem:[#allocation10 + $0x578] sm:$0xff]  ;;  %v1112_v48 = vld [vmem:[#allocation10 + $0x7c8] sm:$0xff] }
 0x24b   :  { %1382 = vmatpush1.msra.mxu1 %v1001_v49  ;;  %1455 = vmatpush1.msra.mxu0 %v1075_v50  ;;  %v1037_v49 = vld [vmem:[#allocation10 + $0x570] sm:$0xff]  ;;  %v1111_v50 = vld [vmem:[#allocation10 + $0x7c0] sm:$0xff]  ;;  %v1036_v51 = vld [vmem:[#allocation10 + $0x568] sm:$0xff] }
 0x24c   :  { %1383 = vmatprep.subr.mxu1 %v1000_v53  ;;  %1456 = vmatprep.subr.mxu0 %v1074_v52  ;;  %v1110_v53 = vld [vmem:[#allocation10 + $0x7b8] sm:$0xff]  ;;  %v1035_v52 = vld [vmem:[#allocation10 + $0x560] sm:$0xff] }
 0x24d   :  { %1384 = vmatpush1.msra.mxu1 %v999_v56  ;;  %1457 = vmatpush1.msra.mxu0 %v1073_v57  ;;  %v1109_v56 = vld [vmem:[#allocation10 + $0x7b0] sm:$0xff]  ;;  %v1034_v57 = vld [vmem:[#allocation10 + $0x558] sm:$0xff] }
 0x24e   :  { %1385 = vmatprep.subr.mxu1 %v998_v58  ;;  %1458 = vmatprep.subr.mxu0 %v1072_v61  ;;  %v1108_v58 = vld [vmem:[#allocation10 + $0x7a8] sm:$0xff]  ;;  %v1033_v61 = vld [vmem:[#allocation10 + $0x550] sm:$0xff] }
 0x24f   :  { %1386 = vmatpush1.msra.mxu1 %v997_v62  ;;  %1459 = vmatpush1.msra.mxu0 %v1071_v63  ;;  %v1107_v62 = vld [vmem:[#allocation10 + $0x7a0] sm:$0xff]  ;;  %v1032_v63 = vld [vmem:[#allocation10 + $0x548] sm:$0xff] }
 0x250   :  { %1387 = vmatprep.subr.mxu1 %v996_v2  ;;  %1460 = vmatprep.subr.mxu0 %v1070_v3  ;;  %v1106_v2 = vld [vmem:[#allocation10 + $0x798] sm:$0xff]  ;;  %v1031_v3 = vld [vmem:[#allocation10 + $0x540] sm:$0xff] }
 0x251   :  { %1388 = vmatpush1.msra.mxu1 %v995_v59  ;;  %1461 = vmatpush1.msra.mxu0 %v1069_v4  ;;  %v1105_v59 = vld [vmem:[#allocation10 + $0x790] sm:$0xff]  ;;  %v1030_v4 = vld [vmem:[#allocation10 + $0x538] sm:$0xff] }
 0x252   :  { %1389 = vmatprep.subr.mxu1 %v994_v7  ;;  %1462 = vmatprep.subr.mxu0 %v1068_v9  ;;  %v1104_v7 = vld [vmem:[#allocation10 + $0x788] sm:$0xff]  ;;  %v1029_v9 = vld [vmem:[#allocation10 + $0x530] sm:$0xff] }
 0x253   :  { %1390 = vmatpush1.msra.mxu1 %v993_v10  ;;  %1463 = vmatpush1.msra.mxu0 %v1067_v14  ;;  %v1103_v10 = vld [vmem:[#allocation10 + $0x780] sm:$0xff]  ;;  %v1028_v14 = vld [vmem:[#allocation10 + $0x528] sm:$0xff] }
 0x254   :  { %1391 = vmatprep.subr.mxu1 %v992_v15  ;;  %1464 = vmatprep.subr.mxu0 %v1066_v16  ;;  %v1102_v15 = vld [vmem:[#allocation10 + $0x778] sm:$0xff]  ;;  %v1027_v16 = vld [vmem:[#allocation10 + $0x520] sm:$0xff] }
 0x255   :  { %1392 = vmatpush1.msra.mxu1 %v991_v17  ;;  %1465 = vmatpush1.msra.mxu0 %v1065_v18  ;;  %v1101_v17 = vld [vmem:[#allocation10 + $0x770] sm:$0xff]  ;;  %v784_v18 = vld [vmem:[#allocation3] sm:$0xf0] }
 0x256   :  { %1393 = vmatprep.subr.mxu1 %v1054_v19  ;;  %1466 = vmatprep.subr.mxu0 %v1064_v20  ;;  %v1026_v19 = vld [vmem:[#allocation10 + $0x518] sm:$0xff]  ;;  %v1100_v20 = vld [vmem:[#allocation10 + $0x768] sm:$0xff] }
 0x257   :  { %1394 = vmatpush2.msra.mxu1 %v1053_v22  ;;  %1467 = vmatpush1.msra.mxu0 %v1063_v23  ;;  %v5960_v22 = vld [vmem:[#allocation3 + $0x28] sm:$0xff]  ;;  %v1025_v23 = vld [vmem:[#allocation10 + $0x510] sm:$0xff] }
 0x258   :  { %1395 = vmatprep.subr.mxu1 %v1052_v24  ;;  %1468 = vmatprep.subr.mxu0 %v1062_v26  ;;  %v1099_v24 = vld [vmem:[#allocation10 + $0x760] sm:$0xff]  ;;  %v1024_v26 = vld [vmem:[#allocation10 + $0x508] sm:$0xff] }
 0x259   :  { %1396 = vmatpush2.msra.mxu1 %v1051_v27  ;;  %1469 = vmatpush1.msra.mxu0 %v1061_v28  ;;  %v1098_v27 = vld [vmem:[#allocation10 + $0x758] sm:$0xff]  ;;  %v822_v28 = vrot.slane %v784_v18, 4 }
 0x25a   :  { %1397 = vmatprep.subr.mxu1 %v1050_v1  ;;  %1470 = vmatprep.subr.mxu0 %v1060_v55  ;;  %v823_v1 = vrot.slane %v5929_v43, 4  ;;  %v1023_v55 = vld [vmem:[#allocation10 + $0x500] sm:$0xff] }
 0x25b   :  { %1398 = vmatpush2.msra.mxu1 %v1049_v0  ;;  %1471 = vmatpush1.msra.mxu0 %v1059_v30  ;;  %v1097_v0 = vld [vmem:[#allocation10 + $0x750] sm:$0xff]  ;;  %v830_v30 = vrot.slane %v5960_v22, 4 }
 0x25c   :  { %1399 = vmatprep.subr.mxu1 %v1048_v31  ;;  %1472 = vmatprep.subr.mxu0 %v1058_v32  ;;  %v1096_v31 = vld [vmem:[#allocation10 + $0x748] sm:$0xff]  ;;  %v1150_v32 = vld [vmem:[#allocation10 + $0x8f8] sm:$0xff] }
 0x25d   :  { %1400 = vmatpush2.msra.mxu1 %v1047_v25  ;;  %1473 = vmatpush1.msra.mxu0 %v1057_v33  ;;  %v824_v25 = vsel %vm821_vm4, %v822_v28, %v823_v1  ;;  %v1095_v33 = vld [vmem:[#allocation10 + $0x740] sm:$0xff]  ;;  %v1124_v28 = vld [vmem:[#allocation10 + $0x828] sm:$0xff] }
 0x25e   :  { %1401 = vmatprep.subr.mxu1 %v1046_v34  ;;  %1474 = vmatprep.subr.mxu0 %v1056_v54  ;;  %v1149_v34 = vld [vmem:[#allocation10 + $0x8f0] sm:$0xff]  ;;  %v831_v54 = vsel %vm821_vm4, %v826_v11, %v830_v30 }
 0x25f   :  { %1402 = vmatpush2.msra.mxu1 %v1045_v35  ;;  %1475 = vmatpush1.msra.mxu0 %v1055_v36  ;;  %v1094_v35 = vld [vmem:[#allocation10 + $0x738] sm:$0xff]  ;;  %v1148_v36 = vld [vmem:[#allocation10 + $0x8e8] sm:$0xff]  ;;  %v1145_v11 = vld [vmem:[#allocation10 + $0x8d0] sm:$0xff] }
 0x260   :  { %1403 = vmatprep.subr.mxu1 %v1044_v37  ;;  %1476 = vmatprep.subr.mxu0 %v1118_v38  ;;  %v828_v37 = vrot.slane %v5937_v60, 4  ;;  %v1093_v38 = vld [vmem:[#allocation10 + $0x730] sm:$0xff] }
 0x261   :  { %1404 = vmatpush2.msra.mxu1 %v1043_v45  ;;  %1477 = vmatpush2.msra.mxu0 %v1117_v39  ;;  %v1147_v45 = vld [vmem:[#allocation10 + $0x8e0] sm:$0xff]  ;;  %v1092_v39 = vld [vmem:[#allocation10 + $0x728] sm:$0xff] }
 0x262   :  { %1405 = vmatprep.subr.mxu1 %v1042_v40  ;;  %1478 = vmatprep.subr.mxu0 %v1116_v41  ;;  %v1146_v40 = vld [vmem:[#allocation10 + $0x8d8] sm:$0xff]  ;;  %v829_v41 = vsel %vm821_vm4, %v823_v1, %v828_v37  ;;  %v1123_v1 = vld [vmem:[#allocation10 + $0x820] sm:$0xff] }
 0x263   :  { %1406 = vmatpush2.msra.mxu1 %v1041_v42  ;;  %1479 = vmatpush2.msra.mxu0 %v1115_v21  ;;  %v1091_v42 = vld [vmem:[#allocation10 + $0x720] sm:$0xff]  ;;  %v1090_v21 = vld [vmem:[#allocation10 + $0x718] sm:$0xff] }
 0x264   :  { %1407 = vmatprep.subr.mxu1 %v1040_v29  ;;  %1480 = vmatprep.subr.mxu0 %v1114_v13  ;;  %v1144_v29 = vld [vmem:[#allocation10 + $0x8c8] sm:$0xff]  ;;  %v788_v13 = vld [vmem:[#allocation3] sm:$0xc0] }
 0x265   :  { %1408 = vmatpush2.msra.mxu1 %v1039_v44  ;;  %1481 = vmatpush2.msra.mxu0 %v1113_v46  ;;  %v1089_v44 = vld [vmem:[#allocation10 + $0x710] sm:$0xff]  ;;  %v1143_v46 = vld [vmem:[#allocation10 + $0x8c0] sm:$0xff] }
 0x266   :  { %1409 = vmatprep.subr.mxu1 %v1038_v47  ;;  %1482 = vmatprep.subr.mxu0 %v1112_v48  ;;  %v1088_v47 = vld [vmem:[#allocation10 + $0x708] sm:$0xff]  ;;  %v1142_v48 = vld [vmem:[#allocation10 + $0x8b8] sm:$0xff] }
 0x267   :  { %1410 = vmatpush2.msra.mxu1 %v1037_v49  ;;  %1483 = vmatpush2.msra.mxu0 %v1111_v50  ;;  %v1087_v49 = vld [vmem:[#allocation10 + $0x700] sm:$0xff]  ;;  %v843_v50 = vrot.slane %v788_v13, 6  ;;  %v1165_v13 = vld [vmem:[#allocation10 + $0x970] sm:$0xff] }
 0x268   :  { %1411 = vmatprep.subr.mxu1 %v1036_v51  ;;  %1484 = vmatprep.subr.mxu0 %v1110_v53  ;;  %v844_v51 = vrot.slane %v5929_v43, 6  ;;  %v1141_v53 = vld [vmem:[#allocation10 + $0x8b0] sm:$0xff] }
 0x269   :  { %1412 = vmatpush2.msra.mxu1 %v1035_v52  ;;  %1485 = vmatpush2.msra.mxu0 %v1109_v56  ;;  %v851_v52 = vrot.slane %v5960_v22, 6  ;;  %v1140_v56 = vld [vmem:[#allocation10 + $0x8a8] sm:$0xff] }
 0x26a   :  { %1413 = vmatprep.subr.mxu1 %v1034_v57  ;;  %1486 = vmatprep.subr.mxu0 %v1108_v58  ;;  %v791_v57 = vld [vmem:[#allocation3 + $0x38] sm:$0x3]  ;;  %v1139_v58 = vld [vmem:[#allocation10 + $0x8a0] sm:$0xff] }
 0x26b   :  { %1414 = vmatpush2.msra.mxu1 %v1033_v61  ;;  %1487 = vmatpush2.msra.mxu0 %v1107_v62  ;;  %v845_v61 = vsel %vm842_vm5, %v843_v50, %v844_v51  ;;  %v1138_v62 = vld [vmem:[#allocation10 + $0x898] sm:$0xff]  ;;  %v1159_v50 = vld [vmem:[#allocation10 + $0x940] sm:$0xff] }
 0x26c   :  { %1415 = vmatprep.subr.mxu1 %v1032_v63  ;;  %1488 = vmatprep.subr.mxu0 %v1106_v2  ;;  %v849_v63 = vrot.slane %v5937_v60, 6  ;;  %v852_v2 = vsel %vm842_vm5, %v847_v12, %v851_v52  ;;  %v1132_v12 = vld [vmem:[#allocation10 + $0x868] sm:$0xff] }
 0x26d   :  { %1416 = vmatpush2.msra.mxu1 %v1031_v3  ;;  %1489 = vmatpush2.msra.mxu0 %v1105_v59  ;;  %v1137_v3 = vld [vmem:[#allocation10 + $0x890] sm:$0xff]  ;;  %v855_v59 = vrot.slane %v791_v57, 6  ;;  %v1154_v57 = vld [vmem:[#allocation10 + $0x918] sm:$0xff] }
 0x26e   :  { %1417 = vmatprep.subr.mxu1 %v1030_v4  ;;  %1490 = vmatprep.subr.mxu0 %v1104_v7  ;;  %v790_v4 = vld [vmem:[#allocation3 + $0x30] sm:$0x3] }
 0x26f   :  { %1418 = vmatpush2.msra.mxu1 %v1029_v9  ;;  %1491 = vmatpush2.msra.mxu0 %v1103_v10  ;;  %v1136_v7 = vld [vmem:[#allocation10 + $0x888] sm:$0xff]  ;;  %v1135_v9 = vld [vmem:[#allocation10 + $0x880] sm:$0xff]  ;;  %v850_v10 = vsel %vm842_vm5, %v844_v51, %v849_v63  ;;  %v1158_v51 = vld [vmem:[#allocation10 + $0x938] sm:$0xff] }
 0x270   :  { %1419 = vmatprep.subr.mxu1 %v1028_v14  ;;  %1492 = vmatprep.subr.mxu0 %v1102_v15  ;;  %v1134_v14 = vld [vmem:[#allocation10 + $0x878] sm:$0xff]  ;;  %v853_v15 = vrot.slane %v790_v4, 6 }
 0x271   :  { %1420 = vmatpush2.msra.mxu1 %v1027_v16  ;;  %1493 = vmatpush2.msra.mxu0 %v1101_v17  ;;  %v856_v16 = vsel %vm842_vm5, %v851_v52, %v855_v59  ;;  %v1131_v17 = vld [vmem:[#allocation10 + $0x860] sm:$0xff]  ;;  %v1156_v52 = vld [vmem:[#allocation10 + $0x928] sm:$0xff]  ;;  %v1822_v4 = vld [vmem:[#allocation13 + $0xf0] sm:$0xff] }
 0x272   :  { %1421 = vmatprep.subr.mxu1 %v1026_v19  ;;  %1494 = vmatprep.subr.mxu0 %v1100_v20  ;;  %v854_v18 = vsel %vm842_vm5, %v849_v63, %v853_v15  ;;  %v1130_v19 = vld [vmem:[#allocation10 + $0x858] sm:$0xff]  ;;  %v1129_v20 = vld [vmem:[#allocation10 + $0x850] sm:$0xff] }
 0x273   :  { %1422 = vmatpush2.msra.mxu1 %v1025_v23  ;;  %1495 = vmatpush2.msra.mxu0 %v1099_v24  ;;  %v1128_v23 = vld [vmem:[#allocation10 + $0x848] sm:$0xff]  ;;  %v1127_v24 = vld [vmem:[#allocation10 + $0x840] sm:$0xff]  ;;  %v793_v63 = vld [vmem:[#allocation3 + $0x38] sm:$0xf] }
 0x274   :  { %1423 = vmatprep.subr.mxu1 %v1024_v26  ;;  %1496 = vmatprep.subr.mxu0 %v1098_v27  ;;  %v1126_v26 = vld [vmem:[#allocation10 + $0x838] sm:$0xff]  ;;  %v1125_v27 = vld [vmem:[#allocation10 + $0x830] sm:$0xff] }
 0x275   :  { %1424 = vmatpush2.msra.mxu1 %v1023_v55  ;;  %1497 = vmatpush2.msra.mxu0 %v1097_v0  ;;  %v1122_v55 = vld [vmem:[#allocation10 + $0x818] sm:$0xff]  ;;  %v1121_v0 = vld [vmem:[#allocation10 + $0x810] sm:$0xff] }
 0x276   :  { %1426 = vmatmul.mubr.f32.vlgmr.msra.gmra.mxu1 %v824_v25  ;;  %1498 = vmatprep.subr.mxu0 %v1096_v31  ;;  %v1119_v31 = vld [vmem:[#allocation10 + $0x800] sm:$0xff]  ;;  %v1181_v25 = vld [vmem:[#allocation10 + $0x9f0] sm:$0xff] }
 0x277   :  { %1527 = vmatprep.subr.mxu1 %v1150_v32  ;;  %1431 = vmatprep.mubr.f32.mxu1 %v831_v54  ;;  %v1182_v32 = vld [vmem:[#allocation10 + $0x9f8] sm:$0xff] }
 0x278   :  { %1499 = vmatpush2.msra.mxu0 %v1095_v33  ;;  %1528 = vmatpush1.msra.mxu1 %v1149_v34  ;;  %v1180_v33 = vld [vmem:[#allocation10 + $0x9e8] sm:$0xff]  ;;  %v1179_v34 = vld [vmem:[#allocation10 + $0x9e0] sm:$0xff]  ;;  %v1178_v54 = vld [vmem:[#allocation10 + $0x9d8] sm:$0xff] }
 0x279   :  { %1500 = vmatprep.subr.mxu0 %v1094_v35  ;;  %1529 = vmatprep.subr.mxu1 %v1148_v36  ;;  %v1177_v35 = vld [vmem:[#allocation10 + $0x9d0] sm:$0xff]  ;;  %v1176_v36 = vld [vmem:[#allocation10 + $0x9c8] sm:$0xff]  ;;  %v1807_v59 = vld [vmem:[#allocation13 + $0x78] sm:$0xff] }
 0x27a   :  { %1501 = vmatpush2.msra.mxu0 %v1093_v38  ;;  %1530 = vmatpush1.msra.mxu1 %v1147_v45  ;;  %v1174_v38 = vld [vmem:[#allocation10 + $0x9b8] sm:$0xff]  ;;  %v1173_v45 = vld [vmem:[#allocation10 + $0x9b0] sm:$0xff] }
 0x27b   :  { %1432 = vmatmul.mubr.f32.gmra.mxu1 %v829_v41  ;;  %1502 = vmatprep.subr.mxu0 %v1092_v39  ;;  %v1172_v39 = vld [vmem:[#allocation10 + $0x9a8] sm:$0xff]  ;;  %v1170_v41 = vld [vmem:[#allocation10 + $0x998] sm:$0xff] }
 0x27c   :  { %1531 = vmatprep.subr.mxu1 %v1146_v40  ;;  %1437 = vmatprep.mubr.f32.mxu1 %v830_v30  ;;  %v1120_v30 = vld [vmem:[#allocation10 + $0x808] sm:$0xff]  ;;  %v1171_v40 = vld [vmem:[#allocation10 + $0x9a0] sm:$0xff] }
 0x27d   :  { %1503 = vmatpush2.msra.mxu0 %v1091_v42  ;;  %1532 = vmatpush1.msra.mxu1 %v1145_v11  ;;  %v1169_v42 = vld [vmem:[#allocation10 + $0x990] sm:$0xff]  ;;  %v1168_v11 = vld [vmem:[#allocation10 + $0x988] sm:$0xff] }
 0x27e   :  { %1504 = vmatprep.subr.mxu0 %v1090_v21  ;;  %1533 = vmatprep.subr.mxu1 %v1144_v29  ;;  %v1167_v21 = vld [vmem:[#allocation10 + $0x980] sm:$0xff]  ;;  %v1166_v29 = vld [vmem:[#allocation10 + $0x978] sm:$0xff] }
 0x27f   :  { %1505 = vmatpush2.msra.mxu0 %v1089_v44  ;;  %1534 = vmatpush1.msra.mxu1 %v1143_v46  ;;  %v1164_v44 = vld [vmem:[#allocation10 + $0x968] sm:$0xff]  ;;  %v1163_v46 = vld [vmem:[#allocation10 + $0x960] sm:$0xff] }
 0x280   :  { %1438 = vmatmul.mubr.f32.gmra.mxu1 %v828_v37  ;;  %1506 = vmatprep.subr.mxu0 %v1088_v47  ;;  %v1175_v37 = vld [vmem:[#allocation10 + $0x9c0] sm:$0xff]  ;;  %v1162_v47 = vld [vmem:[#allocation10 + $0x958] sm:$0xff] }
 0x281   :  { %1535 = vmatprep.subr.mxu1 %v1142_v48  ;;  %1507 = vmatpush2.msra.mxu0 %v1087_v49  ;;  %v1161_v48 = vld [vmem:[#allocation10 + $0x950] sm:$0xff]  ;;  %v1160_v49 = vld [vmem:[#allocation10 + $0x948] sm:$0xff] }
 0x282   :  { %1536 = vmatpush1.msra.mxu1 %v1141_v53  ;;  %1591 = vmatprep.mubr.f32.mxu1 %v5942_v6  ;;  %v1133_v6 = vld [vmem:[#allocation10 + $0x870] sm:$0xff] }
 0x283   :  { %1509 = vmatmul.mubr.f32.vlgmr.msra.gmra.mxu0 %v845_v61  ;;  %1537 = vmatprep.subr.mxu1 %v1140_v56  ;;  %v1157_v53 = vld [vmem:[#allocation10 + $0x930] sm:$0xff]  ;;  %v1155_v56 = vld [vmem:[#allocation10 + $0x920] sm:$0xff]  ;;  %v1152_v61 = vld [vmem:[#allocation10 + $0x908] sm:$0xff] }
 0x284   :  { %1514 = vmatprep.mubr.f32.mxu0 %v852_v2  ;;  %1538 = vmatpush1.msra.mxu1 %v1139_v58  ;;  %v1153_v58 = vld [vmem:[#allocation10 + $0x910] sm:$0xff] }
 0x285   :  { %1539 = vmatprep.subr.mxu1 %v1138_v62  ;;  %v1151_v62 = vld [vmem:[#allocation10 + $0x900] sm:$0xff]  ;;  %v792_v2 = vld [vmem:[#allocation3 + $0x30] sm:$0xf] }
 0x286   :  { %1540 = vmatpush1.msra.mxu1 %v1137_v3  ;;  %v1823_v3 = vld [vmem:[#allocation13 + $0xf8] sm:$0xff] }
 0x287   :  { %1515 = vmatmul.mubr.f32.gmra.mxu0 %v850_v10  ;;  %1541 = vmatprep.subr.mxu1 %v1136_v7  ;;  %v1806_v7 = vld [vmem:[#allocation13 + $0x70] sm:$0xff]  ;;  %v1805_v10 = vld [vmem:[#allocation13 + $0x68] sm:$0xff] }
 0x288   :  { %1520 = vmatprep.mubr.f32.mxu0 %v856_v16  ;;  %1542 = vmatpush1.msra.mxu1 %v1135_v9  ;;  %v1821_v9 = vld [vmem:[#allocation13 + $0xe8] sm:$0xff] }
 0x289   :  { %1543 = vmatprep.subr.mxu1 %v1134_v14  ;;  %4842 = vmatprep.subr.mxu0 %v1823_v3  ;;  %v1820_v14 = vld [vmem:[#allocation13 + $0xe0] sm:$0xff] }
 0x28a   :  { %1544 = vmatpush1.msra.mxu1 %v1133_v6  ;;  %4843 = vmatpush3.msra.mxu0 %v1807_v59 }
 0x28b   :  { %1521 = vmatmul.mubr.f32.gmra.mxu0 %v854_v18  ;;  %1545 = vmatprep.subr.mxu1 %v1132_v12 }
 0x28c   :  { %1546 = vmatpush1.msra.mxu1 %v1131_v17  ;;  %4844 = vmatprep.subr.mxu0 %v1822_v4  ;;  %v1802_v4 = vld [vmem:[#allocation13 + $0x50] sm:$0xff] }
 0x28d   :  { %1547 = vmatprep.subr.mxu1 %v1130_v19  ;;  %4845 = vmatpush3.msra.mxu0 %v1806_v7  ;;  %v1885_v7 = vld [vmem:[#allocation13 + $0x2e8] sm:$0xff] }
 0x28e   :  { %1548 = vmatpush1.msra.mxu1 %v1129_v20  ;;  %4846 = vmatprep.subr.mxu0 %v1821_v9 }
 0x28f   :  { %1549 = vmatprep.subr.mxu1 %v1128_v23  ;;  %4847 = vmatpush3.msra.mxu0 %v1805_v10 }
 0x290   :  { %1550 = vmatpush1.msra.mxu1 %v1127_v24  ;;  %4848 = vmatprep.subr.mxu0 %v1820_v14  ;;  %v1817_v14 = vld [vmem:[#allocation13 + $0xc8] sm:$0xff] }
 0x291   :  { %1551 = vmatprep.subr.mxu1 %v1126_v26 }
 0x292   :  { %1552 = vmatpush1.msra.mxu1 %v1125_v27  ;;  %v1183_v27 = vld [vmem:[#allocation11] sm:$0x3] }
 0x293   :  { %1553 = vmatprep.subr.mxu1 %v1124_v28 }
 0x294   :  { %1554 = vmatpush1.msra.mxu1 %v1123_v1 }
 0x295   :  { %1555 = vmatprep.subr.mxu1 %v1122_v55  ;;  %v1188_v55 = vrot.slane %v1183_v27, %v5827_v5 }
 0x296   :  { %1556 = vmatpush1.msra.mxu1 %v1121_v0 }
 0x297   :  { %1557 = vmatprep.subr.mxu1 %v1120_v30 }
 0x298   :  { %1558 = vmatpush1.msra.mxu1 %v1119_v31  ;;  %v1192_v31 = vrot.slane %v1183_v27, %v5829_v8 }
 0x299   :  { %1559 = vmatprep.subr.mxu1 %v1182_v32 }
 0x29a   :  { %1560 = vmatpush2.msra.mxu1 %v1181_v25 }
 0x29b   :  { %1561 = vmatprep.subr.mxu1 %v1180_v33 }
 0x29c   :  { %1562 = vmatpush2.msra.mxu1 %v1179_v34 }
 0x29d   :  { %1563 = vmatprep.subr.mxu1 %v1178_v54 }
 0x29e   :  { %1564 = vmatpush2.msra.mxu1 %v1177_v35 }
 0x29f   :  { %1565 = vmatprep.subr.mxu1 %v1176_v36 }
 0x2a0   :  { %1566 = vmatpush2.msra.mxu1 %v1175_v37 }
 0x2a1   :  { %1567 = vmatprep.subr.mxu1 %v1174_v38 }
 0x2a2   :  { %1568 = vmatpush2.msra.mxu1 %v1173_v45 }
 0x2a3   :  { %1569 = vmatprep.subr.mxu1 %v1172_v39 }
 0x2a4   :  { %1570 = vmatpush2.msra.mxu1 %v1171_v40 }
 0x2a5   :  { %1571 = vmatprep.subr.mxu1 %v1170_v41 }
 0x2a6   :  { %1572 = vmatpush2.msra.mxu1 %v1169_v42 }
 0x2a7   :  { %1573 = vmatprep.subr.mxu1 %v1168_v11  ;;  %v1804_v11 = vld [vmem:[#allocation13 + $0x60] sm:$0xff] }
 0x2a8   :  { %1574 = vmatpush2.msra.mxu1 %v1167_v21  ;;  %v1887_v21 = vld [vmem:[#allocation13 + $0x2f8] sm:$0xff]  ;;  %4849 = vmatpush3.msra.mxu0 %v1804_v11 }
 0x2a9   :  { %1575 = vmatprep.subr.mxu1 %v1166_v29  ;;  %v1819_v29 = vld [vmem:[#allocation13 + $0xd8] sm:$0xff] }
 0x2aa   :  { %1576 = vmatpush2.msra.mxu1 %v1165_v13  ;;  %4850 = vmatprep.subr.mxu0 %v1819_v29  ;;  %v1880_v29 = vld [vmem:[#allocation13 + $0x2c0] sm:$0xff] }
 0x2ab   :  { %1577 = vmatprep.subr.mxu1 %v1164_v44 }
 0x2ac   :  { %1578 = vmatpush2.msra.mxu1 %v1163_v46 }
 0x2ad   :  { %1579 = vmatprep.subr.mxu1 %v1162_v47  ;;  %v1871_v47 = vld [vmem:[#allocation13 + $0x278] sm:$0xff] }
 0x2ae   :  { %1580 = vmatpush2.msra.mxu1 %v1161_v48 }
 0x2af   :  { %1581 = vmatprep.subr.mxu1 %v1160_v49 }
 0x2b0   :  { %1582 = vmatpush2.msra.mxu1 %v1159_v50 }
 0x2b1   :  { %1583 = vmatprep.subr.mxu1 %v1158_v51  ;;  %v1803_v51 = vld [vmem:[#allocation13 + $0x58] sm:$0xff] }
 0x2b2   :  { %1584 = vmatpush2.msra.mxu1 %v1157_v53  ;;  %v1886_v53 = vld [vmem:[#allocation13 + $0x2f0] sm:$0xff]  ;;  %4851 = vmatpush3.msra.mxu0 %v1803_v51  ;;  %v1795_v51 = vld [vmem:[#allocation13 + $0x18] sm:$0xff] }
 0x2b3   :  { %1585 = vmatprep.subr.mxu1 %v1156_v52 }
 0x2b4   :  { %1586 = vmatpush2.msra.mxu1 %v1155_v56 }
 0x2b5   :  { %1587 = vmatprep.subr.mxu1 %v1154_v57 }
 0x2b6   :  { %1588 = vmatpush2.msra.mxu1 %v1153_v58 }
 0x2b7   :  { %1589 = vmatprep.subr.mxu1 %v1152_v61  ;;  %v1818_v61 = vld [vmem:[#allocation13 + $0xd0] sm:$0xff] }
 0x2b8   :  { %1590 = vmatpush2.msra.mxu1 %v1151_v62  ;;  %v1870_v62 = vld [vmem:[#allocation13 + $0x270] sm:$0xff]  ;;  %4852 = vmatprep.subr.mxu0 %v1818_v61  ;;  %v1809_v61 = vld [vmem:[#allocation13 + $0x88] sm:$0xff] }
 0x2b9   :  { %1592 = vmatmul.mubr.f32.vlgmr.msra.gmra.mxu1 %v5929_v43  ;;  %4912 = vmatprep.subr.mxu1 %v1887_v21  ;;  %v1797_v21 = vld [vmem:[#allocation13 + $0x28] sm:$0xff] }
 0x2ba   :  { %1597 = vmatprep.mubr.f32.mxu1 %v5960_v22  ;;  %4913 = vmatpush3.msra.mxu1 %v1871_v47  ;;  %v1796_v47 = vld [vmem:[#allocation13 + $0x20] sm:$0xff] }
 0x2bb   :  { %4914 = vmatprep.subr.mxu1 %v1886_v53  ;;  %4853 = vmatpush3.msra.mxu0 %v1802_v4  ;;  %v1878_v53 = vld [vmem:[#allocation13 + $0x2b0] sm:$0xff] }
 0x2bc   :  { %4915 = vmatpush3.msra.mxu1 %v1870_v62  ;;  %4854 = vmatprep.subr.mxu0 %v1817_v14  ;;  %v1861_v62 = vld [vmem:[#allocation13 + $0x228] sm:$0xff] }
 0x2bd   :  { %1598 = vmatmul.mubr.f32.gmra.mxu1 %v5937_v60  ;;  %4916 = vmatprep.subr.mxu1 %v1885_v7  ;;  %v1860_v7 = vld [vmem:[#allocation13 + $0x220] sm:$0xff] }
 0x2be   :  { %1603 = vmatprep.mubr.f32.mxu1 %v793_v63 }
 0x2c1   :  { %1604 = vmatmul.mubr.f32.gmra.mxu1 %v792_v2 }
 0x2f2   :  { %v1261_v43 = vpop.f32.mrf.mxu1 }
 0x2f3   :  { %v1262_v32 = vadd.f32 %v1261_v43, %v1188_v55  ;;  %v1869_v43 = vld [vmem:[#allocation13 + $0x268] sm:$0xff] }
 0x2f4   :  { %v1263_v60 = vpop.f32.mrf.mxu1  ;;  %4917 = vmatpush3.msra.mxu1 %v1869_v43  ;;  %v1855_v43 = vld [vmem:[#allocation13 + $0x1f8] sm:$0xff] }
 0x2f5   :  { %v1264_v34 = vadd.f32 %v1263_v60, %v1192_v31 }
 0x2fa   :  { %v1267_v22 = vpop.f32.mrf.mxu1 }
 0x2fb   :  { %v1268_v35 = vadd.f32 %v1267_v22, %v1188_v55 }
 0x2fc   :  { %v1269_v16 = vpop.f32.mrf.mxu1 }
 0x2fd   :  { %v1344_v15 = vpop.f32.mrf.mxu0  ;;  %v1270_v38 = vadd.f32 %v1269_v16, %v1192_v31 }
 0x2fe   :  { %v1273_v12 = vpop.f32.mrf.mxu1  ;;  %v1345_v54 = vadd.f32 %v1344_v15, %v1262_v32 }
 0x2ff   :  { %v1346_v6 = vpop.f32.mrf.mxu0  ;;  %v1274_v13 = vadd.f32 %v1273_v12, %v1188_v55  ;;  %v1884_v12 = vld [vmem:[#allocation13 + $0x2e0] sm:$0xff] }
 0x300   :  { %v1275_v18 = vpop.f32.mrf.mxu1  ;;  %v1347_v36 = vadd.f32 %v1346_v6, %v1264_v34  ;;  %v1801_v6 = vld [vmem:[#allocation13 + $0x48] sm:$0xff]  ;;  %4918 = vmatprep.subr.mxu1 %v1884_v12  ;;  %v1882_v34 = vld [vmem:[#allocation13 + $0x2d0] sm:$0xff] }
 0x301   :  { %v1276_v52 = vadd.f32 %v1275_v18, %v1192_v31  ;;  %4855 = vmatpush3.msra.mxu0 %v1801_v6  ;;  %v1874_v6 = vld [vmem:[#allocation13 + $0x290] sm:$0xff] }
 0x302   :  { %v1858_v12 = vld [vmem:[#allocation13 + $0x210] sm:$0xff] }
 0x303   :  { %v1350_v17 = vpop.f32.mrf.mxu0 }
 0x304   :  { %v1351_v40 = vadd.f32 %v1350_v17, %v1268_v35  ;;  %v1814_v35 = vld [vmem:[#allocation13 + $0xb0] sm:$0xff] }
 0x305   :  { %v1352_v19 = vpop.f32.mrf.mxu0 }
 0x306   :  { %v1353_v44 = vadd.f32 %v1352_v19, %v1270_v38  ;;  %v1816_v19 = vld [vmem:[#allocation13 + $0xc0] sm:$0xff] }
 0x307   :  { %4856 = vmatprep.subr.mxu0 %v1816_v19  ;;  %v1857_v19 = vld [vmem:[#allocation13 + $0x208] sm:$0xff] }
 0x308   :  { %v1356_v23 = vpop.f32.mrf.mxu0 }
 0x309   :  { %v1357_v56 = vadd.f32 %v1356_v23, %v1274_v13 }
 0x30a   :  { %v1358_v26 = vpop.f32.mrf.mxu0 }
 0x30b   :  { %v1359_v9 = vadd.f32 %v1358_v26, %v1276_v52  ;;  %v1810_v52 = vld [vmem:[#allocation13 + $0x90] sm:$0xff] }
 0x336   :  { %v1427_v20 = vpop.f32.mrf.mxu1 }
 0x337   :  { %v1428_v37 = vadd.f32 %v1427_v20, %v1345_v54  ;;  %v1868_v20 = vld [vmem:[#allocation13 + $0x260] sm:$0xff] }
 0x338   :  { %v1429_v24 = vpop.f32.mrf.mxu1  ;;  %4919 = vmatpush3.msra.mxu1 %v1868_v20  ;;  %v1872_v20 = vld [vmem:[#allocation13 + $0x280] sm:$0xff] }
 0x339   :  { %v1430_v41 = vadd.f32 %v1429_v24, %v1347_v36  ;;  %v1866_v36 = vld [vmem:[#allocation13 + $0x250] sm:$0xff] }
 0x33b   :  { %v1433_v28 = vpop.f32.mrf.mxu1 }
 0x33c   :  { %v1434_v48 = vadd.f32 %v1433_v28, %v1351_v40  ;;  %v1800_v28 = vld [vmem:[#allocation13 + $0x40] sm:$0xff] }
 0x33d   :  { %v1435_v0 = vpop.f32.mrf.mxu1  ;;  %4857 = vmatpush3.msra.mxu0 %v1800_v28 }
 0x33e   :  { %v1436_v63 = vadd.f32 %v1435_v0, %v1353_v44  ;;  %v1815_v0 = vld [vmem:[#allocation13 + $0xb8] sm:$0xff]  ;;  %v1812_v44 = vld [vmem:[#allocation13 + $0xa0] sm:$0xff] }
 0x33f   :  { %4858 = vmatprep.subr.mxu0 %v1815_v0 }
 0x340   :  { %v1439_v25 = vpop.f32.mrf.mxu1 }
 0x341   :  { %v1440_v60 = vadd.f32 %v1439_v25, %v1357_v56  ;;  %v1862_v56 = vld [vmem:[#allocation13 + $0x230] sm:$0xff] }
 0x342   :  { %v1441_v45 = vpop.f32.mrf.mxu1 }
 0x343   :  { %v1510_v1 = vpop.f32.mrf.mxu0  ;;  %v1442_v23 = vadd.f32 %v1441_v45, %v1359_v9  ;;  %v1798_v45 = vld [vmem:[#allocation13 + $0x30] sm:$0xff]  ;;  %v1792_v9 = vld [vmem:[#allocation13] sm:$0xff] }
 0x344   :  { %v1511_v42 = vadd.f32 %v1510_v1, %v1428_v37  ;;  %v1883_v1 = vld [vmem:[#allocation13 + $0x2d8] sm:$0xff] }
 0x345   :  { %v1512_v30 = vpop.f32.mrf.mxu0  ;;  %4920 = vmatprep.subr.mxu1 %v1883_v1 }
 0x346   :  { %v1513_v49 = vadd.f32 %v1512_v30, %v1430_v41  ;;  %v1867_v30 = vld [vmem:[#allocation13 + $0x258] sm:$0xff]  ;;  %v1813_v41 = vld [vmem:[#allocation13 + $0xa8] sm:$0xff] }
 0x347   :  { %v1516_v33 = vpop.f32.mrf.mxu0  ;;  %4921 = vmatpush3.msra.mxu1 %v1867_v30 }
 0x348   :  { %v1517_v2 = vadd.f32 %v1516_v33, %v1434_v48  ;;  %v1799_v33 = vld [vmem:[#allocation13 + $0x38] sm:$0xff]  ;;  %4922 = vmatprep.subr.mxu1 %v1882_v34 }
 0x349   :  { %v1518_v39 = vpop.f32.mrf.mxu0  ;;  %4859 = vmatpush3.msra.mxu0 %v1799_v33  ;;  %4923 = vmatpush3.msra.mxu1 %v1866_v36  ;;  %v1879_v48 = vld [vmem:[#allocation13 + $0x2b8] sm:$0xff] }
 0x34a   :  { %v1519_v22 = vadd.f32 %v1518_v39, %v1436_v63  ;;  %4860 = vmatprep.subr.mxu0 %v1814_v35  ;;  %v1881_v39 = vld [vmem:[#allocation13 + $0x2c8] sm:$0xff] }
 0x34b   :  { %v1522_v57 = vpop.f32.mrf.mxu0  ;;  %4861 = vmatpush3.msra.mxu0 %v1798_v45  ;;  %4924 = vmatprep.subr.mxu1 %v1881_v39  ;;  %v1793_v63 = vld [vmem:[#allocation13 + $0x8] sm:$0xff] }
 0x34c   :  { %v1523_v24 = vadd.f32 %v1522_v57, %v1440_v60  ;;  %4862 = vmatprep.subr.mxu0 %v1813_v41  ;;  %v1794_v57 = vld [vmem:[#allocation13 + $0x10] sm:$0xff]  ;;  %v1859_v60 = vld [vmem:[#allocation13 + $0x218] sm:$0xff] }
 0x34d   :  { %v1524_v17 = vpop.f32.mrf.mxu0  ;;  %4863 = vmatpush3.msra.mxu0 %v1797_v21 }
 0x34e   :  { %v1525_v31 = vadd.f32 %v1524_v17, %v1442_v23  ;;  %4864 = vmatprep.subr.mxu0 %v1812_v44  ;;  %v1856_v23 = vld [vmem:[#allocation13 + $0x200] sm:$0xff] }
 0x34f   :  { %4865 = vmatpush3.msra.mxu0 %v1796_v47 }
 0x379   :  { %v1593_v46 = vpop.f32.mrf.mxu1 }
 0x37a   :  { %v1594_v50 = vadd.f32 %v1593_v46, %v1511_v42  ;;  %v1865_v42 = vld [vmem:[#allocation13 + $0x248] sm:$0xff]  ;;  %v1864_v46 = vld [vmem:[#allocation13 + $0x240] sm:$0xff] }
 0x37b   :  { %v1595_v58 = vpop.f32.mrf.mxu1  ;;  %4925 = vmatpush3.msra.mxu1 %v1865_v42 }
 0x37c   :  { %v5986_v3 = vmax.f32 %v1594_v50, 0.0  ;;  %v1596_v59 = vadd.f32 %v1595_v58, %v1513_v49  ;;  %4926 = vmatprep.subr.mxu1 %v1880_v29  ;;  %v1811_v49 = vld [vmem:[#allocation13 + $0x98] sm:$0xff]  ;;  %v1877_v58 = vld [vmem:[#allocation13 + $0x2a8] sm:$0xff] }
 0x37d   :  { %v1599_v10 = vpop.f32.mrf.mxu1  ;;  %4927 = vmatpush3.msra.mxu1 %v1864_v46  ;;  %v1863_v50 = vld [vmem:[#allocation13 + $0x238] sm:$0xff]  ;;  %4866 = vmatprep.subr.mxu0 %v1811_v49 }
 0x37e   :  { %1616 = vst [vmem:[#allocation4 + $0x28] sm:$0xff] %v5986_v3  ;;  %v5989_v15 = vmax.f32 %v1596_v59, 0.0  ;;  %v5991_v16 = vadd.f32 %v1599_v10, %v1517_v2  ;;  %4928 = vmatprep.subr.mxu1 %v1879_v48  ;;  %4867 = vmatpush3.msra.mxu0 %v1795_v51  ;;  %v1876_v2 = vld [vmem:[#allocation13 + $0x2a0] sm:$0xff]  ;;  %v1875_v10 = vld [vmem:[#allocation13 + $0x298] sm:$0xff] }
 0x37f   :  { %v1601_v18 = vpop.f32.mrf.mxu1  ;;  %4929 = vmatpush3.msra.mxu1 %v1863_v50  ;;  %4868 = vmatprep.subr.mxu0 %v1810_v52  ;;  %v1808_v59 = vld [vmem:[#allocation13 + $0x80] sm:$0xff] }
 0x380   :  { %1617 = vst [vmem:[#allocation4 + $0x8] sm:$0xff] %v5989_v15  ;;  %v1612_v26 = vmax.f32 %v5991_v16, 0.0  ;;  %v5995_v27 = vadd.f32 %v1601_v18, %v1519_v22  ;;  %4930 = vmatprep.subr.mxu1 %v1878_v53  ;;  %4869 = vmatpush3.msra.mxu0 %v1794_v57  ;;  %v1873_v18 = vld [vmem:[#allocation13 + $0x288] sm:$0xff] }
 0x381   :  { %v1605_v55 = vpop.f32.mrf.mxu1  ;;  %4931 = vmatpush3.msra.mxu1 %v1862_v56  ;;  %4870 = vmatprep.subr.mxu0 %v1809_v61 }
 0x382   :  { %v1613_v32 = vmax.f32 %v5995_v27, 0.0  ;;  %v1606_v25 = vadd.f32 %v1605_v55, %v1523_v24  ;;  %4932 = vmatprep.subr.mxu1 %v1877_v58  ;;  %4871 = vmatpush3.msra.mxu0 %v1793_v63  ;;  %v1951_v24 = vld [vmem:[#allocation13 + $0x4f8] sm:$0xff] }
 0x383   :  { %v1607_v54 = vpop.f32.mrf.mxu1  ;;  %4933 = vmatpush3.msra.mxu1 %v1861_v62  ;;  %4872 = vmatprep.subr.mxu0 %v1808_v59  ;;  %v1839_v59 = vld [vmem:[#allocation13 + $0x178] sm:$0xff] }
 0x384   :  { %v1614_v37 = vmax.f32 %v1606_v25, 0.0  ;;  %v1608_v38 = vadd.f32 %v1607_v54, %v1525_v31  ;;  %4934 = vmatprep.subr.mxu1 %v1876_v2  ;;  %4873 = vmatpush3.msra.mxu0 %v1792_v9  ;;  %v1838_v9 = vld [vmem:[#allocation13 + $0x170] sm:$0xff] }
 0x385   :  { %v5998_v40 = vld [vmem:[#allocation4 + $0x28] sm:$0xfc]  ;;  %4935 = vmatpush3.msra.mxu1 %v1860_v7  ;;  %4877 = vmatprep.subr.mxu0 %v1855_v43 }
 0x386   :  { %1620 = vst [vmem:[#allocation4] sm:$0xf] %v1614_v37  ;;  %v1615_v11 = vmax.f32 %v1608_v38, 0.0  ;;  %1675 = vrot.lane.b32.xlu0 %v5998_v40, %s5653_s2  ;;  %4936 = vmatprep.subr.mxu1 %v1875_v10  ;;  %v1853_v10 = vld [vmem:[#allocation13 + $0x1e8] sm:$0xff]  ;;  %v1852_v43 = vld [vmem:[#allocation13 + $0x1e0] sm:$0xff] }
 0x387   :  { %v6002_v13 = vld [vmem:[#allocation4 + $0x8] sm:$0xfc]  ;;  %4937 = vmatpush3.msra.mxu1 %v1859_v60 }
 0x388   :  { %1621 = vst [vmem:[#allocation4 + $0x20] sm:$0xf] %v1615_v11  ;;  %1677 = vrot.lane.b32.xlu1 %v6002_v13, %s5653_s2  ;;  %4938 = vmatprep.subr.mxu1 %v1874_v6 }
 0x389   :  { %4939 = vmatpush3.msra.mxu1 %v1858_v12 }
 0x38a   :  { %1644 = vrot.lane.b32.xlu0 %v1612_v26, %s5653_s2  ;;  %4940 = vmatprep.subr.mxu1 %v1873_v18  ;;  %v1851_v18 = vld [vmem:[#allocation13 + $0x1d8] sm:$0xff] }
 0x38b   :  { %4941 = vmatpush3.msra.mxu1 %v1857_v19  ;;  %v1935_v19 = vld [vmem:[#allocation13 + $0x478] sm:$0xff] }
 0x38c   :  { %1646 = vrot.lane.b32.xlu1 %v1613_v32, %s5653_s2  ;;  %4942 = vmatprep.subr.mxu1 %v1872_v20  ;;  %v1835_v20 = vld [vmem:[#allocation13 + $0x158] sm:$0xff] }
 0x38d   :  { %v6016_v4 = vld [vmem:[#allocation4] sm:$0xf]  ;;  %4943 = vmatpush3.msra.mxu1 %v1856_v23  ;;  %v1950_v23 = vld [vmem:[#allocation13 + $0x4f0] sm:$0xff] }
 0x38e   :  { %1640 = vrot.lane.b32.xlu0 %v5986_v3, %s5653_s2  ;;  %v6021_v22 = vld [vmem:[#allocation4] sm:$0x3]  ;;  %4982 = vmatprep.subr.mxu1 %v1951_v24 }
 0x38f   :  { %v1670_v14 = vld [vmem:[#allocation4 + $0x20] sm:$0xf] }
 0x390   :  { %1642 = vrot.lane.b32.xlu1 %v5989_v15, %s5653_s2  ;;  %v1633_v17 = vld [vmem:[#allocation4 + $0x20] sm:$0x3] }
 0x392   :  { %1679 = vrot.lane.b32.xlu0 %v6016_v4, %s5653_s2 }
 0x394   :  { %1681 = vrot.lane.b32.xlu1 %v1670_v14, %s5653_s2 }
 0x396   :  { %1648 = vrot.lane.b32.xlu0 %v6021_v22, %s5653_s2 }
 0x398   :  { %1650 = vrot.lane.b32.xlu1 %v1633_v17, %s5653_s2 }
 0x3f8   :  { %v1676_v28 = vpop.permute.xlu0 %1675 }
 0x3fa   :  { %v1678_v1 = vpop.permute.xlu1 %1677 }
 0x3fb   :  { %v1683_v55 = vsel %vm679_vm0, %v1676_v28, %v1678_v1  ;;  %v1690_v30 = vmax.f32 %v6002_v13, %v1678_v1  ;;  %v1850_v28 = vld [vmem:[#allocation13 + $0x1d0] sm:$0xff] }
 0x3fc   :  { %v1645_v0 = vpop.permute.xlu0 %1644  ;;  %v1689_v31 = vmax.f32 %v5998_v40, %v1683_v55  ;;  %v1934_v1 = vld [vmem:[#allocation13 + $0x470] sm:$0xff] }
 0x3fd   :  { %v1702_v36 = vrot.slane %v1690_v30, 2  ;;  %v1834_v55 = vld [vmem:[#allocation13 + $0x150] sm:$0xff]  ;;  %v1849_v30 = vld [vmem:[#allocation13 + $0x1c8] sm:$0xff] }
 0x3fe   :  { %v1647_v25 = vpop.permute.xlu1 %1646  ;;  %v1699_v38 = vrot.slane %v1689_v31, 2  ;;  %v1933_v31 = vld [vmem:[#allocation13 + $0x468] sm:$0xff] }
 0x3ff   :  { %v1653_v33 = vsel %vm679_vm0, %v1645_v0, %v1647_v25  ;;  %v1664_v34 = vmax.f32 %v1613_v32, %v1647_v25  ;;  %v1949_v0 = vld [vmem:[#allocation13 + $0x4e8] sm:$0xff] }
 0x400   :  { %v1663_v54 = vmax.f32 %v1612_v26, %v1653_v33  ;;  %v1641_v35 = vpop.permute.xlu0 %1640  ;;  %v1833_v25 = vld [vmem:[#allocation13 + $0x148] sm:$0xff]  ;;  %v1948_v33 = vld [vmem:[#allocation13 + $0x4e0] sm:$0xff] }
 0x401   :  { %v1703_v37 = vrot.slane %v1664_v34, 2 }
 0x402   :  { %v1700_v45 = vrot.slane %v1663_v54, 2  ;;  %v1643_v39 = vpop.permute.xlu1 %1642 }
 0x403   :  { %v1704_v41 = vsel %vm800_vm3, %v1702_v36, %v1703_v37  ;;  %v1652_v42 = vsel %vm679_vm0, %v1641_v35, %v1643_v39  ;;  %v1662_v40 = vmax.f32 %v5989_v15, %v1643_v39  ;;  %v1832_v35 = vld [vmem:[#allocation13 + $0x140] sm:$0xff]  ;;  %v1947_v36 = vld [vmem:[#allocation13 + $0x4d8] sm:$0xff]  ;;  %v1946_v39 = vld [vmem:[#allocation13 + $0x4d0] sm:$0xff] }
 0x404   :  { %v1661_v11 = vmax.f32 %v5986_v3, %v1652_v42  ;;  %v1701_v27 = vsel %vm800_vm3, %v1699_v38, %v1700_v45  ;;  %v1680_v32 = vpop.permute.xlu0 %1679  ;;  %v1931_v38 = vld [vmem:[#allocation13 + $0x458] sm:$0xff]  ;;  %v1930_v42 = vld [vmem:[#allocation13 + $0x450] sm:$0xff] }
 0x405   :  { %v1716_v21 = vmax.f32 %v1662_v40, %v1704_v41  ;;  %v1846_v41 = vld [vmem:[#allocation13 + $0x1b0] sm:$0xff] }
 0x406   :  { %v1715_v16 = vmax.f32 %v1661_v11, %v1701_v27  ;;  %v1682_v26 = vpop.permute.xlu1 %1681  ;;  %v1830_v40 = vld [vmem:[#allocation13 + $0x130] sm:$0xff]  ;;  %v1945_v11 = vld [vmem:[#allocation13 + $0x4c8] sm:$0xff] }
 0x407   :  { %1722 = vst.msk [vmem:[#allocation5 + $0x8] sm:$0xff] %vm679_vm0, %v1716_v21  ;;  %v1684_v29 = vsel %vm679_vm0, %v1680_v32, %v1682_v26  ;;  %v1692_v13 = vmax.f32 %v1670_v14, %v1682_v26  ;;  %v1837_v14 = vld [vmem:[#allocation13 + $0x168] sm:$0xff]  ;;  %v1844_v26 = vld [vmem:[#allocation13 + $0x1a0] sm:$0xff] }
 0x408   :  { %1721 = vst [vmem:[#allocation5] sm:$0xff] %v1715_v16  ;;  %v1691_v44 = vmax.f32 %v6016_v4, %v1684_v29  ;;  %v1649_v48 = vpop.permute.xlu0 %1648  ;;  %v1854_v4 = vld [vmem:[#allocation13 + $0x1f0] sm:$0xff]  ;;  %v1845_v27 = vld [vmem:[#allocation13 + $0x1a8] sm:$0xff]  ;;  %v1944_v16 = vld [vmem:[#allocation13 + $0x4c0] sm:$0xff] }
 0x409   :  { %v1707_v46 = vrot.slane %v1692_v13, 2  ;;  %v1929_v32 = vld [vmem:[#allocation13 + $0x448] sm:$0xff]  ;;  %v1928_v29 = vld [vmem:[#allocation13 + $0x440] sm:$0xff] }
 0x40a   :  { %v1705_v47 = vrot.slane %v1691_v44, 2  ;;  %v1651_v15 = vpop.permute.xlu1 %1650  ;;  %v1829_v21 = vld [vmem:[#allocation13 + $0x128] sm:$0xff]  ;;  %v1828_v13 = vld [vmem:[#allocation13 + $0x120] sm:$0xff]  ;;  %v1943_v44 = vld [vmem:[#allocation13 + $0x4b8] sm:$0xff] }
 0x40b   :  { %v1708_v3 = vsel %vm800_vm3, %v1703_v37, %v1707_v46  ;;  %v1654_v49 = vsel %vm679_vm0, %v1649_v48, %v1651_v15  ;;  %v1666_v50 = vmax.f32 %v1633_v17, %v1651_v15  ;;  %v1847_v37 = vld [vmem:[#allocation13 + $0x1b8] sm:$0xff]  ;;  %v1942_v15 = vld [vmem:[#allocation13 + $0x4b0] sm:$0xff] }
 0x40c   :  { %v1706_v51 = vsel %vm800_vm3, %v1700_v45, %v1705_v47  ;;  %v1718_v53 = vmax.f32 %v1664_v34, %v1708_v3  ;;  %v1665_v52 = vmax.f32 %v6021_v22, %v1654_v49  ;;  %v1836_v22 = vld [vmem:[#allocation13 + $0x160] sm:$0xff]  ;;  %v1831_v45 = vld [vmem:[#allocation13 + $0x138] sm:$0xff]  ;;  %v1842_v3 = vld [vmem:[#allocation13 + $0x190] sm:$0xff] }
 0x40d   :  { %v1717_v56 = vmax.f32 %v1663_v54, %v1706_v51  ;;  %v1720_v57 = vmax.f32 %v1666_v50, %v1707_v46  ;;  %v1848_v34 = vld [vmem:[#allocation13 + $0x1c0] sm:$0xff]  ;;  %v1843_v46 = vld [vmem:[#allocation13 + $0x198] sm:$0xff]  ;;  %v1926_v49 = vld [vmem:[#allocation13 + $0x430] sm:$0xff] }
 0x40e   :  { %1724 = vst.msk [vmem:[#allocation5 + $0x18] sm:$0xff] %vm679_vm0, %v1718_v53  ;;  %v1719_v58 = vmax.f32 %v1665_v52, %v1705_v47  ;;  %v1932_v54 = vld [vmem:[#allocation13 + $0x460] sm:$0xff]  ;;  %v1927_v47 = vld [vmem:[#allocation13 + $0x438] sm:$0xff]  ;;  %v1826_v50 = vld [vmem:[#allocation13 + $0x110] sm:$0xff] }
 0x40f   :  { %1723 = vst [vmem:[#allocation5 + $0x10] sm:$0xff] %v1717_v56  ;;  %1727 = vst.msk [vmem:[#allocation5 + $0x28] sm:$0x3] %vm1726_vm6, %v1720_v57  ;;  %v1728_v61 = vld [vmem:[#allocation5] ss:$8 sm:$0x3] }
 0x410   :  { %v6048_v62 = vld [vmem:[#allocation5 + $0x4] ss:$8 sm:$0x3]  ;;  %1725 = vst [vmem:[#allocation5 + $0x20] sm:$0x3] %v1719_v58  ;;  %v1741_v63 = vrot.slane %v1728_v61, %v5827_v5  ;;  %v1745_v2 = vrot.slane %v1728_v61, %v5829_v8  ;;  %v1827_v48 = vld [vmem:[#allocation13 + $0x118] sm:$0xff] }
 0x411   :  { %v1756_v7 = vrot.slane %v6048_v62, %v5829_v8  ;;  %v1941_v51 = vld [vmem:[#allocation13 + $0x4a8] sm:$0xff]  ;;  %v1940_v57 = vld [vmem:[#allocation13 + $0x4a0] sm:$0xff] }
 0x412   :  { %2017 = vmatprep.mubr.f32.mxu0 %v1745_v2  ;;  %v1841_v53 = vld [vmem:[#allocation13 + $0x188] sm:$0xff]  ;;  %v1840_v58 = vld [vmem:[#allocation13 + $0x180] sm:$0xff]  ;;  %v1939_v2 = vld [vmem:[#allocation13 + $0x498] sm:$0xff] }
 0x413   :  { %2018 = vmatmul.mubr.f32.vlgmr.msra.gmra.mxu0 %v1741_v63  ;;  %v1925_v52 = vld [vmem:[#allocation13 + $0x428] sm:$0xff]  ;;  %v1924_v61 = vld [vmem:[#allocation13 + $0x420] sm:$0xff] }
 0x414   :  { %4878 = vmatpush3.msra.mxu0 %v1839_v59  ;;  %2087 = vmatprep.mubr.f32.mxu0 %v1756_v7  ;;  %v1825_v56 = vld [vmem:[#allocation13 + $0x108] sm:$0xff]  ;;  %v1824_v63 = vld [vmem:[#allocation13 + $0x100] sm:$0xff]  ;;  %v1919_v7 = vld [vmem:[#allocation13 + $0x3f8] sm:$0xff] }
 0x415   :  { %4879 = vmatprep.subr.mxu0 %v1854_v4  ;;  %v1752_v4 = vrot.slane %v6048_v62, %v5827_v5  ;;  %v1937_v62 = vld [vmem:[#allocation13 + $0x488] sm:$0xff] }
 0x416   :  { %4880 = vmatpush3.msra.mxu0 %v1838_v9  ;;  %v1732_v60 = vld [vmem:[#allocation5 + $0x10] ss:$8 sm:$0x3]  ;;  %v6060_v59 = vld [vmem:[#allocation5 + $0x14] ss:$8 sm:$0x3] }
 0x417   :  { %4881 = vmatprep.subr.mxu0 %v1853_v10  ;;  %v1763_v6 = vrot.slane %v1732_v60, %v5827_v5  ;;  %v1767_v12 = vrot.slane %v1732_v60, %v5829_v8  ;;  %v6056_v17 = vld [vmem:[#allocation5 + $0x20] ss:$8 sm:$0x3]  ;;  %v1918_v60 = vld [vmem:[#allocation13 + $0x3f0] sm:$0xff] }
 0x418   :  { %4882 = vmatpush3.msra.mxu0 %v1837_v14  ;;  %v1789_v24 = vrot.slane %v6056_v17, %v5829_v8  ;;  %v1923_v9 = vld [vmem:[#allocation13 + $0x418] sm:$0xff]  ;;  %v1778_v14 = vrot.slane %v6060_v59, %v5829_v8 }
 0x419   :  { %4883 = vmatprep.subr.mxu0 %v1852_v43  ;;  %2157 = vmatprep.mubr.f32.mxu1 %v1767_v12  ;;  %v1903_v10 = vld [vmem:[#allocation13 + $0x378] sm:$0xff]  ;;  %v1938_v43 = vld [vmem:[#allocation13 + $0x490] sm:$0xff]  ;;  %v1917_v12 = vld [vmem:[#allocation13 + $0x3e8] sm:$0xff] }
 0x41a   :  { %4884 = vmatpush3.msra.mxu0 %v1836_v22  ;;  %2158 = vmatmul.mubr.f32.vlgmr.msra.gmra.mxu1 %v1763_v6  ;;  %v1922_v22 = vld [vmem:[#allocation13 + $0x410] sm:$0xff] }
 0x41b   :  { %4885 = vmatprep.subr.mxu0 %v1851_v18  ;;  %4983 = vmatpush3.msra.mxu1 %v1935_v19  ;;  %v1902_v6 = vld [vmem:[#allocation13 + $0x370] sm:$0xff]  ;;  %v1921_v18 = vld [vmem:[#allocation13 + $0x408] sm:$0xff] }
 0x41c   :  { %4886 = vmatpush3.msra.mxu0 %v1835_v20  ;;  %4984 = vmatprep.subr.mxu1 %v1950_v23  ;;  %v1901_v19 = vld [vmem:[#allocation13 + $0x368] sm:$0xff]  ;;  %v1936_v20 = vld [vmem:[#allocation13 + $0x480] sm:$0xff] }
 0x41d   :  { %2297 = vmatprep.mubr.f32.mxu1 %v1789_v24  ;;  %4887 = vmatprep.subr.mxu0 %v1850_v28  ;;  %v1916_v23 = vld [vmem:[#allocation13 + $0x3e0] sm:$0xff] }
 0x41e   :  { %4985 = vmatpush3.msra.mxu1 %v1934_v1  ;;  %4888 = vmatpush3.msra.mxu0 %v1834_v55  ;;  %v1920_v24 = vld [vmem:[#allocation13 + $0x400] sm:$0xff]  ;;  %v1915_v1 = vld [vmem:[#allocation13 + $0x3d8] sm:$0xff]  ;;  %v1785_v55 = vrot.slane %v6056_v17, %v5827_v5 }
 0x41f   :  { %4986 = vmatprep.subr.mxu1 %v1949_v0  ;;  %4889 = vmatprep.subr.mxu0 %v1849_v30  ;;  %v1900_v28 = vld [vmem:[#allocation13 + $0x360] sm:$0xff]  ;;  %v1899_v0 = vld [vmem:[#allocation13 + $0x358] sm:$0xff]  ;;  %v1914_v30 = vld [vmem:[#allocation13 + $0x3d0] sm:$0xff] }
 0x420   :  { %4987 = vmatpush3.msra.mxu1 %v1933_v31  ;;  %4890 = vmatpush3.msra.mxu0 %v1833_v25  ;;  %v1898_v31 = vld [vmem:[#allocation13 + $0x350] sm:$0xff]  ;;  %v1913_v25 = vld [vmem:[#allocation13 + $0x3c8] sm:$0xff]  ;;  %v1896_v17 = vld [vmem:[#allocation13 + $0x340] sm:$0xff] }
 0x421   :  { %4988 = vmatprep.subr.mxu1 %v1948_v33  ;;  %4891 = vmatprep.subr.mxu0 %v1848_v34  ;;  %v6068_v33 = vld [vmem:[#allocation3 + $0x48] sm:$0xff] }
 0x422   :  { %4989 = vmatpush3.msra.mxu1 %v1932_v54  ;;  %4892 = vmatpush3.msra.mxu0 %v1832_v35  ;;  %v1897_v34 = vld [vmem:[#allocation13 + $0x348] sm:$0xff]  ;;  %v1912_v54 = vld [vmem:[#allocation13 + $0x3c0] sm:$0xff]  ;;  %v1911_v35 = vld [vmem:[#allocation13 + $0x3b8] sm:$0xff] }
 0x423   :  { %4990 = vmatprep.subr.mxu1 %v1947_v36  ;;  %4893 = vmatprep.subr.mxu0 %v1847_v37  ;;  %v1895_v36 = vld [vmem:[#allocation13 + $0x338] sm:$0xff]  ;;  %v1910_v37 = vld [vmem:[#allocation13 + $0x3b0] sm:$0xff] }
 0x424   :  { %4991 = vmatpush3.msra.mxu1 %v1931_v38  ;;  %4894 = vmatpush3.msra.mxu0 %v1831_v45  ;;  %v1894_v38 = vld [vmem:[#allocation13 + $0x330] sm:$0xff]  ;;  %v1909_v45 = vld [vmem:[#allocation13 + $0x3a8] sm:$0xff] }
 0x425   :  { %4992 = vmatprep.subr.mxu1 %v1946_v39  ;;  %4895 = vmatprep.subr.mxu0 %v1846_v41  ;;  %v1893_v39 = vld [vmem:[#allocation13 + $0x328] sm:$0xff]  ;;  %v1908_v41 = vld [vmem:[#allocation13 + $0x3a0] sm:$0xff] }
 0x426   :  { %4993 = vmatpush3.msra.mxu1 %v1930_v42  ;;  %4896 = vmatpush3.msra.mxu0 %v1830_v40  ;;  %v1892_v42 = vld [vmem:[#allocation13 + $0x320] sm:$0xff]  ;;  %v1907_v40 = vld [vmem:[#allocation13 + $0x398] sm:$0xff] }
 0x427   :  { %4994 = vmatprep.subr.mxu1 %v1945_v11  ;;  %4897 = vmatprep.subr.mxu0 %v1845_v27  ;;  %v1891_v11 = vld [vmem:[#allocation13 + $0x318] sm:$0xff]  ;;  %v1906_v27 = vld [vmem:[#allocation13 + $0x390] sm:$0xff] }
 0x428   :  { %4995 = vmatpush3.msra.mxu1 %v1929_v32  ;;  %4898 = vmatpush3.msra.mxu0 %v1829_v21  ;;  %v1890_v32 = vld [vmem:[#allocation13 + $0x310] sm:$0xff]  ;;  %v1905_v21 = vld [vmem:[#allocation13 + $0x388] sm:$0xff] }
 0x429   :  { %4996 = vmatprep.subr.mxu1 %v1944_v16  ;;  %4899 = vmatprep.subr.mxu0 %v1844_v26  ;;  %v1889_v16 = vld [vmem:[#allocation13 + $0x308] sm:$0xff]  ;;  %v1904_v26 = vld [vmem:[#allocation13 + $0x380] sm:$0xff] }
 0x42a   :  { %4997 = vmatpush3.msra.mxu1 %v1928_v29  ;;  %4900 = vmatpush3.msra.mxu0 %v1828_v13  ;;  %v1888_v29 = vld [vmem:[#allocation13 + $0x300] sm:$0xff]  ;;  %v1774_v13 = vrot.slane %v6060_v59, %v5827_v5 }
 0x42b   :  { %4998 = vmatprep.subr.mxu1 %v1943_v44  ;;  %4901 = vmatprep.subr.mxu0 %v1843_v46  ;;  %v2319_v44 = vld [vmem:[#allocation16 + $0x78] sm:$0xff]  ;;  %v2318_v46 = vld [vmem:[#allocation16 + $0x70] sm:$0xff] }
 0x42c   :  { %4999 = vmatpush3.msra.mxu1 %v1927_v47  ;;  %4902 = vmatpush3.msra.mxu0 %v1827_v48  ;;  %v2317_v47 = vld [vmem:[#allocation16 + $0x68] sm:$0xff]  ;;  %v2316_v48 = vld [vmem:[#allocation16 + $0x60] sm:$0xff] }
 0x42d   :  { %5000 = vmatprep.subr.mxu1 %v1942_v15  ;;  %4903 = vmatprep.subr.mxu0 %v1842_v3  ;;  %v2315_v15 = vld [vmem:[#allocation16 + $0x58] sm:$0xff]  ;;  %v2314_v3 = vld [vmem:[#allocation16 + $0x50] sm:$0xff] }
 0x42e   :  { %5001 = vmatpush3.msra.mxu1 %v1926_v49  ;;  %4904 = vmatpush3.msra.mxu0 %v1826_v50  ;;  %v2313_v49 = vld [vmem:[#allocation16 + $0x48] sm:$0xff]  ;;  %v2312_v50 = vld [vmem:[#allocation16 + $0x40] sm:$0xff] }
 0x42f   :  { %5002 = vmatprep.subr.mxu1 %v1941_v51  ;;  %4905 = vmatprep.subr.mxu0 %v1841_v53  ;;  %v2311_v51 = vld [vmem:[#allocation16 + $0x38] sm:$0xff]  ;;  %v2310_v53 = vld [vmem:[#allocation16 + $0x30] sm:$0xff] }
 0x430   :  { %5003 = vmatpush3.msra.mxu1 %v1925_v52  ;;  %4906 = vmatpush3.msra.mxu0 %v1825_v56  ;;  %v2309_v52 = vld [vmem:[#allocation16 + $0x28] sm:$0xff]  ;;  %v2308_v56 = vld [vmem:[#allocation16 + $0x20] sm:$0xff] }
 0x431   :  { %5004 = vmatprep.subr.mxu1 %v1940_v57  ;;  %4907 = vmatprep.subr.mxu0 %v1840_v58  ;;  %v2307_v57 = vld [vmem:[#allocation16 + $0x18] sm:$0xff]  ;;  %v2306_v58 = vld [vmem:[#allocation16 + $0x10] sm:$0xff] }
 0x432   :  { %5005 = vmatpush3.msra.mxu1 %v1924_v61  ;;  %4908 = vmatpush3.msra.mxu0 %v1824_v63  ;;  %v2305_v61 = vld [vmem:[#allocation16 + $0x8] sm:$0xff]  ;;  %v2304_v63 = vld [vmem:[#allocation16] sm:$0xff] }
 0x433   :  { %5006 = vmatprep.subr.mxu1 %v1939_v2  ;;  %2088 = vmatmul.mubr.f32.vlgmr.msra.gmra.mxu0 %v1752_v4  ;;  %v2538_v2 = vld [vmem:[#allocation6 + $0xf8] sm:$0xff]  ;;  %v2407_v59 = vld [vmem:[#allocation19 + $0x78] sm:$0xff] }
 0x434   :  { %4947 = vmatprep.subr.mxu0 %v1919_v7  ;;  %5007 = vmatpush3.msra.mxu1 %v1923_v9  ;;  %v2406_v4 = vld [vmem:[#allocation19 + $0x70] sm:$0xff]  ;;  %v2405_v7 = vld [vmem:[#allocation19 + $0x68] sm:$0xff]  ;;  %v2404_v9 = vld [vmem:[#allocation19 + $0x60] sm:$0xff] }
 0x435   :  { %4948 = vmatpush3.msra.mxu0 %v1903_v10  ;;  %2227 = vmatprep.mubr.f32.mxu0 %v1778_v14  ;;  %v2403_v10 = vld [vmem:[#allocation19 + $0x58] sm:$0xff]  ;;  %v2402_v14 = vld [vmem:[#allocation19 + $0x50] sm:$0xff] }
 0x436   :  { %5008 = vmatprep.subr.mxu1 %v1938_v43  ;;  %4949 = vmatprep.subr.mxu0 %v1918_v60  ;;  %v2401_v43 = vld [vmem:[#allocation19 + $0x48] sm:$0xff]  ;;  %v2400_v60 = vld [vmem:[#allocation19 + $0x40] sm:$0xff] }
 0x437   :  { %5009 = vmatpush3.msra.mxu1 %v1922_v22  ;;  %4950 = vmatpush3.msra.mxu0 %v1902_v6  ;;  %v2399_v22 = vld [vmem:[#allocation19 + $0x38] sm:$0xff]  ;;  %v2398_v6 = vld [vmem:[#allocation19 + $0x30] sm:$0xff] }
 0x438   :  { %5010 = vmatprep.subr.mxu1 %v1937_v62  ;;  %4951 = vmatprep.subr.mxu0 %v1917_v12  ;;  %v2397_v62 = vld [vmem:[#allocation19 + $0x28] sm:$0xff]  ;;  %v2396_v12 = vld [vmem:[#allocation19 + $0x20] sm:$0xff] }
 0x439   :  { %5011 = vmatpush3.msra.mxu1 %v1921_v18  ;;  %4952 = vmatpush3.msra.mxu0 %v1901_v19  ;;  %v2395_v18 = vld [vmem:[#allocation19 + $0x18] sm:$0xff]  ;;  %v2394_v19 = vld [vmem:[#allocation19 + $0x10] sm:$0xff] }
 0x43a   :  { %5012 = vmatprep.subr.mxu1 %v1936_v20  ;;  %4953 = vmatprep.subr.mxu0 %v1916_v23 }
 0x43b   :  { %5013 = vmatpush3.msra.mxu1 %v1920_v24  ;;  %4954 = vmatpush3.msra.mxu0 %v1900_v28 }
 0x43c   :  { %2298 = vmatmul.mubr.f32.vlgmr.msra.gmra.mxu1 %v1785_v55  ;;  %4955 = vmatprep.subr.mxu0 %v1915_v1 }
 0x43d   :  { %4956 = vmatpush3.msra.mxu0 %v1899_v0  ;;  %5295 = vmatprep.subr.mxu1 %v6068_v33  ;;  %v1952_v0 = vld [vmem:[#allocation14] sm:$0x1] }
 0x43e   :  { %4957 = vmatprep.subr.mxu0 %v1914_v30  ;;  %5327 = vmatprep.mubr.msk.f32.mxu1 %vm5654_vm7, %v6068_v33 }
 0x43f   :  { %4958 = vmatpush3.msra.mxu0 %v1898_v31  ;;  %5296 = vmatpush3.msra.mxu1 %v2407_v59  ;;  %v2512_v59 = vld [vmem:[#allocation6 + $0x28] sm:$0xff] }
 0x440   :  { %4959 = vmatprep.subr.mxu0 %v1913_v25  ;;  %5297 = vmatprep.subr.mxu1 %v6068_v33 }
 0x441   :  { %4960 = vmatpush3.msra.mxu0 %v1897_v34  ;;  %5298 = vmatpush3.msra.mxu1 %v2406_v4  ;;  %v2511_v4 = vld [vmem:[#allocation6 + $0x20] sm:$0xff] }
 0x442   :  { %4961 = vmatprep.subr.mxu0 %v1912_v54  ;;  %5299 = vmatprep.subr.mxu1 %v6068_v33 }
 0x443   :  { %4962 = vmatpush3.msra.mxu0 %v1896_v17  ;;  %5300 = vmatpush3.msra.mxu1 %v2405_v7  ;;  %v2510_v7 = vld [vmem:[#allocation6 + $0x18] sm:$0xff] }
 0x444   :  { %4963 = vmatprep.subr.mxu0 %v1911_v35  ;;  %5301 = vmatprep.subr.mxu1 %v6068_v33 }
 0x445   :  { %4964 = vmatpush3.msra.mxu0 %v1895_v36  ;;  %5302 = vmatpush3.msra.mxu1 %v2404_v9  ;;  %v2393_v9 = vld [vmem:[#allocation19 + $0x8] sm:$0xff] }
 0x446   :  { %4965 = vmatprep.subr.mxu0 %v1910_v37  ;;  %5303 = vmatprep.subr.mxu1 %v6068_v33 }
 0x447   :  { %4966 = vmatpush3.msra.mxu0 %v1894_v38  ;;  %5304 = vmatpush3.msra.mxu1 %v2403_v10  ;;  %v2509_v10 = vld [vmem:[#allocation6 + $0x10] sm:$0xff] }
 0x448   :  { %4967 = vmatprep.subr.mxu0 %v1909_v45  ;;  %5305 = vmatprep.subr.mxu1 %v6068_v33 }
 0x449   :  { %4968 = vmatpush3.msra.mxu0 %v1893_v39  ;;  %5306 = vmatpush3.msra.mxu1 %v2402_v14  ;;  %v2508_v14 = vld [vmem:[#allocation6 + $0x8] sm:$0xff] }
 0x44a   :  { %4969 = vmatprep.subr.mxu0 %v1908_v41  ;;  %5307 = vmatprep.subr.mxu1 %v6068_v33 }
 0x44b   :  { %4970 = vmatpush3.msra.mxu0 %v1892_v42  ;;  %5308 = vmatpush3.msra.mxu1 %v2401_v43  ;;  %v2392_v43 = vld [vmem:[#allocation19] sm:$0xff] }
 0x44c   :  { %4971 = vmatprep.subr.mxu0 %v1907_v40  ;;  %5309 = vmatprep.subr.mxu1 %v6068_v33 }
 0x44d   :  { %4972 = vmatpush3.msra.mxu0 %v1891_v11  ;;  %5310 = vmatpush3.msra.mxu1 %v2400_v60  ;;  %v2537_v11 = vld [vmem:[#allocation6 + $0xf0] sm:$0xff]  ;;  %v2507_v60 = vld [vmem:[#allocation6] sm:$0xff] }
 0x44e   :  { %4973 = vmatprep.subr.mxu0 %v1906_v27  ;;  %5311 = vmatprep.subr.mxu1 %v6068_v33  ;;  %v2536_v27 = vld [vmem:[#allocation6 + $0xe8] sm:$0xff] }
 0x44f   :  { %4974 = vmatpush3.msra.mxu0 %v1890_v32  ;;  %5312 = vmatpush3.msra.mxu1 %v2399_v22  ;;  %v2535_v32 = vld [vmem:[#allocation6 + $0xe0] sm:$0xff]  ;;  %v2570_v22 = vld [vmem:[#allocation6 + $0x1f8] sm:$0xff] }
 0x450   :  { %4975 = vmatprep.subr.mxu0 %v1905_v21  ;;  %5313 = vmatprep.subr.mxu1 %v6068_v33  ;;  %v2534_v21 = vld [vmem:[#allocation6 + $0xd8] sm:$0xff] }
 0x451   :  { %4976 = vmatpush3.msra.mxu0 %v1889_v16  ;;  %5314 = vmatpush3.msra.mxu1 %v2398_v6  ;;  %v2533_v16 = vld [vmem:[#allocation6 + $0xd0] sm:$0xff]  ;;  %v2602_v6 = vld [vmem:[#allocation6 + $0x2f8] sm:$0xff] }
 0x452   :  { %4977 = vmatprep.subr.mxu0 %v1904_v26  ;;  %5315 = vmatprep.subr.mxu1 %v6068_v33  ;;  %v2532_v26 = vld [vmem:[#allocation6 + $0xc8] sm:$0xff] }
 0x453   :  { %4978 = vmatpush3.msra.mxu0 %v1888_v29  ;;  %5316 = vmatpush3.msra.mxu1 %v2397_v62  ;;  %v2531_v29 = vld [vmem:[#allocation6 + $0xc0] sm:$0xff]  ;;  %v2569_v62 = vld [vmem:[#allocation6 + $0x1f0] sm:$0xff] }
 0x454   :  { %2228 = vmatmul.mubr.f32.vlgmr.msra.gmra.mxu0 %v1774_v13  ;;  %5260 = vmatprep.subr.mxu0 %v6068_v33  ;;  %v2530_v13 = vld [vmem:[#allocation6 + $0xb8] sm:$0xff] }
 0x455   :  { %5261 = vmatpush3.msra.mxu0 %v2319_v44  ;;  %5292 = vmatprep.mubr.msk.f32.mxu0 %vm5654_vm7, %v6068_v33  ;;  %v2529_v44 = vld [vmem:[#allocation6 + $0xb0] sm:$0xff] }
 0x456   :  { %5262 = vmatprep.subr.mxu0 %v6068_v33  ;;  %5317 = vmatprep.subr.mxu1 %v6068_v33 }
 0x457   :  { %5263 = vmatpush3.msra.mxu0 %v2318_v46  ;;  %5318 = vmatpush3.msra.mxu1 %v2396_v12  ;;  %v2528_v46 = vld [vmem:[#allocation6 + $0xa8] sm:$0xff] }
 0x458   :  { %5264 = vmatprep.subr.mxu0 %v6068_v33  ;;  %5319 = vmatprep.subr.mxu1 %v6068_v33  ;;  %v2568_v12 = vld [vmem:[#allocation6 + $0x1e8] sm:$0xff] }
 0x459   :  { %5265 = vmatpush3.msra.mxu0 %v2317_v47  ;;  %5320 = vmatpush3.msra.mxu1 %v2395_v18  ;;  %v2527_v47 = vld [vmem:[#allocation6 + $0xa0] sm:$0xff] }
 0x45a   :  { %5266 = vmatprep.subr.mxu0 %v6068_v33  ;;  %5321 = vmatprep.subr.mxu1 %v6068_v33  ;;  %v2567_v18 = vld [vmem:[#allocation6 + $0x1e0] sm:$0xff] }
 0x45b   :  { %5267 = vmatpush3.msra.mxu0 %v2316_v48  ;;  %5322 = vmatpush3.msra.mxu1 %v2394_v19  ;;  %v2526_v48 = vld [vmem:[#allocation6 + $0x98] sm:$0xff] }
 0x45c   :  { %5268 = vmatprep.subr.mxu0 %v6068_v33  ;;  %5323 = vmatprep.subr.mxu1 %v6068_v33  ;;  %v2566_v19 = vld [vmem:[#allocation6 + $0x1d8] sm:$0xff] }
 0x45d   :  { %5269 = vmatpush3.msra.mxu0 %v2315_v15  ;;  %v2525_v15 = vld [vmem:[#allocation6 + $0x90] sm:$0xff]  ;;  %5324 = vmatpush3.msra.mxu1 %v2393_v9  ;;  %v4822_v9 = vld [vmem:[%s6453_s0 + $0x28] sm:$0xff] }
 0x45e   :  { %5270 = vmatprep.subr.mxu0 %v6068_v33  ;;  %5325 = vmatprep.subr.mxu1 %v6068_v33 }
 0x45f   :  { %5271 = vmatpush3.msra.mxu0 %v2314_v3  ;;  %v2524_v3 = vld [vmem:[#allocation6 + $0x88] sm:$0xff]  ;;  %5326 = vmatpush3.msra.mxu1 %v2392_v43 }
 0x460   :  { %5272 = vmatprep.subr.mxu0 %v6068_v33  ;;  %2768 = vmatprep.subr.mxu1 %v2602_v6  ;;  %v2644_v43 = vld [vmem:[#allocation6 + $0x448] sm:$0xff]  ;;  %v4823_v6 = vld [vmem:[%s6453_s0 + $0x30] sm:$0xff] }
 0x461   :  { %5273 = vmatpush3.msra.mxu0 %v2313_v49  ;;  %v2523_v49 = vld [vmem:[#allocation6 + $0x80] sm:$0xff] }
 0x462   :  { %5274 = vmatprep.subr.mxu0 %v6068_v33 }
 0x463   :  { %5275 = vmatpush3.msra.mxu0 %v2312_v50  ;;  %v2522_v50 = vld [vmem:[#allocation6 + $0x78] sm:$0xff] }
 0x464   :  { %5276 = vmatprep.subr.mxu0 %v6068_v33 }
 0x465   :  { %5277 = vmatpush3.msra.mxu0 %v2311_v51  ;;  %v2521_v51 = vld [vmem:[#allocation6 + $0x70] sm:$0xff] }
 0x466   :  { %5278 = vmatprep.subr.mxu0 %v6068_v33 }
 0x467   :  { %5279 = vmatpush3.msra.mxu0 %v2310_v53  ;;  %v2520_v53 = vld [vmem:[#allocation6 + $0x68] sm:$0xff] }
 0x468   :  { %5280 = vmatprep.subr.mxu0 %v6068_v33 }
 0x469   :  { %5281 = vmatpush3.msra.mxu0 %v2309_v52  ;;  %v2519_v52 = vld [vmem:[#allocation6 + $0x60] sm:$0xff] }
 0x46a   :  { %5282 = vmatprep.subr.mxu0 %v6068_v33 }
 0x46b   :  { %5283 = vmatpush3.msra.mxu0 %v2308_v56  ;;  %v2518_v56 = vld [vmem:[#allocation6 + $0x58] sm:$0xff] }
 0x46c   :  { %5284 = vmatprep.subr.mxu0 %v6068_v33 }
 0x46d   :  { %5285 = vmatpush3.msra.mxu0 %v2307_v57  ;;  %v2517_v57 = vld [vmem:[#allocation6 + $0x50] sm:$0xff] }
 0x46e   :  { %5286 = vmatprep.subr.mxu0 %v6068_v33 }
 0x46f   :  { %5287 = vmatpush3.msra.mxu0 %v2306_v58  ;;  %v2516_v58 = vld [vmem:[#allocation6 + $0x48] sm:$0xff] }
 0x470   :  { %5288 = vmatprep.subr.mxu0 %v6068_v33 }
 0x471   :  { %5289 = vmatpush3.msra.mxu0 %v2305_v61  ;;  %v2515_v61 = vld [vmem:[#allocation6 + $0x40] sm:$0xff] }
 0x472   :  { %5290 = vmatprep.subr.mxu0 %v6068_v33 }
 0x473   :  { %5291 = vmatpush3.msra.mxu0 %v2304_v63  ;;  %v2514_v63 = vld [vmem:[#allocation6 + $0x38] sm:$0xff] }
 0x474   :  { %2679 = vmatprep.subr.mxu0 %v2538_v2  ;;  %v2513_v2 = vld [vmem:[#allocation6 + $0x30] sm:$0xff] }
 0x4d3   :  { %v4874_v20 = vpop.f32.mrf.mxu0 }
 0x4d5   :  { %v4875_v23 = vpop.f32.mrf.mxu0 }
 0x4d6   :  { %v4876_v55 = vadd.f32 %v4875_v23, %v4874_v20  ;;  %v2565_v20 = vld [vmem:[#allocation6 + $0x1d0] sm:$0xff]  ;;  %v2564_v23 = vld [vmem:[#allocation6 + $0x1c8] sm:$0xff] }
 0x4d8   :  { %v2020_v25 = vadd.f32 %v4876_v55, %v1952_v0  ;;  %v2560_v55 = vld [vmem:[#allocation6 + $0x1a8] sm:$0xff]  ;;  %v2559_v0 = vld [vmem:[#allocation6 + $0x1a0] sm:$0xff] }
 0x4da   :  { %v4944_v28 = vpop.f32.mrf.mxu1 }
 0x4dc   :  { %v4945_v31 = vpop.f32.mrf.mxu1 }
 0x4dd   :  { %v4946_v35 = vadd.f32 %v4945_v31, %v4944_v28  ;;  %v2562_v28 = vld [vmem:[#allocation6 + $0x1b8] sm:$0xff]  ;;  %v2557_v31 = vld [vmem:[#allocation6 + $0x190] sm:$0xff] }
 0x4f3   :  { %v4909_v24 = vpop.f32.mrf.mxu0 }
 0x4f5   :  { %v4910_v1 = vpop.f32.mrf.mxu0 }
 0x4f6   :  { %v4911_v30 = vadd.f32 %v4910_v1, %v4909_v24  ;;  %v2563_v24 = vld [vmem:[#allocation6 + $0x1c0] sm:$0xff]  ;;  %v2561_v1 = vld [vmem:[#allocation6 + $0x1b0] sm:$0xff] }
 0x4f8   :  { %v2090_v54 = vadd.f32 %v4911_v30, %v2020_v25  ;;  %v2558_v30 = vld [vmem:[#allocation6 + $0x198] sm:$0xff]  ;;  %v2556_v25 = vld [vmem:[#allocation6 + $0x188] sm:$0xff] }
 0x4fa   :  { %v2160_v38 = vadd.f32 %v4946_v35, %v2090_v54  ;;  %v2554_v54 = vld [vmem:[#allocation6 + $0x178] sm:$0xff]  ;;  %v2552_v35 = vld [vmem:[#allocation6 + $0x168] sm:$0xff] }
 0x4fc   :  { %v5014_v34 = vpop.f32.mrf.mxu1 }
 0x4fe   :  { %v5015_v36 = vpop.f32.mrf.mxu1 }
 0x4ff   :  { %v5016_v39 = vadd.f32 %v5015_v36, %v5014_v34  ;;  %v2555_v34 = vld [vmem:[#allocation6 + $0x180] sm:$0xff] }
 0x500   :  { %v2551_v36 = vld [vmem:[#allocation6 + $0x160] sm:$0xff] }
 0x514   :  { %v4979_v17 = vpop.f32.mrf.mxu0 }
 0x516   :  { %v4980_v37 = vpop.f32.mrf.mxu0 }
 0x517   :  { %v4981_v45 = vadd.f32 %v4980_v37, %v4979_v17  ;;  %v2553_v17 = vld [vmem:[#allocation6 + $0x170] sm:$0xff]  ;;  %v2550_v37 = vld [vmem:[#allocation6 + $0x158] sm:$0xff] }
 0x519   :  { %v2230_v41 = vadd.f32 %v4981_v45, %v2160_v38  ;;  %v2549_v38 = vld [vmem:[#allocation6 + $0x150] sm:$0xff]  ;;  %v2548_v45 = vld [vmem:[#allocation6 + $0x148] sm:$0xff] }
 0x51b   :  { %v2300_v42 = vadd.f32 %v5016_v39, %v2230_v41  ;;  %v2547_v39 = vld [vmem:[#allocation6 + $0x140] sm:$0xff]  ;;  %v2546_v41 = vld [vmem:[#allocation6 + $0x138] sm:$0xff] }
 0x51d   :  { %v2303_v40 = vmax.f32 %v2300_v42, 0.0  ;;  %v2545_v42 = vld [vmem:[#allocation6 + $0x130] sm:$0xff] }
 0x51f   :  { %5293 = vmatmul.mubr.f32.vlgmr.msra.gmra.mxu0 %v2303_v40  ;;  %v2544_v40 = vld [vmem:[#allocation6 + $0x128] sm:$0xff] }
 0x520   :  { %2680 = vmatpush1.msra.mxu0 %v2537_v11  ;;  %v2543_v11 = vld [vmem:[#allocation6 + $0x120] sm:$0xff] }
 0x521   :  { %2681 = vmatprep.subr.mxu0 %v2536_v27  ;;  %v2542_v27 = vld [vmem:[#allocation6 + $0x118] sm:$0xff] }
 0x522   :  { %2682 = vmatpush1.msra.mxu0 %v2535_v32  ;;  %v2541_v32 = vld [vmem:[#allocation6 + $0x110] sm:$0xff] }
 0x523   :  { %2683 = vmatprep.subr.mxu0 %v2534_v21  ;;  %v2540_v21 = vld [vmem:[#allocation6 + $0x108] sm:$0xff] }
 0x524   :  { %2684 = vmatpush1.msra.mxu0 %v2533_v16  ;;  %v2539_v16 = vld [vmem:[#allocation6 + $0x100] sm:$0xff] }
 0x525   :  { %2685 = vmatprep.subr.mxu0 %v2532_v26  ;;  %v4825_v26 = vld [vmem:[%s6453_s0 + $0x21] sm:$0xff] }
 0x526   :  { %2686 = vmatpush1.msra.mxu0 %v2531_v29  ;;  %v2666_v29 = vld [vmem:[#allocation6 + $0x4f8] sm:$0xff]  ;;  %2743 = vmatprep.mubr.f32.mxu0 %v4825_v26 }
 0x527   :  { %2687 = vmatprep.subr.mxu0 %v2530_v13  ;;  %v4821_v13 = vld [vmem:[%s6453_s0 + $0x20] sm:$0xff]  ;;  %v2590_v26 = vld [vmem:[#allocation6 + $0x298] sm:$0xff] }
 0x528   :  { %2688 = vmatpush1.msra.mxu0 %v2529_v44  ;;  %v2665_v44 = vld [vmem:[#allocation6 + $0x4f0] sm:$0xff] }
 0x529   :  { %2689 = vmatprep.subr.mxu0 %v2528_v46  ;;  %v2664_v46 = vld [vmem:[#allocation6 + $0x4e8] sm:$0xff] }
 0x52a   :  { %2690 = vmatpush1.msra.mxu0 %v2527_v47  ;;  %v2663_v47 = vld [vmem:[#allocation6 + $0x4e0] sm:$0xff] }
 0x52b   :  { %2691 = vmatprep.subr.mxu0 %v2526_v48  ;;  %v2662_v48 = vld [vmem:[#allocation6 + $0x4d8] sm:$0xff] }
 0x52c   :  { %2692 = vmatpush1.msra.mxu0 %v2525_v15  ;;  %v2661_v15 = vld [vmem:[#allocation6 + $0x4d0] sm:$0xff] }
 0x52d   :  { %2693 = vmatprep.subr.mxu0 %v2524_v3  ;;  %v2660_v3 = vld [vmem:[#allocation6 + $0x4c8] sm:$0xff] }
 0x52e   :  { %2694 = vmatpush1.msra.mxu0 %v2523_v49  ;;  %v2659_v49 = vld [vmem:[#allocation6 + $0x4c0] sm:$0xff] }
 0x52f   :  { %2695 = vmatprep.subr.mxu0 %v2522_v50  ;;  %v2658_v50 = vld [vmem:[#allocation6 + $0x4b8] sm:$0xff] }
 0x530   :  { %2696 = vmatpush1.msra.mxu0 %v2521_v51  ;;  %v2657_v51 = vld [vmem:[#allocation6 + $0x4b0] sm:$0xff] }
 0x531   :  { %2697 = vmatprep.subr.mxu0 %v2520_v53  ;;  %v2656_v53 = vld [vmem:[#allocation6 + $0x4a8] sm:$0xff] }
 0x532   :  { %2698 = vmatpush1.msra.mxu0 %v2519_v52  ;;  %v2655_v52 = vld [vmem:[#allocation6 + $0x4a0] sm:$0xff] }
 0x533   :  { %2699 = vmatprep.subr.mxu0 %v2518_v56  ;;  %v2654_v56 = vld [vmem:[#allocation6 + $0x498] sm:$0xff] }
 0x534   :  { %2700 = vmatpush1.msra.mxu0 %v2517_v57  ;;  %v2653_v57 = vld [vmem:[#allocation6 + $0x490] sm:$0xff] }
 0x535   :  { %2701 = vmatprep.subr.mxu0 %v2516_v58  ;;  %v2652_v58 = vld [vmem:[#allocation6 + $0x488] sm:$0xff] }
 0x536   :  { %2702 = vmatpush1.msra.mxu0 %v2515_v61  ;;  %v2651_v61 = vld [vmem:[#allocation6 + $0x480] sm:$0xff] }
 0x537   :  { %2703 = vmatprep.subr.mxu0 %v2514_v63  ;;  %v2650_v63 = vld [vmem:[#allocation6 + $0x478] sm:$0xff] }
 0x538   :  { %2704 = vmatpush1.msra.mxu0 %v2513_v2  ;;  %v2649_v2 = vld [vmem:[#allocation6 + $0x470] sm:$0xff] }
 0x539   :  { %2705 = vmatprep.subr.mxu0 %v2512_v59  ;;  %v2648_v59 = vld [vmem:[#allocation6 + $0x468] sm:$0xff] }
 0x53a   :  { %2706 = vmatpush1.msra.mxu0 %v2511_v4  ;;  %v4826_v4 = vld [vmem:[%s6453_s0 + $0x29] sm:$0xff] }
 0x53b   :  { %2707 = vmatprep.subr.mxu0 %v2510_v7  ;;  %v2647_v7 = vld [vmem:[#allocation6 + $0x460] sm:$0xff] }
 0x53c   :  { %2708 = vmatpush1.msra.mxu0 %v2509_v10  ;;  %v2646_v10 = vld [vmem:[#allocation6 + $0x458] sm:$0xff] }
 0x53d   :  { %2709 = vmatprep.subr.mxu0 %v2508_v14  ;;  %v2645_v14 = vld [vmem:[#allocation6 + $0x450] sm:$0xff] }
 0x53e   :  { %2710 = vmatpush1.msra.mxu0 %v2507_v60  ;;  %v4827_v60 = vld [vmem:[%s6453_s0 + $0x31] sm:$0xff] }
 0x53f   :  { %2711 = vmatprep.subr.mxu0 %v2570_v22  ;;  %v2643_v22 = vld [vmem:[#allocation6 + $0x440] sm:$0xff] }
 0x540   :  { %2712 = vmatpush2.msra.mxu0 %v2569_v62  ;;  %v2642_v62 = vld [vmem:[#allocation6 + $0x438] sm:$0xff] }
 0x541   :  { %2713 = vmatprep.subr.mxu0 %v2568_v12  ;;  %v2641_v12 = vld [vmem:[#allocation6 + $0x430] sm:$0xff] }
 0x542   :  { %2714 = vmatpush2.msra.mxu0 %v2567_v18  ;;  %v2640_v18 = vld [vmem:[#allocation6 + $0x428] sm:$0xff] }
 0x543   :  { %2715 = vmatprep.subr.mxu0 %v2566_v19  ;;  %v4828_v19 = vld [vmem:[%s6453_s0 + $0x39] sm:$0xf] }
 0x544   :  { %2716 = vmatpush2.msra.mxu0 %v2565_v20  ;;  %v2639_v20 = vld [vmem:[#allocation6 + $0x420] sm:$0xff] }
 0x545   :  { %2717 = vmatprep.subr.mxu0 %v2564_v23  ;;  %v4824_v23 = vld [vmem:[%s6453_s0 + $0x38] sm:$0xf] }
 0x546   :  { %2718 = vmatpush2.msra.mxu0 %v2563_v24  ;;  %v2638_v24 = vld [vmem:[#allocation6 + $0x418] sm:$0xff] }
 0x547   :  { %2719 = vmatprep.subr.mxu0 %v2562_v28  ;;  %v2637_v28 = vld [vmem:[#allocation6 + $0x410] sm:$0xff] }
 0x548   :  { %2720 = vmatpush2.msra.mxu0 %v2561_v1  ;;  %v2636_v1 = vld [vmem:[#allocation6 + $0x408] sm:$0xff] }
 0x549   :  { %2721 = vmatprep.subr.mxu0 %v2560_v55  ;;  %v2635_v55 = vld [vmem:[#allocation6 + $0x400] sm:$0xff] }
 0x54a   :  { %2722 = vmatpush2.msra.mxu0 %v2559_v0  ;;  %v4837_v0 = vld [vmem:[%s6453_s0 + $0x24] sm:$0xff] }
 0x54b   :  { %2723 = vmatprep.subr.mxu0 %v2558_v30  ;;  %v4838_v30 = vld [vmem:[%s6453_s0 + $0x2c] sm:$0xff] }
 0x54c   :  { %2724 = vmatpush2.msra.mxu0 %v2557_v31  ;;  %v4839_v31 = vld [vmem:[%s6453_s0 + $0x34] sm:$0xff] }
 0x54d   :  { %2725 = vmatprep.subr.mxu0 %v2556_v25  ;;  %v4840_v25 = vld [vmem:[%s6453_s0 + $0x3c] sm:$0xf] }
 0x54e   :  { %2726 = vmatpush2.msra.mxu0 %v2555_v34  ;;  %v2320_v34 = vld [vmem:[#allocation17] sm:$0x1] }
 0x54f   :  { %2727 = vmatprep.subr.mxu0 %v2554_v54 }
 0x550   :  { %2728 = vmatpush2.msra.mxu0 %v2553_v17 }
 0x551   :  { %2729 = vmatprep.subr.mxu0 %v2552_v35 }
 0x552   :  { %2730 = vmatpush2.msra.mxu0 %v2551_v36 }
 0x553   :  { %2731 = vmatprep.subr.mxu0 %v2550_v37  ;;  %v2601_v37 = vld [vmem:[#allocation6 + $0x2f0] sm:$0xff] }
 0x554   :  { %2732 = vmatpush2.msra.mxu0 %v2549_v38  ;;  %v4833_v38 = vld [vmem:[%s6453_s0 + $0x23] sm:$0xff] }
 0x555   :  { %2733 = vmatprep.subr.mxu0 %v2548_v45  ;;  %v2600_v45 = vld [vmem:[#allocation6 + $0x2e8] sm:$0xff] }
 0x556   :  { %2734 = vmatpush2.msra.mxu0 %v2547_v39  ;;  %v2599_v39 = vld [vmem:[#allocation6 + $0x2e0] sm:$0xff] }
 0x557   :  { %2735 = vmatprep.subr.mxu0 %v2546_v41  ;;  %v2598_v41 = vld [vmem:[#allocation6 + $0x2d8] sm:$0xff] }
 0x558   :  { %2736 = vmatpush2.msra.mxu0 %v2545_v42  ;;  %v2597_v42 = vld [vmem:[#allocation6 + $0x2d0] sm:$0xff] }
 0x559   :  { %2737 = vmatprep.subr.mxu0 %v2544_v40  ;;  %v2596_v40 = vld [vmem:[#allocation6 + $0x2c8] sm:$0xff] }
 0x55a   :  { %2738 = vmatpush2.msra.mxu0 %v2543_v11  ;;  %v2595_v11 = vld [vmem:[#allocation6 + $0x2c0] sm:$0xff] }
 0x55b   :  { %2739 = vmatprep.subr.mxu0 %v2542_v27  ;;  %v2594_v27 = vld [vmem:[#allocation6 + $0x2b8] sm:$0xff] }
 0x55c   :  { %2740 = vmatpush2.msra.mxu0 %v2541_v32  ;;  %v2593_v32 = vld [vmem:[#allocation6 + $0x2b0] sm:$0xff] }
 0x55d   :  { %2741 = vmatprep.subr.mxu0 %v2540_v21  ;;  %v2592_v21 = vld [vmem:[#allocation6 + $0x2a8] sm:$0xff] }
 0x55e   :  { %2742 = vmatpush2.msra.mxu0 %v2539_v16  ;;  %v2591_v16 = vld [vmem:[#allocation6 + $0x2a0] sm:$0xff] }
 0x55f   :  { %2857 = vmatprep.subr.mxu0 %v2666_v29  ;;  %2744 = vmatmul.mubr.f32.vlgmr.msra.gmra.mxu0 %v4821_v13  ;;  %v2589_v29 = vld [vmem:[#allocation6 + $0x290] sm:$0xff]  ;;  %v2588_v13 = vld [vmem:[#allocation6 + $0x288] sm:$0xff] }
 0x560   :  { %2858 = vmatpush1.msra.mxu0 %v2665_v44  ;;  %2749 = vmatprep.mubr.f32.mxu0 %v4826_v4  ;;  %v2587_v44 = vld [vmem:[#allocation6 + $0x280] sm:$0xff]  ;;  %v2633_v4 = vld [vmem:[#allocation6 + $0x3f0] sm:$0xff] }
 0x561   :  { %2859 = vmatprep.subr.mxu0 %v2664_v46  ;;  %v2586_v46 = vld [vmem:[#allocation6 + $0x278] sm:$0xff] }
 0x562   :  { %2860 = vmatpush1.msra.mxu0 %v2663_v47  ;;  %v2585_v47 = vld [vmem:[#allocation6 + $0x270] sm:$0xff] }
 0x563   :  { %2861 = vmatprep.subr.mxu0 %v2662_v48  ;;  %2750 = vmatmul.mubr.f32.gmra.mxu0 %v4822_v9  ;;  %v2584_v48 = vld [vmem:[#allocation6 + $0x268] sm:$0xff]  ;;  %v2631_v9 = vld [vmem:[#allocation6 + $0x3e0] sm:$0xff] }
 0x564   :  { %2862 = vmatpush1.msra.mxu0 %v2661_v15  ;;  %2755 = vmatprep.mubr.f32.mxu0 %v4827_v60  ;;  %v2583_v15 = vld [vmem:[#allocation6 + $0x260] sm:$0xff] }
 0x565   :  { %2863 = vmatprep.subr.mxu0 %v2660_v3  ;;  %v2582_v3 = vld [vmem:[#allocation6 + $0x258] sm:$0xff]  ;;  %v2627_v60 = vld [vmem:[#allocation6 + $0x3c0] sm:$0xff] }
 0x566   :  { %2864 = vmatpush1.msra.mxu0 %v2659_v49  ;;  %v2581_v49 = vld [vmem:[#allocation6 + $0x250] sm:$0xff] }
 0x567   :  { %2865 = vmatprep.subr.mxu0 %v2658_v50  ;;  %2756 = vmatmul.mubr.f32.gmra.mxu0 %v4823_v6  ;;  %v2580_v50 = vld [vmem:[#allocation6 + $0x248] sm:$0xff]  ;;  %v2625_v6 = vld [vmem:[#allocation6 + $0x3b0] sm:$0xff] }
 0x568   :  { %2866 = vmatpush1.msra.mxu0 %v2657_v51  ;;  %2761 = vmatprep.mubr.f32.mxu0 %v4828_v19  ;;  %v2579_v51 = vld [vmem:[#allocation6 + $0x240] sm:$0xff]  ;;  %v2621_v19 = vld [vmem:[#allocation6 + $0x390] sm:$0xff] }
 0x569   :  { %2867 = vmatprep.subr.mxu0 %v2656_v53  ;;  %v2578_v53 = vld [vmem:[#allocation6 + $0x238] sm:$0xff] }
 0x56a   :  { %2868 = vmatpush1.msra.mxu0 %v2655_v52  ;;  %v2577_v52 = vld [vmem:[#allocation6 + $0x230] sm:$0xff] }
 0x56b   :  { %2869 = vmatprep.subr.mxu0 %v2654_v56  ;;  %2762 = vmatmul.mubr.f32.gmra.mxu0 %v4824_v23  ;;  %v2576_v56 = vld [vmem:[#allocation6 + $0x228] sm:$0xff]  ;;  %v2619_v23 = vld [vmem:[#allocation6 + $0x380] sm:$0xff] }
 0x56c   :  { %2870 = vmatpush1.msra.mxu0 %v2653_v57  ;;  %2921 = vmatprep.mubr.f32.mxu0 %v6068_v33  ;;  %v2575_v57 = vld [vmem:[#allocation6 + $0x220] sm:$0xff] }
 0x56d   :  { %2871 = vmatprep.subr.mxu0 %v2652_v58  ;;  %v2574_v58 = vld [vmem:[#allocation6 + $0x218] sm:$0xff] }
 0x56e   :  { %2872 = vmatpush1.msra.mxu0 %v2651_v61  ;;  %v2573_v61 = vld [vmem:[#allocation6 + $0x210] sm:$0xff] }
 0x56f   :  { %2873 = vmatprep.subr.mxu0 %v2650_v63  ;;  %v2572_v63 = vld [vmem:[#allocation6 + $0x208] sm:$0xff] }
 0x570   :  { %2874 = vmatpush1.msra.mxu0 %v2649_v2  ;;  %v2571_v2 = vld [vmem:[#allocation6 + $0x200] sm:$0xff] }
 0x571   :  { %2875 = vmatprep.subr.mxu0 %v2648_v59  ;;  %v2634_v59 = vld [vmem:[#allocation6 + $0x3f8] sm:$0xff] }
 0x572   :  { %2876 = vmatpush1.msra.mxu0 %v2647_v7  ;;  %v2632_v7 = vld [vmem:[#allocation6 + $0x3e8] sm:$0xff] }
 0x573   :  { %2877 = vmatprep.subr.mxu0 %v2646_v10  ;;  %v2630_v10 = vld [vmem:[#allocation6 + $0x3d8] sm:$0xff] }
 0x574   :  { %2878 = vmatpush1.msra.mxu0 %v2645_v14  ;;  %v2629_v14 = vld [vmem:[#allocation6 + $0x3d0] sm:$0xff] }
 0x575   :  { %2879 = vmatprep.subr.mxu0 %v2644_v43  ;;  %v2628_v43 = vld [vmem:[#allocation6 + $0x3c8] sm:$0xff] }
 0x576   :  { %2880 = vmatpush1.msra.mxu0 %v2643_v22  ;;  %v2626_v22 = vld [vmem:[#allocation6 + $0x3b8] sm:$0xff] }
 0x577   :  { %2881 = vmatprep.subr.mxu0 %v2642_v62  ;;  %v2624_v62 = vld [vmem:[#allocation6 + $0x3a8] sm:$0xff] }
 0x578   :  { %2882 = vmatpush1.msra.mxu0 %v2641_v12  ;;  %v2623_v12 = vld [vmem:[#allocation6 + $0x3a0] sm:$0xff] }
 0x579   :  { %2883 = vmatprep.subr.mxu0 %v2640_v18  ;;  %v2622_v18 = vld [vmem:[#allocation6 + $0x398] sm:$0xff] }
 0x57a   :  { %2884 = vmatpush1.msra.mxu0 %v2639_v20  ;;  %v2620_v20 = vld [vmem:[#allocation6 + $0x388] sm:$0xff] }
 0x57b   :  { %2885 = vmatprep.subr.mxu0 %v2638_v24  ;;  %v2618_v24 = vld [vmem:[#allocation6 + $0x378] sm:$0xff] }
 0x57c   :  { %2886 = vmatpush1.msra.mxu0 %v2637_v28  ;;  %v2617_v28 = vld [vmem:[#allocation6 + $0x370] sm:$0xff] }
 0x57d   :  { %2887 = vmatprep.subr.mxu0 %v2636_v1  ;;  %v2616_v1 = vld [vmem:[#allocation6 + $0x368] sm:$0xff] }
 0x57e   :  { %2888 = vmatpush1.msra.mxu0 %v2635_v55  ;;  %v2615_v55 = vld [vmem:[#allocation6 + $0x360] sm:$0xff] }
 0x57f   :  { %2922 = vmatmul.mubr.f32.vlgmr.msra.gmra.mxu0 %v4837_v0  ;;  %v2614_v0 = vld [vmem:[#allocation6 + $0x358] sm:$0xff] }
 0x580   :  { %2927 = vmatprep.mubr.f32.mxu0 %v6068_v33 }
 0x583   :  { %2928 = vmatmul.mubr.f32.gmra.mxu0 %v4838_v30  ;;  %v2613_v30 = vld [vmem:[#allocation6 + $0x350] sm:$0xff] }
 0x584   :  { %2933 = vmatprep.mubr.f32.mxu0 %v6068_v33 }
 0x587   :  { %2934 = vmatmul.mubr.f32.gmra.mxu0 %v4839_v31  ;;  %v2612_v31 = vld [vmem:[#allocation6 + $0x348] sm:$0xff] }
 0x588   :  { %2939 = vmatprep.mubr.f32.mxu0 %v6068_v33 }
 0x58b   :  { %2940 = vmatmul.mubr.f32.gmra.mxu0 %v4840_v25  ;;  %v2611_v25 = vld [vmem:[#allocation6 + $0x340] sm:$0xff] }
 0x5df   :  { %v2387_v54 = vpop.f32.mrf.mxu0 }
 0x5e0   :  { %v2388_v17 = vadd.f32 %v2387_v54, %v2320_v34  ;;  %v2610_v34 = vld [vmem:[#allocation6 + $0x338] sm:$0xff]  ;;  %v2609_v54 = vld [vmem:[#allocation6 + $0x330] sm:$0xff] }
 0x5e1   :  { %v5294_v35 = vpop.f32.mrf.mxu0 }
 0x5e2   :  { %v2391_v36 = vmax.f32 %v2388_v17, 0.0  ;;  %v2608_v17 = vld [vmem:[#allocation6 + $0x328] sm:$0xff]  ;;  %v2607_v35 = vld [vmem:[#allocation6 + $0x320] sm:$0xff] }
 0x5e4   :  { %5328 = vmatmul.mubr.f32.vlgmr.msra.gmra.mxu1 %v2391_v36  ;;  %v2606_v36 = vld [vmem:[#allocation6 + $0x318] sm:$0xff] }
 0x5e5   :  { %2769 = vmatpush1.msra.mxu1 %v2601_v37  ;;  %2832 = vmatprep.mubr.f32.mxu1 %v4833_v38  ;;  %v2605_v37 = vld [vmem:[#allocation6 + $0x310] sm:$0xff]  ;;  %v2604_v38 = vld [vmem:[#allocation6 + $0x308] sm:$0xff] }
 0x5e6   :  { %2770 = vmatprep.subr.mxu1 %v2600_v45  ;;  %v2603_v45 = vld [vmem:[#allocation6 + $0x300] sm:$0xff] }
 0x5e7   :  { %2771 = vmatpush1.msra.mxu1 %v2599_v39  ;;  %v4829_v39 = vld [vmem:[%s6453_s0 + $0x22] sm:$0xff] }
 0x5e8   :  { %2772 = vmatprep.subr.mxu1 %v2598_v41  ;;  %v4834_v41 = vld [vmem:[%s6453_s0 + $0x2b] sm:$0xff] }
 0x5e9   :  { %2773 = vmatpush1.msra.mxu1 %v2597_v42  ;;  %v4830_v42 = vld [vmem:[%s6453_s0 + $0x2a] sm:$0xff] }
 0x5ea   :  { %2774 = vmatprep.subr.mxu1 %v2596_v40  ;;  %v4835_v40 = vld [vmem:[%s6453_s0 + $0x33] sm:$0xff] }
 0x5eb   :  { %2775 = vmatpush1.msra.mxu1 %v2595_v11  ;;  %v4831_v11 = vld [vmem:[%s6453_s0 + $0x32] sm:$0xff] }
 0x5ec   :  { %2776 = vmatprep.subr.mxu1 %v2594_v27  ;;  %v4836_v27 = vld [vmem:[%s6453_s0 + $0x3b] sm:$0xf] }
 0x5ed   :  { %2777 = vmatpush1.msra.mxu1 %v2593_v32  ;;  %v4832_v32 = vld [vmem:[%s6453_s0 + $0x3a] sm:$0xf] }
 0x5ee   :  { %2778 = vmatprep.subr.mxu1 %v2592_v21  ;;  %v3213_v21 = vld [vmem:[#allocation10 + $0xf8] sm:$0xff] }
 0x5ef   :  { %2779 = vmatpush1.msra.mxu1 %v2591_v16  ;;  %v3212_v16 = vld [vmem:[#allocation10 + $0xf0] sm:$0xff] }
 0x5f0   :  { %2780 = vmatprep.subr.mxu1 %v2590_v26  ;;  %v3211_v26 = vld [vmem:[#allocation10 + $0xe8] sm:$0xff] }
 0x5f1   :  { %2781 = vmatpush1.msra.mxu1 %v2589_v29  ;;  %v3210_v29 = vld [vmem:[#allocation10 + $0xe0] sm:$0xff] }
 0x5f2   :  { %2782 = vmatprep.subr.mxu1 %v2588_v13  ;;  %v3209_v13 = vld [vmem:[#allocation10 + $0xd8] sm:$0xff] }
 0x5f3   :  { %2783 = vmatpush1.msra.mxu1 %v2587_v44  ;;  %v3208_v44 = vld [vmem:[#allocation10 + $0xd0] sm:$0xff] }
 0x5f4   :  { %2784 = vmatprep.subr.mxu1 %v2586_v46  ;;  %v3277_v46 = vld [vmem:[#allocation10 + $0x2f8] sm:$0xff] }
 0x5f5   :  { %2785 = vmatpush1.msra.mxu1 %v2585_v47  ;;  %v3207_v47 = vld [vmem:[#allocation10 + $0xc8] sm:$0xff]  ;;  %3597 = vmatprep.subr.mxu0 %v3277_v46  ;;  %v3248_v46 = vld [vmem:[#allocation10 + $0x210] sm:$0xff] }
 0x5f6   :  { %2786 = vmatprep.subr.mxu1 %v2584_v48  ;;  %v3276_v48 = vld [vmem:[#allocation10 + $0x2f0] sm:$0xff] }
 0x5f7   :  { %2787 = vmatpush1.msra.mxu1 %v2583_v15  ;;  %v3206_v15 = vld [vmem:[#allocation10 + $0xc0] sm:$0xff]  ;;  %3598 = vmatpush1.msra.mxu0 %v3276_v48  ;;  %v3247_v48 = vld [vmem:[#allocation10 + $0x208] sm:$0xff] }
 0x5f8   :  { %2788 = vmatprep.subr.mxu1 %v2582_v3  ;;  %v3275_v3 = vld [vmem:[#allocation10 + $0x2e8] sm:$0xff] }
 0x5f9   :  { %2789 = vmatpush1.msra.mxu1 %v2581_v49  ;;  %v3274_v49 = vld [vmem:[#allocation10 + $0x2e0] sm:$0xff]  ;;  %3599 = vmatprep.subr.mxu0 %v3275_v3 }
 0x5fa   :  { %2790 = vmatprep.subr.mxu1 %v2580_v50  ;;  %v3205_v50 = vld [vmem:[#allocation10 + $0xb8] sm:$0xff]  ;;  %3600 = vmatpush1.msra.mxu0 %v3274_v49  ;;  %v3246_v3 = vld [vmem:[#allocation10 + $0x200] sm:$0xff] }
 0x5fb   :  { %2791 = vmatpush1.msra.mxu1 %v2579_v51  ;;  %v3273_v51 = vld [vmem:[#allocation10 + $0x2d8] sm:$0xff]  ;;  %v3242_v49 = vld [vmem:[#allocation10 + $0x1e0] sm:$0xff] }
 0x5fc   :  { %2792 = vmatprep.subr.mxu1 %v2578_v53  ;;  %v3204_v53 = vld [vmem:[#allocation10 + $0xb0] sm:$0xff]  ;;  %3601 = vmatprep.subr.mxu0 %v3273_v51 }
 0x5fd   :  { %2793 = vmatpush1.msra.mxu1 %v2577_v52  ;;  %v3272_v52 = vld [vmem:[#allocation10 + $0x2d0] sm:$0xff] }
 0x5fe   :  { %2794 = vmatprep.subr.mxu1 %v2576_v56  ;;  %v3271_v56 = vld [vmem:[#allocation10 + $0x2c8] sm:$0xff]  ;;  %3602 = vmatpush1.msra.mxu0 %v3272_v52  ;;  %v3240_v51 = vld [vmem:[#allocation10 + $0x1d0] sm:$0xff]  ;;  %v3238_v52 = vld [vmem:[#allocation10 + $0x1c0] sm:$0xff] }
 0x5ff   :  { %2795 = vmatpush1.msra.mxu1 %v2575_v57  ;;  %v3203_v57 = vld [vmem:[#allocation10 + $0xa8] sm:$0xff]  ;;  %3603 = vmatprep.subr.mxu0 %v3271_v56  ;;  %v3237_v56 = vld [vmem:[#allocation10 + $0x1b8] sm:$0xff] }
 0x600   :  { %2796 = vmatprep.subr.mxu1 %v2574_v58  ;;  %v3270_v58 = vld [vmem:[#allocation10 + $0x2c0] sm:$0xff] }
 0x601   :  { %2797 = vmatpush1.msra.mxu1 %v2573_v61  ;;  %v3202_v61 = vld [vmem:[#allocation10 + $0xa0] sm:$0xff]  ;;  %3604 = vmatpush1.msra.mxu0 %v3270_v58 }
 0x602   :  { %2798 = vmatprep.subr.mxu1 %v2572_v63  ;;  %v3269_v63 = vld [vmem:[#allocation10 + $0x2b8] sm:$0xff] }
 0x603   :  { %2799 = vmatpush1.msra.mxu1 %v2571_v2  ;;  %v3201_v2 = vld [vmem:[#allocation10 + $0x98] sm:$0xff]  ;;  %3605 = vmatprep.subr.mxu0 %v3269_v63 }
 0x604   :  { %2800 = vmatprep.subr.mxu1 %v2634_v59  ;;  %v3268_v59 = vld [vmem:[#allocation10 + $0x2b0] sm:$0xff] }
 0x605   :  { %2801 = vmatpush2.msra.mxu1 %v2633_v4  ;;  %v3200_v4 = vld [vmem:[#allocation10 + $0x90] sm:$0xff]  ;;  %3606 = vmatpush1.msra.mxu0 %v3268_v59 }
 0x606   :  { %2802 = vmatprep.subr.mxu1 %v2632_v7  ;;  %v3267_v7 = vld [vmem:[#allocation10 + $0x2a8] sm:$0xff] }
 0x607   :  { %2803 = vmatpush2.msra.mxu1 %v2631_v9  ;;  %v3199_v9 = vld [vmem:[#allocation10 + $0x88] sm:$0xff]  ;;  %3607 = vmatprep.subr.mxu0 %v3267_v7 }
 0x608   :  { %2804 = vmatprep.subr.mxu1 %v2630_v10  ;;  %v3266_v10 = vld [vmem:[#allocation10 + $0x2a0] sm:$0xff] }
 0x609   :  { %2805 = vmatpush2.msra.mxu1 %v2629_v14  ;;  %v3198_v14 = vld [vmem:[#allocation10 + $0x80] sm:$0xff]  ;;  %3608 = vmatpush1.msra.mxu0 %v3266_v10 }
 0x60a   :  { %2806 = vmatprep.subr.mxu1 %v2628_v43  ;;  %v3265_v43 = vld [vmem:[#allocation10 + $0x298] sm:$0xff] }
 0x60b   :  { %2807 = vmatpush2.msra.mxu1 %v2627_v60  ;;  %v3197_v60 = vld [vmem:[#allocation10 + $0x78] sm:$0xff]  ;;  %3609 = vmatprep.subr.mxu0 %v3265_v43 }
 0x60c   :  { %2808 = vmatprep.subr.mxu1 %v2626_v22  ;;  %v3264_v22 = vld [vmem:[#allocation10 + $0x290] sm:$0xff] }
 0x60d   :  { %2809 = vmatpush2.msra.mxu1 %v2625_v6  ;;  %v3196_v6 = vld [vmem:[#allocation10 + $0x70] sm:$0xff]  ;;  %3610 = vmatpush1.msra.mxu0 %v3264_v22  ;;  %v2667_v22 = vld [vmem:[#allocation8] sm:$0x3] }
 0x60e   :  { %2810 = vmatprep.subr.mxu1 %v2624_v62  ;;  %v3263_v62 = vld [vmem:[#allocation10 + $0x288] sm:$0xff] }
 0x60f   :  { %2811 = vmatpush2.msra.mxu1 %v2623_v12  ;;  %v3195_v12 = vld [vmem:[#allocation10 + $0x68] sm:$0xff]  ;;  %3611 = vmatprep.subr.mxu0 %v3263_v62 }
 0x610   :  { %2812 = vmatprep.subr.mxu1 %v2622_v18  ;;  %v3262_v18 = vld [vmem:[#allocation10 + $0x280] sm:$0xff] }
 0x611   :  { %2813 = vmatpush2.msra.mxu1 %v2621_v19  ;;  %v3194_v19 = vld [vmem:[#allocation10 + $0x60] sm:$0xff]  ;;  %3612 = vmatpush1.msra.mxu0 %v3262_v18  ;;  %v6183_v18 = vrot.slane %v2667_v22, %v5829_v8 }
 0x612   :  { %2814 = vmatprep.subr.mxu1 %v2620_v20  ;;  %v3261_v20 = vld [vmem:[#allocation10 + $0x278] sm:$0xff] }
 0x613   :  { %2815 = vmatpush2.msra.mxu1 %v2619_v23  ;;  %v3193_v23 = vld [vmem:[#allocation10 + $0x58] sm:$0xff]  ;;  %3613 = vmatprep.subr.mxu0 %v3261_v20 }
 0x614   :  { %2816 = vmatprep.subr.mxu1 %v2618_v24  ;;  %v3260_v24 = vld [vmem:[#allocation10 + $0x270] sm:$0xff] }
 0x615   :  { %2817 = vmatpush2.msra.mxu1 %v2617_v28  ;;  %v3192_v28 = vld [vmem:[#allocation10 + $0x50] sm:$0xff]  ;;  %3614 = vmatpush1.msra.mxu0 %v3260_v24 }
 0x616   :  { %2818 = vmatprep.subr.mxu1 %v2616_v1  ;;  %v3259_v1 = vld [vmem:[#allocation10 + $0x268] sm:$0xff] }
 0x617   :  { %2819 = vmatpush2.msra.mxu1 %v2615_v55  ;;  %v3191_v55 = vld [vmem:[#allocation10 + $0x48] sm:$0xff]  ;;  %3615 = vmatprep.subr.mxu0 %v3259_v1 }
 0x618   :  { %2820 = vmatprep.subr.mxu1 %v2614_v0  ;;  %v3258_v0 = vld [vmem:[#allocation10 + $0x260] sm:$0xff]  ;;  %v3235_v1 = vld [vmem:[#allocation10 + $0x1a8] sm:$0xff] }
 0x619   :  { %2821 = vmatpush2.msra.mxu1 %v2613_v30  ;;  %v3190_v30 = vld [vmem:[#allocation10 + $0x40] sm:$0xff]  ;;  %3616 = vmatpush1.msra.mxu0 %v3258_v0 }
 0x61a   :  { %2822 = vmatprep.subr.mxu1 %v2612_v31  ;;  %v3257_v31 = vld [vmem:[#allocation10 + $0x258] sm:$0xff]  ;;  %v3234_v0 = vld [vmem:[#allocation10 + $0x1a0] sm:$0xff] }
 0x61b   :  { %2823 = vmatpush2.msra.mxu1 %v2611_v25  ;;  %v3189_v25 = vld [vmem:[#allocation10 + $0x38] sm:$0xff]  ;;  %3617 = vmatprep.subr.mxu0 %v3257_v31 }
 0x61c   :  { %2824 = vmatprep.subr.mxu1 %v2610_v34  ;;  %v3256_v34 = vld [vmem:[#allocation10 + $0x250] sm:$0xff] }
 0x61d   :  { %2825 = vmatpush2.msra.mxu1 %v2609_v54  ;;  %v3188_v54 = vld [vmem:[#allocation10 + $0x30] sm:$0xff]  ;;  %3618 = vmatpush1.msra.mxu0 %v3256_v34 }
 0x61e   :  { %2826 = vmatprep.subr.mxu1 %v2608_v17  ;;  %v3255_v17 = vld [vmem:[#allocation10 + $0x248] sm:$0xff] }
 0x61f   :  { %2827 = vmatpush2.msra.mxu1 %v2607_v35  ;;  %v3187_v35 = vld [vmem:[#allocation10 + $0x28] sm:$0xff]  ;;  %3619 = vmatprep.subr.mxu0 %v3255_v17  ;;  %v2745_v63 = vpop.f32.mrf.mxu0 }
 0x620   :  { %2828 = vmatprep.subr.mxu1 %v2606_v36  ;;  %v3254_v36 = vld [vmem:[#allocation10 + $0x240] sm:$0xff] }
 0x621   :  { %2829 = vmatpush2.msra.mxu1 %v2605_v37  ;;  %v2408_v37 = vld [vmem:[#allocation20] sm:$0x1]  ;;  %3620 = vmatpush1.msra.mxu0 %v3254_v36  ;;  %v3307_v36 = vld [vmem:[#allocation10 + $0x3e8] sm:$0xff] }
 0x622   :  { %2830 = vmatprep.subr.mxu1 %v2604_v38  ;;  %v3186_v38 = vld [vmem:[#allocation10 + $0x20] sm:$0xff] }
 0x623   :  { %2831 = vmatpush2.msra.mxu1 %v2603_v45  ;;  %v3253_v45 = vld [vmem:[#allocation10 + $0x238] sm:$0xff] }
 0x624   :  { %2833 = vmatmul.mubr.f32.vlgmr.msra.gmra.mxu1 %v4829_v39  ;;  %3514 = vmatprep.subr.mxu1 %v3213_v21  ;;  %v3185_v39 = vld [vmem:[#allocation10 + $0x18] sm:$0xff]  ;;  %v3250_v21 = vld [vmem:[#allocation10 + $0x220] sm:$0xff] }
 0x625   :  { %2838 = vmatprep.mubr.f32.mxu1 %v4834_v41  ;;  %3515 = vmatpush1.msra.mxu1 %v3212_v16  ;;  %v3252_v41 = vld [vmem:[#allocation10 + $0x230] sm:$0xff] }
 0x626   :  { %3516 = vmatprep.subr.mxu1 %v3211_v26  ;;  %3621 = vmatprep.subr.mxu0 %v3253_v45  ;;  %v3182_v26 = vld [vmem:[#allocation10] sm:$0xff] }
 0x627   :  { %3517 = vmatpush1.msra.mxu1 %v3210_v29  ;;  %3622 = vmatpush1.msra.mxu0 %v3252_v41  ;;  %v3249_v29 = vld [vmem:[#allocation10 + $0x218] sm:$0xff]  ;;  %v3306_v45 = vld [vmem:[#allocation10 + $0x3e0] sm:$0xff] }
 0x628   :  { %2839 = vmatmul.mubr.f32.gmra.mxu1 %v4830_v42  ;;  %3518 = vmatprep.subr.mxu1 %v3209_v13 }
 0x629   :  { %2844 = vmatprep.mubr.f32.mxu1 %v4835_v40  ;;  %3519 = vmatpush1.msra.mxu1 %v3208_v44  ;;  %v3184_v40 = vld [vmem:[#allocation10 + $0x10] sm:$0xff]  ;;  %v3245_v44 = vld [vmem:[#allocation10 + $0x1f8] sm:$0xff] }
 0x62a   :  { %3520 = vmatprep.subr.mxu1 %v3207_v47  ;;  %v3244_v47 = vld [vmem:[#allocation10 + $0x1f0] sm:$0xff] }
 0x62b   :  { %3521 = vmatpush1.msra.mxu1 %v3206_v15  ;;  %v3243_v15 = vld [vmem:[#allocation10 + $0x1e8] sm:$0xff] }
 0x62c   :  { %2845 = vmatmul.mubr.f32.gmra.mxu1 %v4831_v11  ;;  %3522 = vmatprep.subr.mxu1 %v3205_v50  ;;  %v3251_v11 = vld [vmem:[#allocation10 + $0x228] sm:$0xff]  ;;  %v3241_v50 = vld [vmem:[#allocation10 + $0x1d8] sm:$0xff] }
 0x62d   :  { %2850 = vmatprep.mubr.f32.mxu1 %v4836_v27  ;;  %3523 = vmatpush1.msra.mxu1 %v3204_v53  ;;  %v3239_v53 = vld [vmem:[#allocation10 + $0x1c8] sm:$0xff] }
 0x62e   :  { %3524 = vmatprep.subr.mxu1 %v3203_v57  ;;  %3623 = vmatprep.subr.mxu0 %v3251_v11  ;;  %v3236_v57 = vld [vmem:[#allocation10 + $0x1b0] sm:$0xff]  ;;  %v3231_v11 = vld [vmem:[#allocation10 + $0x188] sm:$0xff] }
 0x62f   :  { %3525 = vmatpush1.msra.mxu1 %v3202_v61  ;;  %3624 = vmatpush1.msra.mxu0 %v3250_v21 }
 0x630   :  { %2851 = vmatmul.mubr.f32.gmra.mxu1 %v4832_v32  ;;  %3526 = vmatprep.subr.mxu1 %v3201_v2  ;;  %v3183_v32 = vld [vmem:[#allocation10 + $0x8] sm:$0xff]  ;;  %v2747_v2 = vpop.f32.mrf.mxu0 }
 0x631   :  { %3527 = vmatpush1.msra.mxu1 %v3200_v4  ;;  %3625 = vmatprep.subr.mxu0 %v3249_v29  ;;  %v2748_v24 = vadd.f32 %v2747_v2, %v6183_v18  ;;  %v3300_v2 = vld [vmem:[#allocation10 + $0x3b0] sm:$0xff] }
 0x632   :  { %3528 = vmatprep.subr.mxu1 %v3199_v9  ;;  %3626 = vmatpush1.msra.mxu0 %v3248_v46  ;;  %v2751_v59 = vpop.f32.mrf.mxu0 }
 0x633   :  { %3529 = vmatpush1.msra.mxu1 %v3198_v14  ;;  %3627 = vmatprep.subr.mxu0 %v3247_v48  ;;  %v3303_v48 = vld [vmem:[#allocation10 + $0x3c8] sm:$0xff] }
 0x634   :  { %3530 = vmatprep.subr.mxu1 %v3197_v60  ;;  %3628 = vmatpush1.msra.mxu0 %v3246_v3  ;;  %v2753_v4 = vpop.f32.mrf.mxu0  ;;  %v3228_v3 = vld [vmem:[#allocation10 + $0x170] sm:$0xff] }
 0x635   :  { %3531 = vmatpush1.msra.mxu1 %v3196_v6 }
 0x636   :  { %3532 = vmatprep.subr.mxu1 %v3195_v12  ;;  %v2757_v9 = vpop.f32.mrf.mxu0  ;;  %v6180_v12 = vrot.slane %v2667_v22, %v5827_v5 }
 0x637   :  { %3533 = vmatpush1.msra.mxu1 %v3194_v19 }
 0x638   :  { %3534 = vmatprep.subr.mxu1 %v3193_v23  ;;  %v2759_v10 = vpop.f32.mrf.mxu0  ;;  %v2746_v20 = vadd.f32 %v2745_v63, %v6180_v12  ;;  %v2752_v34 = vadd.f32 %v2751_v59, %v6180_v12  ;;  %v2758_v29 = vadd.f32 %v2757_v9, %v6180_v12  ;;  %v3226_v63 = vld [vmem:[#allocation10 + $0x160] sm:$0xff] }
 0x639   :  { %3535 = vmatpush1.msra.mxu1 %v3192_v28 }
 0x63a   :  { %3536 = vmatprep.subr.mxu1 %v3191_v55  ;;  %v6175_v14 = vpop.f32.mrf.mxu0  ;;  %v3309_v55 = vld [vmem:[#allocation10 + $0x3f8] sm:$0xff] }
 0x63b   :  { %3537 = vmatpush1.msra.mxu1 %v3190_v30  ;;  %3629 = vmatprep.subr.mxu0 %v3309_v55  ;;  %v2764_v59 = vadd.f32 %v6175_v14, %v6180_v12 }
 0x63c   :  { %3538 = vmatprep.subr.mxu1 %v3189_v25  ;;  %v6177_v43 = vpop.f32.mrf.mxu0  ;;  %v3308_v25 = vld [vmem:[#allocation10 + $0x3f0] sm:$0xff] }
 0x63d   :  { %3539 = vmatpush1.msra.mxu1 %v3188_v54  ;;  %3630 = vmatpush2.msra.mxu0 %v3308_v25  ;;  %v3221_v25 = vld [vmem:[#allocation10 + $0x138] sm:$0xff] }
 0x63e   :  { %3540 = vmatprep.subr.mxu1 %v3187_v35  ;;  %v3233_v35 = vld [vmem:[#allocation10 + $0x198] sm:$0xff]  ;;  %3631 = vmatprep.subr.mxu0 %v3307_v36 }
 0x63f   :  { %3541 = vmatpush1.msra.mxu1 %v3186_v38  ;;  %v2923_v60 = vpop.f32.mrf.mxu0  ;;  %v3232_v38 = vld [vmem:[#allocation10 + $0x190] sm:$0xff]  ;;  %3632 = vmatpush2.msra.mxu0 %v3306_v45  ;;  %v3293_v45 = vld [vmem:[#allocation10 + $0x378] sm:$0xff] }
 0x640   :  { %3542 = vmatprep.subr.mxu1 %v3185_v39  ;;  %v2754_v39 = vadd.f32 %v2753_v4, %v6183_v18 }
 0x641   :  { %3543 = vmatpush1.msra.mxu1 %v3184_v40  ;;  %v2925_v6 = vpop.f32.mrf.mxu0 }
 0x642   :  { %3544 = vmatprep.subr.mxu1 %v3183_v32 }
 0x643   :  { %3545 = vmatpush1.msra.mxu1 %v3182_v26  ;;  %v2929_v62 = vpop.f32.mrf.mxu0  ;;  %v3304_v26 = vld [vmem:[#allocation10 + $0x3d0] sm:$0xff] }
 0x644   :  { %3546 = vmatprep.subr.mxu1 %v3245_v44 }
 0x645   :  { %3547 = vmatpush2.msra.mxu1 %v3244_v47  ;;  %v2931_v19 = vpop.f32.mrf.mxu0  ;;  %v3229_v47 = vld [vmem:[#allocation10 + $0x178] sm:$0xff] }
 0x646   :  { %3548 = vmatprep.subr.mxu1 %v3243_v15 }
 0x647   :  { %3549 = vmatpush2.msra.mxu1 %v3242_v49  ;;  %v2935_v31 = vpop.f32.mrf.mxu0  ;;  %v3302_v49 = vld [vmem:[#allocation10 + $0x3c0] sm:$0xff] }
 0x648   :  { %3550 = vmatprep.subr.mxu1 %v3241_v50  ;;  %v2760_v50 = vadd.f32 %v2759_v10, %v6183_v18  ;;  %v3225_v10 = vld [vmem:[#allocation10 + $0x158] sm:$0xff] }
 0x649   :  { %3551 = vmatpush2.msra.mxu1 %v3240_v51  ;;  %v2937_v21 = vpop.f32.mrf.mxu0 }
 0x64a   :  { %3552 = vmatprep.subr.mxu1 %v3239_v53 }
 0x64b   :  { %3553 = vmatpush2.msra.mxu1 %v3238_v52 }
 0x64c   :  { %3554 = vmatprep.subr.mxu1 %v3237_v56  ;;  %v3227_v56 = vld [vmem:[#allocation10 + $0x168] sm:$0xff] }
 0x64d   :  { %3555 = vmatpush2.msra.mxu1 %v3236_v57  ;;  %v3301_v57 = vld [vmem:[#allocation10 + $0x3b8] sm:$0xff] }
 0x64e   :  { %3556 = vmatprep.subr.mxu1 %v3235_v1 }
 0x64f   :  { %3557 = vmatpush2.msra.mxu1 %v3234_v0  ;;  %v3222_v0 = vld [vmem:[#allocation10 + $0x140] sm:$0xff] }
 0x650   :  { %3558 = vmatprep.subr.mxu1 %v3233_v35  ;;  %v3294_v35 = vld [vmem:[#allocation10 + $0x380] sm:$0xff] }
 0x651   :  { %3559 = vmatpush2.msra.mxu1 %v3232_v38  ;;  %v3219_v38 = vld [vmem:[#allocation10 + $0x128] sm:$0xff] }
 0x652   :  { %3560 = vmatprep.subr.mxu1 %v3231_v11  ;;  %v3217_v11 = vld [vmem:[#allocation10 + $0x118] sm:$0xff] }
 0x6a4   :  { %v2475_v42 = vpop.f32.mrf.mxu1 }
 0x6a5   :  { %v2476_v27 = vadd.f32 %v2475_v42, %v2408_v37 }
 0x6a6   :  { %v5329_v16 = vpop.f32.mrf.mxu1 }
 0x6a7   :  { %v4820_v13 = vmul.f32 -1.442695, %v2476_v27  ;;  %v3305_v27 = vld [vmem:[#allocation10 + $0x3d8] sm:$0xff]  ;;  %v3230_v16 = vld [vmem:[#allocation10 + $0x180] sm:$0xff] }
 0x6a8   :  { %3633 = vmatprep.subr.mxu0 %v3305_v27  ;;  %3561 = vmatpush2.msra.mxu1 %v3230_v16  ;;  %v3291_v27 = vld [vmem:[#allocation10 + $0x368] sm:$0xff] }
 0x6a9   :  { %5417 = vpow2.f32 %v4820_v13  ;;  %3634 = vmatpush2.msra.mxu0 %v3304_v26  ;;  %3562 = vmatprep.subr.mxu1 %v3229_v47  ;;  %v3215_v16 = vld [vmem:[#allocation10 + $0x108] sm:$0xff]  ;;  %v3289_v26 = vld [vmem:[#allocation10 + $0x358] sm:$0xff] }
 0x6aa   :  { %3635 = vmatprep.subr.mxu0 %v3303_v48  ;;  %3563 = vmatpush2.msra.mxu1 %v3228_v3  ;;  %v3287_v47 = vld [vmem:[#allocation10 + $0x348] sm:$0xff]  ;;  %v3341_v48 = vld [vmem:[#allocation10 + $0x4f8] sm:$0xff] }
 0x6ab   :  { %3636 = vmatpush2.msra.mxu0 %v3302_v49  ;;  %3564 = vmatprep.subr.mxu1 %v3227_v56  ;;  %v3285_v3 = vld [vmem:[#allocation10 + $0x338] sm:$0xff]  ;;  %v3284_v49 = vld [vmem:[#allocation10 + $0x330] sm:$0xff] }
 0x6ac   :  { %3637 = vmatprep.subr.mxu0 %v3301_v57  ;;  %3565 = vmatpush2.msra.mxu1 %v3226_v63  ;;  %v3281_v57 = vld [vmem:[#allocation10 + $0x318] sm:$0xff]  ;;  %v3279_v63 = vld [vmem:[#allocation10 + $0x308] sm:$0xff] }
 0x6ad   :  { %3638 = vmatpush2.msra.mxu0 %v3300_v2  ;;  %3566 = vmatprep.subr.mxu1 %v3225_v10  ;;  %v3278_v2 = vld [vmem:[#allocation10 + $0x300] sm:$0xff] }
 0x6b6   :  { %v5418_v58 = vpop.eup %5417 }
 0x6b7   :  { %v2482_v61 = vadd.f32 1.0, %v5418_v58 }
 0x6b9   :  { %5419 = vrcp.f32 %v2482_v61  ;;  %v2941_v61 = vpop.f32.mrf.mxu0 }
 0x6bb   :  { %v2943_v55 = vpop.f32.mrf.mxu0 }
 0x6c6   :  { %v5420_v7 = vpop.eup %5419 }
 0x6c7   :  { %2485 = vst [vmem:[%s6464_s11] sm:$0x1] %v5420_v7 }
 0x6e4   :  { %v2834_v23 = vpop.f32.mrf.mxu1 }
 0x6e5   :  { %v2835_v28 = vadd.f32 %v2834_v23, %v2746_v20  ;;  %v3223_v23 = vld [vmem:[#allocation10 + $0x148] sm:$0xff] }
 0x6e6   :  { %v2836_v30 = vpop.f32.mrf.mxu1 }
 0x6e7   :  { %v2924_v54 = vadd.f32 %v2923_v60, %v2835_v28  ;;  %v2837_v17 = vadd.f32 %v2836_v30, %v2748_v24  ;;  %v3299_v60 = vld [vmem:[#allocation10 + $0x3a8] sm:$0xff]  ;;  %v3297_v24 = vld [vmem:[#allocation10 + $0x398] sm:$0xff]  ;;  %v3296_v30 = vld [vmem:[#allocation10 + $0x390] sm:$0xff] }
 0x6e8   :  { %v2840_v37 = vpop.f32.mrf.mxu1  ;;  %3639 = vmatprep.subr.mxu0 %v3299_v60 }
 0x6e9   :  { %v6189_v41 = vmax.f32 %v2924_v54, 0.0  ;;  %v2926_v42 = vadd.f32 %v2925_v6, %v2837_v17  ;;  %v2841_v40 = vadd.f32 %v2840_v37, %v2752_v34  ;;  %v3224_v6 = vld [vmem:[#allocation10 + $0x150] sm:$0xff]  ;;  %v3295_v34 = vld [vmem:[#allocation10 + $0x388] sm:$0xff] }
 0x6ea   :  { %v2842_v32 = vpop.f32.mrf.mxu1  ;;  %3567 = vmatpush2.msra.mxu1 %v3224_v6  ;;  %v3220_v17 = vld [vmem:[#allocation10 + $0x130] sm:$0xff] }
 0x6eb   :  { %2955 = vst [vmem:[#allocation2 + $0x40] sm:$0xff] %v6189_v41  ;;  %v6193_v13 = vmax.f32 %v2926_v42, 0.0  ;;  %v6195_v44 = vadd.f32 %v2929_v62, %v2841_v40  ;;  %v2843_v46 = vadd.f32 %v2842_v32, %v2754_v39  ;;  %v3298_v62 = vld [vmem:[#allocation10 + $0x3a0] sm:$0xff]  ;;  %3568 = vmatprep.subr.mxu1 %v3223_v23  ;;  %v3292_v42 = vld [vmem:[#allocation10 + $0x370] sm:$0xff] }
 0x6ec   :  { %v2846_v15 = vpop.f32.mrf.mxu1  ;;  %3640 = vmatpush2.msra.mxu0 %v3298_v62  ;;  %3569 = vmatpush2.msra.mxu1 %v3222_v0  ;;  %v3218_v39 = vld [vmem:[#allocation10 + $0x120] sm:$0xff]  ;;  %v3216_v32 = vld [vmem:[#allocation10 + $0x110] sm:$0xff] }
 0x6ed   :  { %2956 = vst [vmem:[#allocation2 + $0x20] sm:$0xff] %v6193_v13  ;;  %v2948_v51 = vmax.f32 %v6195_v44, 0.0  ;;  %v6200_v53 = vadd.f32 %v2931_v19, %v2843_v46  ;;  %v2847_v52 = vadd.f32 %v2846_v15, %v2758_v29  ;;  %v2766_v19 = vadd.f32 %v6177_v43, %v6183_v18  ;;  %3641 = vmatprep.subr.mxu0 %v3297_v24  ;;  %v3214_v29 = vld [vmem:[#allocation10 + $0x100] sm:$0xff]  ;;  %v3288_v46 = vld [vmem:[#allocation10 + $0x350] sm:$0xff] }
 0x6ee   :  { %v2848_v58 = vpop.f32.mrf.mxu1  ;;  %3642 = vmatpush2.msra.mxu0 %v3296_v30  ;;  %3570 = vmatprep.subr.mxu1 %v3221_v25  ;;  %v3286_v15 = vld [vmem:[#allocation10 + $0x340] sm:$0xff] }
 0x6ef   :  { %v2949_v4 = vmax.f32 %v6200_v53, 0.0  ;;  %v2849_v7 = vadd.f32 %v2848_v58, %v2760_v50  ;;  %v6205_v9 = vadd.f32 %v2935_v31, %v2847_v52  ;;  %3643 = vmatprep.subr.mxu0 %v3295_v34  ;;  %3571 = vmatpush2.msra.mxu1 %v3220_v17  ;;  %v3283_v50 = vld [vmem:[#allocation10 + $0x328] sm:$0xff]  ;;  %v3282_v52 = vld [vmem:[#allocation10 + $0x320] sm:$0xff]  ;;  %v3280_v58 = vld [vmem:[#allocation10 + $0x310] sm:$0xff] }
 0x6f0   :  { %v2852_v22 = vpop.f32.mrf.mxu1  ;;  %3644 = vmatpush2.msra.mxu0 %v3294_v35  ;;  %3572 = vmatprep.subr.mxu1 %v3219_v38 }
 0x6f1   :  { %v2950_v20 = vmax.f32 %v6205_v9, 0.0  ;;  %v2853_v14 = vadd.f32 %v2852_v22, %v2764_v59  ;;  %v6210_v12 = vadd.f32 %v2937_v21, %v2849_v7  ;;  %3645 = vmatprep.subr.mxu0 %v3293_v45  ;;  %3573 = vmatpush2.msra.mxu1 %v3218_v39  ;;  %v3290_v21 = vld [vmem:[#allocation10 + $0x360] sm:$0xff]  ;;  %v3405_v7 = vld [vmem:[#allocation10 + $0x6f8] sm:$0xff] }
 0x6f2   :  { %v2854_v28 = vpop.f32.mrf.mxu1  ;;  %v6212_v1 = vld [vmem:[#allocation2 + $0x40] sm:$0xfe]  ;;  %3646 = vmatpush2.msra.mxu0 %v3292_v42  ;;  %3574 = vmatprep.subr.mxu1 %v3217_v11 }
 0x6f3   :  { %v2951_v31 = vmax.f32 %v6210_v12, 0.0  ;;  %v2855_v43 = vadd.f32 %v2854_v28, %v2766_v19  ;;  %v2942_v18 = vadd.f32 %v2941_v61, %v2853_v14  ;;  %3032 = vrot.lane.b32.xlu0 %v6212_v1, %s5653_s2  ;;  %3647 = vmatprep.subr.mxu0 %v3291_v27 }
 0x6f4   :  { %v6217_v54 = vld [vmem:[#allocation2 + $0x20] sm:$0xfe]  ;;  %3575 = vmatpush2.msra.mxu1 %v3216_v32  ;;  %3648 = vmatpush2.msra.mxu0 %v3290_v21 }
 0x6f5   :  { %v2952_v36 = vmax.f32 %v2942_v18, 0.0  ;;  %v2944_v37 = vadd.f32 %v2943_v55, %v2855_v43  ;;  %3034 = vrot.lane.b32.xlu1 %v6217_v54, %s5653_s2  ;;  %3576 = vmatprep.subr.mxu1 %v3215_v16 }
 0x6f6   :  { %3649 = vmatprep.subr.mxu0 %v3289_v26  ;;  %3577 = vmatpush2.msra.mxu1 %v3214_v29 }
 0x6f7   :  { %2961 = vst [vmem:[#allocation2 + $0x78] sm:$0xf] %v2952_v36  ;;  %v2953_v40 = vmax.f32 %v2944_v37, 0.0  ;;  %2992 = vrot.lane.b32.xlu0 %v2948_v51, %s5653_s2  ;;  %3650 = vmatpush2.msra.mxu0 %v3288_v46  ;;  %v3340_v46 = vld [vmem:[#allocation10 + $0x4f0] sm:$0xff] }
 0x6f8   :  { %3651 = vmatprep.subr.mxu0 %v3287_v47  ;;  %3680 = vmatprep.subr.mxu1 %v3341_v48 }
 0x6f9   :  { %2962 = vst [vmem:[#allocation2 + $0x28] sm:$0xf] %v2953_v40  ;;  %2994 = vrot.lane.b32.xlu1 %v2949_v4, %s5653_s2  ;;  %3652 = vmatpush2.msra.mxu0 %v3286_v15 }
 0x6fa   :  { %3653 = vmatprep.subr.mxu0 %v3285_v3  ;;  %v3339_v3 = vld [vmem:[#allocation10 + $0x4e8] sm:$0xff] }
 0x6fb   :  { %2988 = vrot.lane.b32.xlu0 %v6189_v41, %s5653_s2  ;;  %3654 = vmatpush2.msra.mxu0 %v3284_v49 }
 0x6fc   :  { %3655 = vmatprep.subr.mxu0 %v3283_v50 }
 0x6fd   :  { %2990 = vrot.lane.b32.xlu1 %v6193_v13, %s5653_s2  ;;  %3656 = vmatpush2.msra.mxu0 %v3282_v52 }
 0x6fe   :  { %v6237_v56 = vld [vmem:[#allocation2 + $0x78] sm:$0xf]  ;;  %3657 = vmatprep.subr.mxu0 %v3281_v57 }
 0x6ff   :  { %2996 = vrot.lane.b32.xlu0 %v2950_v20, %s5653_s2  ;;  %v6242_v59 = vld [vmem:[#allocation2 + $0x78] sm:$0x7]  ;;  %3658 = vmatpush2.msra.mxu0 %v3280_v58 }
 0x700   :  { %v3027_v61 = vld [vmem:[#allocation2 + $0x28] sm:$0xf]  ;;  %3659 = vmatprep.subr.mxu0 %v3279_v63 }
 0x701   :  { %2998 = vrot.lane.b32.xlu1 %v2951_v31, %s5653_s2  ;;  %v6246_v10 = vld [vmem:[#allocation2 + $0x28] sm:$0x7]  ;;  %3660 = vmatpush2.msra.mxu0 %v3278_v2  ;;  %v3336_v2 = vld [vmem:[#allocation10 + $0x4d0] sm:$0xff] }
 0x702   :  { %3763 = vmatprep.subr.mxu0 %v3405_v7  ;;  %v3335_v7 = vld [vmem:[#allocation10 + $0x4c8] sm:$0xff] }
 0x703   :  { %3036 = vrot.lane.b32.xlu0 %v6237_v56, %s5653_s2 }
 0x705   :  { %3038 = vrot.lane.b32.xlu1 %v3027_v61, %s5653_s2 }
 0x707   :  { %3000 = vrot.lane.b32.xlu0 %v6242_v59, %s5653_s2 }
 0x709   :  { %3002 = vrot.lane.b32.xlu1 %v6246_v10, %s5653_s2 }
 0x765   :  { %v3033_v60 = vpop.permute.xlu0 %3032 }
 0x767   :  { %v3035_v22 = vpop.permute.xlu1 %3034 }
 0x768   :  { %v3040_v6 = vsel %vm679_vm0, %v3033_v60, %v3035_v22  ;;  %v3047_v19 = vmax.f32 %v6217_v54, %v3035_v22  ;;  %v3334_v60 = vld [vmem:[#allocation10 + $0x4c0] sm:$0xff] }
 0x769   :  { %v2993_v62 = vpop.permute.xlu0 %2992  ;;  %v3046_v14 = vmax.f32 %v6212_v1, %v3040_v6  ;;  %v3333_v6 = vld [vmem:[#allocation10 + $0x4b8] sm:$0xff] }
 0x76a   :  { %v3061_v30 = vrot.slane %v3047_v19, 1 }
 0x76b   :  { %v2995_v23 = vpop.permute.xlu1 %2994  ;;  %v3058_v18 = vrot.slane %v3046_v14, 1 }
 0x76c   :  { %v3005_v24 = vsel %vm679_vm0, %v2993_v62, %v2995_v23  ;;  %v3019_v28 = vmax.f32 %v2949_v4, %v2995_v23  ;;  %v3332_v62 = vld [vmem:[#allocation10 + $0x4b0] sm:$0xff] }
 0x76d   :  { %v3018_v55 = vmax.f32 %v2948_v51, %v3005_v24  ;;  %v2989_v0 = vpop.permute.xlu0 %2988 }
 0x76e   :  { %v3062_v43 = vrot.slane %v3019_v28, 1 }
 0x76f   :  { %v3059_v25 = vrot.slane %v3018_v55, 1  ;;  %v2991_v34 = vpop.permute.xlu1 %2990 }
 0x770   :  { %v3063_v17 = vsel %vm734_vm1, %v3061_v30, %v3062_v43  ;;  %v3004_v54 = vsel %vm679_vm0, %v2989_v0, %v2991_v34  ;;  %v3017_v1 = vmax.f32 %v6193_v13, %v2991_v34  ;;  %v3330_v0 = vld [vmem:[#allocation10 + $0x4a0] sm:$0xff]  ;;  %v3404_v30 = vld [vmem:[#allocation10 + $0x6f0] sm:$0xff] }
 0x771   :  { %v3016_v35 = vmax.f32 %v6189_v41, %v3004_v54  ;;  %v3060_v53 = vsel %vm734_vm1, %v3058_v18, %v3059_v25  ;;  %v2997_v4 = vpop.permute.xlu0 %2996 }
 0x772   :  { %v3081_v36 = vmax.f32 %v3017_v1, %v3063_v17 }
 0x773   :  { %v3080_v44 = vmax.f32 %v3016_v35, %v3060_v53  ;;  %v2999_v51 = vpop.permute.xlu1 %2998  ;;  %v3403_v35 = vld [vmem:[#allocation10 + $0x6e8] sm:$0xff] }
 0x774   :  { %3089 = vst.msk [vmem:[#allocation3 + $0x48] sm:$0xff] %vm679_vm0, %v3081_v36  ;;  %v3006_v37 = vsel %vm679_vm0, %v2997_v4, %v2999_v51  ;;  %v3021_v38 = vmax.f32 %v2951_v31, %v2999_v51  ;;  %v3328_v36 = vld [vmem:[#allocation10 + $0x490] sm:$0xff] }
 0x775   :  { %3088 = vst [vmem:[#allocation3 + $0x40] sm:$0xff] %v3080_v44  ;;  %v3020_v45 = vmax.f32 %v2950_v20, %v3006_v37  ;;  %v3037_v13 = vpop.permute.xlu0 %3036  ;;  %v3402_v37 = vld [vmem:[#allocation10 + $0x6e0] sm:$0xff] }
 0x776   :  { %v3066_v39 = vrot.slane %v3021_v38, 1 }
 0x777   :  { %v3064_v41 = vrot.slane %v3020_v45, 1  ;;  %v3039_v42 = vpop.permute.xlu1 %3038 }
 0x778   :  { %v3067_v40 = vsel %vm734_vm1, %v3062_v43, %v3066_v39  ;;  %v3041_v11 = vsel %vm679_vm0, %v3037_v13, %v3039_v42  ;;  %v3049_v27 = vmax.f32 %v3027_v61, %v3039_v42  ;;  %v3337_v61 = vld [vmem:[#allocation10 + $0x4d8] sm:$0xff]  ;;  %v3327_v13 = vld [vmem:[#allocation10 + $0x488] sm:$0xff]  ;;  %v3326_v42 = vld [vmem:[#allocation10 + $0x480] sm:$0xff] }
 0x779   :  { %v3065_v32 = vsel %vm734_vm1, %v3059_v25, %v3064_v41  ;;  %v3083_v21 = vmax.f32 %v3019_v28, %v3067_v40  ;;  %v3048_v16 = vmax.f32 %v6237_v56, %v3041_v11  ;;  %v3001_v20 = vpop.permute.xlu0 %3000  ;;  %v3338_v56 = vld [vmem:[#allocation10 + $0x4e0] sm:$0xff]  ;;  %v3331_v28 = vld [vmem:[#allocation10 + $0x4a8] sm:$0xff]  ;;  %v3329_v25 = vld [vmem:[#allocation10 + $0x498] sm:$0xff] }
 0x77a   :  { %v6273_v12 = vmax.f32 %v3018_v55, %v3065_v32  ;;  %v3070_v31 = vrot.slane %v3049_v27, 1  ;;  %v3400_v40 = vld [vmem:[#allocation10 + $0x6d0] sm:$0xff]  ;;  %v3325_v11 = vld [vmem:[#allocation10 + $0x478] sm:$0xff]  ;;  %v3399_v27 = vld [vmem:[#allocation10 + $0x6c8] sm:$0xff] }
 0x77b   :  { %3091 = vst.msk [vmem:[#allocation3 + $0x58] sm:$0xff] %vm679_vm0, %v3083_v21  ;;  %v3068_v9 = vrot.slane %v3048_v16, 1  ;;  %v3003_v26 = vpop.permute.xlu1 %3002  ;;  %v3097_v29 = vld [vmem:[#allocation3 + $0x48] sm:$0xff]  ;;  %v3324_v32 = vld [vmem:[#allocation10 + $0x470] sm:$0xff] }
 0x77c   :  { %v3071_v47 = vsel %vm734_vm1, %v3066_v39, %v3070_v31  ;;  %v3007_v48 = vsel %vm679_vm0, %v3001_v20, %v3003_v26  ;;  %v3023_v15 = vmax.f32 %v6246_v10, %v3003_v26  ;;  %3578 = vmatprep.mubr.f32.mxu1 %v3097_v29  ;;  %v3103_v10 = vld [vmem:[#allocation3 + $0x48] sm:$0xfc]  ;;  %v3123_v24 = vrot.slane %v6273_v12, 2  ;;  %v3401_v39 = vld [vmem:[#allocation10 + $0x6d8] sm:$0xff]  ;;  %v3398_v21 = vld [vmem:[#allocation10 + $0x6c0] sm:$0xff] }
 0x77d   :  { %v3069_v49 = vsel %vm734_vm1, %v3064_v41, %v3068_v9  ;;  %v3085_v50 = vmax.f32 %v3021_v38, %v3071_v47  ;;  %v3022_v52 = vmax.f32 %v6242_v59, %v3007_v48  ;;  %3579 = vmatmul.mubr.f32.vlgmr.msra.gmra.mxu1 %v3080_v44  ;;  %v3102_v59 = vld [vmem:[#allocation3 + $0x40] sm:$0xfc]  ;;  %v3125_v19 = vrot.slane %v3103_v10, 2  ;;  %v3107_v43 = vld [vmem:[#allocation3 + $0x48] sm:$0xf0]  ;;  %v3396_v29 = vld [vmem:[#allocation10 + $0x6b0] sm:$0xff] }
 0x77e   :  { %v6281_v57 = vmax.f32 %v3020_v45, %v3069_v49  ;;  %v3087_v58 = vmax.f32 %v3023_v15, %v3070_v31  ;;  %3681 = vmatpush1.msra.mxu1 %v3340_v46  ;;  %v3122_v23 = vrot.slane %v3102_v59, 2  ;;  %v3145_v44 = vrot.slane %v3107_v43, 4  ;;  %v3323_v16 = vld [vmem:[#allocation10 + $0x468] sm:$0xff]  ;;  %v3397_v31 = vld [vmem:[#allocation10 + $0x6b8] sm:$0xff]  ;;  %v3322_v20 = vld [vmem:[#allocation10 + $0x460] sm:$0xff] }
 0x77f   :  { %3093 = vst.msk [vmem:[#allocation3 + $0x68] sm:$0xff] %vm679_vm0, %v3085_v50  ;;  %v3086_v63 = vmax.f32 %v3022_v52, %v3068_v9  ;;  %3682 = vmatprep.subr.mxu1 %v3339_v3  ;;  %v3111_v9 = vld [vmem:[#allocation3 + $0x48] sm:$0xc0]  ;;  %v3321_v46 = vld [vmem:[#allocation10 + $0x458] sm:$0xff]  ;;  %v3320_v15 = vld [vmem:[#allocation10 + $0x450] sm:$0xff] }
 0x780   :  { %3092 = vst [vmem:[#allocation3 + $0x60] sm:$0xff] %v6281_v57  ;;  %3095 = vst.msk [vmem:[#allocation3 + $0x78] sm:$0x7] %vm772_vm2, %v3087_v58  ;;  %3683 = vmatpush1.msra.mxu1 %v3338_v56  ;;  %v3124_v54 = vsel %vm800_vm3, %v3122_v23, %v3123_v24  ;;  %v3395_v47 = vld [vmem:[#allocation10 + $0x6a8] sm:$0xff]  ;;  %v3165_v48 = vrot.slane %v3111_v9, 6  ;;  %v3394_v3 = vld [vmem:[#allocation10 + $0x6a0] sm:$0xff] }
 0x781   :  { %3094 = vst [vmem:[#allocation3 + $0x70] sm:$0x7] %v3086_v63  ;;  %3684 = vmatprep.subr.mxu1 %v3337_v61  ;;  %v3319_v50 = vld [vmem:[#allocation10 + $0x448] sm:$0xff]  ;;  %v3393_v52 = vld [vmem:[#allocation10 + $0x698] sm:$0xff]  ;;  %v3318_v56 = vld [vmem:[#allocation10 + $0x440] sm:$0xff] }
 0x782   :  { %3685 = vmatpush1.msra.mxu1 %v3336_v2  ;;  %v6286_v22 = vld [vmem:[#allocation3 + $0x58] sm:$0xff]  ;;  %v3391_v63 = vld [vmem:[#allocation10 + $0x688] sm:$0xff]  ;;  %v3386_v23 = vld [vmem:[#allocation10 + $0x660] sm:$0xff] }
 0x783   :  { %3686 = vmatprep.subr.mxu1 %v3335_v7  ;;  %3584 = vmatprep.mubr.f32.mxu1 %v6286_v22  ;;  %v3126_v14 = vrot.slane %v6286_v22, 2  ;;  %v3146_v34 = vrot.slane %v6286_v22, 4  ;;  %v3166_v26 = vrot.slane %v6286_v22, 6  ;;  %v3392_v58 = vld [vmem:[#allocation10 + $0x690] sm:$0xff]  ;;  %v3317_v61 = vld [vmem:[#allocation10 + $0x438] sm:$0xff]  ;;  %v3390_v7 = vld [vmem:[#allocation10 + $0x680] sm:$0xff] }
 0x784   :  { %3687 = vmatpush1.msra.mxu1 %v3334_v60  ;;  %v3316_v2 = vld [vmem:[#allocation10 + $0x430] sm:$0xff]  ;;  %v3315_v10 = vld [vmem:[#allocation10 + $0x428] sm:$0xff]  ;;  %v3389_v59 = vld [vmem:[#allocation10 + $0x678] sm:$0xff] }
 0x785   :  { %3585 = vmatmul.mubr.f32.gmra.mxu1 %v6273_v12  ;;  %3688 = vmatprep.subr.mxu1 %v3333_v6  ;;  %v3127_v55 = vsel %vm800_vm3, %v3125_v19, %v3126_v14  ;;  %v3147_v45 = vsel %vm821_vm4, %v3145_v44, %v3146_v34  ;;  %v3167_v49 = vsel %vm842_vm5, %v3165_v48, %v3166_v26  ;;  %v3314_v60 = vld [vmem:[#allocation10 + $0x420] sm:$0xff]  ;;  %v3388_v6 = vld [vmem:[#allocation10 + $0x670] sm:$0xff]  ;;  %v3387_v19 = vld [vmem:[#allocation10 + $0x668] sm:$0xff] }
 0x786   :  { %3689 = vmatpush1.msra.mxu1 %v3332_v62  ;;  %3661 = vmatprep.mubr.f32.mxu0 %v3127_v55  ;;  %v3101_v18 = vld [vmem:[#allocation3 + $0x68] sm:$0xf]  ;;  %v3313_v62 = vld [vmem:[#allocation10 + $0x418] sm:$0xff] }
 0x787   :  { %v3105_v17 = vld [vmem:[#allocation3 + $0x68] sm:$0x3f]  ;;  %3690 = vmatprep.subr.mxu1 %v3331_v28  ;;  %3590 = vmatprep.mubr.f32.mxu1 %v3101_v18  ;;  %v3100_v1 = vld [vmem:[#allocation3 + $0x60] sm:$0xf]  ;;  %v3372_v18 = vld [vmem:[#allocation10 + $0x5f0] sm:$0xff] }
 0x788   :  { %v3130_v53 = vrot.slane %v3105_v17, 2  ;;  %v3104_v4 = vld [vmem:[#allocation3 + $0x60] sm:$0x3f]  ;;  %3662 = vmatmul.mubr.f32.vlgmr.msra.gmra.mxu0 %v3124_v54  ;;  %3691 = vmatpush1.msra.mxu1 %v3330_v0  ;;  %v3384_v0 = vld [vmem:[#allocation10 + $0x650] sm:$0xff]  ;;  %v3383_v43 = vld [vmem:[#allocation10 + $0x648] sm:$0xff] }
 0x789   :  { %v3128_v51 = vrot.slane %v3104_v4, 2  ;;  %3764 = vmatpush1.msra.mxu0 %v3404_v30  ;;  %3591 = vmatmul.mubr.f32.gmra.mxu1 %v3100_v1  ;;  %v3385_v28 = vld [vmem:[#allocation10 + $0x658] sm:$0xff]  ;;  %v3310_v55 = vld [vmem:[#allocation10 + $0x400] sm:$0xff]  ;;  %v3371_v17 = vld [vmem:[#allocation10 + $0x5e8] sm:$0xff] }
 0x78a   :  { %v3131_v38 = vsel %vm800_vm3, %v3126_v14, %v3130_v53  ;;  %3692 = vmatprep.subr.mxu1 %v3329_v25  ;;  %3765 = vmatprep.subr.mxu0 %v3403_v35  ;;  %v3312_v14 = vld [vmem:[#allocation10 + $0x410] sm:$0xff]  ;;  %v3373_v30 = vld [vmem:[#allocation10 + $0x5f8] sm:$0xff]  ;;  %v3382_v25 = vld [vmem:[#allocation10 + $0x640] sm:$0xff] }
 0x78b   :  { %3693 = vmatpush1.msra.mxu1 %v3328_v36  ;;  %3744 = vmatprep.mubr.f32.mxu1 %v3147_v45  ;;  %v3129_v41 = vsel %vm800_vm3, %v3123_v24, %v3128_v51  ;;  %v3311_v24 = vld [vmem:[#allocation10 + $0x408] sm:$0xff]  ;;  %v3381_v54 = vld [vmem:[#allocation10 + $0x638] sm:$0xff]  ;;  %v3370_v1 = vld [vmem:[#allocation10 + $0x5e0] sm:$0xff] }
 0x78c   :  { %3766 = vmatpush1.msra.mxu0 %v3402_v37  ;;  %3667 = vmatprep.mubr.f32.mxu0 %v3131_v38  ;;  %v3380_v35 = vld [vmem:[#allocation10 + $0x630] sm:$0xff]  ;;  %v3379_v4 = vld [vmem:[#allocation10 + $0x628] sm:$0xff]  ;;  %v3378_v44 = vld [vmem:[#allocation10 + $0x620] sm:$0xff] }
 0x78d   :  { %3694 = vmatprep.subr.mxu1 %v3327_v13  ;;  %3767 = vmatprep.subr.mxu0 %v3401_v39  ;;  %v3368_v36 = vld [vmem:[#allocation10 + $0x5d0] sm:$0xff]  ;;  %v3377_v37 = vld [vmem:[#allocation10 + $0x618] sm:$0xff]  ;;  %v3366_v38 = vld [vmem:[#allocation10 + $0x5c0] sm:$0xff] }
 0x78e   :  { %3668 = vmatmul.mubr.f32.gmra.mxu0 %v3129_v41  ;;  %3695 = vmatpush1.msra.mxu1 %v3326_v42  ;;  %v3376_v45 = vld [vmem:[#allocation10 + $0x610] sm:$0xff]  ;;  %v3365_v13 = vld [vmem:[#allocation10 + $0x5b8] sm:$0xff]  ;;  %v3375_v39 = vld [vmem:[#allocation10 + $0x608] sm:$0xff] }
 0x78f   :  { %3768 = vmatpush1.msra.mxu0 %v3400_v40  ;;  %3673 = vmatprep.mubr.f32.mxu0 %v3130_v53  ;;  %v3369_v53 = vld [vmem:[#allocation10 + $0x5d8] sm:$0xff]  ;;  %v3364_v41 = vld [vmem:[#allocation10 + $0x5b0] sm:$0xff]  ;;  %v3374_v42 = vld [vmem:[#allocation10 + $0x600] sm:$0xff] }
 0x790   :  { %3696 = vmatprep.subr.mxu1 %v3325_v11  ;;  %3769 = vmatprep.subr.mxu0 %v3399_v27  ;;  %v3363_v40 = vld [vmem:[#allocation10 + $0x5a8] sm:$0xff]  ;;  %v3437_v11 = vld [vmem:[#allocation10 + $0x7f8] sm:$0xff]  ;;  %v3362_v27 = vld [vmem:[#allocation10 + $0x5a0] sm:$0xff] }
 0x791   :  { %3697 = vmatpush1.msra.mxu1 %v3324_v32  ;;  %3770 = vmatpush1.msra.mxu0 %v3398_v21  ;;  %v3436_v32 = vld [vmem:[#allocation10 + $0x7f0] sm:$0xff]  ;;  %v3361_v21 = vld [vmem:[#allocation10 + $0x598] sm:$0xff]  ;;  %v3434_v9 = vld [vmem:[#allocation10 + $0x7e0] sm:$0xff] }
 0x792   :  { %3698 = vmatprep.subr.mxu1 %v3323_v16  ;;  %3771 = vmatprep.subr.mxu0 %v3397_v31  ;;  %v3435_v16 = vld [vmem:[#allocation10 + $0x7e8] sm:$0xff]  ;;  %v3360_v31 = vld [vmem:[#allocation10 + $0x590] sm:$0xff]  ;;  %v3357_v48 = vld [vmem:[#allocation10 + $0x578] sm:$0xff] }
 0x793   :  { %3674 = vmatmul.mubr.f32.gmra.mxu0 %v3128_v51  ;;  %3699 = vmatpush1.msra.mxu1 %v3322_v20  ;;  %v3367_v51 = vld [vmem:[#allocation10 + $0x5c8] sm:$0xff] }
 0x794   :  { %3772 = vmatpush1.msra.mxu0 %v3396_v29  ;;  %3700 = vmatprep.subr.mxu1 %v3321_v46  ;;  %v3359_v20 = vld [vmem:[#allocation10 + $0x588] sm:$0xff]  ;;  %v3433_v29 = vld [vmem:[#allocation10 + $0x7d8] sm:$0xff]  ;;  %v3358_v46 = vld [vmem:[#allocation10 + $0x580] sm:$0xff] }
 0x795   :  { %3773 = vmatprep.subr.mxu0 %v3395_v47  ;;  %3827 = vmatprep.mubr.f32.mxu0 %v3167_v49  ;;  %v3432_v47 = vld [vmem:[#allocation10 + $0x7d0] sm:$0xff]  ;;  %v3430_v49 = vld [vmem:[#allocation10 + $0x7c0] sm:$0xff] }
 0x796   :  { %3701 = vmatpush1.msra.mxu1 %v3320_v15  ;;  %3774 = vmatpush1.msra.mxu0 %v3394_v3  ;;  %v3431_v15 = vld [vmem:[#allocation10 + $0x7c8] sm:$0xff]  ;;  %v3356_v3 = vld [vmem:[#allocation10 + $0x570] sm:$0xff] }
 0x797   :  { %3702 = vmatprep.subr.mxu1 %v3319_v50  ;;  %3775 = vmatprep.subr.mxu0 %v3393_v52  ;;  %v3355_v50 = vld [vmem:[#allocation10 + $0x568] sm:$0xff]  ;;  %v3429_v52 = vld [vmem:[#allocation10 + $0x7b8] sm:$0xff] }
 0x798   :  { %3703 = vmatpush1.msra.mxu1 %v3318_v56  ;;  %3776 = vmatpush1.msra.mxu0 %v3392_v58  ;;  %v3354_v56 = vld [vmem:[#allocation10 + $0x560] sm:$0xff]  ;;  %v3428_v58 = vld [vmem:[#allocation10 + $0x7b0] sm:$0xff] }
 0x799   :  { %3704 = vmatprep.subr.mxu1 %v3317_v61  ;;  %3777 = vmatprep.subr.mxu0 %v3391_v63  ;;  %v3353_v61 = vld [vmem:[#allocation10 + $0x558] sm:$0xff]  ;;  %v3427_v63 = vld [vmem:[#allocation10 + $0x7a8] sm:$0xff] }
 0x79a   :  { %3705 = vmatpush1.msra.mxu1 %v3316_v2  ;;  %3778 = vmatpush1.msra.mxu0 %v3390_v7  ;;  %v3352_v2 = vld [vmem:[#allocation10 + $0x550] sm:$0xff]  ;;  %v3426_v7 = vld [vmem:[#allocation10 + $0x7a0] sm:$0xff] }
 0x79b   :  { %3706 = vmatprep.subr.mxu1 %v3315_v10  ;;  %3779 = vmatprep.subr.mxu0 %v3389_v59  ;;  %v3351_v10 = vld [vmem:[#allocation10 + $0x548] sm:$0xff]  ;;  %v3425_v59 = vld [vmem:[#allocation10 + $0x798] sm:$0xff] }
 0x79c   :  { %3707 = vmatpush1.msra.mxu1 %v3314_v60  ;;  %3780 = vmatpush1.msra.mxu0 %v3388_v6  ;;  %v3350_v60 = vld [vmem:[#allocation10 + $0x540] sm:$0xff]  ;;  %v3424_v6 = vld [vmem:[#allocation10 + $0x790] sm:$0xff] }
 0x79d   :  { %3708 = vmatprep.subr.mxu1 %v3313_v62  ;;  %3781 = vmatprep.subr.mxu0 %v3387_v19  ;;  %v3349_v62 = vld [vmem:[#allocation10 + $0x538] sm:$0xff]  ;;  %v3423_v19 = vld [vmem:[#allocation10 + $0x788] sm:$0xff] }
 0x79e   :  { %3709 = vmatpush1.msra.mxu1 %v3312_v14  ;;  %3782 = vmatpush1.msra.mxu0 %v3386_v23  ;;  %v3348_v14 = vld [vmem:[#allocation10 + $0x530] sm:$0xff]  ;;  %v3422_v23 = vld [vmem:[#allocation10 + $0x780] sm:$0xff] }
 0x79f   :  { %3710 = vmatprep.subr.mxu1 %v3311_v24  ;;  %3783 = vmatprep.subr.mxu0 %v3385_v28  ;;  %v3347_v24 = vld [vmem:[#allocation10 + $0x528] sm:$0xff]  ;;  %v3421_v28 = vld [vmem:[#allocation10 + $0x778] sm:$0xff] }
 0x7a0   :  { %3711 = vmatpush1.msra.mxu1 %v3310_v55  ;;  %3784 = vmatpush1.msra.mxu0 %v3384_v0  ;;  %v3346_v55 = vld [vmem:[#allocation10 + $0x520] sm:$0xff]  ;;  %v3420_v0 = vld [vmem:[#allocation10 + $0x770] sm:$0xff] }
 0x7a1   :  { %3712 = vmatprep.subr.mxu1 %v3373_v30  ;;  %3785 = vmatprep.subr.mxu0 %v3383_v43  ;;  %v3106_v30 = vld [vmem:[#allocation3 + $0x40] sm:$0xf0]  ;;  %v3345_v43 = vld [vmem:[#allocation10 + $0x518] sm:$0xff] }
 0x7a2   :  { %3713 = vmatpush2.msra.mxu1 %v3372_v18  ;;  %3786 = vmatpush1.msra.mxu0 %v3382_v25  ;;  %v3419_v18 = vld [vmem:[#allocation10 + $0x768] sm:$0xff] }
 0x7a3   :  { %3714 = vmatprep.subr.mxu1 %v3371_v17  ;;  %3787 = vmatprep.subr.mxu0 %v3381_v54  ;;  %v6304_v25 = vld [vmem:[#allocation3 + $0x68] sm:$0xff]  ;;  %v3344_v17 = vld [vmem:[#allocation10 + $0x510] sm:$0xff] }
 0x7a4   :  { %3715 = vmatpush2.msra.mxu1 %v3370_v1  ;;  %3788 = vmatpush1.msra.mxu0 %v3380_v35  ;;  %v3418_v54 = vld [vmem:[#allocation10 + $0x760] sm:$0xff]  ;;  %v3343_v1 = vld [vmem:[#allocation10 + $0x508] sm:$0xff]  ;;  %v3417_v35 = vld [vmem:[#allocation10 + $0x758] sm:$0xff] }
 0x7a5   :  { %3716 = vmatprep.subr.mxu1 %v3369_v53  ;;  %3789 = vmatprep.subr.mxu0 %v3379_v4  ;;  %v3142_v53 = vrot.slane %v3106_v30, 4  ;;  %v3143_v4 = vrot.slane %v6273_v12, 4  ;;  %v3450_v30 = vld [vmem:[#allocation10 + $0x860] sm:$0xff] }
 0x7a6   :  { %3717 = vmatpush2.msra.mxu1 %v3368_v36  ;;  %3790 = vmatpush1.msra.mxu0 %v3378_v44  ;;  %v3342_v36 = vld [vmem:[#allocation10 + $0x500] sm:$0xff]  ;;  %v3416_v44 = vld [vmem:[#allocation10 + $0x750] sm:$0xff] }
 0x7a7   :  { %3718 = vmatprep.subr.mxu1 %v3367_v51  ;;  %3791 = vmatprep.subr.mxu0 %v3377_v37  ;;  %v3150_v51 = vrot.slane %v6304_v25, 4  ;;  %v3415_v37 = vld [vmem:[#allocation10 + $0x748] sm:$0xff] }
 0x7a8   :  { %3719 = vmatpush2.msra.mxu1 %v3366_v38  ;;  %3792 = vmatpush1.msra.mxu0 %v3376_v45  ;;  %v3469_v38 = vld [vmem:[#allocation10 + $0x8f8] sm:$0xff]  ;;  %v3144_v45 = vsel %vm821_vm4, %v3142_v53, %v3143_v4  ;;  %v3444_v53 = vld [vmem:[#allocation10 + $0x830] sm:$0xff] }
 0x7a9   :  { %3720 = vmatprep.subr.mxu1 %v3365_v13  ;;  %3793 = vmatprep.subr.mxu0 %v3375_v39  ;;  %v3414_v13 = vld [vmem:[#allocation10 + $0x740] sm:$0xff]  ;;  %v3468_v39 = vld [vmem:[#allocation10 + $0x8f0] sm:$0xff] }
 0x7aa   :  { %3721 = vmatpush2.msra.mxu1 %v3364_v41  ;;  %3794 = vmatpush1.msra.mxu0 %v3374_v42  ;;  %v3151_v41 = vsel %vm821_vm4, %v3146_v34, %v3150_v51  ;;  %v3413_v42 = vld [vmem:[#allocation10 + $0x738] sm:$0xff]  ;;  %v3464_v34 = vld [vmem:[#allocation10 + $0x8d0] sm:$0xff] }
 0x7ab   :  { %3722 = vmatprep.subr.mxu1 %v3363_v40  ;;  %3795 = vmatprep.subr.mxu0 %v3437_v11  ;;  %v3467_v40 = vld [vmem:[#allocation10 + $0x8e8] sm:$0xff]  ;;  %v3148_v11 = vrot.slane %v6281_v57, 4 }
 0x7ac   :  { %3723 = vmatpush2.msra.mxu1 %v3362_v27  ;;  %3796 = vmatpush2.msra.mxu0 %v3436_v32  ;;  %v3412_v27 = vld [vmem:[#allocation10 + $0x730] sm:$0xff]  ;;  %v3466_v32 = vld [vmem:[#allocation10 + $0x8e0] sm:$0xff] }
 0x7ad   :  { %3724 = vmatprep.subr.mxu1 %v3361_v21  ;;  %3797 = vmatprep.subr.mxu0 %v3435_v16  ;;  %v3411_v21 = vld [vmem:[#allocation10 + $0x728] sm:$0xff]  ;;  %v3465_v16 = vld [vmem:[#allocation10 + $0x8d8] sm:$0xff] }
 0x7ae   :  { %3725 = vmatpush2.msra.mxu1 %v3360_v31  ;;  %3798 = vmatpush2.msra.mxu0 %v3434_v9  ;;  %v3149_v31 = vsel %vm821_vm4, %v3143_v4, %v3148_v11  ;;  %v3410_v9 = vld [vmem:[#allocation10 + $0x720] sm:$0xff]  ;;  %v3443_v4 = vld [vmem:[#allocation10 + $0x828] sm:$0xff] }
 0x7af   :  { %3726 = vmatprep.subr.mxu1 %v3359_v20  ;;  %3799 = vmatprep.subr.mxu0 %v3433_v29  ;;  %v3409_v20 = vld [vmem:[#allocation10 + $0x718] sm:$0xff]  ;;  %v3463_v29 = vld [vmem:[#allocation10 + $0x8c8] sm:$0xff] }
 0x7b0   :  { %3727 = vmatpush2.msra.mxu1 %v3358_v46  ;;  %3800 = vmatpush2.msra.mxu0 %v3432_v47  ;;  %v3110_v46 = vld [vmem:[#allocation3 + $0x40] sm:$0xc0]  ;;  %v3408_v47 = vld [vmem:[#allocation10 + $0x710] sm:$0xff] }
 0x7b1   :  { %3728 = vmatprep.subr.mxu1 %v3357_v48  ;;  %3801 = vmatprep.subr.mxu0 %v3431_v15  ;;  %v3462_v48 = vld [vmem:[#allocation10 + $0x8c0] sm:$0xff]  ;;  %v3407_v15 = vld [vmem:[#allocation10 + $0x708] sm:$0xff] }
 0x7b2   :  { %3729 = vmatpush2.msra.mxu1 %v3356_v3  ;;  %3802 = vmatpush2.msra.mxu0 %v3430_v49  ;;  %v3461_v3 = vld [vmem:[#allocation10 + $0x8b8] sm:$0xff]  ;;  %v3406_v49 = vld [vmem:[#allocation10 + $0x700] sm:$0xff] }
 0x7b3   :  { %3730 = vmatprep.subr.mxu1 %v3355_v50  ;;  %3803 = vmatprep.subr.mxu0 %v3429_v52  ;;  %v3162_v50 = vrot.slane %v3110_v46, 6  ;;  %v3163_v52 = vrot.slane %v6273_v12, 6  ;;  %v3485_v46 = vld [vmem:[#allocation10 + $0x978] sm:$0xff] }
 0x7b4   :  { %3731 = vmatpush2.msra.mxu1 %v3354_v56  ;;  %3804 = vmatpush2.msra.mxu0 %v3428_v58  ;;  %v3460_v56 = vld [vmem:[#allocation10 + $0x8b0] sm:$0xff]  ;;  %v3170_v58 = vrot.slane %v6304_v25, 6 }
 0x7b5   :  { %3732 = vmatprep.subr.mxu1 %v3353_v61  ;;  %3805 = vmatprep.subr.mxu0 %v3427_v63  ;;  %v3459_v61 = vld [vmem:[#allocation10 + $0x8a8] sm:$0xff]  ;;  %v3113_v63 = vld [vmem:[#allocation3 + $0x78] sm:$0x3] }
 0x7b6   :  { %3733 = vmatpush2.msra.mxu1 %v3352_v2  ;;  %3806 = vmatpush2.msra.mxu0 %v3426_v7  ;;  %v3458_v2 = vld [vmem:[#allocation10 + $0x8a0] sm:$0xff]  ;;  %v3164_v7 = vsel %vm842_vm5, %v3162_v50, %v3163_v52  ;;  %v3479_v50 = vld [vmem:[#allocation10 + $0x948] sm:$0xff] }
 0x7b7   :  { %3734 = vmatprep.subr.mxu1 %v3351_v10  ;;  %3807 = vmatprep.subr.mxu0 %v3425_v59  ;;  %v3457_v10 = vld [vmem:[#allocation10 + $0x898] sm:$0xff]  ;;  %v3168_v59 = vrot.slane %v6281_v57, 6 }
 0x7b8   :  { %3735 = vmatpush2.msra.mxu1 %v3350_v60  ;;  %3808 = vmatpush2.msra.mxu0 %v3424_v6  ;;  %v3171_v60 = vsel %vm842_vm5, %v3166_v26, %v3170_v58  ;;  %v3456_v6 = vld [vmem:[#allocation10 + $0x890] sm:$0xff]  ;;  %v3451_v26 = vld [vmem:[#allocation10 + $0x868] sm:$0xff] }
 0x7b9   :  { %3736 = vmatprep.subr.mxu1 %v3349_v62  ;;  %3809 = vmatprep.subr.mxu0 %v3423_v19  ;;  %v3174_v62 = vrot.slane %v3113_v63, 6  ;;  %v3112_v19 = vld [vmem:[#allocation3 + $0x70] sm:$0x3]  ;;  %v3474_v63 = vld [vmem:[#allocation10 + $0x920] sm:$0xff] }
 0x7ba   :  { %3737 = vmatpush2.msra.mxu1 %v3348_v14  ;;  %3810 = vmatpush2.msra.mxu0 %v3422_v23  ;;  %v3455_v14 = vld [vmem:[#allocation10 + $0x888] sm:$0xff]  ;;  %v3454_v23 = vld [vmem:[#allocation10 + $0x880] sm:$0xff] }
 0x7bb   :  { %3738 = vmatprep.subr.mxu1 %v3347_v24  ;;  %3811 = vmatprep.subr.mxu0 %v3421_v28  ;;  %v3169_v24 = vsel %vm842_vm5, %v3163_v52, %v3168_v59  ;;  %v3453_v28 = vld [vmem:[#allocation10 + $0x878] sm:$0xff]  ;;  %v3478_v52 = vld [vmem:[#allocation10 + $0x940] sm:$0xff] }
 0x7bc   :  { %3739 = vmatpush2.msra.mxu1 %v3346_v55  ;;  %3812 = vmatpush2.msra.mxu0 %v3420_v0  ;;  %v3172_v55 = vrot.slane %v3112_v19, 6  ;;  %v3175_v0 = vsel %vm842_vm5, %v3170_v58, %v3174_v62  ;;  %v3476_v58 = vld [vmem:[#allocation10 + $0x930] sm:$0xff]  ;;  %v4143_v62 = vld [vmem:[#allocation13 + $0xf8] sm:$0xff] }
 0x7bd   :  { %3740 = vmatprep.subr.mxu1 %v3345_v43  ;;  %3813 = vmatprep.subr.mxu0 %v3419_v18  ;;  %v3449_v18 = vld [vmem:[#allocation10 + $0x858] sm:$0xff] }
 0x7be   :  { %3741 = vmatpush2.msra.mxu1 %v3344_v17  ;;  %3814 = vmatpush2.msra.mxu0 %v3418_v54  ;;  %v3173_v43 = vsel %vm842_vm5, %v3168_v59, %v3172_v55  ;;  %v3448_v17 = vld [vmem:[#allocation10 + $0x850] sm:$0xff]  ;;  %v3447_v54 = vld [vmem:[#allocation10 + $0x848] sm:$0xff]  ;;  %v3470_v59 = vld [vmem:[#allocation10 + $0x900] sm:$0xff] }
 0x7bf   :  { %3742 = vmatprep.subr.mxu1 %v3343_v1  ;;  %3815 = vmatprep.subr.mxu0 %v3417_v35  ;;  %v3446_v1 = vld [vmem:[#allocation10 + $0x840] sm:$0xff]  ;;  %v3445_v35 = vld [vmem:[#allocation10 + $0x838] sm:$0xff] }
 0x7c0   :  { %3743 = vmatpush2.msra.mxu1 %v3342_v36  ;;  %3816 = vmatpush2.msra.mxu0 %v3416_v44  ;;  %v3442_v36 = vld [vmem:[#allocation10 + $0x820] sm:$0xff]  ;;  %v3441_v44 = vld [vmem:[#allocation10 + $0x818] sm:$0xff] }
 0x7c1   :  { %3745 = vmatmul.mubr.f32.vlgmr.msra.gmra.mxu1 %v3144_v45  ;;  %3817 = vmatprep.subr.mxu0 %v3415_v37  ;;  %v3439_v37 = vld [vmem:[#allocation10 + $0x808] sm:$0xff]  ;;  %v3501_v45 = vld [vmem:[#allocation10 + $0x9f8] sm:$0xff] }
 0x7c2   :  { %3846 = vmatprep.subr.mxu1 %v3469_v38  ;;  %3750 = vmatprep.mubr.f32.mxu1 %v3151_v41  ;;  %v3438_v38 = vld [vmem:[#allocation10 + $0x800] sm:$0xff] }
 0x7c3   :  { %3818 = vmatpush2.msra.mxu0 %v3414_v13  ;;  %3847 = vmatpush1.msra.mxu1 %v3468_v39  ;;  %v3500_v13 = vld [vmem:[#allocation10 + $0x9f0] sm:$0xff]  ;;  %v3499_v39 = vld [vmem:[#allocation10 + $0x9e8] sm:$0xff]  ;;  %v3498_v41 = vld [vmem:[#allocation10 + $0x9e0] sm:$0xff] }
 0x7c4   :  { %3819 = vmatprep.subr.mxu0 %v3413_v42  ;;  %3848 = vmatprep.subr.mxu1 %v3467_v40  ;;  %v3497_v42 = vld [vmem:[#allocation10 + $0x9d8] sm:$0xff]  ;;  %v3496_v40 = vld [vmem:[#allocation10 + $0x9d0] sm:$0xff]  ;;  %v4140_v55 = vld [vmem:[#allocation13 + $0xe0] sm:$0xff] }
 0x7c5   :  { %3820 = vmatpush2.msra.mxu0 %v3412_v27  ;;  %3849 = vmatpush1.msra.mxu1 %v3466_v32  ;;  %v3494_v27 = vld [vmem:[#allocation10 + $0x9c0] sm:$0xff]  ;;  %v3493_v32 = vld [vmem:[#allocation10 + $0x9b8] sm:$0xff] }
 0x7c6   :  { %3751 = vmatmul.mubr.f32.gmra.mxu1 %v3149_v31  ;;  %3821 = vmatprep.subr.mxu0 %v3411_v21  ;;  %v3492_v21 = vld [vmem:[#allocation10 + $0x9b0] sm:$0xff]  ;;  %v3490_v31 = vld [vmem:[#allocation10 + $0x9a0] sm:$0xff] }
 0x7c7   :  { %3850 = vmatprep.subr.mxu1 %v3465_v16  ;;  %3756 = vmatprep.mubr.f32.mxu1 %v3150_v51  ;;  %v3440_v51 = vld [vmem:[#allocation10 + $0x810] sm:$0xff]  ;;  %v3491_v16 = vld [vmem:[#allocation10 + $0x9a8] sm:$0xff]  ;;  %v4127_v19 = vld [vmem:[#allocation13 + $0x78] sm:$0xff] }
 0x7c8   :  { %3822 = vmatpush2.msra.mxu0 %v3410_v9  ;;  %3851 = vmatpush1.msra.mxu1 %v3464_v34  ;;  %v3489_v9 = vld [vmem:[#allocation10 + $0x998] sm:$0xff]  ;;  %v3488_v34 = vld [vmem:[#allocation10 + $0x990] sm:$0xff] }
 0x7c9   :  { %3823 = vmatprep.subr.mxu0 %v3409_v20  ;;  %3852 = vmatprep.subr.mxu1 %v3463_v29  ;;  %v3487_v20 = vld [vmem:[#allocation10 + $0x988] sm:$0xff]  ;;  %v3486_v29 = vld [vmem:[#allocation10 + $0x980] sm:$0xff] }
 0x7ca   :  { %3824 = vmatpush2.msra.mxu0 %v3408_v47  ;;  %3853 = vmatpush1.msra.mxu1 %v3462_v48  ;;  %v3484_v47 = vld [vmem:[#allocation10 + $0x970] sm:$0xff]  ;;  %v3483_v48 = vld [vmem:[#allocation10 + $0x968] sm:$0xff] }
 0x7cb   :  { %3757 = vmatmul.mubr.f32.gmra.mxu1 %v3148_v11  ;;  %3825 = vmatprep.subr.mxu0 %v3407_v15  ;;  %v3495_v11 = vld [vmem:[#allocation10 + $0x9c8] sm:$0xff]  ;;  %v3482_v15 = vld [vmem:[#allocation10 + $0x960] sm:$0xff] }
 0x7cc   :  { %3854 = vmatprep.subr.mxu1 %v3461_v3  ;;  %3826 = vmatpush2.msra.mxu0 %v3406_v49  ;;  %v3481_v3 = vld [vmem:[#allocation10 + $0x958] sm:$0xff]  ;;  %v3480_v49 = vld [vmem:[#allocation10 + $0x950] sm:$0xff] }
 0x7cd   :  { %3855 = vmatpush1.msra.mxu1 %v3460_v56  ;;  %3910 = vmatprep.mubr.f32.mxu1 %v6286_v22  ;;  %v3452_v22 = vld [vmem:[#allocation10 + $0x870] sm:$0xff]  ;;  %v3477_v56 = vld [vmem:[#allocation10 + $0x938] sm:$0xff] }
 0x7ce   :  { %3828 = vmatmul.mubr.f32.vlgmr.msra.gmra.mxu0 %v3164_v7  ;;  %3856 = vmatprep.subr.mxu1 %v3459_v61  ;;  %v3475_v61 = vld [vmem:[#allocation10 + $0x928] sm:$0xff]  ;;  %v3472_v7 = vld [vmem:[#allocation10 + $0x910] sm:$0xff] }
 0x7cf   :  { %3833 = vmatprep.mubr.f32.mxu0 %v3171_v60  ;;  %3857 = vmatpush1.msra.mxu1 %v3458_v2  ;;  %v3473_v2 = vld [vmem:[#allocation10 + $0x918] sm:$0xff] }
 0x7d0   :  { %3858 = vmatprep.subr.mxu1 %v3457_v10  ;;  %v3471_v10 = vld [vmem:[#allocation10 + $0x908] sm:$0xff]  ;;  %v3115_v60 = vld [vmem:[#allocation3 + $0x78] sm:$0xf]  ;;  %5051 = vmatprep.subr.mxu0 %v4143_v62 }
 0x7d1   :  { %3859 = vmatpush1.msra.mxu1 %v3456_v6  ;;  %v3114_v6 = vld [vmem:[#allocation3 + $0x70] sm:$0xf]  ;;  %5052 = vmatpush3.msra.mxu0 %v4127_v19 }
 0x7d2   :  { %3834 = vmatmul.mubr.f32.gmra.mxu0 %v3169_v24  ;;  %3860 = vmatprep.subr.mxu1 %v3455_v14  ;;  %v4142_v14 = vld [vmem:[#allocation13 + $0xf0] sm:$0xff]  ;;  %v4141_v24 = vld [vmem:[#allocation13 + $0xe8] sm:$0xff] }
 0x7d3   :  { %3839 = vmatprep.mubr.f32.mxu0 %v3175_v0  ;;  %3861 = vmatpush1.msra.mxu1 %v3454_v23  ;;  %v4126_v23 = vld [vmem:[#allocation13 + $0x70] sm:$0xff] }
 0x7d4   :  { %3862 = vmatprep.subr.mxu1 %v3453_v28  ;;  %5053 = vmatprep.subr.mxu0 %v4142_v14  ;;  %v4125_v28 = vld [vmem:[#allocation13 + $0x68] sm:$0xff] }
 0x7d5   :  { %3863 = vmatpush1.msra.mxu1 %v3452_v22  ;;  %5054 = vmatpush3.msra.mxu0 %v4126_v23  ;;  %v4122_v23 = vld [vmem:[#allocation13 + $0x50] sm:$0xff] }
 0x7d6   :  { %3840 = vmatmul.mubr.f32.gmra.mxu0 %v3173_v43  ;;  %3864 = vmatprep.subr.mxu1 %v3451_v26 }
 0x7d7   :  { %3865 = vmatpush1.msra.mxu1 %v3450_v30  ;;  %5055 = vmatprep.subr.mxu0 %v4141_v24  ;;  %v4205_v24 = vld [vmem:[#allocation13 + $0x2e8] sm:$0xff] }
 0x7d8   :  { %3866 = vmatprep.subr.mxu1 %v3449_v18  ;;  %5056 = vmatpush3.msra.mxu0 %v4125_v28 }
 0x7d9   :  { %3867 = vmatpush1.msra.mxu1 %v3448_v17  ;;  %5057 = vmatprep.subr.mxu0 %v4140_v55 }
 0x7da   :  { %3868 = vmatprep.subr.mxu1 %v3447_v54 }
 0x7db   :  { %3869 = vmatpush1.msra.mxu1 %v3446_v1 }
 0x7dc   :  { %3870 = vmatprep.subr.mxu1 %v3445_v35 }
 0x7dd   :  { %3871 = vmatpush1.msra.mxu1 %v3444_v53 }
 0x7de   :  { %3872 = vmatprep.subr.mxu1 %v3443_v4  ;;  %v3502_v4 = vld [vmem:[#allocation11] sm:$0x3] }
 0x7df   :  { %3873 = vmatpush1.msra.mxu1 %v3442_v36 }
 0x7e0   :  { %3874 = vmatprep.subr.mxu1 %v3441_v44 }
 0x7e1   :  { %3875 = vmatpush1.msra.mxu1 %v3440_v51  ;;  %v3507_v51 = vrot.slane %v3502_v4, %v5827_v5 }
 0x7e2   :  { %3876 = vmatprep.subr.mxu1 %v3439_v37 }
 0x7e3   :  { %3877 = vmatpush1.msra.mxu1 %v3438_v38 }
 0x7e4   :  { %3878 = vmatprep.subr.mxu1 %v3501_v45  ;;  %v3511_v45 = vrot.slane %v3502_v4, %v5829_v8 }
 0x7e5   :  { %3879 = vmatpush2.msra.mxu1 %v3500_v13 }
 0x7e6   :  { %3880 = vmatprep.subr.mxu1 %v3499_v39 }
 0x7e7   :  { %3881 = vmatpush2.msra.mxu1 %v3498_v41 }
 0x7e8   :  { %3882 = vmatprep.subr.mxu1 %v3497_v42 }
 0x7e9   :  { %3883 = vmatpush2.msra.mxu1 %v3496_v40 }
 0x7ea   :  { %3884 = vmatprep.subr.mxu1 %v3495_v11 }
 0x7eb   :  { %3885 = vmatpush2.msra.mxu1 %v3494_v27 }
 0x7ec   :  { %3886 = vmatprep.subr.mxu1 %v3493_v32 }
 0x7ed   :  { %3887 = vmatpush2.msra.mxu1 %v3492_v21 }
 0x7ee   :  { %3888 = vmatprep.subr.mxu1 %v3491_v16 }
 0x7ef   :  { %3889 = vmatpush2.msra.mxu1 %v3490_v31 }
 0x7f0   :  { %3890 = vmatprep.subr.mxu1 %v3489_v9 }
 0x7f1   :  { %3891 = vmatpush2.msra.mxu1 %v3488_v34 }
 0x7f2   :  { %3892 = vmatprep.subr.mxu1 %v3487_v20 }
 0x7f3   :  { %3893 = vmatpush2.msra.mxu1 %v3486_v29  ;;  %v4124_v29 = vld [vmem:[#allocation13 + $0x60] sm:$0xff] }
 0x7f4   :  { %3894 = vmatprep.subr.mxu1 %v3485_v46  ;;  %v4207_v46 = vld [vmem:[#allocation13 + $0x2f8] sm:$0xff]  ;;  %5058 = vmatpush3.msra.mxu0 %v4124_v29  ;;  %v4185_v29 = vld [vmem:[#allocation13 + $0x248] sm:$0xff] }
 0x7f5   :  { %3895 = vmatpush2.msra.mxu1 %v3484_v47  ;;  %v4139_v47 = vld [vmem:[#allocation13 + $0xd8] sm:$0xff] }
 0x7f6   :  { %3896 = vmatprep.subr.mxu1 %v3483_v48  ;;  %5059 = vmatprep.subr.mxu0 %v4139_v47  ;;  %v4117_v47 = vld [vmem:[#allocation13 + $0x28] sm:$0xff] }
 0x7f7   :  { %3897 = vmatpush2.msra.mxu1 %v3482_v15 }
 0x7f8   :  { %3898 = vmatprep.subr.mxu1 %v3481_v3 }
 0x7f9   :  { %3899 = vmatpush2.msra.mxu1 %v3480_v49  ;;  %v4191_v49 = vld [vmem:[#allocation13 + $0x278] sm:$0xff] }
 0x7fa   :  { %3900 = vmatprep.subr.mxu1 %v3479_v50 }
 0x7fb   :  { %3901 = vmatpush2.msra.mxu1 %v3478_v52 }
 0x7fc   :  { %3902 = vmatprep.subr.mxu1 %v3477_v56 }
 0x7fd   :  { %3903 = vmatpush2.msra.mxu1 %v3476_v58  ;;  %v4123_v58 = vld [vmem:[#allocation13 + $0x58] sm:$0xff] }
 0x7fe   :  { %3904 = vmatprep.subr.mxu1 %v3475_v61  ;;  %v4206_v61 = vld [vmem:[#allocation13 + $0x2f0] sm:$0xff]  ;;  %5060 = vmatpush3.msra.mxu0 %v4123_v58  ;;  %v4183_v58 = vld [vmem:[#allocation13 + $0x238] sm:$0xff] }
 0x7ff   :  { %3905 = vmatpush2.msra.mxu1 %v3474_v63 }
 0x800   :  { %3906 = vmatprep.subr.mxu1 %v3473_v2 }
 0x801   :  { %3907 = vmatpush2.msra.mxu1 %v3472_v7 }
 0x802   :  { %3908 = vmatprep.subr.mxu1 %v3471_v10 }
 0x803   :  { %3909 = vmatpush2.msra.mxu1 %v3470_v59  ;;  %v4138_v59 = vld [vmem:[#allocation13 + $0xd0] sm:$0xff] }
 0x804   :  { %3911 = vmatmul.mubr.f32.vlgmr.msra.gmra.mxu1 %v6273_v12  ;;  %5121 = vmatprep.subr.mxu1 %v4207_v46 }
 0x805   :  { %3916 = vmatprep.mubr.f32.mxu1 %v6304_v25  ;;  %5122 = vmatpush3.msra.mxu1 %v4191_v49  ;;  %v4184_v49 = vld [vmem:[#allocation13 + $0x240] sm:$0xff] }
 0x806   :  { %5123 = vmatprep.subr.mxu1 %v4206_v61  ;;  %5061 = vmatprep.subr.mxu0 %v4138_v59  ;;  %v4115_v61 = vld [vmem:[#allocation13 + $0x18] sm:$0xff]  ;;  %v4197_v59 = vld [vmem:[#allocation13 + $0x2a8] sm:$0xff] }
 0x807   :  { %5062 = vmatpush3.msra.mxu0 %v4122_v23  ;;  %v4128_v23 = vld [vmem:[#allocation13 + $0x80] sm:$0xff] }
 0x808   :  { %3917 = vmatmul.mubr.f32.gmra.mxu1 %v6281_v57 }
 0x809   :  { %3922 = vmatprep.mubr.f32.mxu1 %v3115_v60  ;;  %v4190_v60 = vld [vmem:[#allocation13 + $0x270] sm:$0xff] }
 0x80a   :  { %5124 = vmatpush3.msra.mxu1 %v4190_v60  ;;  %v4129_v60 = vld [vmem:[#allocation13 + $0x88] sm:$0xff] }
 0x80b   :  { %5125 = vmatprep.subr.mxu1 %v4205_v24 }
 0x80c   :  { %3923 = vmatmul.mubr.f32.gmra.mxu1 %v3114_v6 }
 0x83d   :  { %v3580_v12 = vpop.f32.mrf.mxu1 }
 0x83e   :  { %v3581_v13 = vadd.f32 %v3580_v12, %v3507_v51  ;;  %v4137_v12 = vld [vmem:[#allocation13 + $0xc8] sm:$0xff] }
 0x83f   :  { %v3582_v57 = vpop.f32.mrf.mxu1  ;;  %5063 = vmatprep.subr.mxu0 %v4137_v12  ;;  %v4195_v12 = vld [vmem:[#allocation13 + $0x298] sm:$0xff] }
 0x840   :  { %v3583_v42 = vadd.f32 %v3582_v57, %v3511_v45  ;;  %v4189_v57 = vld [vmem:[#allocation13 + $0x268] sm:$0xff] }
 0x841   :  { %5126 = vmatpush3.msra.mxu1 %v4189_v57 }
 0x845   :  { %v3586_v25 = vpop.f32.mrf.mxu1 }
 0x846   :  { %v3587_v11 = vadd.f32 %v3586_v25, %v3507_v51 }
 0x847   :  { %v3588_v22 = vpop.f32.mrf.mxu1 }
 0x848   :  { %v3663_v0 = vpop.f32.mrf.mxu0  ;;  %v3589_v21 = vadd.f32 %v3588_v22, %v3511_v45 }
 0x849   :  { %v3592_v30 = vpop.f32.mrf.mxu1  ;;  %v3664_v40 = vadd.f32 %v3663_v0, %v3581_v13 }
 0x84a   :  { %v3665_v26 = vpop.f32.mrf.mxu0  ;;  %v3593_v48 = vadd.f32 %v3592_v30, %v3507_v51  ;;  %v4121_v30 = vld [vmem:[#allocation13 + $0x48] sm:$0xff]  ;;  %v4203_v51 = vld [vmem:[#allocation13 + $0x2d8] sm:$0xff] }
 0x84b   :  { %v3594_v18 = vpop.f32.mrf.mxu1  ;;  %v3666_v27 = vadd.f32 %v3665_v26, %v3583_v42  ;;  %5064 = vmatpush3.msra.mxu0 %v4121_v30  ;;  %v4119_v42 = vld [vmem:[#allocation13 + $0x38] sm:$0xff] }
 0x84c   :  { %v3595_v63 = vadd.f32 %v3594_v18, %v3511_v45  ;;  %v4187_v45 = vld [vmem:[#allocation13 + $0x258] sm:$0xff] }
 0x84e   :  { %v3669_v43 = vpop.f32.mrf.mxu0 }
 0x84f   :  { %v3670_v9 = vadd.f32 %v3669_v43, %v3587_v11  ;;  %v4204_v43 = vld [vmem:[#allocation13 + $0x2e0] sm:$0xff] }
 0x850   :  { %v3671_v17 = vpop.f32.mrf.mxu0  ;;  %5127 = vmatprep.subr.mxu1 %v4204_v43  ;;  %v4194_v43 = vld [vmem:[#allocation13 + $0x290] sm:$0xff] }
 0x851   :  { %v3672_v15 = vadd.f32 %v3671_v17, %v3589_v21 }
 0x853   :  { %v3675_v1 = vpop.f32.mrf.mxu0 }
 0x854   :  { %v3676_v2 = vadd.f32 %v3675_v1, %v3593_v48  ;;  %v4188_v1 = vld [vmem:[#allocation13 + $0x260] sm:$0xff] }
 0x855   :  { %v3677_v53 = vpop.f32.mrf.mxu0  ;;  %5128 = vmatpush3.msra.mxu1 %v4188_v1  ;;  %v4200_v48 = vld [vmem:[#allocation13 + $0x2c0] sm:$0xff]  ;;  %v4177_v1 = vld [vmem:[#allocation13 + $0x208] sm:$0xff] }
 0x856   :  { %v3678_v28 = vadd.f32 %v3677_v53, %v3595_v63  ;;  %5129 = vmatprep.subr.mxu1 %v4203_v51  ;;  %v4198_v63 = vld [vmem:[#allocation13 + $0x2b0] sm:$0xff] }
 0x857   :  { %5130 = vmatpush3.msra.mxu1 %v4187_v45 }
 0x881   :  { %v3746_v54 = vpop.f32.mrf.mxu1 }
 0x882   :  { %v3747_v32 = vadd.f32 %v3746_v54, %v3664_v40  ;;  %v4136_v54 = vld [vmem:[#allocation13 + $0xc0] sm:$0xff]  ;;  %v4202_v40 = vld [vmem:[#allocation13 + $0x2d0] sm:$0xff] }
 0x883   :  { %v3748_v35 = vpop.f32.mrf.mxu1  ;;  %5065 = vmatprep.subr.mxu0 %v4136_v54  ;;  %5131 = vmatprep.subr.mxu1 %v4202_v40  ;;  %v4193_v54 = vld [vmem:[#allocation13 + $0x288] sm:$0xff] }
 0x884   :  { %v3749_v34 = vadd.f32 %v3748_v35, %v3666_v27  ;;  %v4134_v27 = vld [vmem:[#allocation13 + $0xb0] sm:$0xff] }
 0x886   :  { %v3752_v36 = vpop.f32.mrf.mxu1 }
 0x887   :  { %v3753_v50 = vadd.f32 %v3752_v36, %v3670_v9  ;;  %v4201_v9 = vld [vmem:[#allocation13 + $0x2c8] sm:$0xff] }
 0x888   :  { %v3754_v37 = vpop.f32.mrf.mxu1 }
 0x889   :  { %v3755_v6 = vadd.f32 %v3754_v37, %v3672_v15 }
 0x88b   :  { %v3758_v39 = vpop.f32.mrf.mxu1 }
 0x88c   :  { %v3759_v25 = vadd.f32 %v3758_v39, %v3676_v2  ;;  %v4130_v2 = vld [vmem:[#allocation13 + $0x90] sm:$0xff] }
 0x88d   :  { %v3760_v16 = vpop.f32.mrf.mxu1 }
 0x88e   :  { %v3829_v44 = vpop.f32.mrf.mxu0  ;;  %v3761_v35 = vadd.f32 %v3760_v16, %v3678_v28  ;;  %v4180_v28 = vld [vmem:[#allocation13 + $0x220] sm:$0xff] }
 0x88f   :  { %v3830_v20 = vadd.f32 %v3829_v44, %v3747_v32  ;;  %v4120_v44 = vld [vmem:[#allocation13 + $0x40] sm:$0xff]  ;;  %v4186_v32 = vld [vmem:[#allocation13 + $0x250] sm:$0xff] }
 0x890   :  { %v3831_v38 = vpop.f32.mrf.mxu0  ;;  %5066 = vmatpush3.msra.mxu0 %v4120_v44  ;;  %5132 = vmatpush3.msra.mxu1 %v4186_v32  ;;  %v4271_v44 = vld [vmem:[#allocation13 + $0x4f8] sm:$0xff] }
 0x891   :  { %v3832_v52 = vadd.f32 %v3831_v38, %v3749_v34  ;;  %v4135_v38 = vld [vmem:[#allocation13 + $0xb8] sm:$0xff]  ;;  %5133 = vmatprep.subr.mxu1 %v4201_v9 }
 0x892   :  { %v3835_v41 = vpop.f32.mrf.mxu0  ;;  %5067 = vmatprep.subr.mxu0 %v4135_v38  ;;  %5134 = vmatpush3.msra.mxu1 %v4185_v29 }
 0x893   :  { %v3836_v62 = vadd.f32 %v3835_v41, %v3753_v50  ;;  %5068 = vmatpush3.msra.mxu0 %v4119_v42  ;;  %5135 = vmatprep.subr.mxu1 %v4200_v48  ;;  %v4116_v50 = vld [vmem:[#allocation13 + $0x20] sm:$0xff] }
 0x894   :  { %v3837_v31 = vpop.f32.mrf.mxu0  ;;  %5069 = vmatprep.subr.mxu0 %v4134_v27  ;;  %5136 = vmatpush3.msra.mxu1 %v4184_v49 }
 0x895   :  { %v3838_v0 = vadd.f32 %v3837_v31, %v3755_v6  ;;  %v4118_v31 = vld [vmem:[#allocation13 + $0x30] sm:$0xff]  ;;  %v4181_v6 = vld [vmem:[#allocation13 + $0x228] sm:$0xff] }
 0x896   :  { %v3841_v7 = vpop.f32.mrf.mxu0  ;;  %5070 = vmatpush3.msra.mxu0 %v4118_v31 }
 0x897   :  { %v3842_v53 = vadd.f32 %v3841_v7, %v3759_v25  ;;  %v4182_v7 = vld [vmem:[#allocation13 + $0x230] sm:$0xff]  ;;  %v4175_v25 = vld [vmem:[#allocation13 + $0x1f8] sm:$0xff] }
 0x898   :  { %v3843_v18 = vpop.f32.mrf.mxu0 }
 0x899   :  { %v3844_v13 = vadd.f32 %v3843_v18, %v3761_v35  ;;  %v4178_v18 = vld [vmem:[#allocation13 + $0x210] sm:$0xff]  ;;  %v4192_v35 = vld [vmem:[#allocation13 + $0x280] sm:$0xff] }
 0x8c4   :  { %v3912_v3 = vpop.f32.mrf.mxu1 }
 0x8c5   :  { %v3913_v56 = vadd.f32 %v3912_v3, %v3830_v20  ;;  %v4133_v20 = vld [vmem:[#allocation13 + $0xa8] sm:$0xff]  ;;  %v4132_v3 = vld [vmem:[#allocation13 + $0xa0] sm:$0xff] }
 0x8c6   :  { %v3914_v10 = vpop.f32.mrf.mxu1  ;;  %5071 = vmatprep.subr.mxu0 %v4133_v20 }
 0x8c7   :  { %v6330_v19 = vmax.f32 %v3913_v56, 0.0  ;;  %v3915_v14 = vadd.f32 %v3914_v10, %v3832_v52  ;;  %5072 = vmatpush3.msra.mxu0 %v4117_v47  ;;  %v4199_v52 = vld [vmem:[#allocation13 + $0x2b8] sm:$0xff]  ;;  %v4114_v10 = vld [vmem:[#allocation13 + $0x10] sm:$0xff] }
 0x8c8   :  { %v3918_v55 = vpop.f32.mrf.mxu1  ;;  %5073 = vmatprep.subr.mxu0 %v4132_v3  ;;  %v4131_v56 = vld [vmem:[#allocation13 + $0x98] sm:$0xff]  ;;  %5137 = vmatprep.subr.mxu1 %v4199_v52 }
 0x8c9   :  { %3936 = vst [vmem:[#allocation4 + $0x30] sm:$0xff] %v6330_v19  ;;  %v6333_v22 = vmax.f32 %v3915_v14, 0.0  ;;  %v6335_v26 = vadd.f32 %v3918_v55, %v3836_v62  ;;  %5074 = vmatpush3.msra.mxu0 %v4116_v50  ;;  %5138 = vmatpush3.msra.mxu1 %v4183_v58  ;;  %v4113_v62 = vld [vmem:[#allocation13 + $0x8] sm:$0xff]  ;;  %v4196_v14 = vld [vmem:[#allocation13 + $0x2a0] sm:$0xff] }
 0x8ca   :  { %v3920_v17 = vpop.f32.mrf.mxu1  ;;  %5075 = vmatprep.subr.mxu0 %v4131_v56  ;;  %5139 = vmatprep.subr.mxu1 %v4198_v63  ;;  %v4112_v55 = vld [vmem:[#allocation13] sm:$0xff] }
 0x8cb   :  { %3937 = vst [vmem:[#allocation4 + $0x18] sm:$0xff] %v6333_v22  ;;  %v3931_v4 = vmax.f32 %v6335_v26, 0.0  ;;  %v6339_v36 = vadd.f32 %v3920_v17, %v3838_v0  ;;  %5076 = vmatpush3.msra.mxu0 %v4115_v61  ;;  %5140 = vmatpush3.msra.mxu1 %v4182_v7  ;;  %v4179_v0 = vld [vmem:[#allocation13 + $0x218] sm:$0xff] }
 0x8cc   :  { %v3924_v37 = vpop.f32.mrf.mxu1  ;;  %5077 = vmatprep.subr.mxu0 %v4130_v2  ;;  %5141 = vmatprep.subr.mxu1 %v4197_v59 }
 0x8cd   :  { %v3932_v39 = vmax.f32 %v6339_v36, 0.0  ;;  %v3925_v41 = vadd.f32 %v3924_v37, %v3842_v53  ;;  %5078 = vmatpush3.msra.mxu0 %v4114_v10  ;;  %5142 = vmatpush3.msra.mxu1 %v4181_v6  ;;  %v4176_v53 = vld [vmem:[#allocation13 + $0x200] sm:$0xff] }
 0x8ce   :  { %v3926_v11 = vpop.f32.mrf.mxu1  ;;  %5079 = vmatprep.subr.mxu0 %v4129_v60  ;;  %5143 = vmatprep.subr.mxu1 %v4196_v14 }
 0x8cf   :  { %v3933_v21 = vmax.f32 %v3925_v41, 0.0  ;;  %v3927_v16 = vadd.f32 %v3926_v11, %v3844_v13  ;;  %5080 = vmatpush3.msra.mxu0 %v4113_v62  ;;  %5144 = vmatpush3.msra.mxu1 %v4180_v28  ;;  %v4174_v28 = vld [vmem:[#allocation13 + $0x1f0] sm:$0xff] }
 0x8d0   :  { %v6342_v34 = vld [vmem:[#allocation4 + $0x30] sm:$0xfc]  ;;  %5081 = vmatprep.subr.mxu0 %v4128_v23  ;;  %5145 = vmatprep.subr.mxu1 %v4195_v12 }
 0x8d1   :  { %3940 = vst [vmem:[#allocation4 + $0x48] sm:$0xf] %v3933_v21  ;;  %v3934_v46 = vmax.f32 %v3927_v16, 0.0  ;;  %3996 = vrot.lane.b32.xlu0 %v6342_v34, %s5653_s2  ;;  %5082 = vmatpush3.msra.mxu0 %v4112_v55  ;;  %v4158_v12 = vld [vmem:[#allocation13 + $0x170] sm:$0xff] }
 0x8d2   :  { %v6346_v15 = vld [vmem:[#allocation4 + $0x18] sm:$0xfc]  ;;  %5086 = vmatprep.subr.mxu0 %v4175_v25  ;;  %5146 = vmatpush3.msra.mxu1 %v4179_v0  ;;  %v4157_v25 = vld [vmem:[#allocation13 + $0x168] sm:$0xff]  ;;  %v4172_v0 = vld [vmem:[#allocation13 + $0x1e0] sm:$0xff] }
 0x8d3   :  { %3941 = vst [vmem:[#allocation4 + $0x58] sm:$0xf] %v3934_v46  ;;  %3998 = vrot.lane.b32.xlu1 %v6346_v15, %s5653_s2  ;;  %5147 = vmatprep.subr.mxu1 %v4194_v43  ;;  %v4156_v43 = vld [vmem:[#allocation13 + $0x160] sm:$0xff] }
 0x8d4   :  { %5148 = vmatpush3.msra.mxu1 %v4178_v18 }
 0x8d5   :  { %3965 = vrot.lane.b32.xlu0 %v3931_v4, %s5653_s2  ;;  %5149 = vmatprep.subr.mxu1 %v4193_v54 }
 0x8d6   :  { %5150 = vmatpush3.msra.mxu1 %v4177_v1  ;;  %v4171_v1 = vld [vmem:[#allocation13 + $0x1d8] sm:$0xff] }
 0x8d7   :  { %3967 = vrot.lane.b32.xlu1 %v3932_v39, %s5653_s2  ;;  %5151 = vmatprep.subr.mxu1 %v4192_v35  ;;  %v4255_v35 = vld [vmem:[#allocation13 + $0x478] sm:$0xff] }
 0x8d8   :  { %v6360_v24 = vld [vmem:[#allocation4 + $0x48] sm:$0xf]  ;;  %5152 = vmatpush3.msra.mxu1 %v4176_v53  ;;  %v4155_v53 = vld [vmem:[#allocation13 + $0x158] sm:$0xff] }
 0x8d9   :  { %3961 = vrot.lane.b32.xlu0 %v6330_v19, %s5653_s2  ;;  %v6365_v30 = vld [vmem:[#allocation4 + $0x48] sm:$0x3]  ;;  %5191 = vmatprep.subr.mxu1 %v4271_v44  ;;  %v4270_v44 = vld [vmem:[#allocation13 + $0x4f0] sm:$0xff] }
 0x8da   :  { %v3991_v57 = vld [vmem:[#allocation4 + $0x58] sm:$0xf] }
 0x8db   :  { %3963 = vrot.lane.b32.xlu1 %v6333_v22, %s5653_s2  ;;  %v3954_v17 = vld [vmem:[#allocation4 + $0x58] sm:$0x3] }
 0x8dd   :  { %4000 = vrot.lane.b32.xlu0 %v6360_v24, %s5653_s2 }
 0x8df   :  { %4002 = vrot.lane.b32.xlu1 %v3991_v57, %s5653_s2 }
 0x8e1   :  { %3969 = vrot.lane.b32.xlu0 %v6365_v30, %s5653_s2 }
 0x8e3   :  { %3971 = vrot.lane.b32.xlu1 %v3954_v17, %s5653_s2 }
 0x943   :  { %v3997_v51 = vpop.permute.xlu0 %3996 }
 0x945   :  { %v3999_v37 = vpop.permute.xlu1 %3998 }
 0x946   :  { %v4004_v38 = vsel %vm679_vm0, %v3997_v51, %v3999_v37  ;;  %v4011_v13 = vmax.f32 %v6346_v15, %v3999_v37  ;;  %v4170_v37 = vld [vmem:[#allocation13 + $0x1d0] sm:$0xff] }
 0x947   :  { %v3966_v45 = vpop.permute.xlu0 %3965  ;;  %v4010_v41 = vmax.f32 %v6342_v34, %v4004_v38  ;;  %v4254_v38 = vld [vmem:[#allocation13 + $0x470] sm:$0xff] }
 0x948   :  { %v4023_v21 = vrot.slane %v4011_v13, 2  ;;  %v4269_v13 = vld [vmem:[#allocation13 + $0x4e8] sm:$0xff] }
 0x949   :  { %v3968_v42 = vpop.permute.xlu1 %3967  ;;  %v4020_v31 = vrot.slane %v4010_v41, 2  ;;  %v4169_v41 = vld [vmem:[#allocation13 + $0x1c8] sm:$0xff] }
 0x94a   :  { %v3974_v40 = vsel %vm679_vm0, %v3966_v45, %v3968_v42  ;;  %v3985_v11 = vmax.f32 %v3932_v39, %v3968_v42  ;;  %v4154_v45 = vld [vmem:[#allocation13 + $0x150] sm:$0xff]  ;;  %v4253_v42 = vld [vmem:[#allocation13 + $0x468] sm:$0xff] }
 0x94b   :  { %v3984_v27 = vmax.f32 %v3931_v4, %v3974_v40  ;;  %v3962_v32 = vpop.permute.xlu0 %3961  ;;  %v4153_v40 = vld [vmem:[#allocation13 + $0x148] sm:$0xff] }
 0x94c   :  { %v4024_v16 = vrot.slane %v3985_v11, 2 }
 0x94d   :  { %v4021_v9 = vrot.slane %v3984_v27, 2  ;;  %v3964_v20 = vpop.permute.xlu1 %3963 }
 0x94e   :  { %v4025_v29 = vsel %vm800_vm3, %v4023_v21, %v4024_v16  ;;  %v3973_v46 = vsel %vm679_vm0, %v3962_v32, %v3964_v20  ;;  %v3983_v34 = vmax.f32 %v6333_v22, %v3964_v20  ;;  %v4252_v32 = vld [vmem:[#allocation13 + $0x460] sm:$0xff]  ;;  %v4151_v20 = vld [vmem:[#allocation13 + $0x138] sm:$0xff] }
 0x94f   :  { %v3982_v47 = vmax.f32 %v6330_v19, %v3973_v46  ;;  %v4022_v36 = vsel %vm800_vm3, %v4020_v31, %v4021_v9  ;;  %v4001_v39 = vpop.permute.xlu0 %4000  ;;  %v4152_v21 = vld [vmem:[#allocation13 + $0x140] sm:$0xff]  ;;  %v4167_v31 = vld [vmem:[#allocation13 + $0x1b8] sm:$0xff]  ;;  %v4166_v46 = vld [vmem:[#allocation13 + $0x1b0] sm:$0xff] }
 0x950   :  { %v4037_v48 = vmax.f32 %v3983_v34, %v4025_v29  ;;  %v4266_v29 = vld [vmem:[#allocation13 + $0x4d0] sm:$0xff] }
 0x951   :  { %v4036_v26 = vmax.f32 %v3982_v47, %v4022_v36  ;;  %v4003_v4 = vpop.permute.xlu1 %4002  ;;  %v4250_v34 = vld [vmem:[#allocation13 + $0x450] sm:$0xff]  ;;  %v4265_v36 = vld [vmem:[#allocation13 + $0x4c8] sm:$0xff] }
 0x952   :  { %4043 = vst.msk [vmem:[#allocation5 + $0x38] sm:$0xff] %vm679_vm0, %v4037_v48  ;;  %v4005_v15 = vsel %vm679_vm0, %v4001_v39, %v4003_v4  ;;  %v4013_v3 = vmax.f32 %v3991_v57, %v4003_v4  ;;  %v4173_v57 = vld [vmem:[#allocation13 + $0x1e8] sm:$0xff]  ;;  %v4150_v47 = vld [vmem:[#allocation13 + $0x130] sm:$0xff]  ;;  %v4264_v4 = vld [vmem:[#allocation13 + $0x4c0] sm:$0xff] }
 0x953   :  { %4042 = vst [vmem:[#allocation5 + $0x30] sm:$0xff] %v4036_v26  ;;  %v4012_v49 = vmax.f32 %v6360_v24, %v4005_v15  ;;  %v3970_v56 = vpop.permute.xlu0 %3969  ;;  %v4159_v24 = vld [vmem:[#allocation13 + $0x178] sm:$0xff]  ;;  %v4165_v39 = vld [vmem:[#allocation13 + $0x1a8] sm:$0xff]  ;;  %v4164_v15 = vld [vmem:[#allocation13 + $0x1a0] sm:$0xff] }
 0x954   :  { %v4028_v50 = vrot.slane %v4013_v3, 2  ;;  %v4249_v48 = vld [vmem:[#allocation13 + $0x448] sm:$0xff]  ;;  %v4248_v3 = vld [vmem:[#allocation13 + $0x440] sm:$0xff] }
 0x955   :  { %v4026_v52 = vrot.slane %v4012_v49, 2  ;;  %v3972_v22 = vpop.permute.xlu1 %3971  ;;  %v4149_v26 = vld [vmem:[#allocation13 + $0x128] sm:$0xff]  ;;  %v4148_v49 = vld [vmem:[#allocation13 + $0x120] sm:$0xff] }
 0x956   :  { %v4029_v19 = vsel %vm800_vm3, %v4024_v16, %v4028_v50  ;;  %v3975_v58 = vsel %vm679_vm0, %v3970_v56, %v3972_v22  ;;  %v3987_v61 = vmax.f32 %v3954_v17, %v3972_v22  ;;  %v4267_v16 = vld [vmem:[#allocation13 + $0x4d8] sm:$0xff] }
 0x957   :  { %v4027_v63 = vsel %vm800_vm3, %v4021_v9, %v4026_v52  ;;  %v4039_v2 = vmax.f32 %v3985_v11, %v4029_v19  ;;  %v3986_v7 = vmax.f32 %v6365_v30, %v3975_v58  ;;  %v4268_v11 = vld [vmem:[#allocation13 + $0x4e0] sm:$0xff]  ;;  %v4251_v9 = vld [vmem:[#allocation13 + $0x458] sm:$0xff]  ;;  %v4262_v19 = vld [vmem:[#allocation13 + $0x4b0] sm:$0xff] }
 0x958   :  { %v4038_v10 = vmax.f32 %v3984_v27, %v4027_v63  ;;  %v4041_v59 = vmax.f32 %v3987_v61, %v4028_v50  ;;  %v4168_v27 = vld [vmem:[#allocation13 + $0x1c0] sm:$0xff]  ;;  %v4263_v50 = vld [vmem:[#allocation13 + $0x4b8] sm:$0xff]  ;;  %v4162_v58 = vld [vmem:[#allocation13 + $0x190] sm:$0xff] }
 0x959   :  { %4045 = vst.msk [vmem:[#allocation5 + $0x48] sm:$0xff] %vm679_vm0, %v4039_v2  ;;  %v4040_v60 = vmax.f32 %v3986_v7, %v4026_v52  ;;  %v4163_v52 = vld [vmem:[#allocation13 + $0x198] sm:$0xff]  ;;  %v4246_v61 = vld [vmem:[#allocation13 + $0x430] sm:$0xff]  ;;  %v4261_v2 = vld [vmem:[#allocation13 + $0x4a8] sm:$0xff] }
 0x95a   :  { %4044 = vst [vmem:[#allocation5 + $0x40] sm:$0xff] %v4038_v10  ;;  %4047 = vst.msk [vmem:[#allocation5 + $0x58] sm:$0x3] %vm1726_vm6, %v4041_v59  ;;  %v4048_v6 = vld [vmem:[#allocation5 + $0x30] ss:$8 sm:$0x3] }
 0x95b   :  { %v6392_v62 = vld [vmem:[#allocation5 + $0x34] ss:$8 sm:$0x3]  ;;  %4046 = vst [vmem:[#allocation5 + $0x50] sm:$0x3] %v4040_v60  ;;  %v4061_v14 = vrot.slane %v4048_v6, %v5827_v5  ;;  %v4065_v23 = vrot.slane %v4048_v6, %v5829_v8  ;;  %v4161_v7 = vld [vmem:[#allocation13 + $0x188] sm:$0xff] }
 0x95c   :  { %v4076_v55 = vrot.slane %v6392_v62, %v5829_v8  ;;  %v4247_v56 = vld [vmem:[#allocation13 + $0x438] sm:$0xff]  ;;  %v4146_v63 = vld [vmem:[#allocation13 + $0x110] sm:$0xff]  ;;  %v4245_v10 = vld [vmem:[#allocation13 + $0x428] sm:$0xff] }
 0x95d   :  { %4337 = vmatprep.mubr.f32.mxu0 %v4065_v23  ;;  %v4147_v22 = vld [vmem:[#allocation13 + $0x118] sm:$0xff]  ;;  %v4145_v59 = vld [vmem:[#allocation13 + $0x108] sm:$0xff]  ;;  %v4260_v60 = vld [vmem:[#allocation13 + $0x4a0] sm:$0xff] }
 0x95e   :  { %4338 = vmatmul.mubr.f32.vlgmr.msra.gmra.mxu0 %v4061_v14  ;;  %v4160_v6 = vld [vmem:[#allocation13 + $0x180] sm:$0xff] }
 0x95f   :  { %5087 = vmatpush3.msra.mxu0 %v4159_v24  ;;  %4407 = vmatprep.mubr.f32.mxu0 %v4076_v55  ;;  %v4244_v14 = vld [vmem:[#allocation13 + $0x420] sm:$0xff]  ;;  %v4259_v24 = vld [vmem:[#allocation13 + $0x498] sm:$0xff]  ;;  %v4072_v55 = vrot.slane %v6392_v62, %v5827_v5  ;;  %v4257_v62 = vld [vmem:[#allocation13 + $0x488] sm:$0xff] }
 0x960   :  { %5088 = vmatprep.subr.mxu0 %v4174_v28  ;;  %v4144_v23 = vld [vmem:[#allocation13 + $0x100] sm:$0xff] }
 0x961   :  { %5089 = vmatpush3.msra.mxu0 %v4158_v12  ;;  %v4052_v30 = vld [vmem:[#allocation5 + $0x40] ss:$8 sm:$0x3]  ;;  %v6404_v28 = vld [vmem:[#allocation5 + $0x44] ss:$8 sm:$0x3] }
 0x962   :  { %5090 = vmatprep.subr.mxu0 %v4173_v57  ;;  %v4083_v18 = vrot.slane %v4052_v30, %v5827_v5  ;;  %v4087_v17 = vrot.slane %v4052_v30, %v5829_v8  ;;  %v6400_v54 = vld [vmem:[#allocation5 + $0x50] ss:$8 sm:$0x3]  ;;  %v4239_v12 = vld [vmem:[#allocation13 + $0x3f8] sm:$0xff] }
 0x963   :  { %5091 = vmatpush3.msra.mxu0 %v4157_v25  ;;  %v4109_v51 = vrot.slane %v6400_v54, %v5829_v8  ;;  %v4243_v57 = vld [vmem:[#allocation13 + $0x418] sm:$0xff]  ;;  %v4258_v30 = vld [vmem:[#allocation13 + $0x490] sm:$0xff] }
 0x964   :  { %5092 = vmatprep.subr.mxu0 %v4172_v0  ;;  %4477 = vmatprep.mubr.f32.mxu1 %v4087_v17  ;;  %v4223_v25 = vld [vmem:[#allocation13 + $0x378] sm:$0xff]  ;;  %v4098_v0 = vrot.slane %v6404_v28, %v5829_v8  ;;  %v4222_v17 = vld [vmem:[#allocation13 + $0x370] sm:$0xff]  ;;  %v4240_v8 = vld [vmem:[#allocation13 + $0x400] sm:$0xff] }
 0x965   :  { %5093 = vmatpush3.msra.mxu0 %v4156_v43  ;;  %4478 = vmatmul.mubr.f32.vlgmr.msra.gmra.mxu1 %v4083_v18  ;;  %v4238_v43 = vld [vmem:[#allocation13 + $0x3f0] sm:$0xff] }
 0x966   :  { %5094 = vmatprep.subr.mxu0 %v4171_v1  ;;  %5192 = vmatpush3.msra.mxu1 %v4255_v35  ;;  %v4242_v18 = vld [vmem:[#allocation13 + $0x410] sm:$0xff]  ;;  %v4237_v1 = vld [vmem:[#allocation13 + $0x3e8] sm:$0xff] }
 0x967   :  { %5095 = vmatpush3.msra.mxu0 %v4155_v53  ;;  %5193 = vmatprep.subr.mxu1 %v4270_v44  ;;  %v4241_v35 = vld [vmem:[#allocation13 + $0x408] sm:$0xff]  ;;  %v4256_v44 = vld [vmem:[#allocation13 + $0x480] sm:$0xff] }
 0x968   :  { %4617 = vmatprep.mubr.f32.mxu1 %v4109_v51  ;;  %5096 = vmatprep.subr.mxu0 %v4170_v37  ;;  %v4221_v53 = vld [vmem:[#allocation13 + $0x368] sm:$0xff]  ;;  %v4236_v51 = vld [vmem:[#allocation13 + $0x3e0] sm:$0xff] }
 0x969   :  { %5194 = vmatpush3.msra.mxu1 %v4254_v38  ;;  %5097 = vmatpush3.msra.mxu0 %v4154_v45  ;;  %v4220_v37 = vld [vmem:[#allocation13 + $0x360] sm:$0xff]  ;;  %v4235_v38 = vld [vmem:[#allocation13 + $0x3d8] sm:$0xff]  ;;  %v4105_v45 = vrot.slane %v6400_v54, %v5827_v5 }
 0x96a   :  { %5195 = vmatprep.subr.mxu1 %v4269_v13  ;;  %5098 = vmatprep.subr.mxu0 %v4169_v41  ;;  %v4219_v13 = vld [vmem:[#allocation13 + $0x358] sm:$0xff]  ;;  %v4234_v41 = vld [vmem:[#allocation13 + $0x3d0] sm:$0xff]  ;;  %v4232_v54 = vld [vmem:[#allocation13 + $0x3c0] sm:$0xff] }
 0x96b   :  { %5196 = vmatpush3.msra.mxu1 %v4253_v42  ;;  %5099 = vmatpush3.msra.mxu0 %v4153_v40  ;;  %v4218_v42 = vld [vmem:[#allocation13 + $0x350] sm:$0xff]  ;;  %v4233_v40 = vld [vmem:[#allocation13 + $0x3c8] sm:$0xff] }
 0x96c   :  { %5197 = vmatprep.subr.mxu1 %v4268_v11  ;;  %5100 = vmatprep.subr.mxu0 %v4168_v27  ;;  %v4217_v11 = vld [vmem:[#allocation13 + $0x348] sm:$0xff]  ;;  %v4216_v27 = vld [vmem:[#allocation13 + $0x340] sm:$0xff] }
 0x96d   :  { %5198 = vmatpush3.msra.mxu1 %v4252_v32  ;;  %5101 = vmatpush3.msra.mxu0 %v4152_v21  ;;  %v4231_v32 = vld [vmem:[#allocation13 + $0x3b8] sm:$0xff] }
 0x96e   :  { %5199 = vmatprep.subr.mxu1 %v4267_v16  ;;  %5102 = vmatprep.subr.mxu0 %v4167_v31  ;;  %v4215_v21 = vld [vmem:[#allocation13 + $0x338] sm:$0xff]  ;;  %v4230_v16 = vld [vmem:[#allocation13 + $0x3b0] sm:$0xff] }
 0x96f   :  { %5200 = vmatpush3.msra.mxu1 %v4251_v9  ;;  %5103 = vmatpush3.msra.mxu0 %v4151_v20  ;;  %v4214_v31 = vld [vmem:[#allocation13 + $0x330] sm:$0xff]  ;;  %v4229_v9 = vld [vmem:[#allocation13 + $0x3a8] sm:$0xff] }
 0x970   :  { %5201 = vmatprep.subr.mxu1 %v4266_v29  ;;  %5104 = vmatprep.subr.mxu0 %v4166_v46  ;;  %v4213_v20 = vld [vmem:[#allocation13 + $0x328] sm:$0xff]  ;;  %v4228_v29 = vld [vmem:[#allocation13 + $0x3a0] sm:$0xff] }
 0x971   :  { %5202 = vmatpush3.msra.mxu1 %v4250_v34  ;;  %5105 = vmatpush3.msra.mxu0 %v4150_v47  ;;  %v4212_v46 = vld [vmem:[#allocation13 + $0x320] sm:$0xff]  ;;  %v4227_v34 = vld [vmem:[#allocation13 + $0x398] sm:$0xff] }
 0x972   :  { %5203 = vmatprep.subr.mxu1 %v4265_v36  ;;  %5106 = vmatprep.subr.mxu0 %v4165_v39  ;;  %v4211_v47 = vld [vmem:[#allocation13 + $0x318] sm:$0xff]  ;;  %v4226_v36 = vld [vmem:[#allocation13 + $0x390] sm:$0xff] }
 0x973   :  { %5204 = vmatpush3.msra.mxu1 %v4249_v48  ;;  %5107 = vmatpush3.msra.mxu0 %v4149_v26  ;;  %v4210_v39 = vld [vmem:[#allocation13 + $0x310] sm:$0xff]  ;;  %v4225_v48 = vld [vmem:[#allocation13 + $0x388] sm:$0xff] }
 0x974   :  { %5205 = vmatprep.subr.mxu1 %v4264_v4  ;;  %5108 = vmatprep.subr.mxu0 %v4164_v15  ;;  %v4209_v26 = vld [vmem:[#allocation13 + $0x308] sm:$0xff]  ;;  %v4224_v4 = vld [vmem:[#allocation13 + $0x380] sm:$0xff] }
 0x975   :  { %5206 = vmatpush3.msra.mxu1 %v4248_v3  ;;  %5109 = vmatpush3.msra.mxu0 %v4148_v49  ;;  %v4208_v15 = vld [vmem:[#allocation13 + $0x300] sm:$0xff]  ;;  %v4094_v3 = vrot.slane %v6404_v28, %v5827_v5 }
 0x976   :  { %5207 = vmatprep.subr.mxu1 %v4263_v50  ;;  %5110 = vmatprep.subr.mxu0 %v4163_v52  ;;  %v4639_v49 = vld [vmem:[#allocation16 + $0x78] sm:$0xff]  ;;  %v4638_v50 = vld [vmem:[#allocation16 + $0x70] sm:$0xff]  ;;  %v4637_v52 = vld [vmem:[#allocation16 + $0x68] sm:$0xff] }
 0x977   :  { %5208 = vmatpush3.msra.mxu1 %v4247_v56  ;;  %5111 = vmatpush3.msra.mxu0 %v4147_v22  ;;  %v4636_v56 = vld [vmem:[#allocation16 + $0x60] sm:$0xff]  ;;  %v4635_v5 = vld [vmem:[#allocation16 + $0x58] sm:$0xff]  ;;  %v4634_v22 = vld [vmem:[#allocation16 + $0x50] sm:$0xff] }
 0x978   :  { %5209 = vmatprep.subr.mxu1 %v4262_v19  ;;  %5112 = vmatprep.subr.mxu0 %v4162_v58  ;;  %v4633_v19 = vld [vmem:[#allocation16 + $0x48] sm:$0xff]  ;;  %v4632_v58 = vld [vmem:[#allocation16 + $0x40] sm:$0xff] }
 0x979   :  { %5210 = vmatpush3.msra.mxu1 %v4246_v61  ;;  %5113 = vmatpush3.msra.mxu0 %v4146_v63  ;;  %v4631_v61 = vld [vmem:[#allocation16 + $0x38] sm:$0xff]  ;;  %v4630_v63 = vld [vmem:[#allocation16 + $0x30] sm:$0xff]  ;;  %v4724_v28 = vld [vmem:[#allocation19 + $0x60] sm:$0xff] }
 0x97a   :  { %5211 = vmatprep.subr.mxu1 %v4261_v2  ;;  %5114 = vmatprep.subr.mxu0 %v4161_v7  ;;  %v4629_v2 = vld [vmem:[#allocation16 + $0x28] sm:$0xff]  ;;  %v4628_v7 = vld [vmem:[#allocation16 + $0x20] sm:$0xff] }
 0x97b   :  { %5212 = vmatpush3.msra.mxu1 %v4245_v10  ;;  %5115 = vmatpush3.msra.mxu0 %v4145_v59  ;;  %v4627_v10 = vld [vmem:[#allocation16 + $0x18] sm:$0xff]  ;;  %v4626_v59 = vld [vmem:[#allocation16 + $0x10] sm:$0xff] }
 0x97c   :  { %5213 = vmatprep.subr.mxu1 %v4260_v60  ;;  %5116 = vmatprep.subr.mxu0 %v4160_v6  ;;  %v4625_v60 = vld [vmem:[#allocation16 + $0x8] sm:$0xff]  ;;  %v4624_v6 = vld [vmem:[#allocation16] sm:$0xff] }
 0x97d   :  { %5214 = vmatpush3.msra.mxu1 %v4244_v14  ;;  %5117 = vmatpush3.msra.mxu0 %v4144_v23  ;;  %v4727_v14 = vld [vmem:[#allocation19 + $0x78] sm:$0xff]  ;;  %v4726_v23 = vld [vmem:[#allocation19 + $0x70] sm:$0xff] }
 0x97e   :  { %5215 = vmatprep.subr.mxu1 %v4259_v24  ;;  %4408 = vmatmul.mubr.f32.vlgmr.msra.gmra.mxu0 %v4072_v55  ;;  %v4725_v24 = vld [vmem:[#allocation19 + $0x68] sm:$0xff]  ;;  %v4723_v55 = vld [vmem:[#allocation19 + $0x58] sm:$0xff] }
 0x97f   :  { %5156 = vmatprep.subr.mxu0 %v4239_v12  ;;  %5216 = vmatpush3.msra.mxu1 %v4243_v57  ;;  %v4722_v12 = vld [vmem:[#allocation19 + $0x50] sm:$0xff]  ;;  %v4721_v57 = vld [vmem:[#allocation19 + $0x48] sm:$0xff] }
 0x980   :  { %5157 = vmatpush3.msra.mxu0 %v4223_v25  ;;  %4547 = vmatprep.mubr.f32.mxu0 %v4098_v0  ;;  %v4720_v25 = vld [vmem:[#allocation19 + $0x40] sm:$0xff]  ;;  %v4719_v0 = vld [vmem:[#allocation19 + $0x38] sm:$0xff] }
 0x981   :  { %5217 = vmatprep.subr.mxu1 %v4258_v30  ;;  %5158 = vmatprep.subr.mxu0 %v4238_v43  ;;  %v4718_v30 = vld [vmem:[#allocation19 + $0x30] sm:$0xff]  ;;  %v4717_v43 = vld [vmem:[#allocation19 + $0x28] sm:$0xff] }
 0x982   :  { %5218 = vmatpush3.msra.mxu1 %v4242_v18  ;;  %5159 = vmatpush3.msra.mxu0 %v4222_v17  ;;  %v4716_v18 = vld [vmem:[#allocation19 + $0x20] sm:$0xff]  ;;  %v4715_v17 = vld [vmem:[#allocation19 + $0x18] sm:$0xff] }
 0x983   :  { %5219 = vmatprep.subr.mxu1 %v4257_v62  ;;  %5160 = vmatprep.subr.mxu0 %v4237_v1 }
 0x984   :  { %5220 = vmatpush3.msra.mxu1 %v4241_v35  ;;  %5161 = vmatpush3.msra.mxu0 %v4221_v53 }
 0x985   :  { %5221 = vmatprep.subr.mxu1 %v4256_v44  ;;  %5162 = vmatprep.subr.mxu0 %v4236_v51 }
 0x986   :  { %5222 = vmatpush3.msra.mxu1 %v4240_v8  ;;  %5163 = vmatpush3.msra.mxu0 %v4220_v37  ;;  %v4272_v8 = vld [vmem:[#allocation14] sm:$0x1] }
 0x987   :  { %4618 = vmatmul.mubr.f32.vlgmr.msra.gmra.mxu1 %v4105_v45  ;;  %5164 = vmatprep.subr.mxu0 %v4235_v38 }
 0x988   :  { %5165 = vmatpush3.msra.mxu0 %v4219_v13  ;;  %5365 = vmatprep.subr.mxu1 %v6068_v33 }
 0x989   :  { %5166 = vmatprep.subr.mxu0 %v4234_v41  ;;  %5397 = vmatprep.mubr.msk.f32.mxu1 %vm5654_vm7, %v6068_v33 }
 0x98a   :  { %5167 = vmatpush3.msra.mxu0 %v4218_v42  ;;  %5366 = vmatpush3.msra.mxu1 %v4727_v14 }
 0x98b   :  { %5168 = vmatprep.subr.mxu0 %v4233_v40  ;;  %5367 = vmatprep.subr.mxu1 %v6068_v33 }
 0x98c   :  { %5169 = vmatpush3.msra.mxu0 %v4217_v11  ;;  %5368 = vmatpush3.msra.mxu1 %v4726_v23 }
 0x98d   :  { %5170 = vmatprep.subr.mxu0 %v4232_v54  ;;  %5369 = vmatprep.subr.mxu1 %v6068_v33 }
 0x98e   :  { %5171 = vmatpush3.msra.mxu0 %v4216_v27  ;;  %5370 = vmatpush3.msra.mxu1 %v4725_v24 }
 0x98f   :  { %5172 = vmatprep.subr.mxu0 %v4231_v32  ;;  %5371 = vmatprep.subr.mxu1 %v6068_v33 }
 0x990   :  { %5173 = vmatpush3.msra.mxu0 %v4215_v21  ;;  %5372 = vmatpush3.msra.mxu1 %v4724_v28 }
 0x991   :  { %5174 = vmatprep.subr.mxu0 %v4230_v16  ;;  %5373 = vmatprep.subr.mxu1 %v6068_v33 }
 0x992   :  { %5175 = vmatpush3.msra.mxu0 %v4214_v31  ;;  %5374 = vmatpush3.msra.mxu1 %v4723_v55 }
 0x993   :  { %5176 = vmatprep.subr.mxu0 %v4229_v9  ;;  %5375 = vmatprep.subr.mxu1 %v6068_v33 }
 0x994   :  { %5177 = vmatpush3.msra.mxu0 %v4213_v20  ;;  %5376 = vmatpush3.msra.mxu1 %v4722_v12  ;;  %v4714_v20 = vld [vmem:[#allocation19 + $0x10] sm:$0xff] }
 0x995   :  { %5178 = vmatprep.subr.mxu0 %v4228_v29  ;;  %5377 = vmatprep.subr.mxu1 %v6068_v33  ;;  %v4713_v29 = vld [vmem:[#allocation19 + $0x8] sm:$0xff] }
 0x996   :  { %5179 = vmatpush3.msra.mxu0 %v4212_v46  ;;  %5378 = vmatpush3.msra.mxu1 %v4721_v57  ;;  %v4712_v46 = vld [vmem:[#allocation19] sm:$0xff] }
 0x997   :  { %5180 = vmatprep.subr.mxu0 %v4227_v34  ;;  %5379 = vmatprep.subr.mxu1 %v6068_v33  ;;  %v4640_v34 = vld [vmem:[#allocation17] sm:$0x1] }
 0x998   :  { %5181 = vmatpush3.msra.mxu0 %v4211_v47  ;;  %5380 = vmatpush3.msra.mxu1 %v4720_v25 }
 0x999   :  { %5182 = vmatprep.subr.mxu0 %v4226_v36  ;;  %5381 = vmatprep.subr.mxu1 %v6068_v33 }
 0x99a   :  { %5183 = vmatpush3.msra.mxu0 %v4210_v39  ;;  %5382 = vmatpush3.msra.mxu1 %v4719_v0 }
 0x99b   :  { %5184 = vmatprep.subr.mxu0 %v4225_v48  ;;  %5383 = vmatprep.subr.mxu1 %v6068_v33 }
 0x99c   :  { %5185 = vmatpush3.msra.mxu0 %v4209_v26  ;;  %5384 = vmatpush3.msra.mxu1 %v4718_v30  ;;  %v4728_v26 = vld [vmem:[#allocation20] sm:$0x1] }
 0x99d   :  { %5186 = vmatprep.subr.mxu0 %v4224_v4  ;;  %5385 = vmatprep.subr.mxu1 %v6068_v33 }
 0x99e   :  { %5187 = vmatpush3.msra.mxu0 %v4208_v15  ;;  %5386 = vmatpush3.msra.mxu1 %v4717_v43 }
 0x99f   :  { %4548 = vmatmul.mubr.f32.vlgmr.msra.gmra.mxu0 %v4094_v3  ;;  %5330 = vmatprep.subr.mxu0 %v6068_v33 }
 0x9a0   :  { %5362 = vmatprep.mubr.msk.f32.mxu0 %vm5654_vm7, %v6068_v33  ;;  %5331 = vmatpush3.msra.mxu0 %v4639_v49 }
 0x9a1   :  { %5332 = vmatprep.subr.mxu0 %v6068_v33  ;;  %5387 = vmatprep.subr.mxu1 %v6068_v33 }
 0x9a2   :  { %5333 = vmatpush3.msra.mxu0 %v4638_v50  ;;  %5388 = vmatpush3.msra.mxu1 %v4716_v18 }
 0x9a3   :  { %5334 = vmatprep.subr.mxu0 %v6068_v33  ;;  %5389 = vmatprep.subr.mxu1 %v6068_v33 }
 0x9a4   :  { %5335 = vmatpush3.msra.mxu0 %v4637_v52  ;;  %5390 = vmatpush3.msra.mxu1 %v4715_v17 }
 0x9a5   :  { %5336 = vmatprep.subr.mxu0 %v6068_v33  ;;  %5391 = vmatprep.subr.mxu1 %v6068_v33 }
 0x9a6   :  { %5337 = vmatpush3.msra.mxu0 %v4636_v56  ;;  %5392 = vmatpush3.msra.mxu1 %v4714_v20 }
 0x9a7   :  { %5338 = vmatprep.subr.mxu0 %v6068_v33  ;;  %5393 = vmatprep.subr.mxu1 %v6068_v33 }
 0x9a8   :  { %5339 = vmatpush3.msra.mxu0 %v4635_v5  ;;  %5394 = vmatpush3.msra.mxu1 %v4713_v29 }
 0x9a9   :  { %5340 = vmatprep.subr.mxu0 %v6068_v33  ;;  %5395 = vmatprep.subr.mxu1 %v6068_v33 }
 0x9aa   :  { %5341 = vmatpush3.msra.mxu0 %v4634_v22  ;;  %5396 = vmatpush3.msra.mxu1 %v4712_v46 }
 0x9ab   :  { %5342 = vmatprep.subr.mxu0 %v6068_v33 }
 0x9ac   :  { %5343 = vmatpush3.msra.mxu0 %v4633_v19 }
 0x9ad   :  { %5344 = vmatprep.subr.mxu0 %v6068_v33 }
 0x9ae   :  { %5345 = vmatpush3.msra.mxu0 %v4632_v58 }
 0x9af   :  { %5346 = vmatprep.subr.mxu0 %v6068_v33 }
 0x9b0   :  { %5347 = vmatpush3.msra.mxu0 %v4631_v61 }
 0x9b1   :  { %5348 = vmatprep.subr.mxu0 %v6068_v33 }
 0x9b2   :  { %5349 = vmatpush3.msra.mxu0 %v4630_v63 }
 0x9b3   :  { %5350 = vmatprep.subr.mxu0 %v6068_v33 }
 0x9b4   :  { %5351 = vmatpush3.msra.mxu0 %v4629_v2 }
 0x9b5   :  { %5352 = vmatprep.subr.mxu0 %v6068_v33 }
 0x9b6   :  { %5353 = vmatpush3.msra.mxu0 %v4628_v7 }
 0x9b7   :  { %5354 = vmatprep.subr.mxu0 %v6068_v33 }
 0x9b8   :  { %5355 = vmatpush3.msra.mxu0 %v4627_v10 }
 0x9b9   :  { %5356 = vmatprep.subr.mxu0 %v6068_v33 }
 0x9ba   :  { %5357 = vmatpush3.msra.mxu0 %v4626_v59 }
 0x9bb   :  { %5358 = vmatprep.subr.mxu0 %v6068_v33 }
 0x9bc   :  { %5359 = vmatpush3.msra.mxu0 %v4625_v60 }
 0x9bd   :  { %5360 = vmatprep.subr.mxu0 %v6068_v33 }
 0x9be   :  { %5361 = vmatpush3.msra.mxu0 %v4624_v6 }
 0xa1e   :  { %v5083_v62 = vpop.f32.mrf.mxu0 }
 0xa20   :  { %v5084_v1 = vpop.f32.mrf.mxu0 }
 0xa21   :  { %v5085_v51 = vadd.f32 %v5084_v1, %v5083_v62 }
 0xa23   :  { %v4340_v45 = vadd.f32 %v5085_v51, %v4272_v8 }
 0xa25   :  { %v5153_v53 = vpop.f32.mrf.mxu1 }
 0xa27   :  { %v5154_v38 = vpop.f32.mrf.mxu1 }
 0xa28   :  { %v5155_v40 = vadd.f32 %v5154_v38, %v5153_v53 }
 0xa3e   :  { %v5118_v35 = vpop.f32.mrf.mxu0 }
 0xa40   :  { %v5119_v44 = vpop.f32.mrf.mxu0 }
 0xa41   :  { %v5120_v37 = vadd.f32 %v5119_v44, %v5118_v35 }
 0xa43   :  { %v4410_v41 = vadd.f32 %v5120_v37, %v4340_v45 }
 0xa45   :  { %v4480_v27 = vadd.f32 %v5155_v40, %v4410_v41 }
 0xa47   :  { %v5223_v13 = vpop.f32.mrf.mxu1 }
 0xa49   :  { %v5224_v11 = vpop.f32.mrf.mxu1 }
 0xa4a   :  { %v5225_v21 = vadd.f32 %v5224_v11, %v5223_v13 }
 0xa5f   :  { %v5188_v42 = vpop.f32.mrf.mxu0 }
 0xa61   :  { %v5189_v54 = vpop.f32.mrf.mxu0 }
 0xa62   :  { %v5190_v32 = vadd.f32 %v5189_v54, %v5188_v42 }
 0xa64   :  { %v4550_v16 = vadd.f32 %v5190_v32, %v4480_v27 }
 0xa66   :  { %v4620_v31 = vadd.f32 %v5225_v21, %v4550_v16 }
 0xa68   :  { %v4623_v9 = vmax.f32 %v4620_v31, 0.0 }
 0xa6a   :  { %5363 = vmatmul.mubr.f32.vlgmr.msra.gmra.mxu0 %v4623_v9 }
 0xb2a   :  { %v4707_v47 = vpop.f32.mrf.mxu0 }
 0xb2b   :  { %v4708_v36 = vadd.f32 %v4707_v47, %v4640_v34 }
 0xb2c   :  { %v5364_v39 = vpop.f32.mrf.mxu0 }
 0xb2d   :  { %v4711_v48 = vmax.f32 %v4708_v36, 0.0 }
 0xb2f   :  { %5398 = vmatmul.mubr.f32.vlgmr.msra.gmra.mxu1 %v4711_v48 }
 0xbef   :  { %v4795_v4 = vpop.f32.mrf.mxu1 }
 0xbf0   :  { %v4796_v15 = vadd.f32 %v4795_v4, %v4728_v26 }
 0xbf1   :  { %v5399_v3 = vpop.f32.mrf.mxu1 }
 0xbf2   :  { %v4841_v49 = vmul.f32 -1.442695, %v4796_v15 }
 0xbf4   :  { %5421 = vpow2.f32 %v4841_v49 }
 0xc01   :  { %v5422_v50 = vpop.eup %5421 }
 0xc02   :  { %v4802_v52 = vadd.f32 1.0, %v5422_v50 }
 0xc04   :  { %5423 = vrcp.f32 %v4802_v52 }
 0xc11   :  { %v5424_v56 = vpop.eup %5423 }
 0xc12   :  { %4805 = vst [vmem:[%s6464_s11 + $0x1] sm:$0x1] %v5424_v56 }
 0xc13   :  { %4810 = vsyncpa [#allocation7], 1 }
 0xc14   :  { %4811 = vsyncpa [#allocation9], 1 }
 0xc15   :  { %4812 = vsyncpa [#allocation12], 1 }
 0xc16   :  { %4813 = vsyncpa [#allocation15], 1 }
 0xc17   :  { %4814 = vsyncpa [#allocation18], 1 }
 0xc18   :  { %4815 = vsyncpa [#allocation21], 1 }

</bundles_post_ra>
